<compile_context>
chip_gen: v7x
topology: tpu7x:2x2x1
jax: 0.10.0
libtpu: 0.0.40
codegen_flags: <defaults>
</compile_context>

<pallas_src>
import math
import jax
import jax.numpy as jnp
import numpy as np
from jax.experimental import pallas as pl
from jax.experimental.pallas import tpu as pltpu

D_MODEL = 256
N_HEADS = 4
HEAD_DIM = D_MODEL // N_HEADS
D_FF = 1024
N_LAYERS = 4
LN_EPS_EMB = 1e-12   # BERT embedding LayerNorm eps
LN_EPS_TX = 1e-5     # nn.TransformerEncoderLayer default layer_norm_eps
NEG_INF = -1e30      # additive key-padding mask value (finite to avoid NaN on TPU)


def _layernorm(x, gamma, beta, eps):
    mu = jnp.mean(x, axis=-1, keepdims=True)
    var = jnp.mean(jnp.square(x - mu), axis=-1, keepdims=True)
    return (x - mu) * jax.lax.rsqrt(var + eps) * gamma + beta


# ---------------------------------------------------------------------------
# Fused Pallas kernel: embedding LayerNorm + all N_LAYERS encoder layers.
#   grid = (BT,), one grid step per batch tile; layers are a static in-kernel loop.
#   Weight refs hold ALL layers (constant block index -> DMA'd once per core).
# ---------------------------------------------------------------------------
def fused_encoder_kernel(x_ref, mask_ref, embln_ref,
                         wqkv_ref, wo_ref, w1_ref, w2_ref, pslab_ref,
                         o_ref):
    M = x_ref.shape[0]
    TB, S = mask_ref.shape
    bf16 = jnp.bfloat16
    scale = 1.0 / math.sqrt(HEAD_DIM)

    # BERT embedding LayerNorm prologue (activation stays in registers/VMEM after this).
    x = _layernorm(x_ref[...].astype(jnp.float32),
                   embln_ref[0:1, :], embln_ref[1:2, :], LN_EPS_EMB)        # (M, D)

    # Additive key-padding mask, broadcast over query positions: (TB, 1, S).
    mask_add = mask_ref[...][:, None, :]

    for l in range(N_LAYERS):                                               # static unroll (4 layers)
        slab = pslab_ref[l]                                                 # (8, 1024) f32, static slices below
        bqkv = slab[0:1, 0:3 * D_MODEL]
        bo = slab[0:1, 3 * D_MODEL:4 * D_MODEL]
        b1 = slab[1:2, :]
        b2 = slab[2:3, 0:D_MODEL]
        g1 = slab[2:3, D_MODEL:2 * D_MODEL]
        be1 = slab[2:3, 2 * D_MODEL:3 * D_MODEL]
        g2 = slab[2:3, 3 * D_MODEL:4 * D_MODEL]
        be2 = slab[3:4, 0:D_MODEL]

        # Fused QKV projection: bf16 x bf16 on the MXU, f32 accumulation.
        x_lo = x.astype(bf16)
        qkv = jnp.dot(x_lo, wqkv_ref[l], preferred_element_type=jnp.float32) + bqkv
        q = qkv[:, 0:D_MODEL] * scale
        k = qkv[:, D_MODEL:2 * D_MODEL]
        v = qkv[:, 2 * D_MODEL:3 * D_MODEL]

        # Per-head, per-sequence batched attention: (TB, S, S) scores — no cross-batch waste.
        heads = []
        for h in range(N_HEADS):                                            # static unroll
            sl = slice(h * HEAD_DIM, (h + 1) * HEAD_DIM)
            qh = q[:, sl].reshape(TB, S, HEAD_DIM).astype(bf16)
            kh = k[:, sl].reshape(TB, S, HEAD_DIM).astype(bf16)
            vh = v[:, sl].reshape(TB, S, HEAD_DIM).astype(bf16)
            scores = jnp.einsum('bqd,bkd->bqk', qh, kh,
                                preferred_element_type=jnp.float32) + mask_add
            scores = scores - jnp.max(scores, axis=-1, keepdims=True)
            p = jnp.exp(scores)
            inv = pl.reciprocal(jnp.sum(p, axis=-1, keepdims=True), approx=True)
            pv = jnp.einsum('bqk,bkd->bqd', p.astype(bf16), vh,
                            preferred_element_type=jnp.float32)
            heads.append((pv * inv).reshape(M, HEAD_DIM))

        # Single full-K output projection (no per-head accumulation).
        attn = jnp.concatenate(heads, axis=-1)                              # (M, D)
        attn = jnp.dot(attn.astype(bf16), wo_ref[l],
                       preferred_element_type=jnp.float32) + bo

        # Post-norm residual block 1.
        y = _layernorm(x + attn, g1, be1, LN_EPS_TX)

        # Feed-forward (relu) + post-norm residual block 2.
        h1 = jnp.maximum(jnp.dot(y.astype(bf16), w1_ref[l],
                                 preferred_element_type=jnp.float32) + b1, 0.0)
        ff = jnp.dot(h1.astype(bf16), w2_ref[l],
                     preferred_element_type=jnp.float32) + b2
        x = _layernorm(y + ff, g2, be2, LN_EPS_TX)

    o_ref[...] = x


# ---------------------------------------------------------------------------
# Wrapper
# ---------------------------------------------------------------------------
def _pick_batch_tile(B, S, max_rows=512):
    """Fold batch rows into the matmul M dimension (fill the MXU) while keeping
    >= 2 parallel batch tiles when B >= 2 so both v7x TensorCores get work."""
    tb_cap = max(1, max_rows // S)
    tb = min(tb_cap, max(B // 2, 1))
    while B % tb:                               # need an exact divisor of B
        tb -= 1
    return max(tb, 1)


def _pack_param_slab(params):
    """Pack all per-layer biases + LayerNorm params into one (N_LAYERS, 8, D_FF) f32 slab.
    Row/lane layout (all offsets are multiples of 128 lanes):
      row 0: [bqkv(768) | bo(256)]
      row 1: [b1(1024)]
      row 2: [b2(256) | ln1_g(256) | ln1_b(256) | ln2_g(256)]
      row 3: [ln2_b(256) | zeros(768)]
    """
    L = N_LAYERS
    r = lambda kname: params[kname].reshape(L, -1).astype(jnp.float32)
    row0 = jnp.concatenate([r('bqkv'), r('bo')], axis=-1)
    row1 = r('b1')
    row2 = jnp.concatenate([r('b2'), r('ln1_g'), r('ln1_b'), r('ln2_g')], axis=-1)
    row3 = jnp.concatenate([r('ln2_b'), jnp.zeros((L, 3 * D_MODEL), jnp.float32)], axis=-1)
    rows = jnp.stack([row0, row1, row2, row3], axis=1)                      # (L, 4, D_FF)
    return jnp.pad(rows, ((0, 0), (0, 4), (0, 0)))                          # (L, 8, D_FF)


def text_encoder_forward(token_ids, attention_mask, params, batch_tile=None):
    B, S0 = token_ids.shape
    D = D_MODEL

    # Embedding lookup (gather) + adds stay in plain JAX (XLA fuses them);
    # the LayerNorm rides inside the fused kernel as the prologue.
    emb = (jnp.take(params['word_emb'], token_ids, axis=0)
           + params['pos_emb'][:S0][None, :, :]
           + params['type_emb'][0][None, None, :])

    if attention_mask is None:
        attention_mask = jnp.ones((B, S0), jnp.int32)

    # Pad S to a multiple of 8 so the (M, dh) <-> (TB, S, dh) reshapes inside the kernel
    # split the sublane axis cleanly; padded keys are masked, padded rows discarded.
    S = ((S0 + 7) // 8) * 8
    if S != S0:
        emb = jnp.pad(emb, ((0, 0), (0, S - S0), (0, 0)))
        attention_mask = jnp.pad(attention_mask, ((0, 0), (0, S - S0)))

    TB = _pick_batch_tile(B, S) if batch_tile is None else batch_tile
    assert B % TB == 0
    BT, M = B // TB, TB * S

    x = emb.reshape(BT, M, D).astype(jnp.float32)                           # lane-dense activation slab
    mask_add = jnp.where(attention_mask == 0, NEG_INF, 0.0).astype(jnp.float32).reshape(BT, TB, S)
    embln = jnp.concatenate([params['emb_ln_g'], params['emb_ln_b']], axis=0)   # (2, D)
    pslab = _pack_param_slab(params)

    # Full-array blocks with a constant index_map -> DMA'd once per core, grid-resident.
    def full(arr):
        return pl.BlockSpec(arr.shape, lambda b: (0,) * arr.ndim)

    out = pl.pallas_call(
        fused_encoder_kernel,
        out_shape=jax.ShapeDtypeStruct((BT, M, D), jnp.float32),
        grid=(BT,),
        in_specs=[pl.BlockSpec((None, M, D), lambda b: (b, 0, 0)),          # embeddings
                  pl.BlockSpec((None, TB, S), lambda b: (b, 0, 0)),         # key-padding mask (tiny)
                  full(embln),                                              # emb LN gamma/beta
                  full(params['wqkv']), full(params['wo']),                 # stacked bf16 weights
                  full(params['w1']), full(params['w2']),
                  full(pslab)],                                             # packed bias/LN slab
        out_specs=pl.BlockSpec((None, M, D), lambda b: (b, 0, 0)),
        compiler_params=pltpu.CompilerParams(
            dimension_semantics=("parallel",),
            vmem_limit_bytes=48 * 1024 * 1024),
    )(x, mask_add, embln, params['wqkv'], params['wo'], params['w1'], params['w2'], pslab)

    return out.reshape(B, S, D)[:, :S0]


# ---------------------------------------------------------------------------
# Deterministic synthetic parameters + pure-JAX reference
# ---------------------------------------------------------------------------
def init_params(key, vocab_size, max_pos):
    def nrm(k, shape, dtype=jnp.float32):
        return (0.02 * jax.random.normal(k, shape, jnp.float32)).astype(dtype)

    keys = iter(jax.random.split(key, 3 + 12 * N_LAYERS))
    L = N_LAYERS
    params = {
        'word_emb': nrm(next(keys), (vocab_size, D_MODEL)),
        'pos_emb': nrm(next(keys), (max_pos, D_MODEL)),
        'type_emb': nrm(next(keys), (2, D_MODEL)),
        'emb_ln_g': jnp.ones((1, D_MODEL), jnp.float32),
        'emb_ln_b': jnp.zeros((1, D_MODEL), jnp.float32),
    }
    # Big matrices in bf16 (halves weight HBM/VMEM); biases / LN params in f32.
    params['wqkv'] = jnp.stack([nrm(next(keys), (D_MODEL, 3 * D_MODEL), jnp.bfloat16) for _ in range(L)])
    params['wo'] = jnp.stack([nrm(next(keys), (D_MODEL, D_MODEL), jnp.bfloat16) for _ in range(L)])
    params['w1'] = jnp.stack([nrm(next(keys), (D_MODEL, D_FF), jnp.bfloat16) for _ in range(L)])
    params['w2'] = jnp.stack([nrm(next(keys), (D_FF, D_MODEL), jnp.bfloat16) for _ in range(L)])
    params['bqkv'] = jnp.stack([nrm(next(keys), (1, 3 * D_MODEL)) for _ in range(L)])
    params['bo'] = jnp.stack([nrm(next(keys), (1, D_MODEL)) for _ in range(L)])
    params['b1'] = jnp.stack([nrm(next(keys), (1, D_FF)) for _ in range(L)])
    params['b2'] = jnp.stack([nrm(next(keys), (1, D_MODEL)) for _ in range(L)])
    params['ln1_g'] = jnp.stack([1.0 + nrm(next(keys), (1, D_MODEL)) for _ in range(L)])
    params['ln1_b'] = jnp.stack([nrm(next(keys), (1, D_MODEL)) for _ in range(L)])
    params['ln2_g'] = jnp.stack([1.0 + nrm(next(keys), (1, D_MODEL)) for _ in range(L)])
    params['ln2_b'] = jnp.stack([nrm(next(keys), (1, D_MODEL)) for _ in range(L)])
    return params


def reference_forward(token_ids, attention_mask, params):
    """Pure-JAX reference mirroring the kernel's precision choices
    (bf16 matmul inputs everywhere, f32 accumulation), so tolerances stay tight."""
    B, S = token_ids.shape
    bf16 = jnp.bfloat16
    emb = (params['word_emb'][token_ids]
           + params['pos_emb'][:S][None]
           + params['type_emb'][0][None, None])
    x = _layernorm(emb, params['emb_ln_g'], params['emb_ln_b'], LN_EPS_EMB)
    mask_add = jnp.where(attention_mask == 0, NEG_INF, 0.0).astype(jnp.float32)  # (B, S)
    scale = 1.0 / math.sqrt(HEAD_DIM)
    for l in range(N_LAYERS):
        qkv = jnp.einsum('bsd,df->bsf', x.astype(bf16), params['wqkv'][l],
                         preferred_element_type=jnp.float32) + params['bqkv'][l]
        q, k, v = jnp.split(qkv, 3, axis=-1)

        def heads(t):
            return t.reshape(B, S, N_HEADS, HEAD_DIM).transpose(0, 2, 1, 3)

        qh, kh, vh = heads(q * scale), heads(k), heads(v)
        scores = jnp.einsum('bhqd,bhkd->bhqk', qh.astype(bf16), kh.astype(bf16),
                            preferred_element_type=jnp.float32) + mask_add[:, None, None, :]
        scores = scores - jnp.max(scores, axis=-1, keepdims=True)
        p = jnp.exp(scores)
        p = p / jnp.sum(p, axis=-1, keepdims=True)
        attn = jnp.einsum('bhqk,bhkd->bhqd', p.astype(bf16), vh.astype(bf16),
                          preferred_element_type=jnp.float32)
        attn = attn.transpose(0, 2, 1, 3).reshape(B, S, D_MODEL)
        attn = jnp.einsum('bsd,df->bsf', attn.astype(bf16), params['wo'][l],
                          preferred_element_type=jnp.float32) + params['bo'][l]
        y = _layernorm(x + attn, params['ln1_g'][l], params['ln1_b'][l], LN_EPS_TX)
        h1 = jnp.maximum(jnp.einsum('bsd,df->bsf', y.astype(bf16), params['w1'][l],
                                    preferred_element_type=jnp.float32) + params['b1'][l], 0.0)
        ff = jnp.einsum('bsf,fd->bsd', h1.astype(bf16), params['w2'][l],
                        preferred_element_type=jnp.float32) + params['b2'][l]
        x = _layernorm(y + ff, params['ln2_g'][l], params['ln2_b'][l], LN_EPS_TX)
    return x


# TODO(synk): dropout layers (embeddings + encoder layers) are identity in eval mode and omitted.

if __name__ == "__main__":
    B, S = 2, 8
    VOCAB, MAX_POS = 50, 32

    key = jax.random.PRNGKey(0)
    k_tok, k_params = jax.random.split(key)
    token_ids = jax.random.randint(k_tok, (B, S), 0, VOCAB, dtype=jnp.int32)
    attention_mask = jnp.array([[1, 1, 1, 1, 1, 1, 1, 1],
                                [1, 1, 1, 1, 1, 0, 0, 0]], dtype=jnp.int32)

    params = init_params(k_params, VOCAB, MAX_POS)

    fwd = jax.jit(text_encoder_forward)
    out = jax.block_until_ready(fwd(token_ids, attention_mask, params))

    ref = reference_forward(token_ids, attention_mask, params)
    # bf16 matmul inputs + approximate softmax reciprocal -> modest tolerance.
    np.testing.assert_allclose(np.asarray(out), np.asarray(ref), rtol=2e-2, atol=2e-2)

    print("KERNEL_OK")
</pallas_src>

<mosaic_0001>
module attributes {stable_mosaic.version = 11 : i64} {
  func.func @fused_encoder_kernel(%arg0: i32, %arg1: memref<1x8x256xf32, #tpu.memory_space<vmem>>, %arg2: memref<1x1x8xf32, #tpu.memory_space<vmem>>, %arg3: memref<2x256xf32, #tpu.memory_space<vmem>>, %arg4: memref<4x256x768xbf16, #tpu.memory_space<vmem>>, %arg5: memref<4x256x256xbf16, #tpu.memory_space<vmem>>, %arg6: memref<4x256x1024xbf16, #tpu.memory_space<vmem>>, %arg7: memref<4x1024x256xbf16, #tpu.memory_space<vmem>>, %arg8: memref<4x8x1024xf32, #tpu.memory_space<vmem>>, %arg9: memref<1x8x256xf32, #tpu.memory_space<vmem>>) attributes {dimension_semantics = [#tpu.dimension_semantics<parallel>], iteration_bounds = array<i64: 2>, scalar_prefetch = 0 : i64, scratch_operands = 0 : i64, tpu.core_type = #tpu.core_type<tc>, window_params = [{transform_indices = @transform_0, window_bounds = array<i64: 1, 8, 256>}, {transform_indices = @transform_1, window_bounds = array<i64: 1, 1, 8>}, {pipeline_mode = #tpu.pipeline_mode<synchronous>, transform_indices = @transform_2, window_bounds = array<i64: 2, 256>}, {pipeline_mode = #tpu.pipeline_mode<synchronous>, transform_indices = @transform_3, window_bounds = array<i64: 4, 256, 768>}, {pipeline_mode = #tpu.pipeline_mode<synchronous>, transform_indices = @transform_4, window_bounds = array<i64: 4, 256, 256>}, {pipeline_mode = #tpu.pipeline_mode<synchronous>, transform_indices = @transform_5, window_bounds = array<i64: 4, 256, 1024>}, {pipeline_mode = #tpu.pipeline_mode<synchronous>, transform_indices = @transform_6, window_bounds = array<i64: 4, 1024, 256>}, {pipeline_mode = #tpu.pipeline_mode<synchronous>, transform_indices = @transform_7, window_bounds = array<i64: 4, 8, 1024>}, {transform_indices = @transform_8, window_bounds = array<i64: 1, 8, 256>}]} {
    %c0 = arith.constant 0 : index
    %c0_0 = arith.constant 0 : index
    %c0_1 = arith.constant 0 : index
    %0 = vector.load %arg1[%c0, %c0_0, %c0_1] : memref<1x8x256xf32, #tpu.memory_space<vmem>>, vector<1x8x256xf32>
    %1 = vector.shape_cast %0 : vector<1x8x256xf32> to vector<8x256xf32>
    %c0_2 = arith.constant 0 : index
    %c0_3 = arith.constant 0 : index
    %2 = vector.load %arg3[%c0_2, %c0_3] : memref<2x256xf32, #tpu.memory_space<vmem>>, vector<1x256xf32>
    %c1 = arith.constant 1 : index
    %c0_4 = arith.constant 0 : index
    %3 = vector.load %arg3[%c1, %c0_4] : memref<2x256xf32, #tpu.memory_space<vmem>>, vector<1x256xf32>
    %cst = arith.constant dense<0.000000e+00> : vector<8xf32>
    %4 = vector.multi_reduction <add>, %1, %cst [1] : vector<8x256xf32> to vector<8xf32>
    %5 = vector.shape_cast %4 : vector<8xf32> to vector<8x1xf32>
    %cst_5 = arith.constant 2.560000e+02 : f32
    %6 = vector.broadcast %cst_5 : f32 to vector<8x1xf32>
    %7 = arith.divf %5, %6 : vector<8x1xf32>
    %8 = vector.broadcast %7 : vector<8x1xf32> to vector<8x256xf32>
    %9 = arith.subf %1, %8 : vector<8x256xf32>
    %10 = arith.mulf %9, %9 : vector<8x256xf32>
    %cst_6 = arith.constant dense<0.000000e+00> : vector<8xf32>
    %11 = vector.multi_reduction <add>, %10, %cst_6 [1] : vector<8x256xf32> to vector<8xf32>
    %12 = vector.shape_cast %11 : vector<8xf32> to vector<8x1xf32>
    %cst_7 = arith.constant 2.560000e+02 : f32
    %13 = vector.broadcast %cst_7 : f32 to vector<8x1xf32>
    %14 = arith.divf %12, %13 : vector<8x1xf32>
    %15 = vector.broadcast %7 : vector<8x1xf32> to vector<8x256xf32>
    %16 = arith.subf %1, %15 : vector<8x256xf32>
    %cst_8 = arith.constant 9.99999996E-13 : f32
    %17 = vector.broadcast %cst_8 : f32 to vector<8x1xf32>
    %18 = arith.addf %14, %17 : vector<8x1xf32>
    %19 = math.rsqrt %18 : vector<8x1xf32>
    %20 = vector.broadcast %19 : vector<8x1xf32> to vector<8x256xf32>
    %21 = arith.mulf %16, %20 : vector<8x256xf32>
    %22 = vector.broadcast %2 : vector<1x256xf32> to vector<8x256xf32>
    %23 = arith.mulf %21, %22 : vector<8x256xf32>
    %24 = vector.broadcast %3 : vector<1x256xf32> to vector<8x256xf32>
    %25 = arith.addf %23, %24 : vector<8x256xf32>
    %c0_9 = arith.constant 0 : index
    %c0_10 = arith.constant 0 : index
    %c0_11 = arith.constant 0 : index
    %26 = vector.load %arg2[%c0_9, %c0_10, %c0_11] : memref<1x1x8xf32, #tpu.memory_space<vmem>>, vector<1x1x8xf32>
    %27 = vector.shape_cast %26 : vector<1x1x8xf32> to vector<1x8xf32>
    %28 = vector.shape_cast %27 : vector<1x8xf32> to vector<1x1x8xf32>
    %c0_12 = arith.constant 0 : index
    %c0_13 = arith.constant 0 : index
    %c0_14 = arith.constant 0 : index
    %29 = vector.load %arg8[%c0_12, %c0_13, %c0_14] : memref<4x8x1024xf32, #tpu.memory_space<vmem>>, vector<1x8x1024xf32>
    %30 = vector.shape_cast %29 : vector<1x8x1024xf32> to vector<8x1024xf32>
    %31 = vector.extract_strided_slice %30 {offsets = [0, 0], sizes = [1, 768], strides = [1, 1]} : vector<8x1024xf32> to vector<1x768xf32>
    %32 = vector.extract_strided_slice %30 {offsets = [0, 768], sizes = [1, 256], strides = [1, 1]} : vector<8x1024xf32> to vector<1x256xf32>
    %33 = vector.extract_strided_slice %30 {offsets = [1, 0], sizes = [1, 1024], strides = [1, 1]} : vector<8x1024xf32> to vector<1x1024xf32>
    %34 = vector.extract_strided_slice %30 {offsets = [2, 0], sizes = [1, 256], strides = [1, 1]} : vector<8x1024xf32> to vector<1x256xf32>
    %35 = vector.extract_strided_slice %30 {offsets = [2, 256], sizes = [1, 256], strides = [1, 1]} : vector<8x1024xf32> to vector<1x256xf32>
    %36 = vector.extract_strided_slice %30 {offsets = [2, 512], sizes = [1, 256], strides = [1, 1]} : vector<8x1024xf32> to vector<1x256xf32>
    %37 = vector.extract_strided_slice %30 {offsets = [2, 768], sizes = [1, 256], strides = [1, 1]} : vector<8x1024xf32> to vector<1x256xf32>
    %38 = vector.extract_strided_slice %30 {offsets = [3, 0], sizes = [1, 256], strides = [1, 1]} : vector<8x1024xf32> to vector<1x256xf32>
    %39 = arith.truncf %25 : vector<8x256xf32> to vector<8x256xbf16>
    %c0_15 = arith.constant 0 : index
    %c0_16 = arith.constant 0 : index
    %c0_17 = arith.constant 0 : index
    %40 = vector.load %arg4[%c0_15, %c0_16, %c0_17] : memref<4x256x768xbf16, #tpu.memory_space<vmem>>, vector<1x256x768xbf16>
    %41 = vector.shape_cast %40 : vector<1x256x768xbf16> to vector<256x768xbf16>
    %cst_18 = arith.constant dense<0.000000e+00> : vector<8x768xf32>
    %42 = tpu.matmul %39, %41, %cst_18 {dimension_numbers = #tpu.dot_dimension_numbers<[1], [0], [0], [1], [0, 0, 1, 1], [], []>} : vector<8x256xbf16>, vector<256x768xbf16>, vector<8x768xf32> -> vector<8x768xf32>
    %43 = vector.broadcast %31 : vector<1x768xf32> to vector<8x768xf32>
    %44 = arith.addf %42, %43 : vector<8x768xf32>
    %45 = vector.extract_strided_slice %44 {offsets = [0, 0], sizes = [8, 256], strides = [1, 1]} : vector<8x768xf32> to vector<8x256xf32>
    %cst_19 = arith.constant 1.250000e-01 : f32
    %46 = vector.broadcast %cst_19 : f32 to vector<8x256xf32>
    %47 = arith.mulf %45, %46 : vector<8x256xf32>
    %48 = vector.extract_strided_slice %44 {offsets = [0, 256], sizes = [8, 256], strides = [1, 1]} : vector<8x768xf32> to vector<8x256xf32>
    %49 = vector.extract_strided_slice %44 {offsets = [0, 512], sizes = [8, 256], strides = [1, 1]} : vector<8x768xf32> to vector<8x256xf32>
    %50 = vector.extract_strided_slice %47 {offsets = [0, 0], sizes = [8, 64], strides = [1, 1]} : vector<8x256xf32> to vector<8x64xf32>
    %51 = vector.shape_cast %50 : vector<8x64xf32> to vector<1x8x64xf32>
    %52 = arith.truncf %51 : vector<1x8x64xf32> to vector<1x8x64xbf16>
    %53 = vector.extract_strided_slice %48 {offsets = [0, 0], sizes = [8, 64], strides = [1, 1]} : vector<8x256xf32> to vector<8x64xf32>
    %54 = vector.shape_cast %53 : vector<8x64xf32> to vector<1x8x64xf32>
    %55 = arith.truncf %54 : vector<1x8x64xf32> to vector<1x8x64xbf16>
    %56 = vector.extract_strided_slice %49 {offsets = [0, 0], sizes = [8, 64], strides = [1, 1]} : vector<8x256xf32> to vector<8x64xf32>
    %57 = vector.shape_cast %56 : vector<8x64xf32> to vector<1x8x64xf32>
    %58 = arith.truncf %57 : vector<1x8x64xf32> to vector<1x8x64xbf16>
    "tpu.trace_start"() <{level = 10 : i32, message = "bqd,bkd->bqk"}> : () -> ()
    %cst_20 = arith.constant dense<0.000000e+00> : vector<1x8x8xf32>
    %59 = tpu.matmul %52, %55, %cst_20 {dimension_numbers = #tpu.dot_dimension_numbers<[2], [2], [1], [1], [0, 0, 0, 1, 1, 1], [0], [0]>} : vector<1x8x64xbf16>, vector<1x8x64xbf16>, vector<1x8x8xf32> -> vector<1x8x8xf32>
    "tpu.trace_stop"() : () -> ()
    %60 = vector.broadcast %28 : vector<1x1x8xf32> to vector<1x8x8xf32>
    %61 = arith.addf %59, %60 : vector<1x8x8xf32>
    %cst_21 = arith.constant dense<0xFF800000> : vector<1x8xf32>
    %62 = vector.multi_reduction <maximumf>, %61, %cst_21 [2] : vector<1x8x8xf32> to vector<1x8xf32>
    %63 = vector.shape_cast %62 : vector<1x8xf32> to vector<1x8x1xf32>
    %64 = vector.broadcast %63 : vector<1x8x1xf32> to vector<1x8x8xf32>
    %65 = arith.subf %61, %64 : vector<1x8x8xf32>
    %66 = math.exp %65 : vector<1x8x8xf32>
    %cst_22 = arith.constant dense<0.000000e+00> : vector<1x8xf32>
    %67 = vector.multi_reduction <add>, %66, %cst_22 [2] : vector<1x8x8xf32> to vector<1x8xf32>
    %68 = vector.shape_cast %67 : vector<1x8xf32> to vector<1x8x1xf32>
    %69 = tpu.reciprocal %68 {approx = true} : vector<1x8x1xf32> -> vector<1x8x1xf32>
    %70 = arith.truncf %66 : vector<1x8x8xf32> to vector<1x8x8xbf16>
    "tpu.trace_start"() <{level = 10 : i32, message = "bqk,bkd->bqd"}> : () -> ()
    %cst_23 = arith.constant dense<0.000000e+00> : vector<1x8x64xf32>
    %71 = tpu.matmul %70, %58, %cst_23 {dimension_numbers = #tpu.dot_dimension_numbers<[2], [1], [1], [2], [0, 0, 0, 1, 1, 2], [0], [0]>} : vector<1x8x8xbf16>, vector<1x8x64xbf16>, vector<1x8x64xf32> -> vector<1x8x64xf32>
    "tpu.trace_stop"() : () -> ()
    %72 = vector.broadcast %69 : vector<1x8x1xf32> to vector<1x8x64xf32>
    %73 = arith.mulf %71, %72 : vector<1x8x64xf32>
    %74 = vector.shape_cast %73 : vector<1x8x64xf32> to vector<8x64xf32>
    %75 = vector.extract_strided_slice %47 {offsets = [0, 64], sizes = [8, 64], strides = [1, 1]} : vector<8x256xf32> to vector<8x64xf32>
    %76 = vector.shape_cast %75 : vector<8x64xf32> to vector<1x8x64xf32>
    %77 = arith.truncf %76 : vector<1x8x64xf32> to vector<1x8x64xbf16>
    %78 = vector.extract_strided_slice %48 {offsets = [0, 64], sizes = [8, 64], strides = [1, 1]} : vector<8x256xf32> to vector<8x64xf32>
    %79 = vector.shape_cast %78 : vector<8x64xf32> to vector<1x8x64xf32>
    %80 = arith.truncf %79 : vector<1x8x64xf32> to vector<1x8x64xbf16>
    %81 = vector.extract_strided_slice %49 {offsets = [0, 64], sizes = [8, 64], strides = [1, 1]} : vector<8x256xf32> to vector<8x64xf32>
    %82 = vector.shape_cast %81 : vector<8x64xf32> to vector<1x8x64xf32>
    %83 = arith.truncf %82 : vector<1x8x64xf32> to vector<1x8x64xbf16>
    "tpu.trace_start"() <{level = 10 : i32, message = "bqd,bkd->bqk"}> : () -> ()
    %cst_24 = arith.constant dense<0.000000e+00> : vector<1x8x8xf32>
    %84 = tpu.matmul %77, %80, %cst_24 {dimension_numbers = #tpu.dot_dimension_numbers<[2], [2], [1], [1], [0, 0, 0, 1, 1, 1], [0], [0]>} : vector<1x8x64xbf16>, vector<1x8x64xbf16>, vector<1x8x8xf32> -> vector<1x8x8xf32>
    "tpu.trace_stop"() : () -> ()
    %85 = vector.broadcast %28 : vector<1x1x8xf32> to vector<1x8x8xf32>
    %86 = arith.addf %84, %85 : vector<1x8x8xf32>
    %cst_25 = arith.constant dense<0xFF800000> : vector<1x8xf32>
    %87 = vector.multi_reduction <maximumf>, %86, %cst_25 [2] : vector<1x8x8xf32> to vector<1x8xf32>
    %88 = vector.shape_cast %87 : vector<1x8xf32> to vector<1x8x1xf32>
    %89 = vector.broadcast %88 : vector<1x8x1xf32> to vector<1x8x8xf32>
    %90 = arith.subf %86, %89 : vector<1x8x8xf32>
    %91 = math.exp %90 : vector<1x8x8xf32>
    %cst_26 = arith.constant dense<0.000000e+00> : vector<1x8xf32>
    %92 = vector.multi_reduction <add>, %91, %cst_26 [2] : vector<1x8x8xf32> to vector<1x8xf32>
    %93 = vector.shape_cast %92 : vector<1x8xf32> to vector<1x8x1xf32>
    %94 = tpu.reciprocal %93 {approx = true} : vector<1x8x1xf32> -> vector<1x8x1xf32>
    %95 = arith.truncf %91 : vector<1x8x8xf32> to vector<1x8x8xbf16>
    "tpu.trace_start"() <{level = 10 : i32, message = "bqk,bkd->bqd"}> : () -> ()
    %cst_27 = arith.constant dense<0.000000e+00> : vector<1x8x64xf32>
    %96 = tpu.matmul %95, %83, %cst_27 {dimension_numbers = #tpu.dot_dimension_numbers<[2], [1], [1], [2], [0, 0, 0, 1, 1, 2], [0], [0]>} : vector<1x8x8xbf16>, vector<1x8x64xbf16>, vector<1x8x64xf32> -> vector<1x8x64xf32>
    "tpu.trace_stop"() : () -> ()
    %97 = vector.broadcast %94 : vector<1x8x1xf32> to vector<1x8x64xf32>
    %98 = arith.mulf %96, %97 : vector<1x8x64xf32>
    %99 = vector.shape_cast %98 : vector<1x8x64xf32> to vector<8x64xf32>
    %100 = vector.extract_strided_slice %47 {offsets = [0, 128], sizes = [8, 64], strides = [1, 1]} : vector<8x256xf32> to vector<8x64xf32>
    %101 = vector.shape_cast %100 : vector<8x64xf32> to vector<1x8x64xf32>
    %102 = arith.truncf %101 : vector<1x8x64xf32> to vector<1x8x64xbf16>
    %103 = vector.extract_strided_slice %48 {offsets = [0, 128], sizes = [8, 64], strides = [1, 1]} : vector<8x256xf32> to vector<8x64xf32>
    %104 = vector.shape_cast %103 : vector<8x64xf32> to vector<1x8x64xf32>
    %105 = arith.truncf %104 : vector<1x8x64xf32> to vector<1x8x64xbf16>
    %106 = vector.extract_strided_slice %49 {offsets = [0, 128], sizes = [8, 64], strides = [1, 1]} : vector<8x256xf32> to vector<8x64xf32>
    %107 = vector.shape_cast %106 : vector<8x64xf32> to vector<1x8x64xf32>
    %108 = arith.truncf %107 : vector<1x8x64xf32> to vector<1x8x64xbf16>
    "tpu.trace_start"() <{level = 10 : i32, message = "bqd,bkd->bqk"}> : () -> ()
    %cst_28 = arith.constant dense<0.000000e+00> : vector<1x8x8xf32>
    %109 = tpu.matmul %102, %105, %cst_28 {dimension_numbers = #tpu.dot_dimension_numbers<[2], [2], [1], [1], [0, 0, 0, 1, 1, 1], [0], [0]>} : vector<1x8x64xbf16>, vector<1x8x64xbf16>, vector<1x8x8xf32> -> vector<1x8x8xf32>
    "tpu.trace_stop"() : () -> ()
    %110 = vector.broadcast %28 : vector<1x1x8xf32> to vector<1x8x8xf32>
    %111 = arith.addf %109, %110 : vector<1x8x8xf32>
    %cst_29 = arith.constant dense<0xFF800000> : vector<1x8xf32>
    %112 = vector.multi_reduction <maximumf>, %111, %cst_29 [2] : vector<1x8x8xf32> to vector<1x8xf32>
    %113 = vector.shape_cast %112 : vector<1x8xf32> to vector<1x8x1xf32>
    %114 = vector.broadcast %113 : vector<1x8x1xf32> to vector<1x8x8xf32>
    %115 = arith.subf %111, %114 : vector<1x8x8xf32>
    %116 = math.exp %115 : vector<1x8x8xf32>
    %cst_30 = arith.constant dense<0.000000e+00> : vector<1x8xf32>
    %117 = vector.multi_reduction <add>, %116, %cst_30 [2] : vector<1x8x8xf32> to vector<1x8xf32>
    %118 = vector.shape_cast %117 : vector<1x8xf32> to vector<1x8x1xf32>
    %119 = tpu.reciprocal %118 {approx = true} : vector<1x8x1xf32> -> vector<1x8x1xf32>
    %120 = arith.truncf %116 : vector<1x8x8xf32> to vector<1x8x8xbf16>
    "tpu.trace_start"() <{level = 10 : i32, message = "bqk,bkd->bqd"}> : () -> ()
    %cst_31 = arith.constant dense<0.000000e+00> : vector<1x8x64xf32>
    %121 = tpu.matmul %120, %108, %cst_31 {dimension_numbers = #tpu.dot_dimension_numbers<[2], [1], [1], [2], [0, 0, 0, 1, 1, 2], [0], [0]>} : vector<1x8x8xbf16>, vector<1x8x64xbf16>, vector<1x8x64xf32> -> vector<1x8x64xf32>
    "tpu.trace_stop"() : () -> ()
    %122 = vector.broadcast %119 : vector<1x8x1xf32> to vector<1x8x64xf32>
    %123 = arith.mulf %121, %122 : vector<1x8x64xf32>
    %124 = vector.shape_cast %123 : vector<1x8x64xf32> to vector<8x64xf32>
    %125 = vector.extract_strided_slice %47 {offsets = [0, 192], sizes = [8, 64], strides = [1, 1]} : vector<8x256xf32> to vector<8x64xf32>
    %126 = vector.shape_cast %125 : vector<8x64xf32> to vector<1x8x64xf32>
    %127 = arith.truncf %126 : vector<1x8x64xf32> to vector<1x8x64xbf16>
    %128 = vector.extract_strided_slice %48 {offsets = [0, 192], sizes = [8, 64], strides = [1, 1]} : vector<8x256xf32> to vector<8x64xf32>
    %129 = vector.shape_cast %128 : vector<8x64xf32> to vector<1x8x64xf32>
    %130 = arith.truncf %129 : vector<1x8x64xf32> to vector<1x8x64xbf16>
    %131 = vector.extract_strided_slice %49 {offsets = [0, 192], sizes = [8, 64], strides = [1, 1]} : vector<8x256xf32> to vector<8x64xf32>
    %132 = vector.shape_cast %131 : vector<8x64xf32> to vector<1x8x64xf32>
    %133 = arith.truncf %132 : vector<1x8x64xf32> to vector<1x8x64xbf16>
    "tpu.trace_start"() <{level = 10 : i32, message = "bqd,bkd->bqk"}> : () -> ()
    %cst_32 = arith.constant dense<0.000000e+00> : vector<1x8x8xf32>
    %134 = tpu.matmul %127, %130, %cst_32 {dimension_numbers = #tpu.dot_dimension_numbers<[2], [2], [1], [1], [0, 0, 0, 1, 1, 1], [0], [0]>} : vector<1x8x64xbf16>, vector<1x8x64xbf16>, vector<1x8x8xf32> -> vector<1x8x8xf32>
    "tpu.trace_stop"() : () -> ()
    %135 = vector.broadcast %28 : vector<1x1x8xf32> to vector<1x8x8xf32>
    %136 = arith.addf %134, %135 : vector<1x8x8xf32>
    %cst_33 = arith.constant dense<0xFF800000> : vector<1x8xf32>
    %137 = vector.multi_reduction <maximumf>, %136, %cst_33 [2] : vector<1x8x8xf32> to vector<1x8xf32>
    %138 = vector.shape_cast %137 : vector<1x8xf32> to vector<1x8x1xf32>
    %139 = vector.broadcast %138 : vector<1x8x1xf32> to vector<1x8x8xf32>
    %140 = arith.subf %136, %139 : vector<1x8x8xf32>
    %141 = math.exp %140 : vector<1x8x8xf32>
    %cst_34 = arith.constant dense<0.000000e+00> : vector<1x8xf32>
    %142 = vector.multi_reduction <add>, %141, %cst_34 [2] : vector<1x8x8xf32> to vector<1x8xf32>
    %143 = vector.shape_cast %142 : vector<1x8xf32> to vector<1x8x1xf32>
    %144 = tpu.reciprocal %143 {approx = true} : vector<1x8x1xf32> -> vector<1x8x1xf32>
    %145 = arith.truncf %141 : vector<1x8x8xf32> to vector<1x8x8xbf16>
    "tpu.trace_start"() <{level = 10 : i32, message = "bqk,bkd->bqd"}> : () -> ()
    %cst_35 = arith.constant dense<0.000000e+00> : vector<1x8x64xf32>
    %146 = tpu.matmul %145, %133, %cst_35 {dimension_numbers = #tpu.dot_dimension_numbers<[2], [1], [1], [2], [0, 0, 0, 1, 1, 2], [0], [0]>} : vector<1x8x8xbf16>, vector<1x8x64xbf16>, vector<1x8x64xf32> -> vector<1x8x64xf32>
    "tpu.trace_stop"() : () -> ()
    %147 = vector.broadcast %144 : vector<1x8x1xf32> to vector<1x8x64xf32>
    %148 = arith.mulf %146, %147 : vector<1x8x64xf32>
    %149 = vector.shape_cast %148 : vector<1x8x64xf32> to vector<8x64xf32>
    %150 = tpu.concatenate %74, %99, %124, %149 in 1 : vector<8x64xf32>, vector<8x64xf32>, vector<8x64xf32>, vector<8x64xf32> -> vector<8x256xf32>
    %151 = arith.truncf %150 : vector<8x256xf32> to vector<8x256xbf16>
    %c0_36 = arith.constant 0 : index
    %c0_37 = arith.constant 0 : index
    %c0_38 = arith.constant 0 : index
    %152 = vector.load %arg5[%c0_36, %c0_37, %c0_38] : memref<4x256x256xbf16, #tpu.memory_space<vmem>>, vector<1x256x256xbf16>
    %153 = vector.shape_cast %152 : vector<1x256x256xbf16> to vector<256x256xbf16>
    %cst_39 = arith.constant dense<0.000000e+00> : vector<8x256xf32>
    %154 = tpu.matmul %151, %153, %cst_39 {dimension_numbers = #tpu.dot_dimension_numbers<[1], [0], [0], [1], [0, 0, 1, 1], [], []>} : vector<8x256xbf16>, vector<256x256xbf16>, vector<8x256xf32> -> vector<8x256xf32>
    %155 = vector.broadcast %32 : vector<1x256xf32> to vector<8x256xf32>
    %156 = arith.addf %154, %155 : vector<8x256xf32>
    %157 = arith.addf %25, %156 : vector<8x256xf32>
    %cst_40 = arith.constant dense<0.000000e+00> : vector<8xf32>
    %158 = vector.multi_reduction <add>, %157, %cst_40 [1] : vector<8x256xf32> to vector<8xf32>
    %159 = vector.shape_cast %158 : vector<8xf32> to vector<8x1xf32>
    %cst_41 = arith.constant 2.560000e+02 : f32
    %160 = vector.broadcast %cst_41 : f32 to vector<8x1xf32>
    %161 = arith.divf %159, %160 : vector<8x1xf32>
    %162 = vector.broadcast %161 : vector<8x1xf32> to vector<8x256xf32>
    %163 = arith.subf %157, %162 : vector<8x256xf32>
    %164 = arith.mulf %163, %163 : vector<8x256xf32>
    %cst_42 = arith.constant dense<0.000000e+00> : vector<8xf32>
    %165 = vector.multi_reduction <add>, %164, %cst_42 [1] : vector<8x256xf32> to vector<8xf32>
    %166 = vector.shape_cast %165 : vector<8xf32> to vector<8x1xf32>
    %cst_43 = arith.constant 2.560000e+02 : f32
    %167 = vector.broadcast %cst_43 : f32 to vector<8x1xf32>
    %168 = arith.divf %166, %167 : vector<8x1xf32>
    %169 = vector.broadcast %161 : vector<8x1xf32> to vector<8x256xf32>
    %170 = arith.subf %157, %169 : vector<8x256xf32>
    %cst_44 = arith.constant 9.99999974E-6 : f32
    %171 = vector.broadcast %cst_44 : f32 to vector<8x1xf32>
    %172 = arith.addf %168, %171 : vector<8x1xf32>
    %173 = math.rsqrt %172 : vector<8x1xf32>
    %174 = vector.broadcast %173 : vector<8x1xf32> to vector<8x256xf32>
    %175 = arith.mulf %170, %174 : vector<8x256xf32>
    %176 = vector.broadcast %35 : vector<1x256xf32> to vector<8x256xf32>
    %177 = arith.mulf %175, %176 : vector<8x256xf32>
    %178 = vector.broadcast %36 : vector<1x256xf32> to vector<8x256xf32>
    %179 = arith.addf %177, %178 : vector<8x256xf32>
    %180 = arith.truncf %179 : vector<8x256xf32> to vector<8x256xbf16>
    %c0_45 = arith.constant 0 : index
    %c0_46 = arith.constant 0 : index
    %c0_47 = arith.constant 0 : index
    %181 = vector.load %arg6[%c0_45, %c0_46, %c0_47] : memref<4x256x1024xbf16, #tpu.memory_space<vmem>>, vector<1x256x1024xbf16>
    %182 = vector.shape_cast %181 : vector<1x256x1024xbf16> to vector<256x1024xbf16>
    %cst_48 = arith.constant dense<0.000000e+00> : vector<8x1024xf32>
    %183 = tpu.matmul %180, %182, %cst_48 {dimension_numbers = #tpu.dot_dimension_numbers<[1], [0], [0], [1], [0, 0, 1, 1], [], []>} : vector<8x256xbf16>, vector<256x1024xbf16>, vector<8x1024xf32> -> vector<8x1024xf32>
    %184 = vector.broadcast %33 : vector<1x1024xf32> to vector<8x1024xf32>
    %185 = arith.addf %183, %184 : vector<8x1024xf32>
    %cst_49 = arith.constant 0.000000e+00 : f32
    %186 = vector.broadcast %cst_49 : f32 to vector<8x1024xf32>
    %187 = arith.maximumf %185, %186 : vector<8x1024xf32>
    %188 = arith.truncf %187 : vector<8x1024xf32> to vector<8x1024xbf16>
    %c0_50 = arith.constant 0 : index
    %c0_51 = arith.constant 0 : index
    %c0_52 = arith.constant 0 : index
    %189 = vector.load %arg7[%c0_50, %c0_51, %c0_52] : memref<4x1024x256xbf16, #tpu.memory_space<vmem>>, vector<1x1024x256xbf16>
    %190 = vector.shape_cast %189 : vector<1x1024x256xbf16> to vector<1024x256xbf16>
    %cst_53 = arith.constant dense<0.000000e+00> : vector<8x256xf32>
    %191 = tpu.matmul %188, %190, %cst_53 {dimension_numbers = #tpu.dot_dimension_numbers<[1], [0], [0], [1], [0, 0, 1, 1], [], []>} : vector<8x1024xbf16>, vector<1024x256xbf16>, vector<8x256xf32> -> vector<8x256xf32>
    %192 = vector.broadcast %34 : vector<1x256xf32> to vector<8x256xf32>
    %193 = arith.addf %191, %192 : vector<8x256xf32>
    %194 = arith.addf %179, %193 : vector<8x256xf32>
    %cst_54 = arith.constant dense<0.000000e+00> : vector<8xf32>
    %195 = vector.multi_reduction <add>, %194, %cst_54 [1] : vector<8x256xf32> to vector<8xf32>
    %196 = vector.shape_cast %195 : vector<8xf32> to vector<8x1xf32>
    %cst_55 = arith.constant 2.560000e+02 : f32
    %197 = vector.broadcast %cst_55 : f32 to vector<8x1xf32>
    %198 = arith.divf %196, %197 : vector<8x1xf32>
    %199 = vector.broadcast %198 : vector<8x1xf32> to vector<8x256xf32>
    %200 = arith.subf %194, %199 : vector<8x256xf32>
    %201 = arith.mulf %200, %200 : vector<8x256xf32>
    %cst_56 = arith.constant dense<0.000000e+00> : vector<8xf32>
    %202 = vector.multi_reduction <add>, %201, %cst_56 [1] : vector<8x256xf32> to vector<8xf32>
    %203 = vector.shape_cast %202 : vector<8xf32> to vector<8x1xf32>
    %cst_57 = arith.constant 2.560000e+02 : f32
    %204 = vector.broadcast %cst_57 : f32 to vector<8x1xf32>
    %205 = arith.divf %203, %204 : vector<8x1xf32>
    %206 = vector.broadcast %198 : vector<8x1xf32> to vector<8x256xf32>
    %207 = arith.subf %194, %206 : vector<8x256xf32>
    %cst_58 = arith.constant 9.99999974E-6 : f32
    %208 = vector.broadcast %cst_58 : f32 to vector<8x1xf32>
    %209 = arith.addf %205, %208 : vector<8x1xf32>
    %210 = math.rsqrt %209 : vector<8x1xf32>
    %211 = vector.broadcast %210 : vector<8x1xf32> to vector<8x256xf32>
    %212 = arith.mulf %207, %211 : vector<8x256xf32>
    %213 = vector.broadcast %37 : vector<1x256xf32> to vector<8x256xf32>
    %214 = arith.mulf %212, %213 : vector<8x256xf32>
    %215 = vector.broadcast %38 : vector<1x256xf32> to vector<8x256xf32>
    %216 = arith.addf %214, %215 : vector<8x256xf32>
    %c1_59 = arith.constant 1 : index
    %c0_60 = arith.constant 0 : index
    %c0_61 = arith.constant 0 : index
    %217 = vector.load %arg8[%c1_59, %c0_60, %c0_61] : memref<4x8x1024xf32, #tpu.memory_space<vmem>>, vector<1x8x1024xf32>
    %218 = vector.shape_cast %217 : vector<1x8x1024xf32> to vector<8x1024xf32>
    %219 = vector.extract_strided_slice %218 {offsets = [0, 0], sizes = [1, 768], strides = [1, 1]} : vector<8x1024xf32> to vector<1x768xf32>
    %220 = vector.extract_strided_slice %218 {offsets = [0, 768], sizes = [1, 256], strides = [1, 1]} : vector<8x1024xf32> to vector<1x256xf32>
    %221 = vector.extract_strided_slice %218 {offsets = [1, 0], sizes = [1, 1024], strides = [1, 1]} : vector<8x1024xf32> to vector<1x1024xf32>
    %222 = vector.extract_strided_slice %218 {offsets = [2, 0], sizes = [1, 256], strides = [1, 1]} : vector<8x1024xf32> to vector<1x256xf32>
    %223 = vector.extract_strided_slice %218 {offsets = [2, 256], sizes = [1, 256], strides = [1, 1]} : vector<8x1024xf32> to vector<1x256xf32>
    %224 = vector.extract_strided_slice %218 {offsets = [2, 512], sizes = [1, 256], strides = [1, 1]} : vector<8x1024xf32> to vector<1x256xf32>
    %225 = vector.extract_strided_slice %218 {offsets = [2, 768], sizes = [1, 256], strides = [1, 1]} : vector<8x1024xf32> to vector<1x256xf32>
    %226 = vector.extract_strided_slice %218 {offsets = [3, 0], sizes = [1, 256], strides = [1, 1]} : vector<8x1024xf32> to vector<1x256xf32>
    %227 = arith.truncf %216 : vector<8x256xf32> to vector<8x256xbf16>
    %c1_62 = arith.constant 1 : index
    %c0_63 = arith.constant 0 : index
    %c0_64 = arith.constant 0 : index
    %228 = vector.load %arg4[%c1_62, %c0_63, %c0_64] : memref<4x256x768xbf16, #tpu.memory_space<vmem>>, vector<1x256x768xbf16>
    %229 = vector.shape_cast %228 : vector<1x256x768xbf16> to vector<256x768xbf16>
    %cst_65 = arith.constant dense<0.000000e+00> : vector<8x768xf32>
    %230 = tpu.matmul %227, %229, %cst_65 {dimension_numbers = #tpu.dot_dimension_numbers<[1], [0], [0], [1], [0, 0, 1, 1], [], []>} : vector<8x256xbf16>, vector<256x768xbf16>, vector<8x768xf32> -> vector<8x768xf32>
    %231 = vector.broadcast %219 : vector<1x768xf32> to vector<8x768xf32>
    %232 = arith.addf %230, %231 : vector<8x768xf32>
    %233 = vector.extract_strided_slice %232 {offsets = [0, 0], sizes = [8, 256], strides = [1, 1]} : vector<8x768xf32> to vector<8x256xf32>
    %cst_66 = arith.constant 1.250000e-01 : f32
    %234 = vector.broadcast %cst_66 : f32 to vector<8x256xf32>
    %235 = arith.mulf %233, %234 : vector<8x256xf32>
    %236 = vector.extract_strided_slice %232 {offsets = [0, 256], sizes = [8, 256], strides = [1, 1]} : vector<8x768xf32> to vector<8x256xf32>
    %237 = vector.extract_strided_slice %232 {offsets = [0, 512], sizes = [8, 256], strides = [1, 1]} : vector<8x768xf32> to vector<8x256xf32>
    %238 = vector.extract_strided_slice %235 {offsets = [0, 0], sizes = [8, 64], strides = [1, 1]} : vector<8x256xf32> to vector<8x64xf32>
    %239 = vector.shape_cast %238 : vector<8x64xf32> to vector<1x8x64xf32>
    %240 = arith.truncf %239 : vector<1x8x64xf32> to vector<1x8x64xbf16>
    %241 = vector.extract_strided_slice %236 {offsets = [0, 0], sizes = [8, 64], strides = [1, 1]} : vector<8x256xf32> to vector<8x64xf32>
    %242 = vector.shape_cast %241 : vector<8x64xf32> to vector<1x8x64xf32>
    %243 = arith.truncf %242 : vector<1x8x64xf32> to vector<1x8x64xbf16>
    %244 = vector.extract_strided_slice %237 {offsets = [0, 0], sizes = [8, 64], strides = [1, 1]} : vector<8x256xf32> to vector<8x64xf32>
    %245 = vector.shape_cast %244 : vector<8x64xf32> to vector<1x8x64xf32>
    %246 = arith.truncf %245 : vector<1x8x64xf32> to vector<1x8x64xbf16>
    "tpu.trace_start"() <{level = 10 : i32, message = "bqd,bkd->bqk"}> : () -> ()
    %cst_67 = arith.constant dense<0.000000e+00> : vector<1x8x8xf32>
    %247 = tpu.matmul %240, %243, %cst_67 {dimension_numbers = #tpu.dot_dimension_numbers<[2], [2], [1], [1], [0, 0, 0, 1, 1, 1], [0], [0]>} : vector<1x8x64xbf16>, vector<1x8x64xbf16>, vector<1x8x8xf32> -> vector<1x8x8xf32>
    "tpu.trace_stop"() : () -> ()
    %248 = vector.broadcast %28 : vector<1x1x8xf32> to vector<1x8x8xf32>
    %249 = arith.addf %247, %248 : vector<1x8x8xf32>
    %cst_68 = arith.constant dense<0xFF800000> : vector<1x8xf32>
    %250 = vector.multi_reduction <maximumf>, %249, %cst_68 [2] : vector<1x8x8xf32> to vector<1x8xf32>
    %251 = vector.shape_cast %250 : vector<1x8xf32> to vector<1x8x1xf32>
    %252 = vector.broadcast %251 : vector<1x8x1xf32> to vector<1x8x8xf32>
    %253 = arith.subf %249, %252 : vector<1x8x8xf32>
    %254 = math.exp %253 : vector<1x8x8xf32>
    %cst_69 = arith.constant dense<0.000000e+00> : vector<1x8xf32>
    %255 = vector.multi_reduction <add>, %254, %cst_69 [2] : vector<1x8x8xf32> to vector<1x8xf32>
    %256 = vector.shape_cast %255 : vector<1x8xf32> to vector<1x8x1xf32>
    %257 = tpu.reciprocal %256 {approx = true} : vector<1x8x1xf32> -> vector<1x8x1xf32>
    %258 = arith.truncf %254 : vector<1x8x8xf32> to vector<1x8x8xbf16>
    "tpu.trace_start"() <{level = 10 : i32, message = "bqk,bkd->bqd"}> : () -> ()
    %cst_70 = arith.constant dense<0.000000e+00> : vector<1x8x64xf32>
    %259 = tpu.matmul %258, %246, %cst_70 {dimension_numbers = #tpu.dot_dimension_numbers<[2], [1], [1], [2], [0, 0, 0, 1, 1, 2], [0], [0]>} : vector<1x8x8xbf16>, vector<1x8x64xbf16>, vector<1x8x64xf32> -> vector<1x8x64xf32>
    "tpu.trace_stop"() : () -> ()
    %260 = vector.broadcast %257 : vector<1x8x1xf32> to vector<1x8x64xf32>
    %261 = arith.mulf %259, %260 : vector<1x8x64xf32>
    %262 = vector.shape_cast %261 : vector<1x8x64xf32> to vector<8x64xf32>
    %263 = vector.extract_strided_slice %235 {offsets = [0, 64], sizes = [8, 64], strides = [1, 1]} : vector<8x256xf32> to vector<8x64xf32>
    %264 = vector.shape_cast %263 : vector<8x64xf32> to vector<1x8x64xf32>
    %265 = arith.truncf %264 : vector<1x8x64xf32> to vector<1x8x64xbf16>
    %266 = vector.extract_strided_slice %236 {offsets = [0, 64], sizes = [8, 64], strides = [1, 1]} : vector<8x256xf32> to vector<8x64xf32>
    %267 = vector.shape_cast %266 : vector<8x64xf32> to vector<1x8x64xf32>
    %268 = arith.truncf %267 : vector<1x8x64xf32> to vector<1x8x64xbf16>
    %269 = vector.extract_strided_slice %237 {offsets = [0, 64], sizes = [8, 64], strides = [1, 1]} : vector<8x256xf32> to vector<8x64xf32>
    %270 = vector.shape_cast %269 : vector<8x64xf32> to vector<1x8x64xf32>
    %271 = arith.truncf %270 : vector<1x8x64xf32> to vector<1x8x64xbf16>
    "tpu.trace_start"() <{level = 10 : i32, message = "bqd,bkd->bqk"}> : () -> ()
    %cst_71 = arith.constant dense<0.000000e+00> : vector<1x8x8xf32>
    %272 = tpu.matmul %265, %268, %cst_71 {dimension_numbers = #tpu.dot_dimension_numbers<[2], [2], [1], [1], [0, 0, 0, 1, 1, 1], [0], [0]>} : vector<1x8x64xbf16>, vector<1x8x64xbf16>, vector<1x8x8xf32> -> vector<1x8x8xf32>
    "tpu.trace_stop"() : () -> ()
    %273 = vector.broadcast %28 : vector<1x1x8xf32> to vector<1x8x8xf32>
    %274 = arith.addf %272, %273 : vector<1x8x8xf32>
    %cst_72 = arith.constant dense<0xFF800000> : vector<1x8xf32>
    %275 = vector.multi_reduction <maximumf>, %274, %cst_72 [2] : vector<1x8x8xf32> to vector<1x8xf32>
    %276 = vector.shape_cast %275 : vector<1x8xf32> to vector<1x8x1xf32>
    %277 = vector.broadcast %276 : vector<1x8x1xf32> to vector<1x8x8xf32>
    %278 = arith.subf %274, %277 : vector<1x8x8xf32>
    %279 = math.exp %278 : vector<1x8x8xf32>
    %cst_73 = arith.constant dense<0.000000e+00> : vector<1x8xf32>
    %280 = vector.multi_reduction <add>, %279, %cst_73 [2] : vector<1x8x8xf32> to vector<1x8xf32>
    %281 = vector.shape_cast %280 : vector<1x8xf32> to vector<1x8x1xf32>
    %282 = tpu.reciprocal %281 {approx = true} : vector<1x8x1xf32> -> vector<1x8x1xf32>
    %283 = arith.truncf %279 : vector<1x8x8xf32> to vector<1x8x8xbf16>
    "tpu.trace_start"() <{level = 10 : i32, message = "bqk,bkd->bqd"}> : () -> ()
    %cst_74 = arith.constant dense<0.000000e+00> : vector<1x8x64xf32>
    %284 = tpu.matmul %283, %271, %cst_74 {dimension_numbers = #tpu.dot_dimension_numbers<[2], [1], [1], [2], [0, 0, 0, 1, 1, 2], [0], [0]>} : vector<1x8x8xbf16>, vector<1x8x64xbf16>, vector<1x8x64xf32> -> vector<1x8x64xf32>
    "tpu.trace_stop"() : () -> ()
    %285 = vector.broadcast %282 : vector<1x8x1xf32> to vector<1x8x64xf32>
    %286 = arith.mulf %284, %285 : vector<1x8x64xf32>
    %287 = vector.shape_cast %286 : vector<1x8x64xf32> to vector<8x64xf32>
    %288 = vector.extract_strided_slice %235 {offsets = [0, 128], sizes = [8, 64], strides = [1, 1]} : vector<8x256xf32> to vector<8x64xf32>
    %289 = vector.shape_cast %288 : vector<8x64xf32> to vector<1x8x64xf32>
    %290 = arith.truncf %289 : vector<1x8x64xf32> to vector<1x8x64xbf16>
    %291 = vector.extract_strided_slice %236 {offsets = [0, 128], sizes = [8, 64], strides = [1, 1]} : vector<8x256xf32> to vector<8x64xf32>
    %292 = vector.shape_cast %291 : vector<8x64xf32> to vector<1x8x64xf32>
    %293 = arith.truncf %292 : vector<1x8x64xf32> to vector<1x8x64xbf16>
    %294 = vector.extract_strided_slice %237 {offsets = [0, 128], sizes = [8, 64], strides = [1, 1]} : vector<8x256xf32> to vector<8x64xf32>
    %295 = vector.shape_cast %294 : vector<8x64xf32> to vector<1x8x64xf32>
    %296 = arith.truncf %295 : vector<1x8x64xf32> to vector<1x8x64xbf16>
    "tpu.trace_start"() <{level = 10 : i32, message = "bqd,bkd->bqk"}> : () -> ()
    %cst_75 = arith.constant dense<0.000000e+00> : vector<1x8x8xf32>
    %297 = tpu.matmul %290, %293, %cst_75 {dimension_numbers = #tpu.dot_dimension_numbers<[2], [2], [1], [1], [0, 0, 0, 1, 1, 1], [0], [0]>} : vector<1x8x64xbf16>, vector<1x8x64xbf16>, vector<1x8x8xf32> -> vector<1x8x8xf32>
    "tpu.trace_stop"() : () -> ()
    %298 = vector.broadcast %28 : vector<1x1x8xf32> to vector<1x8x8xf32>
    %299 = arith.addf %297, %298 : vector<1x8x8xf32>
    %cst_76 = arith.constant dense<0xFF800000> : vector<1x8xf32>
    %300 = vector.multi_reduction <maximumf>, %299, %cst_76 [2] : vector<1x8x8xf32> to vector<1x8xf32>
    %301 = vector.shape_cast %300 : vector<1x8xf32> to vector<1x8x1xf32>
    %302 = vector.broadcast %301 : vector<1x8x1xf32> to vector<1x8x8xf32>
    %303 = arith.subf %299, %302 : vector<1x8x8xf32>
    %304 = math.exp %303 : vector<1x8x8xf32>
    %cst_77 = arith.constant dense<0.000000e+00> : vector<1x8xf32>
    %305 = vector.multi_reduction <add>, %304, %cst_77 [2] : vector<1x8x8xf32> to vector<1x8xf32>
    %306 = vector.shape_cast %305 : vector<1x8xf32> to vector<1x8x1xf32>
    %307 = tpu.reciprocal %306 {approx = true} : vector<1x8x1xf32> -> vector<1x8x1xf32>
    %308 = arith.truncf %304 : vector<1x8x8xf32> to vector<1x8x8xbf16>
    "tpu.trace_start"() <{level = 10 : i32, message = "bqk,bkd->bqd"}> : () -> ()
    %cst_78 = arith.constant dense<0.000000e+00> : vector<1x8x64xf32>
    %309 = tpu.matmul %308, %296, %cst_78 {dimension_numbers = #tpu.dot_dimension_numbers<[2], [1], [1], [2], [0, 0, 0, 1, 1, 2], [0], [0]>} : vector<1x8x8xbf16>, vector<1x8x64xbf16>, vector<1x8x64xf32> -> vector<1x8x64xf32>
    "tpu.trace_stop"() : () -> ()
    %310 = vector.broadcast %307 : vector<1x8x1xf32> to vector<1x8x64xf32>
    %311 = arith.mulf %309, %310 : vector<1x8x64xf32>
    %312 = vector.shape_cast %311 : vector<1x8x64xf32> to vector<8x64xf32>
    %313 = vector.extract_strided_slice %235 {offsets = [0, 192], sizes = [8, 64], strides = [1, 1]} : vector<8x256xf32> to vector<8x64xf32>
    %314 = vector.shape_cast %313 : vector<8x64xf32> to vector<1x8x64xf32>
    %315 = arith.truncf %314 : vector<1x8x64xf32> to vector<1x8x64xbf16>
    %316 = vector.extract_strided_slice %236 {offsets = [0, 192], sizes = [8, 64], strides = [1, 1]} : vector<8x256xf32> to vector<8x64xf32>
    %317 = vector.shape_cast %316 : vector<8x64xf32> to vector<1x8x64xf32>
    %318 = arith.truncf %317 : vector<1x8x64xf32> to vector<1x8x64xbf16>
    %319 = vector.extract_strided_slice %237 {offsets = [0, 192], sizes = [8, 64], strides = [1, 1]} : vector<8x256xf32> to vector<8x64xf32>
    %320 = vector.shape_cast %319 : vector<8x64xf32> to vector<1x8x64xf32>
    %321 = arith.truncf %320 : vector<1x8x64xf32> to vector<1x8x64xbf16>
    "tpu.trace_start"() <{level = 10 : i32, message = "bqd,bkd->bqk"}> : () -> ()
    %cst_79 = arith.constant dense<0.000000e+00> : vector<1x8x8xf32>
    %322 = tpu.matmul %315, %318, %cst_79 {dimension_numbers = #tpu.dot_dimension_numbers<[2], [2], [1], [1], [0, 0, 0, 1, 1, 1], [0], [0]>} : vector<1x8x64xbf16>, vector<1x8x64xbf16>, vector<1x8x8xf32> -> vector<1x8x8xf32>
    "tpu.trace_stop"() : () -> ()
    %323 = vector.broadcast %28 : vector<1x1x8xf32> to vector<1x8x8xf32>
    %324 = arith.addf %322, %323 : vector<1x8x8xf32>
    %cst_80 = arith.constant dense<0xFF800000> : vector<1x8xf32>
    %325 = vector.multi_reduction <maximumf>, %324, %cst_80 [2] : vector<1x8x8xf32> to vector<1x8xf32>
    %326 = vector.shape_cast %325 : vector<1x8xf32> to vector<1x8x1xf32>
    %327 = vector.broadcast %326 : vector<1x8x1xf32> to vector<1x8x8xf32>
    %328 = arith.subf %324, %327 : vector<1x8x8xf32>
    %329 = math.exp %328 : vector<1x8x8xf32>
    %cst_81 = arith.constant dense<0.000000e+00> : vector<1x8xf32>
    %330 = vector.multi_reduction <add>, %329, %cst_81 [2] : vector<1x8x8xf32> to vector<1x8xf32>
    %331 = vector.shape_cast %330 : vector<1x8xf32> to vector<1x8x1xf32>
    %332 = tpu.reciprocal %331 {approx = true} : vector<1x8x1xf32> -> vector<1x8x1xf32>
    %333 = arith.truncf %329 : vector<1x8x8xf32> to vector<1x8x8xbf16>
    "tpu.trace_start"() <{level = 10 : i32, message = "bqk,bkd->bqd"}> : () -> ()
    %cst_82 = arith.constant dense<0.000000e+00> : vector<1x8x64xf32>
    %334 = tpu.matmul %333, %321, %cst_82 {dimension_numbers = #tpu.dot_dimension_numbers<[2], [1], [1], [2], [0, 0, 0, 1, 1, 2], [0], [0]>} : vector<1x8x8xbf16>, vector<1x8x64xbf16>, vector<1x8x64xf32> -> vector<1x8x64xf32>
    "tpu.trace_stop"() : () -> ()
    %335 = vector.broadcast %332 : vector<1x8x1xf32> to vector<1x8x64xf32>
    %336 = arith.mulf %334, %335 : vector<1x8x64xf32>
    %337 = vector.shape_cast %336 : vector<1x8x64xf32> to vector<8x64xf32>
    %338 = tpu.concatenate %262, %287, %312, %337 in 1 : vector<8x64xf32>, vector<8x64xf32>, vector<8x64xf32>, vector<8x64xf32> -> vector<8x256xf32>
    %339 = arith.truncf %338 : vector<8x256xf32> to vector<8x256xbf16>
    %c1_83 = arith.constant 1 : index
    %c0_84 = arith.constant 0 : index
    %c0_85 = arith.constant 0 : index
    %340 = vector.load %arg5[%c1_83, %c0_84, %c0_85] : memref<4x256x256xbf16, #tpu.memory_space<vmem>>, vector<1x256x256xbf16>
    %341 = vector.shape_cast %340 : vector<1x256x256xbf16> to vector<256x256xbf16>
    %cst_86 = arith.constant dense<0.000000e+00> : vector<8x256xf32>
    %342 = tpu.matmul %339, %341, %cst_86 {dimension_numbers = #tpu.dot_dimension_numbers<[1], [0], [0], [1], [0, 0, 1, 1], [], []>} : vector<8x256xbf16>, vector<256x256xbf16>, vector<8x256xf32> -> vector<8x256xf32>
    %343 = vector.broadcast %220 : vector<1x256xf32> to vector<8x256xf32>
    %344 = arith.addf %342, %343 : vector<8x256xf32>
    %345 = arith.addf %216, %344 : vector<8x256xf32>
    %cst_87 = arith.constant dense<0.000000e+00> : vector<8xf32>
    %346 = vector.multi_reduction <add>, %345, %cst_87 [1] : vector<8x256xf32> to vector<8xf32>
    %347 = vector.shape_cast %346 : vector<8xf32> to vector<8x1xf32>
    %cst_88 = arith.constant 2.560000e+02 : f32
    %348 = vector.broadcast %cst_88 : f32 to vector<8x1xf32>
    %349 = arith.divf %347, %348 : vector<8x1xf32>
    %350 = vector.broadcast %349 : vector<8x1xf32> to vector<8x256xf32>
    %351 = arith.subf %345, %350 : vector<8x256xf32>
    %352 = arith.mulf %351, %351 : vector<8x256xf32>
    %cst_89 = arith.constant dense<0.000000e+00> : vector<8xf32>
    %353 = vector.multi_reduction <add>, %352, %cst_89 [1] : vector<8x256xf32> to vector<8xf32>
    %354 = vector.shape_cast %353 : vector<8xf32> to vector<8x1xf32>
    %cst_90 = arith.constant 2.560000e+02 : f32
    %355 = vector.broadcast %cst_90 : f32 to vector<8x1xf32>
    %356 = arith.divf %354, %355 : vector<8x1xf32>
    %357 = vector.broadcast %349 : vector<8x1xf32> to vector<8x256xf32>
    %358 = arith.subf %345, %357 : vector<8x256xf32>
    %cst_91 = arith.constant 9.99999974E-6 : f32
    %359 = vector.broadcast %cst_91 : f32 to vector<8x1xf32>
    %360 = arith.addf %356, %359 : vector<8x1xf32>
    %361 = math.rsqrt %360 : vector<8x1xf32>
    %362 = vector.broadcast %361 : vector<8x1xf32> to vector<8x256xf32>
    %363 = arith.mulf %358, %362 : vector<8x256xf32>
    %364 = vector.broadcast %223 : vector<1x256xf32> to vector<8x256xf32>
    %365 = arith.mulf %363, %364 : vector<8x256xf32>
    %366 = vector.broadcast %224 : vector<1x256xf32> to vector<8x256xf32>
    %367 = arith.addf %365, %366 : vector<8x256xf32>
    %368 = arith.truncf %367 : vector<8x256xf32> to vector<8x256xbf16>
    %c1_92 = arith.constant 1 : index
    %c0_93 = arith.constant 0 : index
    %c0_94 = arith.constant 0 : index
    %369 = vector.load %arg6[%c1_92, %c0_93, %c0_94] : memref<4x256x1024xbf16, #tpu.memory_space<vmem>>, vector<1x256x1024xbf16>
    %370 = vector.shape_cast %369 : vector<1x256x1024xbf16> to vector<256x1024xbf16>
    %cst_95 = arith.constant dense<0.000000e+00> : vector<8x1024xf32>
    %371 = tpu.matmul %368, %370, %cst_95 {dimension_numbers = #tpu.dot_dimension_numbers<[1], [0], [0], [1], [0, 0, 1, 1], [], []>} : vector<8x256xbf16>, vector<256x1024xbf16>, vector<8x1024xf32> -> vector<8x1024xf32>
    %372 = vector.broadcast %221 : vector<1x1024xf32> to vector<8x1024xf32>
    %373 = arith.addf %371, %372 : vector<8x1024xf32>
    %cst_96 = arith.constant 0.000000e+00 : f32
    %374 = vector.broadcast %cst_96 : f32 to vector<8x1024xf32>
    %375 = arith.maximumf %373, %374 : vector<8x1024xf32>
    %376 = arith.truncf %375 : vector<8x1024xf32> to vector<8x1024xbf16>
    %c1_97 = arith.constant 1 : index
    %c0_98 = arith.constant 0 : index
    %c0_99 = arith.constant 0 : index
    %377 = vector.load %arg7[%c1_97, %c0_98, %c0_99] : memref<4x1024x256xbf16, #tpu.memory_space<vmem>>, vector<1x1024x256xbf16>
    %378 = vector.shape_cast %377 : vector<1x1024x256xbf16> to vector<1024x256xbf16>
    %cst_100 = arith.constant dense<0.000000e+00> : vector<8x256xf32>
    %379 = tpu.matmul %376, %378, %cst_100 {dimension_numbers = #tpu.dot_dimension_numbers<[1], [0], [0], [1], [0, 0, 1, 1], [], []>} : vector<8x1024xbf16>, vector<1024x256xbf16>, vector<8x256xf32> -> vector<8x256xf32>
    %380 = vector.broadcast %222 : vector<1x256xf32> to vector<8x256xf32>
    %381 = arith.addf %379, %380 : vector<8x256xf32>
    %382 = arith.addf %367, %381 : vector<8x256xf32>
    %cst_101 = arith.constant dense<0.000000e+00> : vector<8xf32>
    %383 = vector.multi_reduction <add>, %382, %cst_101 [1] : vector<8x256xf32> to vector<8xf32>
    %384 = vector.shape_cast %383 : vector<8xf32> to vector<8x1xf32>
    %cst_102 = arith.constant 2.560000e+02 : f32
    %385 = vector.broadcast %cst_102 : f32 to vector<8x1xf32>
    %386 = arith.divf %384, %385 : vector<8x1xf32>
    %387 = vector.broadcast %386 : vector<8x1xf32> to vector<8x256xf32>
    %388 = arith.subf %382, %387 : vector<8x256xf32>
    %389 = arith.mulf %388, %388 : vector<8x256xf32>
    %cst_103 = arith.constant dense<0.000000e+00> : vector<8xf32>
    %390 = vector.multi_reduction <add>, %389, %cst_103 [1] : vector<8x256xf32> to vector<8xf32>
    %391 = vector.shape_cast %390 : vector<8xf32> to vector<8x1xf32>
    %cst_104 = arith.constant 2.560000e+02 : f32
    %392 = vector.broadcast %cst_104 : f32 to vector<8x1xf32>
    %393 = arith.divf %391, %392 : vector<8x1xf32>
    %394 = vector.broadcast %386 : vector<8x1xf32> to vector<8x256xf32>
    %395 = arith.subf %382, %394 : vector<8x256xf32>
    %cst_105 = arith.constant 9.99999974E-6 : f32
    %396 = vector.broadcast %cst_105 : f32 to vector<8x1xf32>
    %397 = arith.addf %393, %396 : vector<8x1xf32>
    %398 = math.rsqrt %397 : vector<8x1xf32>
    %399 = vector.broadcast %398 : vector<8x1xf32> to vector<8x256xf32>
    %400 = arith.mulf %395, %399 : vector<8x256xf32>
    %401 = vector.broadcast %225 : vector<1x256xf32> to vector<8x256xf32>
    %402 = arith.mulf %400, %401 : vector<8x256xf32>
    %403 = vector.broadcast %226 : vector<1x256xf32> to vector<8x256xf32>
    %404 = arith.addf %402, %403 : vector<8x256xf32>
    %c2 = arith.constant 2 : index
    %c0_106 = arith.constant 0 : index
    %c0_107 = arith.constant 0 : index
    %405 = vector.load %arg8[%c2, %c0_106, %c0_107] : memref<4x8x1024xf32, #tpu.memory_space<vmem>>, vector<1x8x1024xf32>
    %406 = vector.shape_cast %405 : vector<1x8x1024xf32> to vector<8x1024xf32>
    %407 = vector.extract_strided_slice %406 {offsets = [0, 0], sizes = [1, 768], strides = [1, 1]} : vector<8x1024xf32> to vector<1x768xf32>
    %408 = vector.extract_strided_slice %406 {offsets = [0, 768], sizes = [1, 256], strides = [1, 1]} : vector<8x1024xf32> to vector<1x256xf32>
    %409 = vector.extract_strided_slice %406 {offsets = [1, 0], sizes = [1, 1024], strides = [1, 1]} : vector<8x1024xf32> to vector<1x1024xf32>
    %410 = vector.extract_strided_slice %406 {offsets = [2, 0], sizes = [1, 256], strides = [1, 1]} : vector<8x1024xf32> to vector<1x256xf32>
    %411 = vector.extract_strided_slice %406 {offsets = [2, 256], sizes = [1, 256], strides = [1, 1]} : vector<8x1024xf32> to vector<1x256xf32>
    %412 = vector.extract_strided_slice %406 {offsets = [2, 512], sizes = [1, 256], strides = [1, 1]} : vector<8x1024xf32> to vector<1x256xf32>
    %413 = vector.extract_strided_slice %406 {offsets = [2, 768], sizes = [1, 256], strides = [1, 1]} : vector<8x1024xf32> to vector<1x256xf32>
    %414 = vector.extract_strided_slice %406 {offsets = [3, 0], sizes = [1, 256], strides = [1, 1]} : vector<8x1024xf32> to vector<1x256xf32>
    %415 = arith.truncf %404 : vector<8x256xf32> to vector<8x256xbf16>
    %c2_108 = arith.constant 2 : index
    %c0_109 = arith.constant 0 : index
    %c0_110 = arith.constant 0 : index
    %416 = vector.load %arg4[%c2_108, %c0_109, %c0_110] : memref<4x256x768xbf16, #tpu.memory_space<vmem>>, vector<1x256x768xbf16>
    %417 = vector.shape_cast %416 : vector<1x256x768xbf16> to vector<256x768xbf16>
    %cst_111 = arith.constant dense<0.000000e+00> : vector<8x768xf32>
    %418 = tpu.matmul %415, %417, %cst_111 {dimension_numbers = #tpu.dot_dimension_numbers<[1], [0], [0], [1], [0, 0, 1, 1], [], []>} : vector<8x256xbf16>, vector<256x768xbf16>, vector<8x768xf32> -> vector<8x768xf32>
    %419 = vector.broadcast %407 : vector<1x768xf32> to vector<8x768xf32>
    %420 = arith.addf %418, %419 : vector<8x768xf32>
    %421 = vector.extract_strided_slice %420 {offsets = [0, 0], sizes = [8, 256], strides = [1, 1]} : vector<8x768xf32> to vector<8x256xf32>
    %cst_112 = arith.constant 1.250000e-01 : f32
    %422 = vector.broadcast %cst_112 : f32 to vector<8x256xf32>
    %423 = arith.mulf %421, %422 : vector<8x256xf32>
    %424 = vector.extract_strided_slice %420 {offsets = [0, 256], sizes = [8, 256], strides = [1, 1]} : vector<8x768xf32> to vector<8x256xf32>
    %425 = vector.extract_strided_slice %420 {offsets = [0, 512], sizes = [8, 256], strides = [1, 1]} : vector<8x768xf32> to vector<8x256xf32>
    %426 = vector.extract_strided_slice %423 {offsets = [0, 0], sizes = [8, 64], strides = [1, 1]} : vector<8x256xf32> to vector<8x64xf32>
    %427 = vector.shape_cast %426 : vector<8x64xf32> to vector<1x8x64xf32>
    %428 = arith.truncf %427 : vector<1x8x64xf32> to vector<1x8x64xbf16>
    %429 = vector.extract_strided_slice %424 {offsets = [0, 0], sizes = [8, 64], strides = [1, 1]} : vector<8x256xf32> to vector<8x64xf32>
    %430 = vector.shape_cast %429 : vector<8x64xf32> to vector<1x8x64xf32>
    %431 = arith.truncf %430 : vector<1x8x64xf32> to vector<1x8x64xbf16>
    %432 = vector.extract_strided_slice %425 {offsets = [0, 0], sizes = [8, 64], strides = [1, 1]} : vector<8x256xf32> to vector<8x64xf32>
    %433 = vector.shape_cast %432 : vector<8x64xf32> to vector<1x8x64xf32>
    %434 = arith.truncf %433 : vector<1x8x64xf32> to vector<1x8x64xbf16>
    "tpu.trace_start"() <{level = 10 : i32, message = "bqd,bkd->bqk"}> : () -> ()
    %cst_113 = arith.constant dense<0.000000e+00> : vector<1x8x8xf32>
    %435 = tpu.matmul %428, %431, %cst_113 {dimension_numbers = #tpu.dot_dimension_numbers<[2], [2], [1], [1], [0, 0, 0, 1, 1, 1], [0], [0]>} : vector<1x8x64xbf16>, vector<1x8x64xbf16>, vector<1x8x8xf32> -> vector<1x8x8xf32>
    "tpu.trace_stop"() : () -> ()
    %436 = vector.broadcast %28 : vector<1x1x8xf32> to vector<1x8x8xf32>
    %437 = arith.addf %435, %436 : vector<1x8x8xf32>
    %cst_114 = arith.constant dense<0xFF800000> : vector<1x8xf32>
    %438 = vector.multi_reduction <maximumf>, %437, %cst_114 [2] : vector<1x8x8xf32> to vector<1x8xf32>
    %439 = vector.shape_cast %438 : vector<1x8xf32> to vector<1x8x1xf32>
    %440 = vector.broadcast %439 : vector<1x8x1xf32> to vector<1x8x8xf32>
    %441 = arith.subf %437, %440 : vector<1x8x8xf32>
    %442 = math.exp %441 : vector<1x8x8xf32>
    %cst_115 = arith.constant dense<0.000000e+00> : vector<1x8xf32>
    %443 = vector.multi_reduction <add>, %442, %cst_115 [2] : vector<1x8x8xf32> to vector<1x8xf32>
    %444 = vector.shape_cast %443 : vector<1x8xf32> to vector<1x8x1xf32>
    %445 = tpu.reciprocal %444 {approx = true} : vector<1x8x1xf32> -> vector<1x8x1xf32>
    %446 = arith.truncf %442 : vector<1x8x8xf32> to vector<1x8x8xbf16>
    "tpu.trace_start"() <{level = 10 : i32, message = "bqk,bkd->bqd"}> : () -> ()
    %cst_116 = arith.constant dense<0.000000e+00> : vector<1x8x64xf32>
    %447 = tpu.matmul %446, %434, %cst_116 {dimension_numbers = #tpu.dot_dimension_numbers<[2], [1], [1], [2], [0, 0, 0, 1, 1, 2], [0], [0]>} : vector<1x8x8xbf16>, vector<1x8x64xbf16>, vector<1x8x64xf32> -> vector<1x8x64xf32>
    "tpu.trace_stop"() : () -> ()
    %448 = vector.broadcast %445 : vector<1x8x1xf32> to vector<1x8x64xf32>
    %449 = arith.mulf %447, %448 : vector<1x8x64xf32>
    %450 = vector.shape_cast %449 : vector<1x8x64xf32> to vector<8x64xf32>
    %451 = vector.extract_strided_slice %423 {offsets = [0, 64], sizes = [8, 64], strides = [1, 1]} : vector<8x256xf32> to vector<8x64xf32>
    %452 = vector.shape_cast %451 : vector<8x64xf32> to vector<1x8x64xf32>
    %453 = arith.truncf %452 : vector<1x8x64xf32> to vector<1x8x64xbf16>
    %454 = vector.extract_strided_slice %424 {offsets = [0, 64], sizes = [8, 64], strides = [1, 1]} : vector<8x256xf32> to vector<8x64xf32>
    %455 = vector.shape_cast %454 : vector<8x64xf32> to vector<1x8x64xf32>
    %456 = arith.truncf %455 : vector<1x8x64xf32> to vector<1x8x64xbf16>
    %457 = vector.extract_strided_slice %425 {offsets = [0, 64], sizes = [8, 64], strides = [1, 1]} : vector<8x256xf32> to vector<8x64xf32>
    %458 = vector.shape_cast %457 : vector<8x64xf32> to vector<1x8x64xf32>
    %459 = arith.truncf %458 : vector<1x8x64xf32> to vector<1x8x64xbf16>
    "tpu.trace_start"() <{level = 10 : i32, message = "bqd,bkd->bqk"}> : () -> ()
    %cst_117 = arith.constant dense<0.000000e+00> : vector<1x8x8xf32>
    %460 = tpu.matmul %453, %456, %cst_117 {dimension_numbers = #tpu.dot_dimension_numbers<[2], [2], [1], [1], [0, 0, 0, 1, 1, 1], [0], [0]>} : vector<1x8x64xbf16>, vector<1x8x64xbf16>, vector<1x8x8xf32> -> vector<1x8x8xf32>
    "tpu.trace_stop"() : () -> ()
    %461 = vector.broadcast %28 : vector<1x1x8xf32> to vector<1x8x8xf32>
    %462 = arith.addf %460, %461 : vector<1x8x8xf32>
    %cst_118 = arith.constant dense<0xFF800000> : vector<1x8xf32>
    %463 = vector.multi_reduction <maximumf>, %462, %cst_118 [2] : vector<1x8x8xf32> to vector<1x8xf32>
    %464 = vector.shape_cast %463 : vector<1x8xf32> to vector<1x8x1xf32>
    %465 = vector.broadcast %464 : vector<1x8x1xf32> to vector<1x8x8xf32>
    %466 = arith.subf %462, %465 : vector<1x8x8xf32>
    %467 = math.exp %466 : vector<1x8x8xf32>
    %cst_119 = arith.constant dense<0.000000e+00> : vector<1x8xf32>
    %468 = vector.multi_reduction <add>, %467, %cst_119 [2] : vector<1x8x8xf32> to vector<1x8xf32>
    %469 = vector.shape_cast %468 : vector<1x8xf32> to vector<1x8x1xf32>
    %470 = tpu.reciprocal %469 {approx = true} : vector<1x8x1xf32> -> vector<1x8x1xf32>
    %471 = arith.truncf %467 : vector<1x8x8xf32> to vector<1x8x8xbf16>
    "tpu.trace_start"() <{level = 10 : i32, message = "bqk,bkd->bqd"}> : () -> ()
    %cst_120 = arith.constant dense<0.000000e+00> : vector<1x8x64xf32>
    %472 = tpu.matmul %471, %459, %cst_120 {dimension_numbers = #tpu.dot_dimension_numbers<[2], [1], [1], [2], [0, 0, 0, 1, 1, 2], [0], [0]>} : vector<1x8x8xbf16>, vector<1x8x64xbf16>, vector<1x8x64xf32> -> vector<1x8x64xf32>
    "tpu.trace_stop"() : () -> ()
    %473 = vector.broadcast %470 : vector<1x8x1xf32> to vector<1x8x64xf32>
    %474 = arith.mulf %472, %473 : vector<1x8x64xf32>
    %475 = vector.shape_cast %474 : vector<1x8x64xf32> to vector<8x64xf32>
    %476 = vector.extract_strided_slice %423 {offsets = [0, 128], sizes = [8, 64], strides = [1, 1]} : vector<8x256xf32> to vector<8x64xf32>
    %477 = vector.shape_cast %476 : vector<8x64xf32> to vector<1x8x64xf32>
    %478 = arith.truncf %477 : vector<1x8x64xf32> to vector<1x8x64xbf16>
    %479 = vector.extract_strided_slice %424 {offsets = [0, 128], sizes = [8, 64], strides = [1, 1]} : vector<8x256xf32> to vector<8x64xf32>
    %480 = vector.shape_cast %479 : vector<8x64xf32> to vector<1x8x64xf32>
    %481 = arith.truncf %480 : vector<1x8x64xf32> to vector<1x8x64xbf16>
    %482 = vector.extract_strided_slice %425 {offsets = [0, 128], sizes = [8, 64], strides = [1, 1]} : vector<8x256xf32> to vector<8x64xf32>
    %483 = vector.shape_cast %482 : vector<8x64xf32> to vector<1x8x64xf32>
    %484 = arith.truncf %483 : vector<1x8x64xf32> to vector<1x8x64xbf16>
    "tpu.trace_start"() <{level = 10 : i32, message = "bqd,bkd->bqk"}> : () -> ()
    %cst_121 = arith.constant dense<0.000000e+00> : vector<1x8x8xf32>
    %485 = tpu.matmul %478, %481, %cst_121 {dimension_numbers = #tpu.dot_dimension_numbers<[2], [2], [1], [1], [0, 0, 0, 1, 1, 1], [0], [0]>} : vector<1x8x64xbf16>, vector<1x8x64xbf16>, vector<1x8x8xf32> -> vector<1x8x8xf32>
    "tpu.trace_stop"() : () -> ()
    %486 = vector.broadcast %28 : vector<1x1x8xf32> to vector<1x8x8xf32>
    %487 = arith.addf %485, %486 : vector<1x8x8xf32>
    %cst_122 = arith.constant dense<0xFF800000> : vector<1x8xf32>
    %488 = vector.multi_reduction <maximumf>, %487, %cst_122 [2] : vector<1x8x8xf32> to vector<1x8xf32>
    %489 = vector.shape_cast %488 : vector<1x8xf32> to vector<1x8x1xf32>
    %490 = vector.broadcast %489 : vector<1x8x1xf32> to vector<1x8x8xf32>
    %491 = arith.subf %487, %490 : vector<1x8x8xf32>
    %492 = math.exp %491 : vector<1x8x8xf32>
    %cst_123 = arith.constant dense<0.000000e+00> : vector<1x8xf32>
    %493 = vector.multi_reduction <add>, %492, %cst_123 [2] : vector<1x8x8xf32> to vector<1x8xf32>
    %494 = vector.shape_cast %493 : vector<1x8xf32> to vector<1x8x1xf32>
    %495 = tpu.reciprocal %494 {approx = true} : vector<1x8x1xf32> -> vector<1x8x1xf32>
    %496 = arith.truncf %492 : vector<1x8x8xf32> to vector<1x8x8xbf16>
    "tpu.trace_start"() <{level = 10 : i32, message = "bqk,bkd->bqd"}> : () -> ()
    %cst_124 = arith.constant dense<0.000000e+00> : vector<1x8x64xf32>
    %497 = tpu.matmul %496, %484, %cst_124 {dimension_numbers = #tpu.dot_dimension_numbers<[2], [1], [1], [2], [0, 0, 0, 1, 1, 2], [0], [0]>} : vector<1x8x8xbf16>, vector<1x8x64xbf16>, vector<1x8x64xf32> -> vector<1x8x64xf32>
    "tpu.trace_stop"() : () -> ()
    %498 = vector.broadcast %495 : vector<1x8x1xf32> to vector<1x8x64xf32>
    %499 = arith.mulf %497, %498 : vector<1x8x64xf32>
    %500 = vector.shape_cast %499 : vector<1x8x64xf32> to vector<8x64xf32>
    %501 = vector.extract_strided_slice %423 {offsets = [0, 192], sizes = [8, 64], strides = [1, 1]} : vector<8x256xf32> to vector<8x64xf32>
    %502 = vector.shape_cast %501 : vector<8x64xf32> to vector<1x8x64xf32>
    %503 = arith.truncf %502 : vector<1x8x64xf32> to vector<1x8x64xbf16>
    %504 = vector.extract_strided_slice %424 {offsets = [0, 192], sizes = [8, 64], strides = [1, 1]} : vector<8x256xf32> to vector<8x64xf32>
    %505 = vector.shape_cast %504 : vector<8x64xf32> to vector<1x8x64xf32>
    %506 = arith.truncf %505 : vector<1x8x64xf32> to vector<1x8x64xbf16>
    %507 = vector.extract_strided_slice %425 {offsets = [0, 192], sizes = [8, 64], strides = [1, 1]} : vector<8x256xf32> to vector<8x64xf32>
    %508 = vector.shape_cast %507 : vector<8x64xf32> to vector<1x8x64xf32>
    %509 = arith.truncf %508 : vector<1x8x64xf32> to vector<1x8x64xbf16>
    "tpu.trace_start"() <{level = 10 : i32, message = "bqd,bkd->bqk"}> : () -> ()
    %cst_125 = arith.constant dense<0.000000e+00> : vector<1x8x8xf32>
    %510 = tpu.matmul %503, %506, %cst_125 {dimension_numbers = #tpu.dot_dimension_numbers<[2], [2], [1], [1], [0, 0, 0, 1, 1, 1], [0], [0]>} : vector<1x8x64xbf16>, vector<1x8x64xbf16>, vector<1x8x8xf32> -> vector<1x8x8xf32>
    "tpu.trace_stop"() : () -> ()
    %511 = vector.broadcast %28 : vector<1x1x8xf32> to vector<1x8x8xf32>
    %512 = arith.addf %510, %511 : vector<1x8x8xf32>
    %cst_126 = arith.constant dense<0xFF800000> : vector<1x8xf32>
    %513 = vector.multi_reduction <maximumf>, %512, %cst_126 [2] : vector<1x8x8xf32> to vector<1x8xf32>
    %514 = vector.shape_cast %513 : vector<1x8xf32> to vector<1x8x1xf32>
    %515 = vector.broadcast %514 : vector<1x8x1xf32> to vector<1x8x8xf32>
    %516 = arith.subf %512, %515 : vector<1x8x8xf32>
    %517 = math.exp %516 : vector<1x8x8xf32>
    %cst_127 = arith.constant dense<0.000000e+00> : vector<1x8xf32>
    %518 = vector.multi_reduction <add>, %517, %cst_127 [2] : vector<1x8x8xf32> to vector<1x8xf32>
    %519 = vector.shape_cast %518 : vector<1x8xf32> to vector<1x8x1xf32>
    %520 = tpu.reciprocal %519 {approx = true} : vector<1x8x1xf32> -> vector<1x8x1xf32>
    %521 = arith.truncf %517 : vector<1x8x8xf32> to vector<1x8x8xbf16>
    "tpu.trace_start"() <{level = 10 : i32, message = "bqk,bkd->bqd"}> : () -> ()
    %cst_128 = arith.constant dense<0.000000e+00> : vector<1x8x64xf32>
    %522 = tpu.matmul %521, %509, %cst_128 {dimension_numbers = #tpu.dot_dimension_numbers<[2], [1], [1], [2], [0, 0, 0, 1, 1, 2], [0], [0]>} : vector<1x8x8xbf16>, vector<1x8x64xbf16>, vector<1x8x64xf32> -> vector<1x8x64xf32>
    "tpu.trace_stop"() : () -> ()
    %523 = vector.broadcast %520 : vector<1x8x1xf32> to vector<1x8x64xf32>
    %524 = arith.mulf %522, %523 : vector<1x8x64xf32>
    %525 = vector.shape_cast %524 : vector<1x8x64xf32> to vector<8x64xf32>
    %526 = tpu.concatenate %450, %475, %500, %525 in 1 : vector<8x64xf32>, vector<8x64xf32>, vector<8x64xf32>, vector<8x64xf32> -> vector<8x256xf32>
    %527 = arith.truncf %526 : vector<8x256xf32> to vector<8x256xbf16>
    %c2_129 = arith.constant 2 : index
    %c0_130 = arith.constant 0 : index
    %c0_131 = arith.constant 0 : index
    %528 = vector.load %arg5[%c2_129, %c0_130, %c0_131] : memref<4x256x256xbf16, #tpu.memory_space<vmem>>, vector<1x256x256xbf16>
    %529 = vector.shape_cast %528 : vector<1x256x256xbf16> to vector<256x256xbf16>
    %cst_132 = arith.constant dense<0.000000e+00> : vector<8x256xf32>
    %530 = tpu.matmul %527, %529, %cst_132 {dimension_numbers = #tpu.dot_dimension_numbers<[1], [0], [0], [1], [0, 0, 1, 1], [], []>} : vector<8x256xbf16>, vector<256x256xbf16>, vector<8x256xf32> -> vector<8x256xf32>
    %531 = vector.broadcast %408 : vector<1x256xf32> to vector<8x256xf32>
    %532 = arith.addf %530, %531 : vector<8x256xf32>
    %533 = arith.addf %404, %532 : vector<8x256xf32>
    %cst_133 = arith.constant dense<0.000000e+00> : vector<8xf32>
    %534 = vector.multi_reduction <add>, %533, %cst_133 [1] : vector<8x256xf32> to vector<8xf32>
    %535 = vector.shape_cast %534 : vector<8xf32> to vector<8x1xf32>
    %cst_134 = arith.constant 2.560000e+02 : f32
    %536 = vector.broadcast %cst_134 : f32 to vector<8x1xf32>
    %537 = arith.divf %535, %536 : vector<8x1xf32>
    %538 = vector.broadcast %537 : vector<8x1xf32> to vector<8x256xf32>
    %539 = arith.subf %533, %538 : vector<8x256xf32>
    %540 = arith.mulf %539, %539 : vector<8x256xf32>
    %cst_135 = arith.constant dense<0.000000e+00> : vector<8xf32>
    %541 = vector.multi_reduction <add>, %540, %cst_135 [1] : vector<8x256xf32> to vector<8xf32>
    %542 = vector.shape_cast %541 : vector<8xf32> to vector<8x1xf32>
    %cst_136 = arith.constant 2.560000e+02 : f32
    %543 = vector.broadcast %cst_136 : f32 to vector<8x1xf32>
    %544 = arith.divf %542, %543 : vector<8x1xf32>
    %545 = vector.broadcast %537 : vector<8x1xf32> to vector<8x256xf32>
    %546 = arith.subf %533, %545 : vector<8x256xf32>
    %cst_137 = arith.constant 9.99999974E-6 : f32
    %547 = vector.broadcast %cst_137 : f32 to vector<8x1xf32>
    %548 = arith.addf %544, %547 : vector<8x1xf32>
    %549 = math.rsqrt %548 : vector<8x1xf32>
    %550 = vector.broadcast %549 : vector<8x1xf32> to vector<8x256xf32>
    %551 = arith.mulf %546, %550 : vector<8x256xf32>
    %552 = vector.broadcast %411 : vector<1x256xf32> to vector<8x256xf32>
    %553 = arith.mulf %551, %552 : vector<8x256xf32>
    %554 = vector.broadcast %412 : vector<1x256xf32> to vector<8x256xf32>
    %555 = arith.addf %553, %554 : vector<8x256xf32>
    %556 = arith.truncf %555 : vector<8x256xf32> to vector<8x256xbf16>
    %c2_138 = arith.constant 2 : index
    %c0_139 = arith.constant 0 : index
    %c0_140 = arith.constant 0 : index
    %557 = vector.load %arg6[%c2_138, %c0_139, %c0_140] : memref<4x256x1024xbf16, #tpu.memory_space<vmem>>, vector<1x256x1024xbf16>
    %558 = vector.shape_cast %557 : vector<1x256x1024xbf16> to vector<256x1024xbf16>
    %cst_141 = arith.constant dense<0.000000e+00> : vector<8x1024xf32>
    %559 = tpu.matmul %556, %558, %cst_141 {dimension_numbers = #tpu.dot_dimension_numbers<[1], [0], [0], [1], [0, 0, 1, 1], [], []>} : vector<8x256xbf16>, vector<256x1024xbf16>, vector<8x1024xf32> -> vector<8x1024xf32>
    %560 = vector.broadcast %409 : vector<1x1024xf32> to vector<8x1024xf32>
    %561 = arith.addf %559, %560 : vector<8x1024xf32>
    %cst_142 = arith.constant 0.000000e+00 : f32
    %562 = vector.broadcast %cst_142 : f32 to vector<8x1024xf32>
    %563 = arith.maximumf %561, %562 : vector<8x1024xf32>
    %564 = arith.truncf %563 : vector<8x1024xf32> to vector<8x1024xbf16>
    %c2_143 = arith.constant 2 : index
    %c0_144 = arith.constant 0 : index
    %c0_145 = arith.constant 0 : index
    %565 = vector.load %arg7[%c2_143, %c0_144, %c0_145] : memref<4x1024x256xbf16, #tpu.memory_space<vmem>>, vector<1x1024x256xbf16>
    %566 = vector.shape_cast %565 : vector<1x1024x256xbf16> to vector<1024x256xbf16>
    %cst_146 = arith.constant dense<0.000000e+00> : vector<8x256xf32>
    %567 = tpu.matmul %564, %566, %cst_146 {dimension_numbers = #tpu.dot_dimension_numbers<[1], [0], [0], [1], [0, 0, 1, 1], [], []>} : vector<8x1024xbf16>, vector<1024x256xbf16>, vector<8x256xf32> -> vector<8x256xf32>
    %568 = vector.broadcast %410 : vector<1x256xf32> to vector<8x256xf32>
    %569 = arith.addf %567, %568 : vector<8x256xf32>
    %570 = arith.addf %555, %569 : vector<8x256xf32>
    %cst_147 = arith.constant dense<0.000000e+00> : vector<8xf32>
    %571 = vector.multi_reduction <add>, %570, %cst_147 [1] : vector<8x256xf32> to vector<8xf32>
    %572 = vector.shape_cast %571 : vector<8xf32> to vector<8x1xf32>
    %cst_148 = arith.constant 2.560000e+02 : f32
    %573 = vector.broadcast %cst_148 : f32 to vector<8x1xf32>
    %574 = arith.divf %572, %573 : vector<8x1xf32>
    %575 = vector.broadcast %574 : vector<8x1xf32> to vector<8x256xf32>
    %576 = arith.subf %570, %575 : vector<8x256xf32>
    %577 = arith.mulf %576, %576 : vector<8x256xf32>
    %cst_149 = arith.constant dense<0.000000e+00> : vector<8xf32>
    %578 = vector.multi_reduction <add>, %577, %cst_149 [1] : vector<8x256xf32> to vector<8xf32>
    %579 = vector.shape_cast %578 : vector<8xf32> to vector<8x1xf32>
    %cst_150 = arith.constant 2.560000e+02 : f32
    %580 = vector.broadcast %cst_150 : f32 to vector<8x1xf32>
    %581 = arith.divf %579, %580 : vector<8x1xf32>
    %582 = vector.broadcast %574 : vector<8x1xf32> to vector<8x256xf32>
    %583 = arith.subf %570, %582 : vector<8x256xf32>
    %cst_151 = arith.constant 9.99999974E-6 : f32
    %584 = vector.broadcast %cst_151 : f32 to vector<8x1xf32>
    %585 = arith.addf %581, %584 : vector<8x1xf32>
    %586 = math.rsqrt %585 : vector<8x1xf32>
    %587 = vector.broadcast %586 : vector<8x1xf32> to vector<8x256xf32>
    %588 = arith.mulf %583, %587 : vector<8x256xf32>
    %589 = vector.broadcast %413 : vector<1x256xf32> to vector<8x256xf32>
    %590 = arith.mulf %588, %589 : vector<8x256xf32>
    %591 = vector.broadcast %414 : vector<1x256xf32> to vector<8x256xf32>
    %592 = arith.addf %590, %591 : vector<8x256xf32>
    %c3 = arith.constant 3 : index
    %c0_152 = arith.constant 0 : index
    %c0_153 = arith.constant 0 : index
    %593 = vector.load %arg8[%c3, %c0_152, %c0_153] : memref<4x8x1024xf32, #tpu.memory_space<vmem>>, vector<1x8x1024xf32>
    %594 = vector.shape_cast %593 : vector<1x8x1024xf32> to vector<8x1024xf32>
    %595 = vector.extract_strided_slice %594 {offsets = [0, 0], sizes = [1, 768], strides = [1, 1]} : vector<8x1024xf32> to vector<1x768xf32>
    %596 = vector.extract_strided_slice %594 {offsets = [0, 768], sizes = [1, 256], strides = [1, 1]} : vector<8x1024xf32> to vector<1x256xf32>
    %597 = vector.extract_strided_slice %594 {offsets = [1, 0], sizes = [1, 1024], strides = [1, 1]} : vector<8x1024xf32> to vector<1x1024xf32>
    %598 = vector.extract_strided_slice %594 {offsets = [2, 0], sizes = [1, 256], strides = [1, 1]} : vector<8x1024xf32> to vector<1x256xf32>
    %599 = vector.extract_strided_slice %594 {offsets = [2, 256], sizes = [1, 256], strides = [1, 1]} : vector<8x1024xf32> to vector<1x256xf32>
    %600 = vector.extract_strided_slice %594 {offsets = [2, 512], sizes = [1, 256], strides = [1, 1]} : vector<8x1024xf32> to vector<1x256xf32>
    %601 = vector.extract_strided_slice %594 {offsets = [2, 768], sizes = [1, 256], strides = [1, 1]} : vector<8x1024xf32> to vector<1x256xf32>
    %602 = vector.extract_strided_slice %594 {offsets = [3, 0], sizes = [1, 256], strides = [1, 1]} : vector<8x1024xf32> to vector<1x256xf32>
    %603 = arith.truncf %592 : vector<8x256xf32> to vector<8x256xbf16>
    %c3_154 = arith.constant 3 : index
    %c0_155 = arith.constant 0 : index
    %c0_156 = arith.constant 0 : index
    %604 = vector.load %arg4[%c3_154, %c0_155, %c0_156] : memref<4x256x768xbf16, #tpu.memory_space<vmem>>, vector<1x256x768xbf16>
    %605 = vector.shape_cast %604 : vector<1x256x768xbf16> to vector<256x768xbf16>
    %cst_157 = arith.constant dense<0.000000e+00> : vector<8x768xf32>
    %606 = tpu.matmul %603, %605, %cst_157 {dimension_numbers = #tpu.dot_dimension_numbers<[1], [0], [0], [1], [0, 0, 1, 1], [], []>} : vector<8x256xbf16>, vector<256x768xbf16>, vector<8x768xf32> -> vector<8x768xf32>
    %607 = vector.broadcast %595 : vector<1x768xf32> to vector<8x768xf32>
    %608 = arith.addf %606, %607 : vector<8x768xf32>
    %609 = vector.extract_strided_slice %608 {offsets = [0, 0], sizes = [8, 256], strides = [1, 1]} : vector<8x768xf32> to vector<8x256xf32>
    %cst_158 = arith.constant 1.250000e-01 : f32
    %610 = vector.broadcast %cst_158 : f32 to vector<8x256xf32>
    %611 = arith.mulf %609, %610 : vector<8x256xf32>
    %612 = vector.extract_strided_slice %608 {offsets = [0, 256], sizes = [8, 256], strides = [1, 1]} : vector<8x768xf32> to vector<8x256xf32>
    %613 = vector.extract_strided_slice %608 {offsets = [0, 512], sizes = [8, 256], strides = [1, 1]} : vector<8x768xf32> to vector<8x256xf32>
    %614 = vector.extract_strided_slice %611 {offsets = [0, 0], sizes = [8, 64], strides = [1, 1]} : vector<8x256xf32> to vector<8x64xf32>
    %615 = vector.shape_cast %614 : vector<8x64xf32> to vector<1x8x64xf32>
    %616 = arith.truncf %615 : vector<1x8x64xf32> to vector<1x8x64xbf16>
    %617 = vector.extract_strided_slice %612 {offsets = [0, 0], sizes = [8, 64], strides = [1, 1]} : vector<8x256xf32> to vector<8x64xf32>
    %618 = vector.shape_cast %617 : vector<8x64xf32> to vector<1x8x64xf32>
    %619 = arith.truncf %618 : vector<1x8x64xf32> to vector<1x8x64xbf16>
    %620 = vector.extract_strided_slice %613 {offsets = [0, 0], sizes = [8, 64], strides = [1, 1]} : vector<8x256xf32> to vector<8x64xf32>
    %621 = vector.shape_cast %620 : vector<8x64xf32> to vector<1x8x64xf32>
    %622 = arith.truncf %621 : vector<1x8x64xf32> to vector<1x8x64xbf16>
    "tpu.trace_start"() <{level = 10 : i32, message = "bqd,bkd->bqk"}> : () -> ()
    %cst_159 = arith.constant dense<0.000000e+00> : vector<1x8x8xf32>
    %623 = tpu.matmul %616, %619, %cst_159 {dimension_numbers = #tpu.dot_dimension_numbers<[2], [2], [1], [1], [0, 0, 0, 1, 1, 1], [0], [0]>} : vector<1x8x64xbf16>, vector<1x8x64xbf16>, vector<1x8x8xf32> -> vector<1x8x8xf32>
    "tpu.trace_stop"() : () -> ()
    %624 = vector.broadcast %28 : vector<1x1x8xf32> to vector<1x8x8xf32>
    %625 = arith.addf %623, %624 : vector<1x8x8xf32>
    %cst_160 = arith.constant dense<0xFF800000> : vector<1x8xf32>
    %626 = vector.multi_reduction <maximumf>, %625, %cst_160 [2] : vector<1x8x8xf32> to vector<1x8xf32>
    %627 = vector.shape_cast %626 : vector<1x8xf32> to vector<1x8x1xf32>
    %628 = vector.broadcast %627 : vector<1x8x1xf32> to vector<1x8x8xf32>
    %629 = arith.subf %625, %628 : vector<1x8x8xf32>
    %630 = math.exp %629 : vector<1x8x8xf32>
    %cst_161 = arith.constant dense<0.000000e+00> : vector<1x8xf32>
    %631 = vector.multi_reduction <add>, %630, %cst_161 [2] : vector<1x8x8xf32> to vector<1x8xf32>
    %632 = vector.shape_cast %631 : vector<1x8xf32> to vector<1x8x1xf32>
    %633 = tpu.reciprocal %632 {approx = true} : vector<1x8x1xf32> -> vector<1x8x1xf32>
    %634 = arith.truncf %630 : vector<1x8x8xf32> to vector<1x8x8xbf16>
    "tpu.trace_start"() <{level = 10 : i32, message = "bqk,bkd->bqd"}> : () -> ()
    %cst_162 = arith.constant dense<0.000000e+00> : vector<1x8x64xf32>
    %635 = tpu.matmul %634, %622, %cst_162 {dimension_numbers = #tpu.dot_dimension_numbers<[2], [1], [1], [2], [0, 0, 0, 1, 1, 2], [0], [0]>} : vector<1x8x8xbf16>, vector<1x8x64xbf16>, vector<1x8x64xf32> -> vector<1x8x64xf32>
    "tpu.trace_stop"() : () -> ()
    %636 = vector.broadcast %633 : vector<1x8x1xf32> to vector<1x8x64xf32>
    %637 = arith.mulf %635, %636 : vector<1x8x64xf32>
    %638 = vector.shape_cast %637 : vector<1x8x64xf32> to vector<8x64xf32>
    %639 = vector.extract_strided_slice %611 {offsets = [0, 64], sizes = [8, 64], strides = [1, 1]} : vector<8x256xf32> to vector<8x64xf32>
    %640 = vector.shape_cast %639 : vector<8x64xf32> to vector<1x8x64xf32>
    %641 = arith.truncf %640 : vector<1x8x64xf32> to vector<1x8x64xbf16>
    %642 = vector.extract_strided_slice %612 {offsets = [0, 64], sizes = [8, 64], strides = [1, 1]} : vector<8x256xf32> to vector<8x64xf32>
    %643 = vector.shape_cast %642 : vector<8x64xf32> to vector<1x8x64xf32>
    %644 = arith.truncf %643 : vector<1x8x64xf32> to vector<1x8x64xbf16>
    %645 = vector.extract_strided_slice %613 {offsets = [0, 64], sizes = [8, 64], strides = [1, 1]} : vector<8x256xf32> to vector<8x64xf32>
    %646 = vector.shape_cast %645 : vector<8x64xf32> to vector<1x8x64xf32>
    %647 = arith.truncf %646 : vector<1x8x64xf32> to vector<1x8x64xbf16>
    "tpu.trace_start"() <{level = 10 : i32, message = "bqd,bkd->bqk"}> : () -> ()
    %cst_163 = arith.constant dense<0.000000e+00> : vector<1x8x8xf32>
    %648 = tpu.matmul %641, %644, %cst_163 {dimension_numbers = #tpu.dot_dimension_numbers<[2], [2], [1], [1], [0, 0, 0, 1, 1, 1], [0], [0]>} : vector<1x8x64xbf16>, vector<1x8x64xbf16>, vector<1x8x8xf32> -> vector<1x8x8xf32>
    "tpu.trace_stop"() : () -> ()
    %649 = vector.broadcast %28 : vector<1x1x8xf32> to vector<1x8x8xf32>
    %650 = arith.addf %648, %649 : vector<1x8x8xf32>
    %cst_164 = arith.constant dense<0xFF800000> : vector<1x8xf32>
    %651 = vector.multi_reduction <maximumf>, %650, %cst_164 [2] : vector<1x8x8xf32> to vector<1x8xf32>
    %652 = vector.shape_cast %651 : vector<1x8xf32> to vector<1x8x1xf32>
    %653 = vector.broadcast %652 : vector<1x8x1xf32> to vector<1x8x8xf32>
    %654 = arith.subf %650, %653 : vector<1x8x8xf32>
    %655 = math.exp %654 : vector<1x8x8xf32>
    %cst_165 = arith.constant dense<0.000000e+00> : vector<1x8xf32>
    %656 = vector.multi_reduction <add>, %655, %cst_165 [2] : vector<1x8x8xf32> to vector<1x8xf32>
    %657 = vector.shape_cast %656 : vector<1x8xf32> to vector<1x8x1xf32>
    %658 = tpu.reciprocal %657 {approx = true} : vector<1x8x1xf32> -> vector<1x8x1xf32>
    %659 = arith.truncf %655 : vector<1x8x8xf32> to vector<1x8x8xbf16>
    "tpu.trace_start"() <{level = 10 : i32, message = "bqk,bkd->bqd"}> : () -> ()
    %cst_166 = arith.constant dense<0.000000e+00> : vector<1x8x64xf32>
    %660 = tpu.matmul %659, %647, %cst_166 {dimension_numbers = #tpu.dot_dimension_numbers<[2], [1], [1], [2], [0, 0, 0, 1, 1, 2], [0], [0]>} : vector<1x8x8xbf16>, vector<1x8x64xbf16>, vector<1x8x64xf32> -> vector<1x8x64xf32>
    "tpu.trace_stop"() : () -> ()
    %661 = vector.broadcast %658 : vector<1x8x1xf32> to vector<1x8x64xf32>
    %662 = arith.mulf %660, %661 : vector<1x8x64xf32>
    %663 = vector.shape_cast %662 : vector<1x8x64xf32> to vector<8x64xf32>
    %664 = vector.extract_strided_slice %611 {offsets = [0, 128], sizes = [8, 64], strides = [1, 1]} : vector<8x256xf32> to vector<8x64xf32>
    %665 = vector.shape_cast %664 : vector<8x64xf32> to vector<1x8x64xf32>
    %666 = arith.truncf %665 : vector<1x8x64xf32> to vector<1x8x64xbf16>
    %667 = vector.extract_strided_slice %612 {offsets = [0, 128], sizes = [8, 64], strides = [1, 1]} : vector<8x256xf32> to vector<8x64xf32>
    %668 = vector.shape_cast %667 : vector<8x64xf32> to vector<1x8x64xf32>
    %669 = arith.truncf %668 : vector<1x8x64xf32> to vector<1x8x64xbf16>
    %670 = vector.extract_strided_slice %613 {offsets = [0, 128], sizes = [8, 64], strides = [1, 1]} : vector<8x256xf32> to vector<8x64xf32>
    %671 = vector.shape_cast %670 : vector<8x64xf32> to vector<1x8x64xf32>
    %672 = arith.truncf %671 : vector<1x8x64xf32> to vector<1x8x64xbf16>
    "tpu.trace_start"() <{level = 10 : i32, message = "bqd,bkd->bqk"}> : () -> ()
    %cst_167 = arith.constant dense<0.000000e+00> : vector<1x8x8xf32>
    %673 = tpu.matmul %666, %669, %cst_167 {dimension_numbers = #tpu.dot_dimension_numbers<[2], [2], [1], [1], [0, 0, 0, 1, 1, 1], [0], [0]>} : vector<1x8x64xbf16>, vector<1x8x64xbf16>, vector<1x8x8xf32> -> vector<1x8x8xf32>
    "tpu.trace_stop"() : () -> ()
    %674 = vector.broadcast %28 : vector<1x1x8xf32> to vector<1x8x8xf32>
    %675 = arith.addf %673, %674 : vector<1x8x8xf32>
    %cst_168 = arith.constant dense<0xFF800000> : vector<1x8xf32>
    %676 = vector.multi_reduction <maximumf>, %675, %cst_168 [2] : vector<1x8x8xf32> to vector<1x8xf32>
    %677 = vector.shape_cast %676 : vector<1x8xf32> to vector<1x8x1xf32>
    %678 = vector.broadcast %677 : vector<1x8x1xf32> to vector<1x8x8xf32>
    %679 = arith.subf %675, %678 : vector<1x8x8xf32>
    %680 = math.exp %679 : vector<1x8x8xf32>
    %cst_169 = arith.constant dense<0.000000e+00> : vector<1x8xf32>
    %681 = vector.multi_reduction <add>, %680, %cst_169 [2] : vector<1x8x8xf32> to vector<1x8xf32>
    %682 = vector.shape_cast %681 : vector<1x8xf32> to vector<1x8x1xf32>
    %683 = tpu.reciprocal %682 {approx = true} : vector<1x8x1xf32> -> vector<1x8x1xf32>
    %684 = arith.truncf %680 : vector<1x8x8xf32> to vector<1x8x8xbf16>
    "tpu.trace_start"() <{level = 10 : i32, message = "bqk,bkd->bqd"}> : () -> ()
    %cst_170 = arith.constant dense<0.000000e+00> : vector<1x8x64xf32>
    %685 = tpu.matmul %684, %672, %cst_170 {dimension_numbers = #tpu.dot_dimension_numbers<[2], [1], [1], [2], [0, 0, 0, 1, 1, 2], [0], [0]>} : vector<1x8x8xbf16>, vector<1x8x64xbf16>, vector<1x8x64xf32> -> vector<1x8x64xf32>
    "tpu.trace_stop"() : () -> ()
    %686 = vector.broadcast %683 : vector<1x8x1xf32> to vector<1x8x64xf32>
    %687 = arith.mulf %685, %686 : vector<1x8x64xf32>
    %688 = vector.shape_cast %687 : vector<1x8x64xf32> to vector<8x64xf32>
    %689 = vector.extract_strided_slice %611 {offsets = [0, 192], sizes = [8, 64], strides = [1, 1]} : vector<8x256xf32> to vector<8x64xf32>
    %690 = vector.shape_cast %689 : vector<8x64xf32> to vector<1x8x64xf32>
    %691 = arith.truncf %690 : vector<1x8x64xf32> to vector<1x8x64xbf16>
    %692 = vector.extract_strided_slice %612 {offsets = [0, 192], sizes = [8, 64], strides = [1, 1]} : vector<8x256xf32> to vector<8x64xf32>
    %693 = vector.shape_cast %692 : vector<8x64xf32> to vector<1x8x64xf32>
    %694 = arith.truncf %693 : vector<1x8x64xf32> to vector<1x8x64xbf16>
    %695 = vector.extract_strided_slice %613 {offsets = [0, 192], sizes = [8, 64], strides = [1, 1]} : vector<8x256xf32> to vector<8x64xf32>
    %696 = vector.shape_cast %695 : vector<8x64xf32> to vector<1x8x64xf32>
    %697 = arith.truncf %696 : vector<1x8x64xf32> to vector<1x8x64xbf16>
    "tpu.trace_start"() <{level = 10 : i32, message = "bqd,bkd->bqk"}> : () -> ()
    %cst_171 = arith.constant dense<0.000000e+00> : vector<1x8x8xf32>
    %698 = tpu.matmul %691, %694, %cst_171 {dimension_numbers = #tpu.dot_dimension_numbers<[2], [2], [1], [1], [0, 0, 0, 1, 1, 1], [0], [0]>} : vector<1x8x64xbf16>, vector<1x8x64xbf16>, vector<1x8x8xf32> -> vector<1x8x8xf32>
    "tpu.trace_stop"() : () -> ()
    %699 = vector.broadcast %28 : vector<1x1x8xf32> to vector<1x8x8xf32>
    %700 = arith.addf %698, %699 : vector<1x8x8xf32>
    %cst_172 = arith.constant dense<0xFF800000> : vector<1x8xf32>
    %701 = vector.multi_reduction <maximumf>, %700, %cst_172 [2] : vector<1x8x8xf32> to vector<1x8xf32>
    %702 = vector.shape_cast %701 : vector<1x8xf32> to vector<1x8x1xf32>
    %703 = vector.broadcast %702 : vector<1x8x1xf32> to vector<1x8x8xf32>
    %704 = arith.subf %700, %703 : vector<1x8x8xf32>
    %705 = math.exp %704 : vector<1x8x8xf32>
    %cst_173 = arith.constant dense<0.000000e+00> : vector<1x8xf32>
    %706 = vector.multi_reduction <add>, %705, %cst_173 [2] : vector<1x8x8xf32> to vector<1x8xf32>
    %707 = vector.shape_cast %706 : vector<1x8xf32> to vector<1x8x1xf32>
    %708 = tpu.reciprocal %707 {approx = true} : vector<1x8x1xf32> -> vector<1x8x1xf32>
    %709 = arith.truncf %705 : vector<1x8x8xf32> to vector<1x8x8xbf16>
    "tpu.trace_start"() <{level = 10 : i32, message = "bqk,bkd->bqd"}> : () -> ()
    %cst_174 = arith.constant dense<0.000000e+00> : vector<1x8x64xf32>
    %710 = tpu.matmul %709, %697, %cst_174 {dimension_numbers = #tpu.dot_dimension_numbers<[2], [1], [1], [2], [0, 0, 0, 1, 1, 2], [0], [0]>} : vector<1x8x8xbf16>, vector<1x8x64xbf16>, vector<1x8x64xf32> -> vector<1x8x64xf32>
    "tpu.trace_stop"() : () -> ()
    %711 = vector.broadcast %708 : vector<1x8x1xf32> to vector<1x8x64xf32>
    %712 = arith.mulf %710, %711 : vector<1x8x64xf32>
    %713 = vector.shape_cast %712 : vector<1x8x64xf32> to vector<8x64xf32>
    %714 = tpu.concatenate %638, %663, %688, %713 in 1 : vector<8x64xf32>, vector<8x64xf32>, vector<8x64xf32>, vector<8x64xf32> -> vector<8x256xf32>
    %715 = arith.truncf %714 : vector<8x256xf32> to vector<8x256xbf16>
    %c3_175 = arith.constant 3 : index
    %c0_176 = arith.constant 0 : index
    %c0_177 = arith.constant 0 : index
    %716 = vector.load %arg5[%c3_175, %c0_176, %c0_177] : memref<4x256x256xbf16, #tpu.memory_space<vmem>>, vector<1x256x256xbf16>
    %717 = vector.shape_cast %716 : vector<1x256x256xbf16> to vector<256x256xbf16>
    %cst_178 = arith.constant dense<0.000000e+00> : vector<8x256xf32>
    %718 = tpu.matmul %715, %717, %cst_178 {dimension_numbers = #tpu.dot_dimension_numbers<[1], [0], [0], [1], [0, 0, 1, 1], [], []>} : vector<8x256xbf16>, vector<256x256xbf16>, vector<8x256xf32> -> vector<8x256xf32>
    %719 = vector.broadcast %596 : vector<1x256xf32> to vector<8x256xf32>
    %720 = arith.addf %718, %719 : vector<8x256xf32>
    %721 = arith.addf %592, %720 : vector<8x256xf32>
    %cst_179 = arith.constant dense<0.000000e+00> : vector<8xf32>
    %722 = vector.multi_reduction <add>, %721, %cst_179 [1] : vector<8x256xf32> to vector<8xf32>
    %723 = vector.shape_cast %722 : vector<8xf32> to vector<8x1xf32>
    %cst_180 = arith.constant 2.560000e+02 : f32
    %724 = vector.broadcast %cst_180 : f32 to vector<8x1xf32>
    %725 = arith.divf %723, %724 : vector<8x1xf32>
    %726 = vector.broadcast %725 : vector<8x1xf32> to vector<8x256xf32>
    %727 = arith.subf %721, %726 : vector<8x256xf32>
    %728 = arith.mulf %727, %727 : vector<8x256xf32>
    %cst_181 = arith.constant dense<0.000000e+00> : vector<8xf32>
    %729 = vector.multi_reduction <add>, %728, %cst_181 [1] : vector<8x256xf32> to vector<8xf32>
    %730 = vector.shape_cast %729 : vector<8xf32> to vector<8x1xf32>
    %cst_182 = arith.constant 2.560000e+02 : f32
    %731 = vector.broadcast %cst_182 : f32 to vector<8x1xf32>
    %732 = arith.divf %730, %731 : vector<8x1xf32>
    %733 = vector.broadcast %725 : vector<8x1xf32> to vector<8x256xf32>
    %734 = arith.subf %721, %733 : vector<8x256xf32>
    %cst_183 = arith.constant 9.99999974E-6 : f32
    %735 = vector.broadcast %cst_183 : f32 to vector<8x1xf32>
    %736 = arith.addf %732, %735 : vector<8x1xf32>
    %737 = math.rsqrt %736 : vector<8x1xf32>
    %738 = vector.broadcast %737 : vector<8x1xf32> to vector<8x256xf32>
    %739 = arith.mulf %734, %738 : vector<8x256xf32>
    %740 = vector.broadcast %599 : vector<1x256xf32> to vector<8x256xf32>
    %741 = arith.mulf %739, %740 : vector<8x256xf32>
    %742 = vector.broadcast %600 : vector<1x256xf32> to vector<8x256xf32>
    %743 = arith.addf %741, %742 : vector<8x256xf32>
    %744 = arith.truncf %743 : vector<8x256xf32> to vector<8x256xbf16>
    %c3_184 = arith.constant 3 : index
    %c0_185 = arith.constant 0 : index
    %c0_186 = arith.constant 0 : index
    %745 = vector.load %arg6[%c3_184, %c0_185, %c0_186] : memref<4x256x1024xbf16, #tpu.memory_space<vmem>>, vector<1x256x1024xbf16>
    %746 = vector.shape_cast %745 : vector<1x256x1024xbf16> to vector<256x1024xbf16>
    %cst_187 = arith.constant dense<0.000000e+00> : vector<8x1024xf32>
    %747 = tpu.matmul %744, %746, %cst_187 {dimension_numbers = #tpu.dot_dimension_numbers<[1], [0], [0], [1], [0, 0, 1, 1], [], []>} : vector<8x256xbf16>, vector<256x1024xbf16>, vector<8x1024xf32> -> vector<8x1024xf32>
    %748 = vector.broadcast %597 : vector<1x1024xf32> to vector<8x1024xf32>
    %749 = arith.addf %747, %748 : vector<8x1024xf32>
    %cst_188 = arith.constant 0.000000e+00 : f32
    %750 = vector.broadcast %cst_188 : f32 to vector<8x1024xf32>
    %751 = arith.maximumf %749, %750 : vector<8x1024xf32>
    %752 = arith.truncf %751 : vector<8x1024xf32> to vector<8x1024xbf16>
    %c3_189 = arith.constant 3 : index
    %c0_190 = arith.constant 0 : index
    %c0_191 = arith.constant 0 : index
    %753 = vector.load %arg7[%c3_189, %c0_190, %c0_191] : memref<4x1024x256xbf16, #tpu.memory_space<vmem>>, vector<1x1024x256xbf16>
    %754 = vector.shape_cast %753 : vector<1x1024x256xbf16> to vector<1024x256xbf16>
    %cst_192 = arith.constant dense<0.000000e+00> : vector<8x256xf32>
    %755 = tpu.matmul %752, %754, %cst_192 {dimension_numbers = #tpu.dot_dimension_numbers<[1], [0], [0], [1], [0, 0, 1, 1], [], []>} : vector<8x1024xbf16>, vector<1024x256xbf16>, vector<8x256xf32> -> vector<8x256xf32>
    %756 = vector.broadcast %598 : vector<1x256xf32> to vector<8x256xf32>
    %757 = arith.addf %755, %756 : vector<8x256xf32>
    %758 = arith.addf %743, %757 : vector<8x256xf32>
    %cst_193 = arith.constant dense<0.000000e+00> : vector<8xf32>
    %759 = vector.multi_reduction <add>, %758, %cst_193 [1] : vector<8x256xf32> to vector<8xf32>
    %760 = vector.shape_cast %759 : vector<8xf32> to vector<8x1xf32>
    %cst_194 = arith.constant 2.560000e+02 : f32
    %761 = vector.broadcast %cst_194 : f32 to vector<8x1xf32>
    %762 = arith.divf %760, %761 : vector<8x1xf32>
    %763 = vector.broadcast %762 : vector<8x1xf32> to vector<8x256xf32>
    %764 = arith.subf %758, %763 : vector<8x256xf32>
    %765 = arith.mulf %764, %764 : vector<8x256xf32>
    %cst_195 = arith.constant dense<0.000000e+00> : vector<8xf32>
    %766 = vector.multi_reduction <add>, %765, %cst_195 [1] : vector<8x256xf32> to vector<8xf32>
    %767 = vector.shape_cast %766 : vector<8xf32> to vector<8x1xf32>
    %cst_196 = arith.constant 2.560000e+02 : f32
    %768 = vector.broadcast %cst_196 : f32 to vector<8x1xf32>
    %769 = arith.divf %767, %768 : vector<8x1xf32>
    %770 = vector.broadcast %762 : vector<8x1xf32> to vector<8x256xf32>
    %771 = arith.subf %758, %770 : vector<8x256xf32>
    %cst_197 = arith.constant 9.99999974E-6 : f32
    %772 = vector.broadcast %cst_197 : f32 to vector<8x1xf32>
    %773 = arith.addf %769, %772 : vector<8x1xf32>
    %774 = math.rsqrt %773 : vector<8x1xf32>
    %775 = vector.broadcast %774 : vector<8x1xf32> to vector<8x256xf32>
    %776 = arith.mulf %771, %775 : vector<8x256xf32>
    %777 = vector.broadcast %601 : vector<1x256xf32> to vector<8x256xf32>
    %778 = arith.mulf %776, %777 : vector<8x256xf32>
    %779 = vector.broadcast %602 : vector<1x256xf32> to vector<8x256xf32>
    %780 = arith.addf %778, %779 : vector<8x256xf32>
    %c0_198 = arith.constant 0 : index
    %c0_199 = arith.constant 0 : index
    %c0_200 = arith.constant 0 : index
    %781 = vector.load %arg9[%c0_198, %c0_199, %c0_200] : memref<1x8x256xf32, #tpu.memory_space<vmem>>, vector<1x8x256xf32>
    %782 = vector.shape_cast %781 : vector<1x8x256xf32> to vector<8x256xf32>
    %783 = vector.shape_cast %780 : vector<8x256xf32> to vector<1x8x256xf32>
    tpu.vector_store %arg9[%c0_198, %c0_199, %c0_200], %783 {strides = array<i32>} : memref<1x8x256xf32, #tpu.memory_space<vmem>>, vector<1x8x256xf32>,
    return
  }
  func.func @transform_0(%arg0: i32) -> (i32, i32, i32) {
    %c0_i32 = arith.constant 0 : i32
    %c0_i32_0 = arith.constant 0 : i32
    %c0_i32_1 = arith.constant 0 : i32
    return %arg0, %c0_i32, %c0_i32_0 : i32, i32, i32
  }
  func.func @transform_1(%arg0: i32) -> (i32, i32, i32) {
    %c0_i32 = arith.constant 0 : i32
    %c0_i32_0 = arith.constant 0 : i32
    %c0_i32_1 = arith.constant 0 : i32
    return %arg0, %c0_i32, %c0_i32_0 : i32, i32, i32
  }
  func.func @transform_2(%arg0: i32) -> (i32, i32) {
    %c0_i32 = arith.constant 0 : i32
    %c0_i32_0 = arith.constant 0 : i32
    %c0_i32_1 = arith.constant 0 : i32
    return %c0_i32, %c0_i32_0 : i32, i32
  }
  func.func @transform_3(%arg0: i32) -> (i32, i32, i32) {
    %c0_i32 = arith.constant 0 : i32
    %c0_i32_0 = arith.constant 0 : i32
    %c0_i32_1 = arith.constant 0 : i32
    %c0_i32_2 = arith.constant 0 : i32
    return %c0_i32, %c0_i32_0, %c0_i32_1 : i32, i32, i32
  }
  func.func @transform_4(%arg0: i32) -> (i32, i32, i32) {
    %c0_i32 = arith.constant 0 : i32
    %c0_i32_0 = arith.constant 0 : i32
    %c0_i32_1 = arith.constant 0 : i32
    %c0_i32_2 = arith.constant 0 : i32
    return %c0_i32, %c0_i32_0, %c0_i32_1 : i32, i32, i32
  }
  func.func @transform_5(%arg0: i32) -> (i32, i32, i32) {
    %c0_i32 = arith.constant 0 : i32
    %c0_i32_0 = arith.constant 0 : i32
    %c0_i32_1 = arith.constant 0 : i32
    %c0_i32_2 = arith.constant 0 : i32
    return %c0_i32, %c0_i32_0, %c0_i32_1 : i32, i32, i32
  }
  func.func @transform_6(%arg0: i32) -> (i32, i32, i32) {
    %c0_i32 = arith.constant 0 : i32
    %c0_i32_0 = arith.constant 0 : i32
    %c0_i32_1 = arith.constant 0 : i32
    %c0_i32_2 = arith.constant 0 : i32
    return %c0_i32, %c0_i32_0, %c0_i32_1 : i32, i32, i32
  }
  func.func @transform_7(%arg0: i32) -> (i32, i32, i32) {
    %c0_i32 = arith.constant 0 : i32
    %c0_i32_0 = arith.constant 0 : i32
    %c0_i32_1 = arith.constant 0 : i32
    %c0_i32_2 = arith.constant 0 : i32
    return %c0_i32, %c0_i32_0, %c0_i32_1 : i32, i32, i32
  }
  func.func @transform_8(%arg0: i32) -> (i32, i32, i32) {
    %c0_i32 = arith.constant 0 : i32
    %c0_i32_0 = arith.constant 0 : i32
    %c0_i32_1 = arith.constant 0 : i32
    return %arg0, %c0_i32, %c0_i32_0 : i32, i32, i32
  }
}

</mosaic_0001>

<bundles_post_ra>
// kernel: text_encoder_forward.1
= control target key start
LH: loop header
LB: loop body
LE: loop exit
PB: predicated region body
PF: predicated region fallthrough
CT: control target
= control target key end

     0   :  { %s19379_s0 = inlined_call_operand.vmem [shape: f32[2,8,256], index: 0, kind: input, shape index: {}]   ;;  %s19380_s1 = inlined_call_operand.vmem [shape: f32[2,1,8], index: 1, kind: input, shape index: {}]   ;;  %s19381_s2 = inlined_call_operand.vmem [shape: f32[2,256], index: 2, kind: input, shape index: {}]   ;;  %s19382_s3 = inlined_call_operand.hbm [shape: bf16[4,256,768], index: 3, kind: input, shape index: {}]   ;;  %s19383_s4 = inlined_call_operand.hbm [shape: bf16[4,256,256], index: 4, kind: input, shape index: {}]   ;;  %s19384_s5 = inlined_call_operand.hbm [shape: bf16[4,256,1024], index: 5, kind: input, shape index: {}]   ;;  %s19385_s6 = inlined_call_operand.hbm [shape: bf16[4,1024,256], index: 6, kind: input, shape index: {}]   ;;  %s19386_s7 = inlined_call_operand.vmem [shape: f32[4,8,1024], index: 7, kind: input, shape index: {}]   ;;  %s19387_s8 = inlined_call_operand.hbm [shape: f32[2,8,256], index: 8, kind: output, shape index: {}]  }
   0x1   :  { %19396 = sst [smem:[#allocation18_spill]] %s19383_s4 }
   0x2   :  { %13 = vsyncpa [#allocation3], 0 }
   0x3   :  { %14 = vsyncpa [#allocation6], 0 }
   0x4   :  { %15 = vsyncpa [#allocation9], 0 }
   0x5   :  { %16 = vsyncpa [#allocation4], 0 }
   0x6   :  { %18 = vsyncpa [#allocation4 + $0x1], 0  ;;  %s18162_s27 = smov 0   ;;  %s18164_s28 = smov 0  }
   0x7   :  { %s18166_s29 = smov 0   ;;  %s18168_s30 = smov 0  }
   0x8 LB: > { %19397 = sst [smem:[#allocation15_spill]] %s18097_s29  ;;  %s18183_s9 = sadd.s32 4294967295, %s18101_s30   ;;  %s18101_s30 = sphi %s18168_s30, %s19417_s30   ;;  %s18097_s29 = sphi %s18166_s29, %s19422_s29   ;;  %s18093_s28 = sphi %s18164_s28, %s19421_s28   ;;  %s18089_s27 = sphi %s18162_s27, %s19420_s27  }
   0x9   : > { %s14281_s10 = sadd.s32 4294967294, %s18101_s30   ;;  %s18187_s11 = sadd.s32 1, %s18101_s30  }
   0xa   : > { %19398 = sst [smem:[#allocation16_spill]] %s18187_s11  ;;  %s209_s12 = sadd.s32 1, %s18097_s29 }
   0xb   : > { %s206_s13 = ssub.s32 %s18101_s30, %s18187_s11  ;;  %p219_p0 = scmp.ne.s32.totalorder %s18097_s29, %s18093_s28 }
   0xc   : > { %p207_p1 = scmp.eq.s32.totalorder %s206_s13, 0  ;;  %p220_p2 = scmp.eq.s32.totalorder %s18183_s9, 1 }
   0xd   : > { %p225_p3 = scmp.ne.s32.totalorder %s18093_s28, %s18089_s27  ;;  %p226_p4 = scmp.eq.s32.totalorder %s14281_s10, 1 }
   0xe   : > { %s18198_s14 = scalar_select %p207_p1, %s18097_s29, %s209_s12  }
   0xf   : > { %p18200_p5 = por %p220_p2, %p219_p0  ;;  %p18204_p6 = por %p226_p4, %p225_p3 }
  0x10   : > { %19399 = sst [smem:[#allocation17_spill]] %s18198_s14  ;;  %p14282_p7 = scmp.ge.s32.totalorder %s18101_s30, 1 }
  0x11   : > { %s19400_s15 = scalar_select %p18200_p5, 1, 0 }
  0x12   : > { %s19401_s16 = scalar_select %p18204_p6, 1, 0 }
  0x13   : > { %p233_p8 = scmp.lt.s32.totalorder %s18101_s30, 3  ;;  %p19388_p9 = scmp.eq.s32.totalorder %s18183_s9, 0 }
  0x14   : > { %s18103_s18 = smov [#allocation5]   ;;  %s18104_s21 = smov [#allocation2]  }
  0x15   : > { %p18211_p10 = pnand %p14282_p7, %p233_p8  ;;  %s261_s19 = sshll.u32 %s18103_s18, 4  ;;  %s262_s19 = int_to_ptr.vmem [resolvable:$true] %s261_s19 }
  0x16   : > { %s248_s22 = sshll.u32 %s18104_s21, 4  ;;  %s19404_s4 = sld [smem:[#allocation18_spill]]  ;;  %s18223_s22 = int_to_ptr.vmem [resolvable:$true] %s248_s22 }
  0x17   : > { %s19402_s17 = scalar_select %p18211_p10, 1, 0 }
  0x18   : > { %p16171_p11 = pneg %p18211_p10 }
  0x1a   : > { %p18219_p12 = pnand %p19388_p9, %p16171_p11 }
  0x1c   : > { %s17915_s25 = scalar_lea.hbm %s19404_s4, 16384  ;;  %p18233_p0 = pneg %p18219_p12 }
  0x1d   : > { %p17916_p13 = scmp.ne.s32.totalorder %s19404_s4, %s17915_s25  ;;  %p17922_p3 = scmp.lt.u32.totalorder %s17915_s25, %s19404_s4 }
  0x1f   : > { %p17918_p1 = pnand %p18233_p0, %p17916_p13 }
  0x21   : > { %p17919_p2 = pneg %p17918_p1 }
  0x23   : > { %p17924_p4 = pnand %p17922_p3, %p17919_p2 }
  0x25   : > { %17927 = shalt.err (!%p17924_p4)
}
  0x26   : > { %s17928_s21 = scalar_lea.vmem %s262_s19, 16384  ;;  %p17936_p9 = scmp.lt.s32.totalorder %s262_s19, %s262_s19 }
  0x27   : > { %p17929_p7 = scmp.ne.s32.totalorder %s262_s19, %s17928_s21  ;;  %p17937_p6 = scmp.lt.s32.totalorder %s17928_s21, %s17928_s21 }
  0x29   : > { %p17931_p8 = pnand %p17929_p7, %p18233_p0  ;;  %p17938_p5 = por %p17937_p6, %p17936_p9 }
  0x2b   : > { %p17932_p11 = pneg %p17931_p8 }
  0x2d   : > { %p17939_p10 = pnand %p17938_p5, %p17932_p11 }
  0x2f   : > { %17942 = shalt.err (!%p17939_p10)
}
  0x30   : > { %s19394_s23 = smov 128   ;;  %s19395_s24 = smov 8  }
  0x31   : > { %16177 = dma.hbm_to_vmem [thread:$0]  (!%p18219_p12), %s19404_s4, 16384, %s262_s19, [#allocation6], %s19394_s23, %s19394_s23, %s19395_s24  }
  0x32   : > { %s17943_s18 = scalar_lea.hbm %s19382_s3, 49152 }
  0x33   : > { %p17944_p5 = scmp.ne.s32.totalorder %s19382_s3, %s17943_s18  ;;  %p17950_p10 = scmp.lt.u32.totalorder %s17943_s18, %s19382_s3 }
  0x35   : > { %p17946_p6 = pnand %p17944_p5, %p18233_p0 }
  0x37   : > { %p17947_p9 = pneg %p17946_p6 }
  0x39   : > { %p17952_p13 = pnand %p17950_p10, %p17947_p9 }
  0x3b   : > { %17955 = shalt.err (!%p17952_p13)
}
  0x3c   : > { %s17956_s19 = scalar_lea.vmem %s18223_s22, 49152  ;;  %p17964_p4 = scmp.lt.s32.totalorder %s18223_s22, %s18223_s22 }
  0x3d   : > { %p17957_p1 = scmp.ne.s32.totalorder %s18223_s22, %s17956_s19  ;;  %p17965_p7 = scmp.lt.s32.totalorder %s17956_s19, %s17956_s19 }
  0x3f   : > { %p17959_p2 = pnand %p17957_p1, %p18233_p0  ;;  %p17966_p8 = por %p17965_p7, %p17964_p4 }
  0x41   : > { %p17960_p3 = pneg %p17959_p2 }
  0x43   : > { %p17967_p11 = pnand %p17966_p8, %p17960_p3 }
  0x45   : > { %17970 = shalt.err (!%p17967_p11)
}
  0x46   : > { %s18107_s14 = smov 384   ;;  %s18108_s29 = smov 24  }
  0x47   : > { %16174 = dma.hbm_to_vmem [thread:$0]  (!%p18219_p12), %s19382_s3, 49152, %s18223_s22, [#allocation3], %s18107_s14, %s18107_s14, %s18108_s29  }
  0x48   : > { %s18109_s26 = smov [#allocation7]   ;;  %s17971_s21 = scalar_lea.hbm %s19384_s5, 65536 }
  0x49   : > { %s274_s10 = sshll.u32 %s18109_s26, 4  ;;  %p17972_p5 = scmp.ne.s32.totalorder %s19384_s5, %s17971_s21  ;;  %s275_s10 = int_to_ptr.vmem [resolvable:$true] %s274_s10 }
  0x4a   : > { %p17978_p10 = scmp.lt.u32.totalorder %s17971_s21, %s19384_s5 }
  0x4b   : > { %p17974_p6 = pnand %p17972_p5, %p18233_p0 }
  0x4d   : > { %p17975_p9 = pneg %p17974_p6 }
  0x4f   : > { %p17980_p13 = pnand %p17978_p10, %p17975_p9 }
  0x51   : > { %17983 = shalt.err (!%p17980_p13)
}
  0x52   : > { %s17984_s22 = scalar_lea.vmem %s275_s10, 65536  ;;  %p17992_p4 = scmp.lt.s32.totalorder %s275_s10, %s275_s10 }
  0x53   : > { %p17985_p1 = scmp.ne.s32.totalorder %s275_s10, %s17984_s22  ;;  %p17993_p7 = scmp.lt.s32.totalorder %s17984_s22, %s17984_s22 }
  0x55   : > { %p17987_p2 = pnand %p17985_p1, %p18233_p0  ;;  %p17994_p8 = por %p17993_p7, %p17992_p4 }
  0x57   : > { %p17988_p3 = pneg %p17987_p2 }
  0x59   : > { %p17995_p11 = pnand %p17994_p8, %p17988_p3 }
  0x5b   : > { %17998 = shalt.err (!%p17995_p11)
}
  0x5c   : > { %s18110_s23 = smov 512   ;;  %s18111_s14 = smov 32  }
  0x5d   : > { %16180 = dma.hbm_to_vmem [thread:$0]  (!%p18219_p12), %s19384_s5, 65536, %s275_s10, [#allocation6], %s18110_s23, %s18110_s23, %s18111_s14  }
  0x5e   : > { %s18112_s29 = smov [#allocation8]   ;;  %s17999_s13 = scalar_lea.hbm %s19385_s6, 65536 }
  0x5f   : > { %s287_s11 = sshll.u32 %s18112_s29, 4  ;;  %p18000_p5 = scmp.ne.s32.totalorder %s19385_s6, %s17999_s13  ;;  %s288_s11 = int_to_ptr.vmem [resolvable:$true] %s287_s11 }
  0x60   : > { %p18006_p10 = scmp.lt.u32.totalorder %s17999_s13, %s19385_s6 }
  0x61   : > { %p18002_p6 = pnand %p18000_p5, %p18233_p0 }
  0x63   : > { %p18003_p9 = pneg %p18002_p6 }
  0x65   : > { %p18008_p13 = pnand %p18006_p10, %p18003_p9 }
  0x67   : > { %18011 = shalt.err (!%p18008_p13)
}
  0x68   : > { %s18012_s10 = scalar_lea.vmem %s288_s11, 65536  ;;  %p18020_p4 = scmp.lt.s32.totalorder %s288_s11, %s288_s11 }
  0x69   : > { %p18013_p1 = scmp.ne.s32.totalorder %s288_s11, %s18012_s10  ;;  %p18021_p7 = scmp.lt.s32.totalorder %s18012_s10, %s18012_s10 }
  0x6b   : > { %p18015_p2 = pnand %p18013_p1, %p18233_p0  ;;  %p18022_p8 = por %p18021_p7, %p18020_p4 }
  0x6d   : > { %p18016_p3 = pneg %p18015_p2 }
  0x6f   : > { %p18023_p11 = pnand %p18022_p8, %p18016_p3 }
  0x71   : > { %18026 = shalt.err (!%p18023_p11)
}
  0x72   : > { %s19406_s23 = smov 8   ;;  %s19407_s14 = smov 128  }
  0x73   : > { %16183 = dma.hbm_to_vmem [thread:$0]  (!%p18219_p12), %s19385_s6, 65536, %s288_s11, [#allocation9], %s19407_s14, %s19407_s14, %s19406_s23  }
  0x74   : > { %p19408_p5 = scmp.ne.s32.totalorder %s19402_s17, 0 }
  0x75   : > { %p19409_p0 = scmp.eq.s32.totalorder (!%p19408_p5), %s18183_s9, 0 }
  0x76   : > { %320 = sbr.rel (%p19408_p5) target bundleno = 12193 (0x2fa1), region = 52 }
  0x7d   : > { %18072 = dma.done.wait (%p19409_p0), [#allocation3], 49152   ;;  %p19410_p6 = pmov %p19409_p0 }
  0x7e   : > { %p19411_p9 = pmov %p19409_p0 }
  0x7f   : > { %18074 = vsyncadd (%p19410_p6), [#allocation3], 4294918144 }
  0x80   : > { %18076 = dma.done.wait (%p19411_p9), [#allocation6], 81920   ;;  %p19412_p10 = pmov %p19409_p0 }
  0x81   : > { %p19413_p13 = pmov %p19409_p0 }
  0x82   : > { %18078 = vsyncadd (%p19412_p10), [#allocation6], 4294885376 }
  0x83   : > { %18080 = dma.done.wait (%p19413_p13), [#allocation9], 65536   ;;  %p19414_p12 = pmov %p19409_p0 }
  0x84   : > { %p369_p1 = scmp.lt.s32.totalorder %s18183_s9, 1  ;;  %v16262_v3 = vld [vmem:[#allocation2 + $0x4] ss:$24 sps:$4 sm:$0xff]   ;;  %v16264_v4 = vld [vmem:[#allocation2] ss:$24 sps:$4 sm:$0xff]   ;;  %vm18114_vm0 = vmmov 0  }
  0x85   : > { %18082 = vsyncadd (%p19414_p12), [#allocation9], 4294901760  ;;  %v16265_v5 = vld [vmem:[#allocation2 + $0xc] ss:$24 sps:$4 sm:$0xff]   ;;  %v16267_v6 = vld [vmem:[#allocation2 + $0x8] ss:$24 sps:$4 sm:$0xff]   ;;  %1037 = vmatprep.subr.bf16.mxu0 %v16262_v3 }
  0x86   : > { %s18330_s17 = scalar_select %p369_p1, %s18183_s9, 1  ;;  %v16268_v7 = vld [vmem:[#allocation2 + $0x34] ss:$24 sps:$4 sm:$0xff]   ;;  %1078 = vmatprep.subr.bf16.mxu1 %v16265_v5  ;;  %1038 = vmatpush1.bf16.msra.mxu0 %v16264_v4  ;;  %v16270_v9 = vld [vmem:[#allocation2 + $0x30] ss:$24 sps:$4 sm:$0xff]   ;;  %vm1171_vm1 = vcmask 523264  }
  0x87   : > { %v16271_v8 = vld [vmem:[#allocation2 + $0x3c] ss:$24 sps:$4 sm:$0xff]   ;;  %1079 = vmatpush1.bf16.msra.mxu1 %v16267_v6  ;;  %v16273_v10 = vld [vmem:[#allocation2 + $0x38] ss:$24 sps:$4 sm:$0xff]   ;;  %1039 = vmatprep.subr.bf16.mxu0 %v16268_v7  ;;  %v16277_v12 = vld [vmem:[#allocation2 + $0x6c] ss:$24 sps:$4 sm:$0xff]  }
  0x88   : > { %s15895_s20 = sshll.u32 %s18330_s17, 4  ;;  %1080 = vmatprep.subr.bf16.mxu1 %v16271_v8  ;;  %v16274_v11 = vld [vmem:[#allocation2 + $0x64] ss:$24 sps:$4 sm:$0xff]   ;;  %v16276_v13 = vld [vmem:[#allocation2 + $0x60] ss:$24 sps:$4 sm:$0xff]   ;;  %s18115_s23 = smov 64  }
  0x89   : > { %s373_s11 = scalar_lea.vmem %s19379_s0, %s15895_s20  ;;  %v16279_v14 = vld [vmem:[#allocation2 + $0x68] ss:$24 sps:$4 sm:$0xff]   ;;  %v16280_v15 = vld [vmem:[#allocation2 + $0x94] ss:$24 sps:$4 sm:$0xff]   ;;  %v16285_v18 = vld [vmem:[#allocation2 + $0x98] ss:$24 sps:$4 sm:$0xff]   ;;  %s18425_s12 = scalar_lea.vmem %s19380_s1, %s18330_s17 }
  0x8a   : > { %v18336_v0 = vld [vmem:[%s373_s11] sm:$0xff]  ;;  %v18338_v1 = vld [vmem:[%s373_s11 + $0x8] sm:$0xff]  ;;  %1040 = vmatpush1.bf16.msra.mxu0 %v16270_v9  ;;  %v16283_v16 = vld [vmem:[#allocation2 + $0x9c] ss:$24 sps:$4 sm:$0xff]   ;;  %vm1233_vm2 = vcmask 1043456   ;;  %vm1218_vm3 = vcmask 64512  }
  0x8b   : > { %v383_v2 = vadd.f32 %v18338_v1, %v18336_v0  ;;  %1081 = vmatpush1.bf16.msra.mxu1 %v16273_v10  ;;  %1041 = vmatprep.subr.bf16.mxu0 %v16274_v11  ;;  %v16282_v17 = vld [vmem:[#allocation2 + $0x90] ss:$24 sps:$4 sm:$0xff]   ;;  %v16286_v19 = vld [vmem:[#allocation2 + $0xc4] ss:$24 sps:$4 sm:$0xff]   ;;  %v16288_v21 = vld [vmem:[#allocation2 + $0xc0] ss:$24 sps:$4 sm:$0xff]  }
  0x8c   : > { %1082 = vmatprep.subr.bf16.mxu1 %v16277_v12  ;;  %v16289_v20 = vld [vmem:[#allocation2 + $0xcc] ss:$24 sps:$4 sm:$0xff]   ;;  %v16291_v22 = vld [vmem:[#allocation2 + $0xc8] ss:$24 sps:$4 sm:$0xff]   ;;  %v16295_v24 = vld [vmem:[#allocation2 + $0xfc] ss:$24 sps:$4 sm:$0xff]  }
  0x8d   : > { %384 = vadd.xlane.f32.xlu0 %v383_v2  ;;  %v16292_v23 = vld [vmem:[#allocation2 + $0xf4] ss:$24 sps:$4 sm:$0xff]   ;;  %v16294_v25 = vld [vmem:[#allocation2 + $0xf0] ss:$24 sps:$4 sm:$0xff]   ;;  %v16298_v27 = vld [vmem:[#allocation2 + $0x124] ss:$24 sps:$4 sm:$0xff]  }
  0x8e   : > { %1042 = vmatpush1.bf16.msra.mxu0 %v16276_v13  ;;  %v16297_v26 = vld [vmem:[#allocation2 + $0xf8] ss:$24 sps:$4 sm:$0xff]   ;;  %v16301_v28 = vld [vmem:[#allocation2 + $0x12c] ss:$24 sps:$4 sm:$0xff]   ;;  %v16303_v30 = vld [vmem:[#allocation2 + $0x128] ss:$24 sps:$4 sm:$0xff]   ;;  %v401_v13 = vlaneseq }
  0x8f   : > { %1083 = vmatpush1.bf16.msra.mxu1 %v16279_v14  ;;  %1043 = vmatprep.subr.bf16.mxu0 %v16280_v15  ;;  %v16300_v29 = vld [vmem:[#allocation2 + $0x120] ss:$24 sps:$4 sm:$0xff]   ;;  %v16304_v31 = vld [vmem:[#allocation2 + $0x154] ss:$24 sps:$4 sm:$0xff]   ;;  %v16306_v33 = vld [vmem:[#allocation2 + $0x150] ss:$24 sps:$4 sm:$0xff]  }
  0x90   : > { %1084 = vmatprep.subr.bf16.mxu1 %v16283_v16  ;;  %v16307_v32 = vld [vmem:[#allocation2 + $0x15c] ss:$24 sps:$4 sm:$0xff]   ;;  %v16309_v34 = vld [vmem:[#allocation2 + $0x158] ss:$24 sps:$4 sm:$0xff]   ;;  %v16313_v36 = vld [vmem:[#allocation2 + $0x18c] ss:$24 sps:$4 sm:$0xff]  }
  0x91   : > { %v16310_v35 = vld [vmem:[#allocation2 + $0x184] ss:$24 sps:$4 sm:$0xff]   ;;  %v16312_v37 = vld [vmem:[#allocation2 + $0x180] ss:$24 sps:$4 sm:$0xff]   ;;  %v16316_v39 = vld [vmem:[#allocation2 + $0x1b4] ss:$24 sps:$4 sm:$0xff]  }
  0x92   : > { %1044 = vmatpush1.bf16.msra.mxu0 %v16282_v17  ;;  %v16315_v38 = vld [vmem:[#allocation2 + $0x188] ss:$24 sps:$4 sm:$0xff]   ;;  %v16319_v40 = vld [vmem:[#allocation2 + $0x1bc] ss:$24 sps:$4 sm:$0xff]   ;;  %v16321_v42 = vld [vmem:[#allocation2 + $0x1b8] ss:$24 sps:$4 sm:$0xff]  }
  0x93   : > { %1085 = vmatpush1.bf16.msra.mxu1 %v16285_v18  ;;  %1045 = vmatprep.subr.bf16.mxu0 %v16286_v19  ;;  %v16318_v41 = vld [vmem:[#allocation2 + $0x1b0] ss:$24 sps:$4 sm:$0xff]   ;;  %v16322_v43 = vld [vmem:[#allocation2 + $0x1e4] ss:$24 sps:$4 sm:$0xff]   ;;  %v16324_v51 = vld [vmem:[#allocation2 + $0x1e0] ss:$24 sps:$4 sm:$0xff]  }
  0x94   : > { %1086 = vmatprep.subr.bf16.mxu1 %v16289_v20  ;;  %v16325_v52 = vld [vmem:[#allocation2 + $0x1ec] ss:$24 sps:$4 sm:$0xff]   ;;  %v16327_v53 = vld [vmem:[#allocation2 + $0x1e8] ss:$24 sps:$4 sm:$0xff]   ;;  %v16331_v56 = vld [vmem:[#allocation2 + $0x21c] ss:$24 sps:$4 sm:$0xff]  }
  0x95   : > { %v16328_v54 = vld [vmem:[#allocation2 + $0x214] ss:$24 sps:$4 sm:$0xff]   ;;  %v16330_v55 = vld [vmem:[#allocation2 + $0x210] ss:$24 sps:$4 sm:$0xff]   ;;  %v16334_v58 = vld [vmem:[#allocation2 + $0x244] ss:$24 sps:$4 sm:$0xff]  }
  0x96   : > { %1046 = vmatpush1.bf16.msra.mxu0 %v16288_v21  ;;  %v16333_v57 = vld [vmem:[#allocation2 + $0x218] ss:$24 sps:$4 sm:$0xff]   ;;  %v16337_v60 = vld [vmem:[#allocation2 + $0x24c] ss:$24 sps:$4 sm:$0xff]   ;;  %v16339_v61 = vld [vmem:[#allocation2 + $0x248] ss:$24 sps:$4 sm:$0xff]  }
  0x97   : > { %1087 = vmatpush1.bf16.msra.mxu1 %v16291_v22  ;;  %1047 = vmatprep.subr.bf16.mxu0 %v16292_v23  ;;  %v16336_v59 = vld [vmem:[#allocation2 + $0x240] ss:$24 sps:$4 sm:$0xff]   ;;  %v16340_v62 = vld [vmem:[#allocation2 + $0x274] ss:$24 sps:$4 sm:$0xff]   ;;  %v16346_v2 = vld [vmem:[#allocation2 + $0x2a4] ss:$24 sps:$4 sm:$0xff]  }
  0x98   : > { %1088 = vmatprep.subr.bf16.mxu1 %v16295_v24  ;;  %v16343_v63 = vld [vmem:[#allocation2 + $0x27c] ss:$24 sps:$4 sm:$0xff]   ;;  %v16348_v3 = vld [vmem:[#allocation2 + $0x2a0] ss:$24 sps:$4 sm:$0xff]   ;;  %v16349_v4 = vld [vmem:[#allocation2 + $0x2ac] ss:$24 sps:$4 sm:$0xff]  }
  0x99   : > { %v16351_v5 = vld [vmem:[#allocation2 + $0x2a8] ss:$24 sps:$4 sm:$0xff]   ;;  %v16352_v6 = vld [vmem:[#allocation2 + $0x2d4] ss:$24 sps:$4 sm:$0xff]   ;;  %v16357_v9 = vld [vmem:[#allocation2 + $0x2d8] ss:$24 sps:$4 sm:$0xff]  }
  0x9a   : > { %1048 = vmatpush1.bf16.msra.mxu0 %v16294_v25  ;;  %v16355_v7 = vld [vmem:[#allocation2 + $0x2dc] ss:$24 sps:$4 sm:$0xff]   ;;  %v16354_v8 = vld [vmem:[#allocation2 + $0x2d0] ss:$24 sps:$4 sm:$0xff]   ;;  %v18352_v15 = vshrl.u32 %v401_v13, 7  ;;  %s366_s24 = sand.u32 1, %s18093_s28  }
  0x9b   : > { %1089 = vmatpush1.bf16.msra.mxu1 %v16297_v26  ;;  %1049 = vmatprep.subr.bf16.mxu0 %v16298_v27  ;;  %v16360_v10 = vld [vmem:[#allocation2 + $0x14] ss:$24 sps:$4 sm:$0xff]   ;;  %v380_v16 = vld [vmem:[%s19381_s2] ss:$2 sm:$0x3]  ;;  %s14293_s20 = sshll.u32 %s366_s24, 4 }
  0x9c   : > { %1090 = vmatprep.subr.bf16.mxu1 %v16301_v28  ;;  %v18358_v17 = vsub.s32 1, %v18352_v15  ;;  %v18361_v18 = vsub.s32 0, %v18352_v15  ;;  %v14296_v19 = vld [vmem:[%s19381_s2 + $0x1] ss:$2 sm:$0x3]  ;;  %s15896_s17 = sshll.u32 %s18183_s9, 8 }
  0x9d   : > { %s368_s29 = scalar_lea.vmem [#allocation10], %s14293_s20  ;;  %s19337_s13 = scalar_lea.hbm %s19387_s8, %s15896_s17 }
  0x9e   : > { %1050 = vmatpush1.bf16.msra.mxu0 %v16300_v29  ;;  %v408_v20 = vrot.slane %v380_v16, %v18358_v17  ;;  %v404_v21 = vrot.slane %v380_v16, %v18361_v18  ;;  %v421_v24 = vrot.slane %v14296_v19, %v18358_v17  ;;  %v417_v26 = vrot.slane %v14296_v19, %v18361_v18  ;;  %s14172_s11 = sshll.u32 %s368_s29, 4  ;;  %s14158_s18 = scalar_lea.sflag [#allocation4], %s366_s24  ;;  %s19339_s11 = int_to_ptr.vmem [resolvable:$true] %s14172_s11 }
  0x9f   : > { %1091 = vmatpush1.bf16.msra.mxu1 %v16303_v30  ;;  %1051 = vmatprep.subr.bf16.mxu0 %v16304_v31  ;;  %v16358_v30 = vld [vmem:[#allocation2 + $0x10] ss:$24 sps:$4 sm:$0xff]   ;;  %s18027_s9 = scalar_lea.vmem %s19339_s11, 256  ;;  %p19415_p3 = scmp.ne.s32.totalorder %s19400_s15, 0 }
  0xa0   : > { %1092 = vmatprep.subr.bf16.mxu1 %v16307_v32  ;;  %v16363_v32 = vld [vmem:[#allocation2 + $0x44] ss:$24 sps:$4 sm:$0xff]   ;;  %p18028_p2 = scmp.ne.s32.totalorder %s19339_s11, %s18027_s9  ;;  %s18116_s21 = smov [#allocation10]  }
  0xa1   : > { %s18031_s19 = sshll.u32 %s18116_s21, 4  ;;  %s18032_s19 = int_to_ptr.vmem [resolvable:$false] %s18031_s19 }
  0xa2   : > { %1052 = vmatpush1.bf16.msra.mxu0 %v16306_v33  ;;  %p18029_p4 = pnand %p18028_p2, %p19415_p3  ;;  %s18033_s22 = scalar_lea.vmem %s18032_s19, 512 }
  0xa3   : > { %1093 = vmatpush1.bf16.msra.mxu1 %v16309_v34  ;;  %1053 = vmatprep.subr.bf16.mxu0 %v16310_v35  ;;  %v16361_v35 = vld [vmem:[#allocation2 + $0x40] ss:$24 sps:$4 sm:$0xff]   ;;  %p18034_p8 = scmp.lt.s32.totalorder %s19339_s11, %s18032_s19  ;;  %p18035_p11 = scmp.lt.s32.totalorder %s18033_s22, %s18027_s9 }
  0xa4   : > { %1094 = vmatprep.subr.bf16.mxu1 %v16313_v36  ;;  %v16366_v36 = vld [vmem:[#allocation2 + $0x74] ss:$24 sps:$4 sm:$0xff]   ;;  %p18030_p7 = pneg %p18029_p4 }
  0xa5   : > { %p18036_p5 = por %p18035_p11, %p18034_p8 }
  0xa6   : > { %1054 = vmatpush1.bf16.msra.mxu0 %v16312_v37  ;;  %v16364_v37 = vld [vmem:[#allocation2 + $0x70] ss:$24 sps:$4 sm:$0xff]  }
  0xa7   : > { %1095 = vmatpush1.bf16.msra.mxu1 %v16315_v38  ;;  %1055 = vmatprep.subr.bf16.mxu0 %v16316_v39  ;;  %v16369_v38 = vld [vmem:[#allocation2 + $0xa4] ss:$24 sps:$4 sm:$0xff]   ;;  %v16367_v39 = vld [vmem:[#allocation2 + $0xa0] ss:$24 sps:$4 sm:$0xff]   ;;  %p18037_p0 = pnand %p18036_p5, %p18030_p7 }
  0xa8   : > { %1096 = vmatprep.subr.bf16.mxu1 %v16319_v40  ;;  %v16372_v40 = vld [vmem:[#allocation2 + $0xd4] ss:$24 sps:$4 sm:$0xff]  }
  0xaa   : > { %1056 = vmatpush1.bf16.msra.mxu0 %v16318_v41  ;;  %v16370_v41 = vld [vmem:[#allocation2 + $0xd0] ss:$24 sps:$4 sm:$0xff]  }
  0xab   : > { %1097 = vmatpush1.bf16.msra.mxu1 %v16321_v42  ;;  %1057 = vmatprep.subr.bf16.mxu0 %v16322_v43  ;;  %v16375_v42 = vld [vmem:[#allocation2 + $0x104] ss:$24 sps:$4 sm:$0xff]   ;;  %v16373_v43 = vld [vmem:[#allocation2 + $0x100] ss:$24 sps:$4 sm:$0xff]  }
  0xac   : > { %1098 = vmatprep.subr.bf16.mxu1 %v16325_v52  ;;  %v16390_v52 = vld [vmem:[#allocation2 + $0x1f4] ss:$24 sps:$4 sm:$0xff]  }
  0xae   : > { %1058 = vmatpush1.bf16.msra.mxu0 %v16324_v51  ;;  %v16385_v51 = vld [vmem:[#allocation2 + $0x1c0] ss:$24 sps:$4 sm:$0xff]  }
  0xaf   : > { %1099 = vmatpush1.bf16.msra.mxu1 %v16327_v53  ;;  %1059 = vmatprep.subr.bf16.mxu0 %v16328_v54  ;;  %v16388_v53 = vld [vmem:[#allocation2 + $0x1f0] ss:$24 sps:$4 sm:$0xff]   ;;  %v16393_v54 = vld [vmem:[#allocation2 + $0x224] ss:$24 sps:$4 sm:$0xff]  }
  0xb0   : > { %1100 = vmatprep.subr.bf16.mxu1 %v16331_v56  ;;  %v16396_v56 = vld [vmem:[#allocation2 + $0x254] ss:$24 sps:$4 sm:$0xff]  }
  0xb2   : > { %1060 = vmatpush1.bf16.msra.mxu0 %v16330_v55  ;;  %v16391_v55 = vld [vmem:[#allocation2 + $0x220] ss:$24 sps:$4 sm:$0xff]  }
  0xb3   : > { %1101 = vmatpush1.bf16.msra.mxu1 %v16333_v57  ;;  %1061 = vmatprep.subr.bf16.mxu0 %v16334_v58  ;;  %v16394_v57 = vld [vmem:[#allocation2 + $0x250] ss:$24 sps:$4 sm:$0xff]   ;;  %v16399_v58 = vld [vmem:[#allocation2 + $0x284] ss:$24 sps:$4 sm:$0xff]  }
  0xb4   : > { %1102 = vmatprep.subr.bf16.mxu1 %v16337_v60  ;;  %v16402_v60 = vld [vmem:[#allocation2 + $0x2b4] ss:$24 sps:$4 sm:$0xff]  }
  0xb6   : > { %1062 = vmatpush1.bf16.msra.mxu0 %v16336_v59  ;;  %v16397_v59 = vld [vmem:[#allocation2 + $0x280] ss:$24 sps:$4 sm:$0xff]  }
  0xb7   : > { %1103 = vmatpush1.bf16.msra.mxu1 %v16339_v61  ;;  %1063 = vmatprep.subr.bf16.mxu0 %v16340_v62  ;;  %v16400_v61 = vld [vmem:[#allocation2 + $0x2b0] ss:$24 sps:$4 sm:$0xff]   ;;  %v16405_v62 = vld [vmem:[#allocation2 + $0x2e4] ss:$24 sps:$4 sm:$0xff]  }
  0xb8   : > { %1104 = vmatprep.subr.bf16.mxu1 %v16343_v63  ;;  %v16403_v63 = vld [vmem:[#allocation2 + $0x2e0] ss:$24 sps:$4 sm:$0xff]  }
 0x11a   : > { %v385_v44 = vpop.xlane.xlu0 %384 }
 0x11b   : > { %v387_v45 = vmul.f32 0.00390625, %v385_v44  ;;  %v16378_v44 = vld [vmem:[#allocation2 + $0x134] ss:$24 sps:$4 sm:$0xff]  }
 0x11d   : > { %v18343_v46 = vsub.f32 %v18336_v0, %v387_v45  ;;  %v18346_v47 = vsub.f32 %v18338_v1, %v387_v45  ;;  %v16342_v0 = vld [vmem:[#allocation2 + $0x270] ss:$24 sps:$4 sm:$0xff]  }
 0x11e   : > { %v16345_v1 = vld [vmem:[#allocation2 + $0x278] ss:$24 sps:$4 sm:$0xff]   ;;  %1064 = vmatpush1.bf16.msra.mxu0 %v16342_v0  ;;  %v18113_v0 = vmov 0.0  }
 0x11f   : > { %v390_v48 = vmul.f32 %v18343_v46, %v18343_v46  ;;  %v391_v49 = vmul.f32 %v18346_v47, %v18346_v47  ;;  %1105 = vmatpush1.bf16.msra.mxu1 %v16345_v1  ;;  %1065 = vmatprep.subr.bf16.mxu0 %v16346_v2  ;;  %v16376_v45 = vld [vmem:[#allocation2 + $0x130] ss:$24 sps:$4 sm:$0xff]   ;;  %v427_v1 = vld [vmem:[%s19386_s7] sm:$0xff] }
 0x120   : > { %1106 = vmatprep.subr.bf16.mxu1 %v16349_v4  ;;  %v18394_v2 = vld [vmem:[%s19386_s7 + $0x10] sm:$0xff] }
 0x121   : > { %v392_v50 = vadd.f32 %v391_v49, %v390_v48  ;;  %v16384_v48 = vld [vmem:[#allocation2 + $0x194] ss:$24 sps:$4 sm:$0xff]   ;;  %v16382_v49 = vld [vmem:[#allocation2 + $0x190] ss:$24 sps:$4 sm:$0xff]   ;;  %v544_v4 = vrot.slane %v18394_v2, %v18361_v18 }
 0x122   : > { %1066 = vmatpush1.bf16.msra.mxu0 %v16348_v3  ;;  %v536_v3 = vrot.slane %v427_v1, %v18361_v18 }
 0x123   : > { %393 = vadd.xlane.f32.xlu0 %v392_v50  ;;  %1107 = vmatpush1.bf16.msra.mxu1 %v16351_v5  ;;  %v16387_v50 = vld [vmem:[#allocation2 + $0x1c4] ss:$24 sps:$4 sm:$0xff]  }
 0x124   : > { %1067 = vmatprep.subr.bf16.mxu0 %v16352_v6  ;;  %1108 = vmatprep.subr.bf16.mxu1 %v16355_v7 }
 0x126   : > { %1068 = vmatpush1.bf16.msra.mxu0 %v16354_v8 }
 0x127   : > { %1109 = vmatpush1.bf16.msra.mxu1 %v16357_v9  ;;  %1119 = vmatprep.subr.bf16.mxu0 %v16360_v10 }
 0x128   : > { %15961 = vmatprep.subr.bf16.mxu1 %v18113_v0 }
 0x1b0   : > { %v394_v11 = vpop.xlane.xlu0 %393 }
 0x1b1   : > { %v395_v12 = vmul.f32 0.00390625, %v394_v11 }
 0x1b3   : > { %v396_v14 = vadd.f32 1e-12, %v395_v12 }
 0x1b5   : > { %17798 = vrsqrt.f32 %v396_v14 }
 0x1bf   : > { %v17799_v22 = vpop.eup %17798 }
 0x1c0   : > { %v399_v23 = vmul.f32 %v17799_v22, %v18346_v47  ;;  %v398_v25 = vmul.f32 %v17799_v22, %v18343_v46  ;;  %v16381_v46 = vld [vmem:[#allocation2 + $0x164] ss:$24 sps:$4 sm:$0xff]   ;;  %v16379_v47 = vld [vmem:[#allocation2 + $0x160] ss:$24 sps:$4 sm:$0xff]  }
 0x1c1   : > { %v18412_v22 = vld [vmem:[%s19386_s7 + $0x20] sm:$0xff] }
 0x1c2   : > { %v412_v27 = vmul.f32 %v408_v20, %v399_v23  ;;  %v411_v28 = vmul.f32 %v404_v21, %v398_v25  ;;  %v552_v23 = vrot.slane %v18412_v22, %v18361_v18 }
 0x1c4   : > { %v18372_v29 = vadd.f32 %v421_v24, %v412_v27  ;;  %v18374_v31 = vadd.f32 %v417_v26, %v411_v28 }
 0x1c6   : > { %v436_v33 = vpack.c.bf16 %v18372_v29, %v18372_v29  ;;  %v18380_v34 = vpack.c.bf16 %v18374_v31, %v18374_v31 }
 0x1c8   : > { %1069 = vmatprep.mubr.bf16.mxu0 %v436_v33  ;;  %1110 = vmatprep.mubr.bf16.mxu1 %v436_v33 }
 0x1c9   : > { %1070 = vmatmul.mubr.bf16.vlgmr.msra.gmra.mrb[0].mxu0 %v18380_v34  ;;  %1111 = vmatmul.mubr.bf16.vlgmr.msra.gmra.mrb[0].mxu1 %v18380_v34 }
 0x1ca   : > { %1120 = vmatpush1.bf16.msra.mxu0 %v16358_v30  ;;  %1151 = vmatprep.mubr.bf16.mxu0 %v436_v33  ;;  %v18428_v33 = vld [vmem:[%s18425_s12] ss:$0 sm:$0xff] }
 0x1cb   : > { %1121 = vmatprep.subr.bf16.mxu0 %v16363_v32  ;;  %15963 = vmatprep.mubr.msk.bf16.mxu1 %vm18114_vm0, %v18113_v0 }
 0x1ce   : > { %1122 = vmatpush1.bf16.msra.mxu0 %v16361_v35 }
 0x1cf   : > { %1123 = vmatprep.subr.bf16.mxu0 %v16366_v36 }
 0x1d2   : > { %1124 = vmatpush1.bf16.msra.mxu0 %v16364_v37 }
 0x1d3   : > { %1125 = vmatprep.subr.bf16.mxu0 %v16369_v38 }
 0x1d6   : > { %1126 = vmatpush1.bf16.msra.mxu0 %v16367_v39 }
 0x1d7   : > { %1127 = vmatprep.subr.bf16.mxu0 %v16372_v40 }
 0x1da   : > { %1128 = vmatpush1.bf16.msra.mxu0 %v16370_v41 }
 0x1db   : > { %1129 = vmatprep.subr.bf16.mxu0 %v16375_v42 }
 0x1de   : > { %1130 = vmatpush1.bf16.msra.mxu0 %v16373_v43 }
 0x1df   : > { %1131 = vmatprep.subr.bf16.mxu0 %v16378_v44 }
 0x1e2   : > { %1132 = vmatpush1.bf16.msra.mxu0 %v16376_v45 }
 0x1e3   : > { %1133 = vmatprep.subr.bf16.mxu0 %v16381_v46 }
 0x1e6   : > { %1134 = vmatpush1.bf16.msra.mxu0 %v16379_v47 }
 0x1e7   : > { %1135 = vmatprep.subr.bf16.mxu0 %v16384_v48 }
 0x1ea   : > { %1136 = vmatpush1.bf16.msra.mxu0 %v16382_v49 }
 0x1eb   : > { %1137 = vmatprep.subr.bf16.mxu0 %v16387_v50 }
 0x1ee   : > { %1138 = vmatpush1.bf16.msra.mxu0 %v16385_v51 }
 0x1ef   : > { %1139 = vmatprep.subr.bf16.mxu0 %v16390_v52 }
 0x1f2   : > { %1140 = vmatpush1.bf16.msra.mxu0 %v16388_v53 }
 0x1f3   : > { %1141 = vmatprep.subr.bf16.mxu0 %v16393_v54 }
 0x1f6   : > { %1142 = vmatpush1.bf16.msra.mxu0 %v16391_v55 }
 0x1f7   : > { %1143 = vmatprep.subr.bf16.mxu0 %v16396_v56 }
 0x1fa   : > { %1144 = vmatpush1.bf16.msra.mxu0 %v16394_v57 }
 0x1fb   : > { %1145 = vmatprep.subr.bf16.mxu0 %v16399_v58 }
 0x1fe   : > { %1146 = vmatpush1.bf16.msra.mxu0 %v16397_v59 }
 0x1ff   : > { %1147 = vmatprep.subr.bf16.mxu0 %v16402_v60  ;;  %v18454_v60 = vld [vmem:[%s19386_s7 + $0x18] sm:$0xff] }
 0x202   : > { %1148 = vmatpush1.bf16.msra.mxu0 %v16400_v61  ;;  %v548_v61 = vrot.slane %v18454_v60, %v18361_v18 }
 0x203   : > { %1149 = vmatprep.subr.bf16.mxu0 %v16405_v62 }
 0x206   : > { %1150 = vmatpush1.bf16.msra.mxu0 %v16403_v63 }
 0x209   : > { %1152 = vmatmul.mubr.bf16.vlgmr.msra.gmra.mrb[4].mxu0 %v18380_v34 }
 0x29c   : > { %v1071_v5 = vpop.f32.mrb[0].mxu0  ;;  %v1112_v6 = vpop.f32.mrb[0].mxu1 }
 0x29d   : > { %v1072_v7 = vadd.f32 %v1071_v5, %v536_v3  ;;  %v1113_v8 = vadd.f32 %v1112_v6, %v544_v4  ;;  %v18399_v9 = vpop.f32.mrb[1].mxu0  ;;  %v18401_v10 = vpop.f32.mrb[1].mxu1  ;;  %v428_v5 = vld [vmem:[%s19386_s7 + $0x8] sm:$0xff] }
 0x29e   : > { %v1075_v11 = vpop.f32.mrb[2].mxu0  ;;  %v1116_v12 = vpop.f32.mrb[2].mxu1  ;;  %v1115_v62 = vadd.f32 %v18401_v10, %v548_v61  ;;  %v18466_v6 = vld [vmem:[%s19386_s7 + $0x28] sm:$0xff] }
 0x29f   : > { %v1160_v13 = vmul.f32 0.125, %v1072_v7  ;;  %v1163_v14 = vpack.c.bf16 %v1113_v8, %v1113_v8  ;;  %v1076_v16 = vpop.f32.mrb[3].mxu0  ;;  %v1117_v19 = vpop.f32.mrb[3].mxu1  ;;  %v540_v7 = vrot.slane %v428_v5, %v18361_v18  ;;  %v556_v8 = vrot.slane %v18466_v6, %v18361_v18  ;;  %v16408_v5 = vld [vmem:[#allocation5 + $0x4] ss:$8 sps:$4 sm:$0xff]  }
 0x2a0   : > { %v1392_v63 = vpack.c.bf16 %v1115_v62, %v1115_v62  ;;  %1823 = vmatprep.subr.bf16.mxu0 %v16408_v5 }
 0x2a1   : > { %v1162_v20 = vpack.c.bf16 %v1160_v13, %v1160_v13  ;;  %v1176_v21 = vsel %vm1171_vm1, %v1163_v14, 0  ;;  %v1074_v11 = vadd.f32 %v18399_v9, %v540_v7  ;;  %v16411_v7 = vld [vmem:[#allocation5 + $0x14] ss:$8 sps:$4 sm:$0xff]  }
 0x2a2   : > { %15962 = vmatpush3.bf16.xpose.msra.mxu1 %v1176_v21  ;;  %v1398_v13 = vsel %vm1171_vm1, %v1392_v63, 0 }
 0x2a3   : > { %1279 = vrot.lane.b32.xlu0 %v1162_v20, %s18115_s23  ;;  %15967 = vmatprep.subr.bf16.mxu1 %v18113_v0  ;;  %v1161_v16 = vmul.f32 0.125, %v1074_v11  ;;  %v16417_v11 = vld [vmem:[#allocation5 + $0x34] ss:$8 sps:$4 sm:$0xff]  }
 0x2a9   : > { %15964 = vmatmul.mubr.msk.bf16.vlgmr.msra.gmra.mrb[4].mxu1 %vm1171_vm1, %v1162_v20  ;;  %v1391_v20 = vpack.c.bf16 %v1161_v16, %v1161_v16  ;;  %v16423_v16 = vld [vmem:[#allocation5 + $0x54] ss:$8 sps:$4 sm:$0xff]  }
 0x2aa   : > { %15969 = vmatprep.mubr.msk.bf16.mxu1 %vm18114_vm0, %v18113_v0 }
 0x2dc   : > { %v1153_v24 = vpop.f32.mrb[4].mxu0 }
 0x2dd   : > { %v1154_v25 = vadd.f32 %v1153_v24, %v552_v23  ;;  %v18416_v26 = vpop.f32.mrb[5].mxu0 }
 0x2de   : > { %v1157_v27 = vpop.f32.mrb[6].mxu0 }
 0x2df   : > { %v1164_v28 = vpack.c.bf16 %v1154_v25, %v1154_v25  ;;  %v1158_v30 = vpop.f32.mrb[7].mxu0 }
 0x2e1   : > { %v1235_v32 = vsel %vm1233_vm2, %v1164_v28, 0  ;;  %1342 = vrot.lane.b32.xlu0 %v1164_v28, %s18115_s23 }
 0x2e2   : > { %15968 = vmatpush3.bf16.msra.mxu1 %v1235_v32 }
 0x2e3   : > { %15973 = vmatprep.subr.bf16.mxu1 %v18113_v0 }
 0x315   : > { %v1280_v47 = vpop.permute.xlu0 %1279 }
 0x353   : > { %v1343_v48 = vpop.permute.xlu0 %1342 }
 0x354   : > { %v1348_v49 = vsel %vm1233_vm2, %v1343_v48, 0 }
 0x37c   : > { %v1212_v34 = vpop.f32.mrb[4].mxu1 }
 0x37d   : > { %v1213_v35 = vadd.f32 %v18428_v33, %v1212_v34  ;;  %v15965_v36 = vpop.f32.mrb[5].mxu1 }
 0x37e   : > { %v1215_v37 = vpop.f32.mrb[6].mxu1 }
 0x37f   : > { %v15966_v38 = vpop.f32.mrb[7].mxu1  ;;  %v1219_v39 = vsel %vm1218_vm3, %v1213_v35, -inf }
 0x380   : > { %1220 = vmax.xlane.f32.xlu1 %v1219_v39 }
 0x391   : > { %1282 = vrot.lane.b32.xlu1 %v1163_v14, %s18115_s23  ;;  %v1156_v14 = vadd.f32 %v18416_v26, %v556_v8  ;;  %v16409_v8 = vld [vmem:[#allocation5 + $0x10] ss:$8 sps:$4 sm:$0xff]  }
 0x393   : > { %v1393_v19 = vpack.c.bf16 %v1156_v14, %v1156_v14  ;;  %v16418_v14 = vld [vmem:[#allocation5 + $0x40] ss:$8 sps:$4 sm:$0xff]  }
 0x395   : > { %v1455_v21 = vsel %vm1233_vm2, %v1393_v19, 0 }
 0x40d   : > { %v1221_v40 = vpop.xlane.xlu1 %1220 }
 0x40e   : > { %v1222_v41 = vsub.f32 %v1213_v35, %v1221_v40 }
 0x410   : > { %v1223_v42 = vmul.f32 1.442695, %v1222_v41 }
 0x411   : > { %v1283_v44 = vpop.permute.xlu1 %1282 }
 0x412   : > { %17800 = vpow2.f32 %v1223_v42  ;;  %v1288_v46 = vsel %vm1171_vm1, %v1283_v44, 0 }
 0x41c   : > { %v18433_v43 = vpop.eup %17800 }
 0x41d   : > { %v1229_v45 = vpack.c.bf16 %v18433_v43, %v18433_v43 }
 0x41f   : > { %15970 = vmatmul.mubr.msk.bf16.vlgmr.msra.gmra.mrb[8].mxu1 %vm1218_vm3, %v1229_v45 }
 0x420   : > { %15974 = vmatpush3.bf16.xpose.msra.mxu1 %v1288_v46  ;;  %15975 = vmatprep.mubr.msk.bf16.mxu1 %vm18114_vm0, %v18113_v0 }
 0x421   : > { %15979 = vmatprep.subr.bf16.mxu1 %v18113_v0 }
 0x427   : > { %15976 = vmatmul.mubr.msk.bf16.vlgmr.msra.gmra.mrb[12].mxu1 %vm1171_vm1, %v1280_v47 }
 0x428   : > { %15980 = vmatpush3.bf16.msra.mxu1 %v1348_v49  ;;  %15981 = vmatprep.mubr.msk.bf16.mxu1 %vm18114_vm0, %v18113_v0 }
 0x429   : > { %15985 = vmatprep.subr.bf16.mxu1 %v18113_v0 }
 0x4f2   : > { %v18447_v50 = vpop.f32.mrb[8].mxu1 }
 0x4f3   : > { %v15971_v51 = vpop.f32.mrb[9].mxu1 }
 0x4f4   : > { %v1274_v52 = vpop.f32.mrb[10].mxu1 }
 0x4f5   : > { %v15972_v53 = vpop.f32.mrb[11].mxu1 }
 0x4fa   : > { %v1324_v54 = vpop.f32.mrb[12].mxu1 }
 0x4fb   : > { %v1325_v55 = vadd.f32 %v18428_v33, %v1324_v54  ;;  %v15977_v56 = vpop.f32.mrb[13].mxu1 }
 0x4fc   : > { %v1327_v57 = vpop.f32.mrb[14].mxu1 }
 0x4fd   : > { %v15978_v58 = vpop.f32.mrb[15].mxu1  ;;  %v1330_v59 = vsel %vm1218_vm3, %v1325_v55, -inf }
 0x4fe   : > { %1331 = vmax.xlane.f32.xlu1 %v1330_v59  ;;  %v1225_v59 = vsel %vm1218_vm3, %v18433_v43, 0.0  ;;  %v16414_v43 = vld [vmem:[#allocation5 + $0x24] ss:$8 sps:$4 sm:$0xff]  }
 0x50f   : > { %1502 = vrot.lane.b32.xlu1 %v1392_v63, %s18115_s23 }
 0x58b   : > { %v1332_v1 = vpop.xlane.xlu1 %1331 }
 0x58c   : > { %v1333_v3 = vsub.f32 %v1325_v55, %v1332_v1 }
 0x58e   : > { %v1334_v4 = vmul.f32 1.442695, %v1333_v3 }
 0x58f   : > { %v1503_v39 = vpop.permute.xlu1 %1502 }
 0x590   : > { %17802 = vpow2.f32 %v1334_v4  ;;  %v1508_v42 = vsel %vm1171_vm1, %v1503_v39, 0  ;;  %v16406_v4 = vld [vmem:[#allocation5] ss:$8 sps:$4 sm:$0xff]   ;;  %v16445_v39 = vld [vmem:[#allocation5 + $0xd0] ss:$8 sps:$4 sm:$0xff]  }
 0x591   : > { %1824 = vmatpush1.bf16.msra.mxu0 %v16406_v4 }
 0x592   : > { %1825 = vmatprep.subr.bf16.mxu0 %v16411_v7 }
 0x595   : > { %1826 = vmatpush1.bf16.msra.mxu0 %v16409_v8 }
 0x596   : > { %1827 = vmatprep.subr.bf16.mxu0 %v16414_v43  ;;  %v433_v43 = vld [vmem:[%s19386_s7 + $0x30] sm:$0xff] }
 0x59a   : > { %v17803_v10 = vpop.eup %17802 }
 0x59b   : > { %v1340_v12 = vpack.c.bf16 %v17803_v10, %v17803_v10  ;;  %v1336_v57 = vsel %vm1218_vm3, %v17803_v10, 0.0  ;;  %v16412_v10 = vld [vmem:[#allocation5 + $0x20] ss:$8 sps:$4 sm:$0xff]  }
 0x59c   : > { %1828 = vmatpush1.bf16.msra.mxu0 %v16412_v10  ;;  %v1658_v10 = vrot.slane %v433_v43, %v18361_v18 }
 0x59d   : > { %15982 = vmatmul.mubr.msk.bf16.vlgmr.msra.gmra.mrb[16].mxu1 %vm1218_vm3, %v1340_v12  ;;  %v16415_v12 = vld [vmem:[#allocation5 + $0x30] ss:$8 sps:$4 sm:$0xff]   ;;  %1829 = vmatprep.subr.bf16.mxu0 %v16417_v11 }
 0x59e   : > { %15986 = vmatpush3.bf16.xpose.msra.mxu1 %v1398_v13  ;;  %15987 = vmatprep.mubr.msk.bf16.mxu1 %vm18114_vm0, %v18113_v0  ;;  %v16420_v13 = vld [vmem:[#allocation5 + $0x44] ss:$8 sps:$4 sm:$0xff]  }
 0x59f   : > { %15991 = vmatprep.subr.bf16.mxu1 %v18113_v0 }
 0x5a0   : > { %1830 = vmatpush1.bf16.msra.mxu0 %v16415_v12 }
 0x5a1   : > { %1831 = vmatprep.subr.bf16.mxu0 %v16420_v13 }
 0x5a4   : > { %1832 = vmatpush1.bf16.msra.mxu0 %v16418_v14 }
 0x5a5   : > { %15988 = vmatmul.mubr.msk.bf16.vlgmr.msra.gmra.mrb[20].mxu1 %vm1171_vm1, %v1391_v20  ;;  %1833 = vmatprep.subr.bf16.mxu0 %v16423_v16 }
 0x5a6   : > { %15992 = vmatpush3.bf16.msra.mxu1 %v1455_v21  ;;  %15993 = vmatprep.mubr.msk.bf16.mxu1 %vm18114_vm0, %v18113_v0  ;;  %v16424_v21 = vld [vmem:[#allocation5 + $0x60] ss:$8 sps:$4 sm:$0xff]  }
 0x5a7   : > { %15997 = vmatprep.subr.bf16.mxu1 %v18113_v0 }
 0x670   : > { %v18483_v9 = vpop.f32.mrb[16].mxu1 }
 0x671   : > { %v15983_v23 = vpop.f32.mrb[17].mxu1 }
 0x672   : > { %v1387_v24 = vpop.f32.mrb[18].mxu1  ;;  %v16429_v23 = vld [vmem:[#allocation5 + $0x74] ss:$8 sps:$4 sm:$0xff]  }
 0x673   : > { %v15984_v25 = vpop.f32.mrb[19].mxu1  ;;  %v16427_v24 = vld [vmem:[#allocation5 + $0x70] ss:$8 sps:$4 sm:$0xff]  }
 0x674   : > { %v16432_v25 = vld [vmem:[#allocation5 + $0x84] ss:$8 sps:$4 sm:$0xff]  }
 0x678   : > { %v1434_v26 = vpop.f32.mrb[20].mxu1 }
 0x679   : > { %v1435_v27 = vadd.f32 %v18428_v33, %v1434_v26  ;;  %v15989_v28 = vpop.f32.mrb[21].mxu1  ;;  %v16430_v26 = vld [vmem:[#allocation5 + $0x80] ss:$8 sps:$4 sm:$0xff]  }
 0x67a   : > { %v1437_v30 = vpop.f32.mrb[22].mxu1  ;;  %v16433_v28 = vld [vmem:[#allocation5 + $0x90] ss:$8 sps:$4 sm:$0xff]  }
 0x67b   : > { %v15990_v32 = vpop.f32.mrb[23].mxu1  ;;  %v1440_v34 = vsel %vm1218_vm3, %v1435_v27, -inf  ;;  %v16438_v30 = vld [vmem:[#allocation5 + $0xa4] ss:$8 sps:$4 sm:$0xff]  }
 0x67c   : > { %1441 = vmax.xlane.f32.xlu0 %v1440_v34  ;;  %v16436_v32 = vld [vmem:[#allocation5 + $0xa0] ss:$8 sps:$4 sm:$0xff]   ;;  %v16441_v34 = vld [vmem:[#allocation5 + $0xb4] ss:$8 sps:$4 sm:$0xff]  }
 0x692   : > { %1499 = vrot.lane.b32.xlu0 %v1391_v20, %s18115_s23  ;;  %v16426_v20 = vld [vmem:[#allocation5 + $0x64] ss:$8 sps:$4 sm:$0xff]  }
 0x696   : > { %1562 = vrot.lane.b32.xlu0 %v1393_v19, %s18115_s23  ;;  %v16421_v19 = vld [vmem:[#allocation5 + $0x50] ss:$8 sps:$4 sm:$0xff]  }
 0x697   : > { %1834 = vmatpush1.bf16.msra.mxu0 %v16421_v19 }
 0x698   : > { %1835 = vmatprep.subr.bf16.mxu0 %v16426_v20 }
 0x69b   : > { %1836 = vmatpush1.bf16.msra.mxu0 %v16424_v21 }
 0x69c   : > { %1837 = vmatprep.subr.bf16.mxu0 %v16429_v23 }
 0x69f   : > { %1838 = vmatpush1.bf16.msra.mxu0 %v16427_v24  ;;  %v1904_v24 = vld [vmem:[#allocation7] sm:$0xff] }
 0x6a0   : > { %1839 = vmatprep.subr.bf16.mxu0 %v16432_v25  ;;  %v1908_v25 = vld [vmem:[#allocation7 + $0x20] sm:$0xff] }
 0x6a3   : > { %1840 = vmatpush1.bf16.msra.mxu0 %v16430_v26  ;;  %v1905_v26 = vld [vmem:[#allocation7 + $0x8] sm:$0xff] }
 0x709   : > { %v1442_v35 = vpop.xlane.xlu0 %1441 }
 0x70a   : > { %v1443_v36 = vsub.f32 %v1435_v27, %v1442_v35  ;;  %v16435_v27 = vld [vmem:[#allocation5 + $0x94] ss:$8 sps:$4 sm:$0xff]   ;;  %v16439_v35 = vld [vmem:[#allocation5 + $0xb0] ss:$8 sps:$4 sm:$0xff]  }
 0x70b   : > { %1841 = vmatprep.subr.bf16.mxu0 %v16435_v27  ;;  %v14434_v27 = vcombine.low %v1904_v24, %v1908_v25 }
 0x70c   : > { %v1444_v37 = vmul.f32 1.442695, %v1443_v36  ;;  %1842 = vmatpush1.bf16.msra.mxu0 %v16433_v28  ;;  %v16444_v36 = vld [vmem:[#allocation5 + $0xc4] ss:$8 sps:$4 sm:$0xff]   ;;  %v14435_v28 = vcombine.high %v1904_v24, %v1908_v25 }
 0x70d   : > { %v1500_v41 = vpop.permute.xlu0 %1499  ;;  %1843 = vmatprep.subr.bf16.mxu0 %v16438_v30  ;;  %v1909_v30 = vld [vmem:[#allocation7 + $0x28] sm:$0xff]  ;;  %v1960_v24 = vld [vmem:[#allocation7 + $0x1c0] sm:$0xff] }
 0x70e   : > { %17804 = vpow2.f32 %v1444_v37  ;;  %v16442_v37 = vld [vmem:[#allocation5 + $0xc0] ss:$8 sps:$4 sm:$0xff]  }
 0x70f   : > { %v1964_v25 = vld [vmem:[#allocation7 + $0x1e0] sm:$0xff] }
 0x710   : > { %1844 = vmatpush1.bf16.msra.mxu0 %v16436_v32  ;;  %v1912_v32 = vld [vmem:[#allocation7 + $0x40] sm:$0xff] }
 0x711   : > { %v1563_v44 = vpop.permute.xlu0 %1562  ;;  %1845 = vmatprep.subr.bf16.mxu0 %v16441_v34  ;;  %v1916_v34 = vld [vmem:[#allocation7 + $0x60] sm:$0xff] }
 0x712   : > { %v1568_v45 = vsel %vm1233_vm2, %v1563_v44, 0 }
 0x714   : > { %1846 = vmatpush1.bf16.msra.mxu0 %v16439_v35  ;;  %v14436_v35 = vcombine.low %v1905_v26, %v1909_v30 }
 0x715   : > { %1847 = vmatprep.subr.bf16.mxu0 %v16444_v36  ;;  %v14437_v36 = vcombine.high %v1905_v26, %v1909_v30  ;;  %v1961_v26 = vld [vmem:[#allocation7 + $0x1c8] sm:$0xff] }
 0x718   : > { %v17805_v38 = vpop.eup %17804  ;;  %1848 = vmatpush1.bf16.msra.mxu0 %v16442_v37  ;;  %v1913_v37 = vld [vmem:[#allocation7 + $0x48] sm:$0xff] }
 0x719   : > { %v1450_v40 = vpack.c.bf16 %v17805_v38, %v17805_v38  ;;  %v1446_v58 = vsel %vm1218_vm3, %v17805_v38, 0.0  ;;  %v16447_v38 = vld [vmem:[#allocation5 + $0xd4] ss:$8 sps:$4 sm:$0xff]  }
 0x71a   : > { %1849 = vmatprep.subr.bf16.mxu0 %v16447_v38  ;;  %v1917_v38 = vld [vmem:[#allocation7 + $0x68] sm:$0xff] }
 0x71b   : > { %15994 = vmatmul.mubr.msk.bf16.vlgmr.msra.gmra.mrb[24].mxu1 %vm1218_vm3, %v1450_v40  ;;  %v16450_v40 = vld [vmem:[#allocation5 + $0xe4] ss:$8 sps:$4 sm:$0xff]  }
 0x71c   : > { %15998 = vmatpush3.bf16.xpose.msra.mxu1 %v1508_v42  ;;  %15999 = vmatprep.mubr.msk.bf16.mxu1 %vm18114_vm0, %v18113_v0 }
 0x71d   : > { %16003 = vmatprep.subr.bf16.mxu1 %v18113_v0  ;;  %1850 = vmatpush1.bf16.msra.mxu0 %v16445_v39  ;;  %v1920_v39 = vld [vmem:[#allocation7 + $0x80] sm:$0xff] }
 0x71e   : > { %1851 = vmatprep.subr.bf16.mxu0 %v16450_v40  ;;  %v1924_v40 = vld [vmem:[#allocation7 + $0xa0] sm:$0xff] }
 0x723   : > { %16000 = vmatmul.mubr.msk.bf16.vlgmr.msra.gmra.mrb[28].mxu1 %vm1171_vm1, %v1500_v41  ;;  %v16448_v41 = vld [vmem:[#allocation5 + $0xe0] ss:$8 sps:$4 sm:$0xff]  }
 0x724   : > { %16004 = vmatpush3.bf16.msra.mxu1 %v1568_v45  ;;  %16005 = vmatprep.mubr.msk.bf16.mxu1 %vm18114_vm0, %v18113_v0  ;;  %v16453_v45 = vld [vmem:[#allocation5 + $0xf4] ss:$8 sps:$4 sm:$0xff]  }
 0x725   : > { %1852 = vmatpush1.bf16.msra.mxu0 %v16448_v41  ;;  %2704 = vmatprep.subr.bf16.mxu1 %v14435_v28  ;;  %v1921_v41 = vld [vmem:[#allocation7 + $0x88] sm:$0xff] }
 0x726   : > { %1853 = vmatprep.subr.bf16.mxu0 %v16453_v45  ;;  %v14444_v45 = vcombine.low %v1913_v37, %v1917_v38 }
 0x7ee   : > { %v18498_v46 = vpop.f32.mrb[24].mxu1 }
 0x7ef   : > { %v15995_v47 = vpop.f32.mrb[25].mxu1 }
 0x7f0   : > { %v1494_v48 = vpop.f32.mrb[26].mxu1  ;;  %v16451_v47 = vld [vmem:[#allocation5 + $0xf0] ss:$8 sps:$4 sm:$0xff]  }
 0x7f1   : > { %v15996_v49 = vpop.f32.mrb[27].mxu1  ;;  %1854 = vmatpush1.bf16.msra.mxu0 %v16451_v47  ;;  %v14451_v47 = vcombine.high %v1920_v39, %v1924_v40 }
 0x7f2   : > { %2745 = vmatprep.subr.bf16.mxu0 %v14437_v36  ;;  %v1972_v36 = vld [vmem:[#allocation7 + $0x220] sm:$0xff] }
 0x7f6   : > { %v1544_v51 = vpop.f32.mrb[28].mxu1 }
 0x7f7   : > { %v1545_v52 = vadd.f32 %v18428_v33, %v1544_v51  ;;  %v16001_v53 = vpop.f32.mrb[29].mxu1 }
 0x7f8   : > { %v1547_v54 = vpop.f32.mrb[30].mxu1 }
 0x7f9   : > { %v16002_v55 = vpop.f32.mrb[31].mxu1  ;;  %v1550_v56 = vsel %vm1218_vm3, %v1545_v52, -inf }
 0x7fa   : > { %1551 = vmax.xlane.f32.xlu1 %v1550_v56 }
 0x7fe   : > { %1337 = vadd.xlane.f32.xlu1 %v1336_v57 }
 0x802   : > { %1447 = vadd.xlane.f32.xlu1 %v1446_v58 }
 0x806   : > { %1226 = vadd.xlane.f32.xlu1 %v1225_v59 }
 0x887   : > { %v1552_v61 = vpop.xlane.xlu1 %1551 }
 0x888   : > { %v1553_v62 = vsub.f32 %v1545_v52, %v1552_v61 }
 0x88a   : > { %v1554_v63 = vmul.f32 1.442695, %v1553_v62 }
 0x88b   : > { %v1338_v42 = vpop.xlane.xlu1 %1337 }
 0x88c   : > { %17806 = vpow2.f32 %v1554_v63 }
 0x88d   : > { %17808 = vrcp.f32 %v1338_v42  ;;  %v1925_v42 = vld [vmem:[#allocation7 + $0xa8] sm:$0xff] }
 0x88f   : > { %v1448_v58 = vpop.xlane.xlu1 %1447 }
 0x893   : > { %v1227_v59 = vpop.xlane.xlu1 %1226 }
 0x896   : > { %v17807_v33 = vpop.eup %17806 }
 0x897   : > { %v1556_v1 = vsel %vm1218_vm3, %v17807_v33, 0.0  ;;  %v1560_v3 = vpack.c.bf16 %v17807_v33, %v17807_v33  ;;  %v17809_v48 = vpop.eup %17808 }
 0x898   : > { %1557 = vadd.xlane.f32.xlu0 %v1556_v1  ;;  %v1390_v52 = vmul.f32 %v17809_v48, %v18483_v9  ;;  %v14453_v48 = vcombine.high %v1921_v41, %v1925_v42 }
 0x899   : > { %16006 = vmatmul.mubr.msk.bf16.vlgmr.msra.gmra.mrb[32].mxu1 %vm1218_vm3, %v1560_v3 }
 0x89a   : > { %2705 = vmatpush1.bf16.msra.mxu1 %v14434_v27  ;;  %v1965_v27 = vld [vmem:[#allocation7 + $0x1e8] sm:$0xff] }
 0x925   : > { %v1558_v44 = vpop.xlane.xlu0 %1557 }
 0x926   : > { %17810 = vrcp.f32 %v1558_v44  ;;  %v14442_v44 = vcombine.low %v1912_v32, %v1916_v34 }
 0x927   : > { %17812 = vrcp.f32 %v1448_v58  ;;  %v1936_v58 = vld [vmem:[#allocation7 + $0x100] sm:$0xff] }
 0x928   : > { %17814 = vrcp.f32 %v1227_v59  ;;  %v1940_v59 = vld [vmem:[#allocation7 + $0x120] sm:$0xff] }
 0x930   : > { %v17811_v49 = vpop.eup %17810 }
 0x931   : > { %v17813_v61 = vpop.eup %17812 }
 0x932   : > { %v17815_v62 = vpop.eup %17814  ;;  %v1497_v9 = vmul.f32 %v17813_v61, %v18498_v46  ;;  %v1937_v61 = vld [vmem:[#allocation7 + $0x108] sm:$0xff] }
 0x933   : > { %v1277_v33 = vmul.f32 %v17815_v62, %v18447_v50  ;;  %v434_v50 = vld [vmem:[%s19386_s7 + $0x38] sm:$0xff]  ;;  %v1941_v62 = vld [vmem:[#allocation7 + $0x128] sm:$0xff] }
 0x934   : > { %v1662_v46 = vrot.slane %v434_v50, %v18361_v18  ;;  %v14468_v43 = vcombine.low %v1937_v61, %v1941_v62 }
 0x96c   : > { %v1604_v51 = vpop.f32.mrb[32].mxu1 }
 0x96d   : > { %v1610_v53 = vmul.f32 %v17811_v49, %v1604_v51  ;;  %v16007_v54 = vpop.f32.mrb[33].mxu1  ;;  %v1928_v49 = vld [vmem:[#allocation7 + $0xc0] sm:$0xff] }
 0x96e   : > { %v1607_v55 = vpop.f32.mrb[34].mxu1  ;;  %v1932_v51 = vld [vmem:[#allocation7 + $0xe0] sm:$0xff]  ;;  %v14450_v54 = vcombine.low %v1920_v39, %v1924_v40  ;;  %v14492_v39 = vcombine.low %v1961_v26, %v1965_v27 }
 0x96f   : > { %v16242_v56 = vpack.i.bf16 %v1390_v52, %v1610_v53  ;;  %v16008_v57 = vpop.f32.mrb[35].mxu1  ;;  %v1929_v52 = vld [vmem:[#allocation7 + $0xc8] sm:$0xff]  ;;  %v14452_v55 = vcombine.low %v1921_v41, %v1925_v42  ;;  %v1976_v41 = vld [vmem:[#allocation7 + $0x240] sm:$0xff] }
 0x970   : > { %v1933_v53 = vld [vmem:[#allocation7 + $0xe8] sm:$0xff]  ;;  %v1980_v42 = vld [vmem:[#allocation7 + $0x260] sm:$0xff] }
 0x971   : > { %16243 = vrot.lane.b32.xlu0 %v16242_v56, %s18115_s23  ;;  %v14459_v56 = vcombine.high %v1928_v49, %v1932_v51  ;;  %v14461_v57 = vcombine.high %v1929_v52, %v1933_v53 }
 0x9e3   : > { %v16244_v63 = vpop.permute.xlu0 %16243 }
 0x9e4   : > { %v16246_v1 = vunpack.i.h.bf16 %v16244_v63  ;;  %v16245_v3 = vunpack.i.l.bf16 %v16244_v63  ;;  %v14458_v63 = vcombine.low %v1928_v49, %v1932_v51  ;;  %v14507_v49 = vcombine.high %v1976_v41, %v1980_v42 }
 0x9e6   : > { %v1619_v4 = vsel %vm1171_vm1, %v1277_v33, %v16246_v1  ;;  %v1620_v5 = vsel %vm1171_vm1, %v1497_v9, %v16245_v3  ;;  %v14460_v33 = vcombine.low %v1929_v52, %v1933_v53  ;;  %v14467_v1 = vcombine.high %v1936_v58, %v1940_v59  ;;  %v1944_v9 = vld [vmem:[#allocation7 + $0x140] sm:$0xff] }
 0x9e7   : > { %v1621_v7 = vpack.c.bf16 %v1619_v4, %v1619_v4  ;;  %v1622_v8 = vpack.c.bf16 %v1620_v5, %v1620_v5  ;;  %v14469_v3 = vcombine.high %v1937_v61, %v1941_v62  ;;  %v1948_v4 = vld [vmem:[#allocation7 + $0x160] sm:$0xff]  ;;  %v1945_v5 = vld [vmem:[#allocation7 + $0x148] sm:$0xff] }
 0x9e8   : > { %v14475_v50 = vcombine.high %v1944_v9, %v1948_v4  ;;  %v1984_v52 = vld [vmem:[#allocation7 + $0x280] sm:$0xff] }
 0x9e9   : > { %1855 = vmatprep.mubr.bf16.mxu0 %v1622_v8  ;;  %v14466_v8 = vcombine.low %v1936_v58, %v1940_v59  ;;  %v1988_v53 = vld [vmem:[#allocation7 + $0x2a0] sm:$0xff] }
 0x9ea   : > { %1856 = vmatmul.mubr.bf16.vlgmr.msra.gmra.mrb[8].mxu0 %v1621_v7  ;;  %v1949_v7 = vld [vmem:[#allocation7 + $0x168] sm:$0xff]  ;;  %v14515_v58 = vcombine.high %v1984_v52, %v1988_v53  ;;  %v14514_v61 = vcombine.low %v1984_v52, %v1988_v53  ;;  %v1906_v53 = vld [vmem:[#allocation7 + $0x10] sm:$0xff] }
 0x9eb   : > { %2746 = vmatpush1.bf16.msra.mxu0 %v14436_v35  ;;  %v1968_v35 = vld [vmem:[#allocation7 + $0x200] sm:$0xff] }
 0xabd   : > { %v1857_v11 = vpop.f32.mrb[8].mxu0 }
 0xabe   : > { %v1858_v12 = vadd.f32 %v1857_v11, %v1658_v10  ;;  %v1859_v13 = vpop.f32.mrb[9].mxu0  ;;  %v14477_v10 = vcombine.high %v1945_v5, %v1949_v7  ;;  %v1956_v11 = vld [vmem:[#allocation7 + $0x1a0] sm:$0xff] }
 0xabf   : > { %v1860_v14 = vadd.f32 %v1859_v13, %v1662_v46  ;;  %v1861_v16 = vpop.f32.mrb[10].mxu0  ;;  %v1952_v46 = vld [vmem:[#allocation7 + $0x180] sm:$0xff]  ;;  %v1957_v13 = vld [vmem:[#allocation7 + $0x1a8] sm:$0xff] }
 0xac0   : > { %v18523_v19 = vadd.f32 %v1858_v12, %v18374_v31  ;;  %v1862_v20 = vpop.f32.mrb[11].mxu0  ;;  %v14443_v31 = vcombine.high %v1912_v32, %v1916_v34  ;;  %v1953_v12 = vld [vmem:[#allocation7 + $0x188] sm:$0xff]  ;;  %v14476_v16 = vcombine.low %v1945_v5, %v1949_v7  ;;  %v14482_v28 = vcombine.low %v1952_v46, %v1956_v11  ;;  %v1992_v7 = vld [vmem:[#allocation7 + $0x2c0] sm:$0xff] }
 0xac1   : > { %v18526_v21 = vadd.f32 %v1860_v14, %v18372_v29  ;;  %v14445_v29 = vcombine.high %v1913_v37, %v1917_v38  ;;  %v14474_v14 = vcombine.low %v1944_v9, %v1948_v4  ;;  %v14483_v20 = vcombine.high %v1952_v46, %v1956_v11  ;;  %v1973_v37 = vld [vmem:[#allocation7 + $0x228] sm:$0xff] }
 0xac2   : > { %2706 = vmatprep.subr.bf16.mxu1 %v14443_v31  ;;  %v14484_v30 = vcombine.low %v1953_v12, %v1957_v13  ;;  %v14491_v32 = vcombine.high %v1960_v24, %v1964_v25  ;;  %v14493_v34 = vcombine.high %v1961_v26, %v1965_v27  ;;  %v1969_v31 = vld [vmem:[#allocation7 + $0x208] sm:$0xff]  ;;  %v14490_v38 = vcombine.low %v1960_v24, %v1964_v25  ;;  %v2008_v25 = vld [vmem:[#allocation7 + $0x340] sm:$0xff] }
 0xac3   : > { %v1866_v23 = vadd.f32 %v18526_v21, %v18523_v19  ;;  %2747 = vmatprep.subr.bf16.mxu0 %v14445_v29  ;;  %2707 = vmatpush1.bf16.msra.mxu1 %v14442_v44  ;;  %v14499_v29 = vcombine.high %v1968_v35, %v1972_v36  ;;  %v14501_v40 = vcombine.high %v1969_v31, %v1973_v37  ;;  %v1977_v44 = vld [vmem:[#allocation7 + $0x248] sm:$0xff]  ;;  %v2012_v26 = vld [vmem:[#allocation7 + $0x360] sm:$0xff] }
 0xac4   : > { %2748 = vmatpush1.bf16.msra.mxu0 %v14444_v45  ;;  %2708 = vmatprep.subr.bf16.mxu1 %v14451_v47  ;;  %v1981_v45 = vld [vmem:[#allocation7 + $0x268] sm:$0xff]  ;;  %v14498_v47 = vcombine.low %v1968_v35, %v1972_v36  ;;  %v2016_v36 = vld [vmem:[#allocation7 + $0x380] sm:$0xff] }
 0xac5   : > { %1867 = vadd.xlane.f32.xlu1 %v1866_v23  ;;  %2749 = vmatprep.subr.bf16.mxu0 %v14453_v48  ;;  %v14485_v23 = vcombine.high %v1953_v12, %v1957_v13  ;;  %v14500_v48 = vcombine.low %v1969_v31, %v1973_v37  ;;  %v14509_v51 = vcombine.high %v1977_v44, %v1981_v45  ;;  %v2004_v12 = vld [vmem:[#allocation7 + $0x320] sm:$0xff]  ;;  %v2001_v13 = vld [vmem:[#allocation7 + $0x308] sm:$0xff] }
 0xac6   : > { %v2009_v27 = vld [vmem:[#allocation7 + $0x348] sm:$0xff]  ;;  %v2020_v31 = vld [vmem:[#allocation7 + $0x3a0] sm:$0xff] }
 0xac7   : > { %2709 = vmatpush1.bf16.msra.mxu1 %v14450_v54  ;;  %v1985_v54 = vld [vmem:[#allocation7 + $0x288] sm:$0xff] }
 0xac8   : > { %2750 = vmatpush1.bf16.msra.mxu0 %v14452_v55  ;;  %2710 = vmatprep.subr.bf16.mxu1 %v14459_v56  ;;  %v1989_v55 = vld [vmem:[#allocation7 + $0x2a8] sm:$0xff]  ;;  %v14506_v56 = vcombine.low %v1976_v41, %v1980_v42  ;;  %v2024_v42 = vld [vmem:[#allocation7 + $0x3c0] sm:$0xff] }
 0xac9   : > { %2751 = vmatprep.subr.bf16.mxu0 %v14461_v57  ;;  %v14508_v57 = vcombine.low %v1977_v44, %v1981_v45  ;;  %v14517_v59 = vcombine.high %v1985_v54, %v1989_v55  ;;  %v14516_v62 = vcombine.low %v1985_v54, %v1989_v55  ;;  %v2017_v37 = vld [vmem:[#allocation7 + $0x388] sm:$0xff]  ;;  %v2028_v44 = vld [vmem:[#allocation7 + $0x3e0] sm:$0xff]  ;;  %v1910_v54 = vld [vmem:[#allocation7 + $0x30] sm:$0xff] }
 0xaca   : > { %v2025_v45 = vld [vmem:[#allocation7 + $0x3c8] sm:$0xff]  ;;  %v1907_v55 = vld [vmem:[#allocation7 + $0x18] sm:$0xff] }
 0xacb   : > { %2711 = vmatpush1.bf16.msra.mxu1 %v14458_v63 }
 0xacc   : > { %2752 = vmatpush1.bf16.msra.mxu0 %v14460_v33  ;;  %2712 = vmatprep.subr.bf16.mxu1 %v14467_v1 }
 0xacd   : > { %2753 = vmatprep.subr.bf16.mxu0 %v14469_v3 }
 0xacf   : > { %2713 = vmatpush1.bf16.msra.mxu1 %v14466_v8  ;;  %v1996_v8 = vld [vmem:[#allocation7 + $0x2e0] sm:$0xff] }
 0xad0   : > { %2754 = vmatpush1.bf16.msra.mxu0 %v14468_v43  ;;  %2714 = vmatprep.subr.bf16.mxu1 %v14475_v50  ;;  %v1993_v43 = vld [vmem:[#allocation7 + $0x2c8] sm:$0xff]  ;;  %v14523_v50 = vcombine.high %v1992_v7, %v1996_v8  ;;  %v14522_v46 = vcombine.low %v1992_v7, %v1996_v8 }
 0xad1   : > { %2755 = vmatprep.subr.bf16.mxu0 %v14477_v10  ;;  %v1997_v10 = vld [vmem:[#allocation7 + $0x2e8] sm:$0xff] }
 0xad2   : > { %v14524_v11 = vcombine.low %v1993_v43, %v1997_v10 }
 0xad3   : > { %2715 = vmatpush1.bf16.msra.mxu1 %v14474_v14 }
 0xad4   : > { %2756 = vmatpush1.bf16.msra.mxu0 %v14476_v16  ;;  %2716 = vmatprep.subr.bf16.mxu1 %v14483_v20  ;;  %v2005_v16 = vld [vmem:[#allocation7 + $0x328] sm:$0xff] }
 0xad5   : > { %2757 = vmatprep.subr.bf16.mxu0 %v14485_v23  ;;  %v14532_v23 = vcombine.low %v2001_v13, %v2005_v16  ;;  %v14533_v24 = vcombine.high %v2001_v13, %v2005_v16  ;;  %v1919_v13 = vld [vmem:[#allocation7 + $0x78] sm:$0xff]  ;;  %v1926_v16 = vld [vmem:[#allocation7 + $0xb0] sm:$0xff] }
 0xad7   : > { %2717 = vmatpush1.bf16.msra.mxu1 %v14482_v28  ;;  %v14539_v28 = vcombine.high %v2008_v25, %v2012_v26 }
 0xad8   : > { %2758 = vmatpush1.bf16.msra.mxu0 %v14484_v30  ;;  %2718 = vmatprep.subr.bf16.mxu1 %v14491_v32  ;;  %v2013_v30 = vld [vmem:[#allocation7 + $0x368] sm:$0xff]  ;;  %v14538_v32 = vcombine.low %v2008_v25, %v2012_v26 }
 0xad9   : > { %2759 = vmatprep.subr.bf16.mxu0 %v14493_v34  ;;  %v14540_v34 = vcombine.low %v2009_v27, %v2013_v30  ;;  %v14541_v35 = vcombine.high %v2009_v27, %v2013_v30  ;;  %v1934_v30 = vld [vmem:[#allocation7 + $0xf0] sm:$0xff] }
 0xadb   : > { %2719 = vmatpush1.bf16.msra.mxu1 %v14490_v38  ;;  %v14547_v38 = vcombine.high %v2016_v36, %v2020_v31 }
 0xadc   : > { %2760 = vmatpush1.bf16.msra.mxu0 %v14492_v39  ;;  %2720 = vmatprep.subr.bf16.mxu1 %v14499_v29  ;;  %v2021_v39 = vld [vmem:[#allocation7 + $0x3a8] sm:$0xff]  ;;  %v14546_v29 = vcombine.low %v2016_v36, %v2020_v31 }
 0xadd   : > { %2761 = vmatprep.subr.bf16.mxu0 %v14501_v40  ;;  %v14548_v40 = vcombine.low %v2017_v37, %v2021_v39  ;;  %v14549_v41 = vcombine.high %v2017_v37, %v2021_v39  ;;  %v1942_v39 = vld [vmem:[#allocation7 + $0x130] sm:$0xff] }
 0xadf   : > { %2721 = vmatpush1.bf16.msra.mxu1 %v14498_v47  ;;  %v14555_v47 = vcombine.high %v2024_v42, %v2028_v44 }
 0xae0   : > { %2762 = vmatpush1.bf16.msra.mxu0 %v14500_v48  ;;  %2722 = vmatprep.subr.bf16.mxu1 %v14507_v49  ;;  %v2029_v48 = vld [vmem:[#allocation7 + $0x3e8] sm:$0xff]  ;;  %v14554_v49 = vcombine.low %v2024_v42, %v2028_v44 }
 0xae1   : > { %2763 = vmatprep.subr.bf16.mxu0 %v14509_v51  ;;  %v14557_v51 = vcombine.high %v2025_v45, %v2029_v48  ;;  %v14556_v52 = vcombine.low %v2025_v45, %v2029_v48  ;;  %v1950_v48 = vld [vmem:[#allocation7 + $0x170] sm:$0xff] }
 0xae3   : > { %2723 = vmatpush1.bf16.msra.mxu1 %v14506_v56  ;;  %v14439_v56 = vcombine.high %v1906_v53, %v1910_v54 }
 0xae4   : > { %2764 = vmatpush1.bf16.msra.mxu0 %v14508_v57  ;;  %2724 = vmatprep.subr.bf16.mxu1 %v14515_v58  ;;  %v1911_v57 = vld [vmem:[#allocation7 + $0x38] sm:$0xff]  ;;  %v14438_v58 = vcombine.low %v1906_v53, %v1910_v54 }
 0xae5   : > { %2765 = vmatprep.subr.bf16.mxu0 %v14517_v59  ;;  %v14440_v59 = vcombine.low %v1907_v55, %v1911_v57 }
 0xae7   : > { %2725 = vmatpush1.bf16.msra.mxu1 %v14514_v61  ;;  %v14441_v61 = vcombine.high %v1907_v55, %v1911_v57  ;;  %v1958_v57 = vld [vmem:[#allocation7 + $0x1b0] sm:$0xff] }
 0xae8   : > { %2766 = vmatpush1.bf16.msra.mxu0 %v14516_v62  ;;  %2726 = vmatprep.subr.bf16.mxu1 %v14523_v50 }
 0xaeb   : > { %2727 = vmatpush1.bf16.msra.mxu1 %v14522_v46 }
 0xb52   : > { %v1868_v63 = vpop.xlane.xlu1 %1867 }
 0xb53   : > { %v1869_v33 = vmul.f32 0.00390625, %v1868_v63 }
 0xb55   : > { %v18531_v1 = vsub.f32 %v18523_v19, %v1869_v33  ;;  %v18534_v3 = vsub.f32 %v18526_v21, %v1869_v33  ;;  %v14525_v19 = vcombine.high %v1993_v43, %v1997_v10  ;;  %v2000_v21 = vld [vmem:[#allocation7 + $0x300] sm:$0xff] }
 0xb56   : > { %v14531_v14 = vcombine.high %v2000_v21, %v2004_v12  ;;  %v14530_v20 = vcombine.low %v2000_v21, %v2004_v12  ;;  %v1918_v12 = vld [vmem:[#allocation7 + $0x70] sm:$0xff] }
 0xb57   : > { %v1872_v9 = vmul.f32 %v18531_v1, %v18531_v1  ;;  %v1873_v4 = vmul.f32 %v18534_v3, %v18534_v3  ;;  %2767 = vmatprep.subr.bf16.mxu0 %v14525_v19 }
 0xb58   : > { %2768 = vmatpush1.bf16.msra.mxu0 %v14524_v11  ;;  %2728 = vmatprep.subr.bf16.mxu1 %v14531_v14 }
 0xb59   : > { %v1874_v5 = vadd.f32 %v1873_v4, %v1872_v9  ;;  %2769 = vmatprep.subr.bf16.mxu0 %v14533_v24  ;;  %2729 = vmatpush1.bf16.msra.mxu1 %v14530_v20  ;;  %v18541_v9 = vsub.s32 2, %v18352_v15  ;;  %v1923_v20 = vld [vmem:[#allocation7 + $0x98] sm:$0xff] }
 0xb5a   : > { %2730 = vmatprep.subr.bf16.mxu1 %v14539_v28  ;;  %v1930_v28 = vld [vmem:[#allocation7 + $0xd0] sm:$0xff] }
 0xb5b   : > { %1875 = vadd.xlane.f32.xlu1 %v1874_v5  ;;  %v1885_v4 = vrot.slane %v18394_v2, %v18541_v9  ;;  %v1889_v5 = vrot.slane %v18454_v60, %v18541_v9  ;;  %v1895_v8 = vrot.slane %v18412_v22, %v18541_v9  ;;  %v1899_v43 = vrot.slane %v18466_v6, %v18541_v9  ;;  %v1914_v2 = vld [vmem:[#allocation7 + $0x50] sm:$0xff]  ;;  %v1915_v60 = vld [vmem:[#allocation7 + $0x58] sm:$0xff] }
 0xb5c   : > { %2770 = vmatpush1.bf16.msra.mxu0 %v14532_v23  ;;  %v14449_v14 = vcombine.high %v1915_v60, %v1919_v13  ;;  %v1927_v23 = vld [vmem:[#allocation7 + $0xb8] sm:$0xff]  ;;  %v14446_v24 = vcombine.low %v1914_v2, %v1918_v12  ;;  %v14448_v25 = vcombine.low %v1915_v60, %v1919_v13  ;;  %v14463_v31 = vcombine.high %v1930_v28, %v1934_v30 }
 0xb5d   : > { %2771 = vmatprep.subr.bf16.mxu0 %v14541_v35  ;;  %2731 = vmatpush1.bf16.msra.mxu1 %v14538_v32  ;;  %v14457_v27 = vcombine.high %v1923_v20, %v1927_v23  ;;  %v1931_v32 = vld [vmem:[#allocation7 + $0xd8] sm:$0xff]  ;;  %v14456_v36 = vcombine.low %v1923_v20, %v1927_v23 }
 0xb5e   : > { %2732 = vmatprep.subr.bf16.mxu1 %v14547_v38  ;;  %v1938_v38 = vld [vmem:[#allocation7 + $0x110] sm:$0xff]  ;;  %v1975_v60 = vld [vmem:[#allocation7 + $0x238] sm:$0xff] }
 0xb5f   : > { %v14471_v44 = vcombine.high %v1938_v38, %v1942_v39  ;;  %v1979_v20 = vld [vmem:[#allocation7 + $0x258] sm:$0xff] }
 0xb60   : > { %2772 = vmatpush1.bf16.msra.mxu0 %v14540_v34  ;;  %v1935_v34 = vld [vmem:[#allocation7 + $0xf8] sm:$0xff] }
 0xb61   : > { %2773 = vmatprep.subr.bf16.mxu0 %v14549_v41  ;;  %2733 = vmatpush1.bf16.msra.mxu1 %v14546_v29  ;;  %v14465_v37 = vcombine.high %v1931_v32, %v1935_v34  ;;  %v1939_v29 = vld [vmem:[#allocation7 + $0x118] sm:$0xff]  ;;  %v14462_v41 = vcombine.low %v1930_v28, %v1934_v30  ;;  %v14464_v42 = vcombine.low %v1931_v32, %v1935_v34  ;;  %v1986_v28 = vld [vmem:[#allocation7 + $0x290] sm:$0xff] }
 0xb62   : > { %2734 = vmatprep.subr.bf16.mxu1 %v14555_v47  ;;  %v1946_v47 = vld [vmem:[#allocation7 + $0x150] sm:$0xff]  ;;  %v1983_v23 = vld [vmem:[#allocation7 + $0x278] sm:$0xff] }
 0xb63   : > { %v14479_v54 = vcombine.high %v1946_v47, %v1950_v48  ;;  %v1990_v30 = vld [vmem:[#allocation7 + $0x2b0] sm:$0xff]  ;;  %v1987_v32 = vld [vmem:[#allocation7 + $0x298] sm:$0xff] }
 0xb64   : > { %2774 = vmatpush1.bf16.msra.mxu0 %v14548_v40  ;;  %v1943_v40 = vld [vmem:[#allocation7 + $0x138] sm:$0xff] }
 0xb65   : > { %2775 = vmatprep.subr.bf16.mxu0 %v14557_v51  ;;  %2735 = vmatpush1.bf16.msra.mxu1 %v14554_v49  ;;  %v14473_v45 = vcombine.high %v1939_v29, %v1943_v40  ;;  %v1947_v49 = vld [vmem:[#allocation7 + $0x158] sm:$0xff]  ;;  %v14472_v53 = vcombine.low %v1939_v29, %v1943_v40 }
 0xb66   : > { %2786 = vmatprep.subr.bf16.mxu1 %v14439_v56  ;;  %v1951_v51 = vld [vmem:[#allocation7 + $0x178] sm:$0xff]  ;;  %v1954_v56 = vld [vmem:[#allocation7 + $0x190] sm:$0xff] }
 0xb67   : > { %v14481_v55 = vcombine.high %v1947_v49, %v1951_v51  ;;  %v1991_v34 = vld [vmem:[#allocation7 + $0x2b8] sm:$0xff] }
 0xb68   : > { %2776 = vmatpush1.bf16.msra.mxu0 %v14556_v52  ;;  %v14470_v52 = vcombine.low %v1938_v38, %v1942_v39  ;;  %v1994_v38 = vld [vmem:[#allocation7 + $0x2d0] sm:$0xff]  ;;  %v1995_v29 = vld [vmem:[#allocation7 + $0x2d8] sm:$0xff] }
 0xb69   : > { %2827 = vmatprep.subr.bf16.mxu0 %v14441_v61  ;;  %v14478_v61 = vcombine.low %v1946_v47, %v1950_v48  ;;  %v1998_v39 = vld [vmem:[#allocation7 + $0x2f0] sm:$0xff]  ;;  %v1999_v40 = vld [vmem:[#allocation7 + $0x2f8] sm:$0xff] }
 0xb6a   : > { %v2002_v47 = vld [vmem:[#allocation7 + $0x310] sm:$0xff] }
 0xb6b   : > { %v2006_v48 = vld [vmem:[#allocation7 + $0x330] sm:$0xff] }
 0xbe8   : > { %v1876_v62 = vpop.xlane.xlu1 %1875 }
 0xbe9   : > { %v1877_v63 = vmul.f32 0.00390625, %v1876_v62  ;;  %v14480_v62 = vcombine.low %v1947_v49, %v1951_v51  ;;  %v2003_v49 = vld [vmem:[#allocation7 + $0x318] sm:$0xff] }
 0xbea   : > { %v2007_v51 = vld [vmem:[#allocation7 + $0x338] sm:$0xff] }
 0xbeb   : > { %v1878_v33 = vadd.f32 1e-05, %v1877_v63  ;;  %v14487_v63 = vcombine.high %v1954_v56, %v1958_v57 }
 0xbed   : > { %17816 = vrsqrt.f32 %v1878_v33 }
 0xbf7   : > { %v17817_v7 = vpop.eup %17816 }
 0xbf8   : > { %v1880_v50 = vmul.f32 %v17817_v7, %v18531_v1  ;;  %v1881_v10 = vmul.f32 %v17817_v7, %v18534_v3  ;;  %v1922_v1 = vld [vmem:[#allocation7 + $0x90] sm:$0xff]  ;;  %v14447_v3 = vcombine.high %v1914_v2, %v1918_v12  ;;  %v1963_v7 = vld [vmem:[#allocation7 + $0x1d8] sm:$0xff] }
 0xbf9   : > { %v14455_v26 = vcombine.high %v1922_v1, %v1926_v16  ;;  %v14454_v35 = vcombine.low %v1922_v1, %v1926_v16  ;;  %v1974_v2 = vld [vmem:[#allocation7 + $0x230] sm:$0xff]  ;;  %v1971_v12 = vld [vmem:[#allocation7 + $0x218] sm:$0xff] }
 0xbfa   : > { %v1891_v46 = vmul.f32 %v1889_v5, %v1881_v10  ;;  %v1890_v11 = vmul.f32 %v1885_v4, %v1880_v50  ;;  %v1962_v4 = vld [vmem:[#allocation7 + $0x1d0] sm:$0xff] }
 0xbfb   : > { %v1966_v5 = vld [vmem:[#allocation7 + $0x1f0] sm:$0xff] }
 0xbfc   : > { %v18553_v19 = vadd.f32 %v1899_v43, %v1891_v46  ;;  %v18555_v21 = vadd.f32 %v1895_v8, %v1890_v11  ;;  %v1967_v8 = vld [vmem:[#allocation7 + $0x1f8] sm:$0xff]  ;;  %v14486_v43 = vcombine.low %v1954_v56, %v1958_v57  ;;  %v14495_v10 = vcombine.high %v1962_v4, %v1966_v5  ;;  %v1970_v11 = vld [vmem:[#allocation7 + $0x210] sm:$0xff] }
 0xbfd   : > { %v14497_v46 = vcombine.high %v1963_v7, %v1967_v8  ;;  %v14494_v13 = vcombine.low %v1962_v4, %v1966_v5  ;;  %v14503_v1 = vcombine.high %v1970_v11, %v1974_v2  ;;  %v1982_v16 = vld [vmem:[#allocation7 + $0x270] sm:$0xff] }
 0xbfe   : > { %v1903_v22 = vpack.c.bf16 %v18553_v19, %v18553_v19  ;;  %v18561_v6 = vpack.c.bf16 %v18555_v21, %v18555_v21  ;;  %v2010_v56 = vld [vmem:[#allocation7 + $0x350] sm:$0xff] }
 0xbff   : > { %v2014_v57 = vld [vmem:[#allocation7 + $0x370] sm:$0xff] }
 0xc00   : > { %2736 = vmatprep.mubr.bf16.mxu1 %v1903_v22  ;;  %2777 = vmatprep.mubr.bf16.mxu0 %v1903_v22  ;;  %v2018_v4 = vld [vmem:[#allocation7 + $0x390] sm:$0xff] }
 0xc01   : > { %2737 = vmatmul.mubr.bf16.vlgmr.msra.gmra.mrb[36].mxu1 %v18561_v6  ;;  %2778 = vmatmul.mubr.bf16.vlgmr.msra.gmra.mrb[12].mxu0 %v18561_v6  ;;  %v2022_v5 = vld [vmem:[#allocation7 + $0x3b0] sm:$0xff] }
 0xc02   : > { %2787 = vmatpush1.bf16.msra.mxu1 %v14438_v58  ;;  %2828 = vmatpush1.bf16.msra.mxu0 %v14440_v59  ;;  %v1955_v58 = vld [vmem:[#allocation7 + $0x198] sm:$0xff] }
 0xc03   : > { %2818 = vmatprep.mubr.bf16.mxu1 %v1903_v22  ;;  %2859 = vmatprep.mubr.bf16.mxu0 %v1903_v22  ;;  %v1959_v59 = vld [vmem:[#allocation7 + $0x1b8] sm:$0xff]  ;;  %v14496_v22 = vcombine.low %v1963_v7, %v1967_v8 }
 0xc04   : > { %2788 = vmatprep.subr.bf16.mxu1 %v14447_v3  ;;  %2829 = vmatprep.subr.bf16.mxu0 %v14449_v14  ;;  %v14489_v33 = vcombine.high %v1955_v58, %v1959_v59  ;;  %v14488_v50 = vcombine.low %v1955_v58, %v1959_v59  ;;  %v14505_v3 = vcombine.high %v1971_v12, %v1975_v60  ;;  %v1978_v14 = vld [vmem:[#allocation7 + $0x250] sm:$0xff]  ;;  %v2011_v58 = vld [vmem:[#allocation7 + $0x358] sm:$0xff] }
 0xc05   : > { %v2015_v59 = vld [vmem:[#allocation7 + $0x378] sm:$0xff] }
 0xc06   : > { %2789 = vmatpush1.bf16.msra.mxu1 %v14446_v24  ;;  %2830 = vmatpush1.bf16.msra.mxu0 %v14448_v25  ;;  %v14502_v24 = vcombine.low %v1970_v11, %v1974_v2  ;;  %v14504_v25 = vcombine.low %v1971_v12, %v1975_v60  ;;  %v2019_v7 = vld [vmem:[#allocation7 + $0x398] sm:$0xff]  ;;  %v2026_v11 = vld [vmem:[#allocation7 + $0x3d0] sm:$0xff] }
 0xc07   : > { %2790 = vmatprep.subr.bf16.mxu1 %v14455_v26  ;;  %2831 = vmatprep.subr.bf16.mxu0 %v14457_v27  ;;  %v14511_v26 = vcombine.high %v1978_v14, %v1982_v16  ;;  %v14513_v27 = vcombine.high %v1979_v20, %v1983_v23  ;;  %v2023_v8 = vld [vmem:[#allocation7 + $0x3b8] sm:$0xff]  ;;  %v2030_v2 = vld [vmem:[#allocation7 + $0x3f0] sm:$0xff] }
 0xc08   : > { %v2027_v12 = vld [vmem:[#allocation7 + $0x3d8] sm:$0xff] }
 0xc09   : > { %v2031_v60 = vld [vmem:[#allocation7 + $0x3f8] sm:$0xff] }
 0xc0a   : > { %2791 = vmatpush1.bf16.msra.mxu1 %v14454_v35  ;;  %2832 = vmatpush1.bf16.msra.mxu0 %v14456_v36  ;;  %v14510_v35 = vcombine.low %v1978_v14, %v1982_v16  ;;  %v14512_v36 = vcombine.low %v1979_v20, %v1983_v23  ;;  %v14558_v14 = vcombine.low %v2026_v11, %v2030_v2  ;;  %v16456_v20 = vld [vmem:[#allocation8 + $0x4] ss:$8 sps:$4 sm:$0xff]  }
 0xc0b   : > { %2792 = vmatprep.subr.bf16.mxu1 %v14463_v31  ;;  %2833 = vmatprep.subr.bf16.mxu0 %v14465_v37  ;;  %v14519_v31 = vcombine.high %v1986_v28, %v1990_v30  ;;  %v14521_v37 = vcombine.high %v1987_v32, %v1991_v34  ;;  %v14560_v16 = vcombine.low %v2027_v12, %v2031_v60  ;;  %v16459_v23 = vld [vmem:[#allocation8 + $0x104] ss:$8 sps:$4 sm:$0xff]  }
 0xc0e   : > { %2793 = vmatpush1.bf16.msra.mxu1 %v14462_v41  ;;  %2834 = vmatpush1.bf16.msra.mxu0 %v14464_v42  ;;  %v14518_v41 = vcombine.low %v1986_v28, %v1990_v30  ;;  %v14520_v42 = vcombine.low %v1987_v32, %v1991_v34  ;;  %v16460_v28 = vld [vmem:[#allocation8 + $0x10] ss:$8 sps:$4 sm:$0xff]   ;;  %v16468_v32 = vld [vmem:[#allocation8 + $0x24] ss:$8 sps:$4 sm:$0xff]  }
 0xc0f   : > { %2794 = vmatprep.subr.bf16.mxu1 %v14471_v44  ;;  %2835 = vmatprep.subr.bf16.mxu0 %v14473_v45  ;;  %v14527_v44 = vcombine.high %v1994_v38, %v1998_v39  ;;  %v14529_v45 = vcombine.high %v1995_v29, %v1999_v40  ;;  %v16463_v30 = vld [vmem:[#allocation8 + $0x110] ss:$8 sps:$4 sm:$0xff]   ;;  %v16471_v34 = vld [vmem:[#allocation8 + $0x124] ss:$8 sps:$4 sm:$0xff]  }
 0xc12   : > { %2795 = vmatpush1.bf16.msra.mxu1 %v14470_v52  ;;  %2836 = vmatpush1.bf16.msra.mxu0 %v14472_v53  ;;  %v14526_v52 = vcombine.low %v1994_v38, %v1998_v39  ;;  %v14528_v53 = vcombine.low %v1995_v29, %v1999_v40  ;;  %v16472_v38 = vld [vmem:[#allocation8 + $0x30] ss:$8 sps:$4 sm:$0xff]   ;;  %v16480_v39 = vld [vmem:[#allocation8 + $0x44] ss:$8 sps:$4 sm:$0xff]   ;;  %v16478_v40 = vld [vmem:[#allocation8 + $0x40] ss:$8 sps:$4 sm:$0xff]  }
 0xc13   : > { %2796 = vmatprep.subr.bf16.mxu1 %v14479_v54  ;;  %2837 = vmatprep.subr.bf16.mxu0 %v14481_v55  ;;  %v14535_v54 = vcombine.high %v2002_v47, %v2006_v48  ;;  %v14537_v55 = vcombine.high %v2003_v49, %v2007_v51  ;;  %v16483_v29 = vld [vmem:[#allocation8 + $0x144] ss:$8 sps:$4 sm:$0xff]  }
 0xc16   : > { %2797 = vmatpush1.bf16.msra.mxu1 %v14478_v61  ;;  %2838 = vmatpush1.bf16.msra.mxu0 %v14480_v62  ;;  %v14534_v61 = vcombine.low %v2002_v47, %v2006_v48  ;;  %v14536_v62 = vcombine.low %v2003_v49, %v2007_v51  ;;  %v16487_v47 = vld [vmem:[#allocation8 + $0x150] ss:$8 sps:$4 sm:$0xff]   ;;  %v16492_v48 = vld [vmem:[#allocation8 + $0x64] ss:$8 sps:$4 sm:$0xff]   ;;  %v16490_v51 = vld [vmem:[#allocation8 + $0x60] ss:$8 sps:$4 sm:$0xff]  }
 0xc17   : > { %2798 = vmatprep.subr.bf16.mxu1 %v14487_v63  ;;  %2839 = vmatprep.subr.bf16.mxu0 %v14489_v33  ;;  %v14543_v63 = vcombine.high %v2010_v56, %v2014_v57  ;;  %v14545_v33 = vcombine.high %v2011_v58, %v2015_v59  ;;  %v16495_v49 = vld [vmem:[#allocation8 + $0x164] ss:$8 sps:$4 sm:$0xff]  }
 0xc1a   : > { %2799 = vmatpush1.bf16.msra.mxu1 %v14486_v43  ;;  %2840 = vmatpush1.bf16.msra.mxu0 %v14488_v50  ;;  %v14542_v43 = vcombine.low %v2010_v56, %v2014_v57  ;;  %v14544_v50 = vcombine.low %v2011_v58, %v2015_v59  ;;  %v16499_v56 = vld [vmem:[#allocation8 + $0x170] ss:$8 sps:$4 sm:$0xff]   ;;  %v16504_v57 = vld [vmem:[#allocation8 + $0x84] ss:$8 sps:$4 sm:$0xff]   ;;  %v16502_v59 = vld [vmem:[#allocation8 + $0x80] ss:$8 sps:$4 sm:$0xff]  }
 0xc1b   : > { %2800 = vmatprep.subr.bf16.mxu1 %v14495_v10  ;;  %2841 = vmatprep.subr.bf16.mxu0 %v14497_v46  ;;  %v14551_v10 = vcombine.high %v2018_v4, %v2022_v5  ;;  %v14553_v46 = vcombine.high %v2019_v7, %v2023_v8  ;;  %v16507_v58 = vld [vmem:[#allocation8 + $0x184] ss:$8 sps:$4 sm:$0xff]  }
 0xc1e   : > { %2801 = vmatpush1.bf16.msra.mxu1 %v14494_v13  ;;  %2842 = vmatpush1.bf16.msra.mxu0 %v14496_v22  ;;  %v14550_v13 = vcombine.low %v2018_v4, %v2022_v5  ;;  %v14552_v22 = vcombine.low %v2019_v7, %v2023_v8  ;;  %v16511_v4 = vld [vmem:[#allocation8 + $0x190] ss:$8 sps:$4 sm:$0xff]   ;;  %v16516_v5 = vld [vmem:[#allocation8 + $0xa4] ss:$8 sps:$4 sm:$0xff]   ;;  %v16514_v8 = vld [vmem:[#allocation8 + $0xa0] ss:$8 sps:$4 sm:$0xff]  }
 0xc1f   : > { %2802 = vmatprep.subr.bf16.mxu1 %v14503_v1  ;;  %2843 = vmatprep.subr.bf16.mxu0 %v14505_v3  ;;  %v14559_v1 = vcombine.high %v2026_v11, %v2030_v2  ;;  %v14561_v3 = vcombine.high %v2027_v12, %v2031_v60  ;;  %v16519_v7 = vld [vmem:[#allocation8 + $0x1a4] ss:$8 sps:$4 sm:$0xff]   ;;  %v16523_v11 = vld [vmem:[#allocation8 + $0x1b0] ss:$8 sps:$4 sm:$0xff]   ;;  %v16526_v60 = vld [vmem:[#allocation8 + $0xc0] ss:$8 sps:$4 sm:$0xff]  }
 0xc20   : > { %v16528_v2 = vld [vmem:[#allocation8 + $0xc4] ss:$8 sps:$4 sm:$0xff]  }
 0xc21   : > { %v16531_v12 = vld [vmem:[#allocation8 + $0x1c4] ss:$8 sps:$4 sm:$0xff]  }
 0xc22   : > { %2803 = vmatpush1.bf16.msra.mxu1 %v14502_v24  ;;  %2844 = vmatpush1.bf16.msra.mxu0 %v14504_v25  ;;  %v16454_v24 = vld [vmem:[#allocation8] ss:$8 sps:$4 sm:$0xff]  }
 0xc23   : > { %2804 = vmatprep.subr.bf16.mxu1 %v14511_v26  ;;  %2845 = vmatprep.subr.bf16.mxu0 %v14513_v27  ;;  %v16457_v25 = vld [vmem:[#allocation8 + $0x100] ss:$8 sps:$4 sm:$0xff]   ;;  %v16462_v26 = vld [vmem:[#allocation8 + $0x14] ss:$8 sps:$4 sm:$0xff]  }
 0xc24   : > { %v16465_v27 = vld [vmem:[#allocation8 + $0x114] ss:$8 sps:$4 sm:$0xff]  }
 0xc26   : > { %2805 = vmatpush1.bf16.msra.mxu1 %v14510_v35  ;;  %2846 = vmatpush1.bf16.msra.mxu0 %v14512_v36  ;;  %v16466_v35 = vld [vmem:[#allocation8 + $0x20] ss:$8 sps:$4 sm:$0xff]  }
 0xc27   : > { %2806 = vmatprep.subr.bf16.mxu1 %v14519_v31  ;;  %2847 = vmatprep.subr.bf16.mxu0 %v14521_v37  ;;  %v16469_v36 = vld [vmem:[#allocation8 + $0x120] ss:$8 sps:$4 sm:$0xff]   ;;  %v16474_v31 = vld [vmem:[#allocation8 + $0x34] ss:$8 sps:$4 sm:$0xff]  }
 0xc28   : > { %v16477_v37 = vld [vmem:[#allocation8 + $0x134] ss:$8 sps:$4 sm:$0xff]  }
 0xc2a   : > { %2807 = vmatpush1.bf16.msra.mxu1 %v14518_v41  ;;  %2848 = vmatpush1.bf16.msra.mxu0 %v14520_v42  ;;  %v16481_v41 = vld [vmem:[#allocation8 + $0x140] ss:$8 sps:$4 sm:$0xff]   ;;  %v16486_v42 = vld [vmem:[#allocation8 + $0x54] ss:$8 sps:$4 sm:$0xff]  }
 0xc2b   : > { %2808 = vmatprep.subr.bf16.mxu1 %v14527_v44  ;;  %2849 = vmatprep.subr.bf16.mxu0 %v14529_v45  ;;  %v16489_v44 = vld [vmem:[#allocation8 + $0x154] ss:$8 sps:$4 sm:$0xff]   ;;  %v16484_v45 = vld [vmem:[#allocation8 + $0x50] ss:$8 sps:$4 sm:$0xff]  }
 0xc2e   : > { %2809 = vmatpush1.bf16.msra.mxu1 %v14526_v52  ;;  %2850 = vmatpush1.bf16.msra.mxu0 %v14528_v53  ;;  %v16493_v52 = vld [vmem:[#allocation8 + $0x160] ss:$8 sps:$4 sm:$0xff]   ;;  %v16498_v53 = vld [vmem:[#allocation8 + $0x74] ss:$8 sps:$4 sm:$0xff]  }
 0xc2f   : > { %2810 = vmatprep.subr.bf16.mxu1 %v14535_v54  ;;  %2851 = vmatprep.subr.bf16.mxu0 %v14537_v55  ;;  %v16501_v54 = vld [vmem:[#allocation8 + $0x174] ss:$8 sps:$4 sm:$0xff]   ;;  %v16496_v55 = vld [vmem:[#allocation8 + $0x70] ss:$8 sps:$4 sm:$0xff]  }
 0xc32   : > { %2811 = vmatpush1.bf16.msra.mxu1 %v14534_v61  ;;  %2852 = vmatpush1.bf16.msra.mxu0 %v14536_v62  ;;  %v16505_v61 = vld [vmem:[#allocation8 + $0x180] ss:$8 sps:$4 sm:$0xff]   ;;  %v16510_v62 = vld [vmem:[#allocation8 + $0x94] ss:$8 sps:$4 sm:$0xff]  }
 0xc33   : > { %2812 = vmatprep.subr.bf16.mxu1 %v14543_v63  ;;  %2853 = vmatprep.subr.bf16.mxu0 %v14545_v33  ;;  %v16513_v63 = vld [vmem:[#allocation8 + $0x194] ss:$8 sps:$4 sm:$0xff]   ;;  %v16508_v33 = vld [vmem:[#allocation8 + $0x90] ss:$8 sps:$4 sm:$0xff]  }
 0xc36   : > { %2813 = vmatpush1.bf16.msra.mxu1 %v14542_v43  ;;  %2854 = vmatpush1.bf16.msra.mxu0 %v14544_v50  ;;  %v16517_v43 = vld [vmem:[#allocation8 + $0x1a0] ss:$8 sps:$4 sm:$0xff]   ;;  %v16522_v50 = vld [vmem:[#allocation8 + $0xb4] ss:$8 sps:$4 sm:$0xff]  }
 0xc37   : > { %2814 = vmatprep.subr.bf16.mxu1 %v14551_v10  ;;  %2855 = vmatprep.subr.bf16.mxu0 %v14553_v46  ;;  %v16525_v10 = vld [vmem:[#allocation8 + $0x1b4] ss:$8 sps:$4 sm:$0xff]   ;;  %v16520_v46 = vld [vmem:[#allocation8 + $0xb0] ss:$8 sps:$4 sm:$0xff]  }
 0xc3a   : > { %2815 = vmatpush1.bf16.msra.mxu1 %v14550_v13  ;;  %2856 = vmatpush1.bf16.msra.mxu0 %v14552_v22  ;;  %v16529_v13 = vld [vmem:[#allocation8 + $0x1c0] ss:$8 sps:$4 sm:$0xff]   ;;  %v16534_v22 = vld [vmem:[#allocation8 + $0xd4] ss:$8 sps:$4 sm:$0xff]  }
 0xc3b   : > { %2816 = vmatprep.subr.bf16.mxu1 %v14559_v1  ;;  %2857 = vmatprep.subr.bf16.mxu0 %v14561_v3  ;;  %v16537_v1 = vld [vmem:[#allocation8 + $0x1d4] ss:$8 sps:$4 sm:$0xff]   ;;  %v16532_v3 = vld [vmem:[#allocation8 + $0xd0] ss:$8 sps:$4 sm:$0xff]  }
 0xc3e   : > { %2817 = vmatpush1.bf16.msra.mxu1 %v14558_v14  ;;  %2858 = vmatpush1.bf16.msra.mxu0 %v14560_v16  ;;  %v16535_v14 = vld [vmem:[#allocation8 + $0x1d0] ss:$8 sps:$4 sm:$0xff]   ;;  %v16540_v16 = vld [vmem:[#allocation8 + $0xe4] ss:$8 sps:$4 sm:$0xff]  }
 0xc3f   : > { %3660 = vmatprep.subr.bf16.mxu1 %v16456_v20  ;;  %3701 = vmatprep.subr.bf16.mxu0 %v16459_v23  ;;  %v16543_v20 = vld [vmem:[#allocation8 + $0x1e4] ss:$8 sps:$4 sm:$0xff]   ;;  %v16538_v23 = vld [vmem:[#allocation8 + $0xe0] ss:$8 sps:$4 sm:$0xff]  }
 0xc41   : > { %2819 = vmatmul.mubr.bf16.vlgmr.msra.gmra.mrb[40].mxu1 %v18561_v6  ;;  %2860 = vmatmul.mubr.bf16.vlgmr.msra.gmra.mrb[16].mxu0 %v18561_v6  ;;  %v16475_v6 = vld [vmem:[#allocation8 + $0x130] ss:$8 sps:$4 sm:$0xff]  }
 0xc42   : > { %3661 = vmatpush1.bf16.msra.mxu1 %v16454_v24  ;;  %3702 = vmatpush1.bf16.msra.mxu0 %v16457_v25  ;;  %v16541_v24 = vld [vmem:[#allocation8 + $0x1e0] ss:$8 sps:$4 sm:$0xff]   ;;  %v16546_v25 = vld [vmem:[#allocation8 + $0xf4] ss:$8 sps:$4 sm:$0xff]  }
 0xc43   : > { %3662 = vmatprep.subr.bf16.mxu1 %v16462_v26  ;;  %3703 = vmatprep.subr.bf16.mxu0 %v16465_v27  ;;  %v16549_v26 = vld [vmem:[#allocation8 + $0x1f4] ss:$8 sps:$4 sm:$0xff]   ;;  %v16544_v27 = vld [vmem:[#allocation8 + $0xf0] ss:$8 sps:$4 sm:$0xff]  }
 0xc46   : > { %3663 = vmatpush1.bf16.msra.mxu1 %v16460_v28  ;;  %3704 = vmatpush1.bf16.msra.mxu0 %v16463_v30  ;;  %v16547_v28 = vld [vmem:[#allocation8 + $0x1f0] ss:$8 sps:$4 sm:$0xff]   ;;  %v16552_v30 = vld [vmem:[#allocation8 + $0x204] ss:$8 sps:$4 sm:$0xff]  }
 0xc47   : > { %3664 = vmatprep.subr.bf16.mxu1 %v16468_v32  ;;  %3705 = vmatprep.subr.bf16.mxu0 %v16471_v34  ;;  %v16555_v32 = vld [vmem:[#allocation8 + $0x304] ss:$8 sps:$4 sm:$0xff]  }
 0xc48   : > { %v18570_v34 = vld [vmem:[%s19386_s7] sm:$0xff] }
 0xc4a   : > { %3665 = vmatpush1.bf16.msra.mxu1 %v16466_v35  ;;  %3706 = vmatpush1.bf16.msra.mxu0 %v16469_v36  ;;  %v2035_v35 = vrot.slane %v18570_v34, %v18358_v17  ;;  %v17881_v36 = vld [vmem:[%s19386_s7 + $0x10] sm:$0xff] }
 0xc4b   : > { %3666 = vmatprep.subr.bf16.mxu1 %v16474_v31  ;;  %3707 = vmatprep.subr.bf16.mxu0 %v16477_v37  ;;  %v2043_v31 = vrot.slane %v17881_v36, %v18358_v17  ;;  %v18581_v37 = vld [vmem:[%s19386_s7 + $0x8] sm:$0xff] }
 0xc4c   : > { %v16600_v36 = vld [vmem:[#allocation8 + $0x284] ss:$8 sps:$4 sm:$0xff]  }
 0xc4e   : > { %3667 = vmatpush1.bf16.msra.mxu1 %v16472_v38  ;;  %3708 = vmatpush1.bf16.msra.mxu0 %v16475_v6  ;;  %v2039_v38 = vrot.slane %v18581_v37, %v18358_v17  ;;  %v17883_v6 = vld [vmem:[%s19386_s7 + $0x18] sm:$0xff] }
 0xc4f   : > { %3668 = vmatprep.subr.bf16.mxu1 %v16480_v39  ;;  %3709 = vmatprep.subr.bf16.mxu0 %v16483_v29  ;;  %v2047_v39 = vrot.slane %v17883_v6, %v18358_v17  ;;  %v16601_v6 = vld [vmem:[#allocation8 + $0x380] ss:$8 sps:$4 sm:$0xff]  }
 0xc52   : > { %3669 = vmatpush1.bf16.msra.mxu1 %v16478_v40  ;;  %3710 = vmatpush1.bf16.msra.mxu0 %v16481_v41 }
 0xc53   : > { %3670 = vmatprep.subr.bf16.mxu1 %v16486_v42  ;;  %3711 = vmatprep.subr.bf16.mxu0 %v16489_v44 }
 0xc56   : > { %3671 = vmatpush1.bf16.msra.mxu1 %v16484_v45  ;;  %3712 = vmatpush1.bf16.msra.mxu0 %v16487_v47 }
 0xc57   : > { %3672 = vmatprep.subr.bf16.mxu1 %v16492_v48  ;;  %3713 = vmatprep.subr.bf16.mxu0 %v16495_v49 }
 0xc5a   : > { %3673 = vmatpush1.bf16.msra.mxu1 %v16490_v51  ;;  %3714 = vmatpush1.bf16.msra.mxu0 %v16493_v52 }
 0xc5b   : > { %3674 = vmatprep.subr.bf16.mxu1 %v16498_v53  ;;  %3715 = vmatprep.subr.bf16.mxu0 %v16501_v54 }
 0xc5e   : > { %3675 = vmatpush1.bf16.msra.mxu1 %v16496_v55  ;;  %3716 = vmatpush1.bf16.msra.mxu0 %v16499_v56 }
 0xc5f   : > { %3676 = vmatprep.subr.bf16.mxu1 %v16504_v57  ;;  %3717 = vmatprep.subr.bf16.mxu0 %v16507_v58 }
 0xc62   : > { %3677 = vmatpush1.bf16.msra.mxu1 %v16502_v59  ;;  %3718 = vmatpush1.bf16.msra.mxu0 %v16505_v61  ;;  %v16550_v61 = vld [vmem:[#allocation8 + $0x200] ss:$8 sps:$4 sm:$0xff]  }
 0xc63   : > { %3678 = vmatprep.subr.bf16.mxu1 %v16510_v62  ;;  %3719 = vmatprep.subr.bf16.mxu0 %v16513_v63  ;;  %v16553_v62 = vld [vmem:[#allocation8 + $0x300] ss:$8 sps:$4 sm:$0xff]  }
 0xc66   : > { %3679 = vmatpush1.bf16.msra.mxu1 %v16508_v33  ;;  %3720 = vmatpush1.bf16.msra.mxu0 %v16511_v4  ;;  %v16558_v4 = vld [vmem:[#allocation8 + $0x214] ss:$8 sps:$4 sm:$0xff]  }
 0xc67   : > { %3680 = vmatprep.subr.bf16.mxu1 %v16516_v5  ;;  %3721 = vmatprep.subr.bf16.mxu0 %v16519_v7  ;;  %v16561_v5 = vld [vmem:[#allocation8 + $0x314] ss:$8 sps:$4 sm:$0xff]   ;;  %v16556_v7 = vld [vmem:[#allocation8 + $0x210] ss:$8 sps:$4 sm:$0xff]  }
 0xc6a   : > { %3681 = vmatpush1.bf16.msra.mxu1 %v16514_v8  ;;  %3722 = vmatpush1.bf16.msra.mxu0 %v16517_v43  ;;  %v16559_v8 = vld [vmem:[#allocation8 + $0x310] ss:$8 sps:$4 sm:$0xff]   ;;  %v16564_v43 = vld [vmem:[#allocation8 + $0x224] ss:$8 sps:$4 sm:$0xff]  }
 0xc6b   : > { %3682 = vmatprep.subr.bf16.mxu1 %v16522_v50  ;;  %3723 = vmatprep.subr.bf16.mxu0 %v16525_v10  ;;  %v16567_v50 = vld [vmem:[#allocation8 + $0x324] ss:$8 sps:$4 sm:$0xff]   ;;  %v16562_v10 = vld [vmem:[#allocation8 + $0x220] ss:$8 sps:$4 sm:$0xff]  }
 0xc6e   : > { %3683 = vmatpush1.bf16.msra.mxu1 %v16520_v46  ;;  %3724 = vmatpush1.bf16.msra.mxu0 %v16523_v11  ;;  %v16565_v46 = vld [vmem:[#allocation8 + $0x320] ss:$8 sps:$4 sm:$0xff]   ;;  %v16570_v11 = vld [vmem:[#allocation8 + $0x234] ss:$8 sps:$4 sm:$0xff]  }
 0xc6f   : > { %3684 = vmatprep.subr.bf16.mxu1 %v16528_v2  ;;  %3725 = vmatprep.subr.bf16.mxu0 %v16531_v12  ;;  %v16573_v2 = vld [vmem:[#allocation8 + $0x334] ss:$8 sps:$4 sm:$0xff]   ;;  %v16568_v12 = vld [vmem:[#allocation8 + $0x230] ss:$8 sps:$4 sm:$0xff]  }
 0xc72   : > { %3685 = vmatpush1.bf16.msra.mxu1 %v16526_v60  ;;  %3726 = vmatpush1.bf16.msra.mxu0 %v16529_v13  ;;  %v16571_v60 = vld [vmem:[#allocation8 + $0x330] ss:$8 sps:$4 sm:$0xff]   ;;  %v16576_v13 = vld [vmem:[#allocation8 + $0x244] ss:$8 sps:$4 sm:$0xff]  }
 0xc73   : > { %3686 = vmatprep.subr.bf16.mxu1 %v16534_v22  ;;  %3727 = vmatprep.subr.bf16.mxu0 %v16537_v1  ;;  %v16579_v22 = vld [vmem:[#allocation8 + $0x344] ss:$8 sps:$4 sm:$0xff]   ;;  %v16574_v1 = vld [vmem:[#allocation8 + $0x240] ss:$8 sps:$4 sm:$0xff]  }
 0xc76   : > { %3687 = vmatpush1.bf16.msra.mxu1 %v16532_v3  ;;  %3728 = vmatpush1.bf16.msra.mxu0 %v16535_v14  ;;  %v16577_v3 = vld [vmem:[#allocation8 + $0x340] ss:$8 sps:$4 sm:$0xff]   ;;  %v16582_v14 = vld [vmem:[#allocation8 + $0x254] ss:$8 sps:$4 sm:$0xff]  }
 0xc77   : > { %3688 = vmatprep.subr.bf16.mxu1 %v16540_v16  ;;  %3729 = vmatprep.subr.bf16.mxu0 %v16543_v20  ;;  %v16585_v16 = vld [vmem:[#allocation8 + $0x354] ss:$8 sps:$4 sm:$0xff]   ;;  %v16580_v20 = vld [vmem:[#allocation8 + $0x250] ss:$8 sps:$4 sm:$0xff]  }
 0xc7a   : > { %3689 = vmatpush1.bf16.msra.mxu1 %v16538_v23  ;;  %3730 = vmatpush1.bf16.msra.mxu0 %v16541_v24  ;;  %v16583_v23 = vld [vmem:[#allocation8 + $0x350] ss:$8 sps:$4 sm:$0xff]   ;;  %v16588_v24 = vld [vmem:[#allocation8 + $0x264] ss:$8 sps:$4 sm:$0xff]  }
 0xc7b   : > { %3690 = vmatprep.subr.bf16.mxu1 %v16546_v25  ;;  %3731 = vmatprep.subr.bf16.mxu0 %v16549_v26  ;;  %v16591_v25 = vld [vmem:[#allocation8 + $0x364] ss:$8 sps:$4 sm:$0xff]   ;;  %v16586_v26 = vld [vmem:[#allocation8 + $0x260] ss:$8 sps:$4 sm:$0xff]  }
 0xc7e   : > { %3691 = vmatpush1.bf16.msra.mxu1 %v16544_v27  ;;  %3732 = vmatpush1.bf16.msra.mxu0 %v16547_v28  ;;  %v16589_v27 = vld [vmem:[#allocation8 + $0x360] ss:$8 sps:$4 sm:$0xff]   ;;  %v16594_v28 = vld [vmem:[#allocation8 + $0x274] ss:$8 sps:$4 sm:$0xff]  }
 0xc7f   : > { %3742 = vmatprep.subr.bf16.mxu1 %v16552_v30  ;;  %3783 = vmatprep.subr.bf16.mxu0 %v16555_v32  ;;  %v16597_v30 = vld [vmem:[#allocation8 + $0x374] ss:$8 sps:$4 sm:$0xff]   ;;  %v16592_v32 = vld [vmem:[#allocation8 + $0x270] ss:$8 sps:$4 sm:$0xff]  }
 0xcd4   : > { %v2738_v29 = vpop.f32.mrb[36].mxu1  ;;  %v2779_v40 = vpop.f32.mrb[12].mxu0 }
 0xcd5   : > { %v2739_v41 = vadd.f32 %v2738_v29, %v2035_v35  ;;  %v2780_v42 = vadd.f32 %v2779_v40, %v2043_v31  ;;  %v2740_v44 = vpop.f32.mrb[37].mxu1  ;;  %v2781_v45 = vpop.f32.mrb[13].mxu0  ;;  %v16595_v35 = vld [vmem:[#allocation8 + $0x370] ss:$8 sps:$4 sm:$0xff]   ;;  %v16603_v31 = vld [vmem:[#allocation8 + $0x384] ss:$8 sps:$4 sm:$0xff]  }
 0xcd6   : > { %v2741_v47 = vadd.f32 %v2740_v44, %v2039_v38  ;;  %v2782_v48 = vadd.f32 %v2781_v45, %v2047_v39  ;;  %v2742_v49 = vpop.f32.mrb[38].mxu1  ;;  %v2783_v51 = vpop.f32.mrb[14].mxu0  ;;  %v16598_v38 = vld [vmem:[#allocation8 + $0x280] ss:$8 sps:$4 sm:$0xff]   ;;  %v16606_v39 = vld [vmem:[#allocation8 + $0x294] ss:$8 sps:$4 sm:$0xff]  }
 0xcd7   : > { %v2868_v52 = vmax.f32 %v2739_v41, 0.0  ;;  %v2870_v53 = vmax.f32 %v2780_v42, 0.0  ;;  %v2743_v54 = vpop.f32.mrb[39].mxu1  ;;  %v2784_v55 = vpop.f32.mrb[15].mxu0  ;;  %v16609_v29 = vld [vmem:[#allocation8 + $0x394] ss:$8 sps:$4 sm:$0xff]  }
 0xcd8   : > { %v2869_v56 = vmax.f32 %v2741_v47, 0.0  ;;  %v2871_v57 = vmax.f32 %v2782_v48, 0.0  ;;  %v16604_v40 = vld [vmem:[#allocation8 + $0x290] ss:$8 sps:$4 sm:$0xff]   ;;  %v16612_v42 = vld [vmem:[#allocation8 + $0x2a4] ss:$8 sps:$4 sm:$0xff]  }
 0xcd9   : > { %v2876_v63 = vpack.c.bf16 %v2868_v52, %v2868_v52  ;;  %v2878_v33 = vpack.c.bf16 %v2870_v53, %v2870_v53  ;;  %v16607_v41 = vld [vmem:[#allocation8 + $0x390] ss:$8 sps:$4 sm:$0xff]   ;;  %v16615_v44 = vld [vmem:[#allocation8 + $0x3a4] ss:$8 sps:$4 sm:$0xff]   ;;  %v16610_v45 = vld [vmem:[#allocation8 + $0x2a0] ss:$8 sps:$4 sm:$0xff]  }
 0xcda   : > { %v2877_v58 = vpack.c.bf16 %v2869_v56, %v2869_v56  ;;  %v2879_v59 = vpack.c.bf16 %v2871_v57, %v2871_v57  ;;  %v16613_v47 = vld [vmem:[#allocation8 + $0x3a0] ss:$8 sps:$4 sm:$0xff]   ;;  %v16618_v48 = vld [vmem:[#allocation8 + $0x2b4] ss:$8 sps:$4 sm:$0xff]   ;;  %v16616_v51 = vld [vmem:[#allocation8 + $0x2b0] ss:$8 sps:$4 sm:$0xff]  }
 0xcdb   : > { %v16621_v49 = vld [vmem:[#allocation8 + $0x3b4] ss:$8 sps:$4 sm:$0xff]   ;;  %v16619_v52 = vld [vmem:[#allocation8 + $0x3b0] ss:$8 sps:$4 sm:$0xff]   ;;  %v16624_v53 = vld [vmem:[#allocation8 + $0x2c4] ss:$8 sps:$4 sm:$0xff]  }
 0xcdc   : > { %3692 = vmatprep.mubr.bf16.mxu1 %v2877_v58  ;;  %3733 = vmatprep.mubr.bf16.mxu0 %v2879_v59  ;;  %v16627_v54 = vld [vmem:[#allocation8 + $0x3c4] ss:$8 sps:$4 sm:$0xff]   ;;  %v16622_v55 = vld [vmem:[#allocation8 + $0x2c0] ss:$8 sps:$4 sm:$0xff]   ;;  %v16630_v57 = vld [vmem:[#allocation8 + $0x2d4] ss:$8 sps:$4 sm:$0xff]  }
 0xcdd   : > { %3693 = vmatmul.mubr.bf16.vlgmr.msra.gmra.mrb[44].mxu1 %v2876_v63  ;;  %3734 = vmatmul.mubr.bf16.vlgmr.msra.gmra.mrb[20].mxu0 %v2878_v33  ;;  %v16625_v56 = vld [vmem:[#allocation8 + $0x3c0] ss:$8 sps:$4 sm:$0xff]   ;;  %v16633_v58 = vld [vmem:[#allocation8 + $0x3d4] ss:$8 sps:$4 sm:$0xff]   ;;  %v16628_v59 = vld [vmem:[#allocation8 + $0x2d0] ss:$8 sps:$4 sm:$0xff]  }
 0xcde   : > { %3743 = vmatpush1.bf16.msra.mxu1 %v16550_v61  ;;  %3784 = vmatpush1.bf16.msra.mxu0 %v16553_v62  ;;  %v16631_v61 = vld [vmem:[#allocation8 + $0x3d0] ss:$8 sps:$4 sm:$0xff]   ;;  %v16636_v62 = vld [vmem:[#allocation8 + $0x2e4] ss:$8 sps:$4 sm:$0xff]  }
 0xcdf   : > { %3744 = vmatprep.subr.bf16.mxu1 %v16558_v4  ;;  %3785 = vmatprep.subr.bf16.mxu0 %v16561_v5  ;;  %v16639_v63 = vld [vmem:[#allocation8 + $0x3e4] ss:$8 sps:$4 sm:$0xff]   ;;  %v18596_v5 = vld [vmem:[%s19386_s7 + $0x30] sm:$0xff] }
 0xce0   : > { %v17884_v33 = vld [vmem:[%s19386_s7 + $0x20] sm:$0xff] }
 0xce1   : > { %v2051_v4 = vrot.slane %v17884_v33, %v18358_v17 }
 0xce2   : > { %3745 = vmatpush1.bf16.msra.mxu1 %v16556_v7  ;;  %3786 = vmatpush1.bf16.msra.mxu0 %v16559_v8  ;;  %v2059_v7 = vrot.slane %v18596_v5, %v18358_v17  ;;  %v17886_v8 = vld [vmem:[%s19386_s7 + $0x28] sm:$0xff] }
 0xce3   : > { %3746 = vmatprep.subr.bf16.mxu1 %v16564_v43  ;;  %3787 = vmatprep.subr.bf16.mxu0 %v16567_v50  ;;  %v2055_v43 = vrot.slane %v17886_v8, %v18358_v17  ;;  %v18607_v50 = vld [vmem:[%s19386_s7 + $0x38] sm:$0xff] }
 0xce6   : > { %3747 = vmatpush1.bf16.msra.mxu1 %v16562_v10  ;;  %3788 = vmatpush1.bf16.msra.mxu0 %v16565_v46  ;;  %v2063_v10 = vrot.slane %v18607_v50, %v18358_v17  ;;  %v16634_v46 = vld [vmem:[#allocation8 + $0x2e0] ss:$8 sps:$4 sm:$0xff]  }
 0xce7   : > { %3748 = vmatprep.subr.bf16.mxu1 %v16570_v11  ;;  %3789 = vmatprep.subr.bf16.mxu0 %v16573_v2  ;;  %v16637_v11 = vld [vmem:[#allocation8 + $0x3e0] ss:$8 sps:$4 sm:$0xff]   ;;  %v16642_v2 = vld [vmem:[#allocation8 + $0x2f4] ss:$8 sps:$4 sm:$0xff]  }
 0xcea   : > { %3749 = vmatpush1.bf16.msra.mxu1 %v16568_v12  ;;  %3790 = vmatpush1.bf16.msra.mxu0 %v16571_v60  ;;  %v16645_v12 = vld [vmem:[#allocation8 + $0x3f4] ss:$8 sps:$4 sm:$0xff]  }
 0xceb   : > { %3750 = vmatprep.subr.bf16.mxu1 %v16576_v13  ;;  %3791 = vmatprep.subr.bf16.mxu0 %v16579_v22 }
 0xcee   : > { %3751 = vmatpush1.bf16.msra.mxu1 %v16574_v1  ;;  %3792 = vmatpush1.bf16.msra.mxu0 %v16577_v3 }
 0xcef   : > { %3752 = vmatprep.subr.bf16.mxu1 %v16582_v14  ;;  %3793 = vmatprep.subr.bf16.mxu0 %v16585_v16 }
 0xcf2   : > { %3753 = vmatpush1.bf16.msra.mxu1 %v16580_v20  ;;  %3794 = vmatpush1.bf16.msra.mxu0 %v16583_v23 }
 0xcf3   : > { %3754 = vmatprep.subr.bf16.mxu1 %v16588_v24  ;;  %3795 = vmatprep.subr.bf16.mxu0 %v16591_v25  ;;  %v16640_v25 = vld [vmem:[#allocation8 + $0x2f0] ss:$8 sps:$4 sm:$0xff]  }
 0xcf6   : > { %3755 = vmatpush1.bf16.msra.mxu1 %v16586_v26  ;;  %3796 = vmatpush1.bf16.msra.mxu0 %v16589_v27  ;;  %v16643_v26 = vld [vmem:[#allocation8 + $0x3f0] ss:$8 sps:$4 sm:$0xff]  }
 0xcf7   : > { %3756 = vmatprep.subr.bf16.mxu1 %v16594_v28  ;;  %3797 = vmatprep.subr.bf16.mxu0 %v16597_v30 }
 0xcfa   : > { %3757 = vmatpush1.bf16.msra.mxu1 %v16592_v32  ;;  %3798 = vmatpush1.bf16.msra.mxu0 %v16595_v35 }
 0xcfb   : > { %3758 = vmatprep.subr.bf16.mxu1 %v16600_v36  ;;  %3799 = vmatprep.subr.bf16.mxu0 %v16603_v31 }
 0xcfe   : > { %3759 = vmatpush1.bf16.msra.mxu1 %v16598_v38  ;;  %3800 = vmatpush1.bf16.msra.mxu0 %v16601_v6 }
 0xcff   : > { %3760 = vmatprep.subr.bf16.mxu1 %v16606_v39  ;;  %3801 = vmatprep.subr.bf16.mxu0 %v16609_v29  ;;  %v3015_v29 = vrot.slane %v18570_v34, %v18541_v9 }
 0xd02   : > { %3761 = vmatpush1.bf16.msra.mxu1 %v16604_v40  ;;  %3802 = vmatpush1.bf16.msra.mxu0 %v16607_v41  ;;  %v3019_v40 = vrot.slane %v18581_v37, %v18541_v9 }
 0xd03   : > { %3762 = vmatprep.subr.bf16.mxu1 %v16612_v42  ;;  %3803 = vmatprep.subr.bf16.mxu0 %v16615_v44 }
 0xd06   : > { %3763 = vmatpush1.bf16.msra.mxu1 %v16610_v45  ;;  %3804 = vmatpush1.bf16.msra.mxu0 %v16613_v47 }
 0xd07   : > { %3764 = vmatprep.subr.bf16.mxu1 %v16618_v48  ;;  %3805 = vmatprep.subr.bf16.mxu0 %v16621_v49 }
 0xd0a   : > { %3765 = vmatpush1.bf16.msra.mxu1 %v16616_v51  ;;  %3806 = vmatpush1.bf16.msra.mxu0 %v16619_v52 }
 0xd0b   : > { %3766 = vmatprep.subr.bf16.mxu1 %v16624_v53  ;;  %3807 = vmatprep.subr.bf16.mxu0 %v16627_v54 }
 0xd0e   : > { %3767 = vmatpush1.bf16.msra.mxu1 %v16622_v55  ;;  %3808 = vmatpush1.bf16.msra.mxu0 %v16625_v56 }
 0xd0f   : > { %3768 = vmatprep.subr.bf16.mxu1 %v16630_v57  ;;  %3809 = vmatprep.subr.bf16.mxu0 %v16633_v58 }
 0xd12   : > { %3769 = vmatpush1.bf16.msra.mxu1 %v16628_v59  ;;  %3810 = vmatpush1.bf16.msra.mxu0 %v16631_v61 }
 0xd13   : > { %3770 = vmatprep.subr.bf16.mxu1 %v16636_v62  ;;  %3811 = vmatprep.subr.bf16.mxu0 %v16639_v63 }
 0xd14   : > { %v2820_v60 = vpop.f32.mrb[40].mxu1  ;;  %v2861_v13 = vpop.f32.mrb[16].mxu0 }
 0xd15   : > { %v2821_v22 = vadd.f32 %v2820_v60, %v2051_v4  ;;  %v2862_v1 = vadd.f32 %v2861_v13, %v2059_v7  ;;  %v2822_v3 = vpop.f32.mrb[41].mxu1  ;;  %v2863_v14 = vpop.f32.mrb[17].mxu0  ;;  %v16649_v60 = vld [vmem:[#allocation2 + $0x308] ss:$24 sps:$4 sm:$0xff]   ;;  %v16651_v13 = vld [vmem:[#allocation2 + $0x30c] ss:$24 sps:$4 sm:$0xff]  }
 0xd16   : > { %v2823_v16 = vadd.f32 %v2822_v3, %v2055_v43  ;;  %v2864_v20 = vadd.f32 %v2863_v14, %v2063_v10  ;;  %v2824_v23 = vpop.f32.mrb[42].mxu1  ;;  %v2865_v24 = vpop.f32.mrb[18].mxu0  ;;  %3771 = vmatpush1.bf16.msra.mxu1 %v16634_v46  ;;  %3812 = vmatpush1.bf16.msra.mxu0 %v16637_v11  ;;  %v16652_v3 = vld [vmem:[#allocation2 + $0x330] ss:$24 sps:$4 sm:$0xff]   ;;  %v16660_v14 = vld [vmem:[#allocation2 + $0x364] ss:$24 sps:$4 sm:$0xff]  }
 0xd17   : > { %v2872_v27 = vmax.f32 %v2821_v22, 0.0  ;;  %v2874_v28 = vmax.f32 %v2862_v1, 0.0  ;;  %v2825_v30 = vpop.f32.mrb[43].mxu1  ;;  %v2866_v32 = vpop.f32.mrb[19].mxu0  ;;  %3772 = vmatprep.subr.bf16.mxu1 %v16642_v2  ;;  %3813 = vmatprep.subr.bf16.mxu0 %v16645_v12  ;;  %v16646_v2 = vld [vmem:[#allocation2 + $0x300] ss:$24 sps:$4 sm:$0xff]  }
 0xd18   : > { %v2873_v35 = vmax.f32 %v2823_v16, 0.0  ;;  %v2875_v36 = vmax.f32 %v2864_v20, 0.0  ;;  %v16648_v12 = vld [vmem:[#allocation2 + $0x304] ss:$24 sps:$4 sm:$0xff]   ;;  %v16654_v22 = vld [vmem:[#allocation2 + $0x334] ss:$24 sps:$4 sm:$0xff]  }
 0xd19   : > { %v2880_v6 = vpack.c.bf16 %v2872_v27, %v2872_v27  ;;  %v2882_v39 = vpack.c.bf16 %v2874_v28, %v2874_v28  ;;  %v16657_v1 = vld [vmem:[#allocation2 + $0x33c] ss:$24 sps:$4 sm:$0xff]   ;;  %v16658_v16 = vld [vmem:[#allocation2 + $0x360] ss:$24 sps:$4 sm:$0xff]   ;;  %v16675_v28 = vld [vmem:[#allocation2 + $0x3cc] ss:$24 sps:$4 sm:$0xff]  }
 0xd1a   : > { %v2881_v31 = vpack.c.bf16 %v2873_v35, %v2873_v35  ;;  %v2883_v38 = vpack.c.bf16 %v2875_v36, %v2875_v36  ;;  %3773 = vmatpush1.bf16.msra.mxu1 %v16640_v25  ;;  %3814 = vmatpush1.bf16.msra.mxu0 %v16643_v26  ;;  %v16661_v20 = vld [vmem:[#allocation2 + $0x368] ss:$24 sps:$4 sm:$0xff]   ;;  %v16666_v23 = vld [vmem:[#allocation2 + $0x394] ss:$24 sps:$4 sm:$0xff]   ;;  %v16667_v26 = vld [vmem:[#allocation2 + $0x398] ss:$24 sps:$4 sm:$0xff]  }
 0xd1b   : > { %4474 = vmatprep.subr.bf16.mxu1 %v16648_v12  ;;  %4515 = vmatprep.subr.bf16.mxu0 %v16651_v13  ;;  %v16669_v24 = vld [vmem:[#allocation2 + $0x39c] ss:$24 sps:$4 sm:$0xff]   ;;  %v16664_v25 = vld [vmem:[#allocation2 + $0x390] ss:$24 sps:$4 sm:$0xff]   ;;  %v16670_v30 = vld [vmem:[#allocation2 + $0x3c0] ss:$24 sps:$4 sm:$0xff]  }
 0xd1c   : > { %3774 = vmatprep.mubr.bf16.mxu1 %v2881_v31  ;;  %3815 = vmatprep.mubr.bf16.mxu0 %v2883_v38  ;;  %v16672_v27 = vld [vmem:[#allocation2 + $0x3c4] ss:$24 sps:$4 sm:$0xff]   ;;  %v16673_v32 = vld [vmem:[#allocation2 + $0x3c8] ss:$24 sps:$4 sm:$0xff]   ;;  %v16678_v35 = vld [vmem:[#allocation2 + $0x3f4] ss:$24 sps:$4 sm:$0xff]  }
 0xd1d   : > { %3775 = vmatmul.mubr.bf16.vlgmr.msra.gmra.mrb[48].mxu1 %v2880_v6  ;;  %3816 = vmatmul.mubr.bf16.vlgmr.msra.gmra.mrb[24].mxu0 %v2882_v39  ;;  %v16681_v36 = vld [vmem:[#allocation2 + $0x3fc] ss:$24 sps:$4 sm:$0xff]   ;;  %v16676_v31 = vld [vmem:[#allocation2 + $0x3f0] ss:$24 sps:$4 sm:$0xff]   ;;  %v16687_v39 = vld [vmem:[#allocation2 + $0x42c] ss:$24 sps:$4 sm:$0xff]  }
 0xd1e   : > { %4475 = vmatpush1.bf16.msra.mxu1 %v16646_v2  ;;  %4516 = vmatpush1.bf16.msra.mxu0 %v16649_v60  ;;  %v16679_v38 = vld [vmem:[#allocation2 + $0x3f8] ss:$24 sps:$4 sm:$0xff]   ;;  %v16684_v6 = vld [vmem:[#allocation2 + $0x424] ss:$24 sps:$4 sm:$0xff]  }
 0xd1f   : > { %4476 = vmatprep.subr.bf16.mxu1 %v16654_v22  ;;  %4517 = vmatprep.subr.bf16.mxu0 %v16657_v1  ;;  %v16717_v2 = vld [vmem:[#allocation2 + $0x51c] ss:$24 sps:$4 sm:$0xff]   ;;  %v16715_v12 = vld [vmem:[#allocation2 + $0x518] ss:$24 sps:$4 sm:$0xff]   ;;  %v16723_v13 = vld [vmem:[#allocation2 + $0x54c] ss:$24 sps:$4 sm:$0xff]  }
 0xd20   : > { %v16720_v60 = vld [vmem:[#allocation2 + $0x544] ss:$24 sps:$4 sm:$0xff]   ;;  %v16726_v22 = vld [vmem:[#allocation2 + $0x574] ss:$24 sps:$4 sm:$0xff]   ;;  %v16724_v1 = vld [vmem:[#allocation2 + $0x570] ss:$24 sps:$4 sm:$0xff]  }
 0xd22   : > { %4477 = vmatpush1.bf16.msra.mxu1 %v16652_v3  ;;  %v16729_v3 = vld [vmem:[#allocation2 + $0x57c] ss:$24 sps:$4 sm:$0xff]  }
 0xd23   : > { %4478 = vmatprep.subr.bf16.mxu1 %v16660_v14  ;;  %v16732_v14 = vld [vmem:[#allocation2 + $0x5a4] ss:$24 sps:$4 sm:$0xff]  }
 0xd26   : > { %4479 = vmatpush1.bf16.msra.mxu1 %v16658_v16  ;;  %v16735_v16 = vld [vmem:[#allocation2 + $0x5ac] ss:$24 sps:$4 sm:$0xff]  }
 0xd27   : > { %4480 = vmatprep.subr.bf16.mxu1 %v16666_v23  ;;  %v16738_v23 = vld [vmem:[#allocation2 + $0x5d4] ss:$24 sps:$4 sm:$0xff]  }
 0xd2a   : > { %4481 = vmatpush1.bf16.msra.mxu1 %v16664_v25  ;;  %v16741_v25 = vld [vmem:[#allocation2 + $0x5dc] ss:$24 sps:$4 sm:$0xff]  }
 0xd2b   : > { %4482 = vmatprep.subr.bf16.mxu1 %v16672_v27  ;;  %v16744_v27 = vld [vmem:[#allocation2 + $0x314] ss:$24 sps:$4 sm:$0xff]  }
 0xd2e   : > { %4483 = vmatpush1.bf16.msra.mxu1 %v16670_v30 }
 0xd2f   : > { %4484 = vmatprep.subr.bf16.mxu1 %v16678_v35  ;;  %v18626_v35 = vsub.s32 3, %v18352_v15 }
 0xd32   : > { %4485 = vmatpush1.bf16.msra.mxu1 %v16676_v31  ;;  %v3849_v31 = vrot.slane %v18607_v50, %v18541_v9 }
 0xd33   : > { %4486 = vmatprep.subr.bf16.mxu1 %v16684_v6  ;;  %v3855_v6 = vrot.slane %v18570_v34, %v18626_v35  ;;  %v16747_v34 = vld [vmem:[#allocation2 + $0x344] ss:$24 sps:$4 sm:$0xff]  }
 0xdb0   : > { %v3694_v41 = vpop.f32.mrb[44].mxu1  ;;  %v3735_v42 = vpop.f32.mrb[20].mxu0 }
 0xdb1   : > { %v3695_v44 = vadd.f32 %v3694_v41, %v3015_v29  ;;  %v3696_v45 = vpop.f32.mrb[45].mxu1  ;;  %v3737_v47 = vpop.f32.mrb[21].mxu0  ;;  %v16682_v29 = vld [vmem:[#allocation2 + $0x420] ss:$24 sps:$4 sm:$0xff]   ;;  %v16690_v41 = vld [vmem:[#allocation2 + $0x454] ss:$24 sps:$4 sm:$0xff]  }
 0xdb2   : > { %v3697_v48 = vadd.f32 %v3696_v45, %v3019_v40  ;;  %v3698_v49 = vpop.f32.mrb[46].mxu1  ;;  %v3739_v51 = vpop.f32.mrb[22].mxu0  ;;  %v16685_v40 = vld [vmem:[#allocation2 + $0x428] ss:$24 sps:$4 sm:$0xff]   ;;  %4487 = vmatpush1.bf16.msra.mxu1 %v16682_v29  ;;  %v16691_v45 = vld [vmem:[#allocation2 + $0x458] ss:$24 sps:$4 sm:$0xff]  }
 0xdb3   : > { %v3736_v52 = vadd.f32 %v3735_v42, %v3695_v44  ;;  %v3699_v53 = vpop.f32.mrb[47].mxu1  ;;  %v3740_v54 = vpop.f32.mrb[23].mxu0  ;;  %v16693_v42 = vld [vmem:[#allocation2 + $0x45c] ss:$24 sps:$4 sm:$0xff]   ;;  %v16688_v44 = vld [vmem:[#allocation2 + $0x450] ss:$24 sps:$4 sm:$0xff]   ;;  %4488 = vmatprep.subr.bf16.mxu1 %v16690_v41 }
 0xdb4   : > { %v3738_v55 = vadd.f32 %v3737_v47, %v3697_v48  ;;  %v16696_v47 = vld [vmem:[#allocation2 + $0x484] ss:$24 sps:$4 sm:$0xff]   ;;  %v16694_v49 = vld [vmem:[#allocation2 + $0x480] ss:$24 sps:$4 sm:$0xff]   ;;  %v16700_v54 = vld [vmem:[#allocation2 + $0x4b0] ss:$24 sps:$4 sm:$0xff]  }
 0xdb5   : > { %v16699_v48 = vld [vmem:[#allocation2 + $0x48c] ss:$24 sps:$4 sm:$0xff]   ;;  %v16697_v51 = vld [vmem:[#allocation2 + $0x488] ss:$24 sps:$4 sm:$0xff]   ;;  %v16705_v53 = vld [vmem:[#allocation2 + $0x4bc] ss:$24 sps:$4 sm:$0xff]  }
 0xdb6   : > { %4489 = vmatpush1.bf16.msra.mxu1 %v16688_v44 }
 0xdb7   : > { %4490 = vmatprep.subr.bf16.mxu1 %v16696_v47  ;;  %v16750_v47 = vld [vmem:[#allocation2 + $0x374] ss:$24 sps:$4 sm:$0xff]  }
 0xdba   : > { %4491 = vmatpush1.bf16.msra.mxu1 %v16694_v49  ;;  %v16753_v49 = vld [vmem:[#allocation2 + $0x3a4] ss:$24 sps:$4 sm:$0xff]  }
 0xdf0   : > { %v3776_v56 = vpop.f32.mrb[48].mxu1  ;;  %v3817_v57 = vpop.f32.mrb[24].mxu0 }
 0xdf1   : > { %v3777_v58 = vadd.f32 %v3776_v56, %v3736_v52  ;;  %v3778_v59 = vpop.f32.mrb[49].mxu1  ;;  %v3819_v61 = vpop.f32.mrb[25].mxu0  ;;  %v16702_v52 = vld [vmem:[#allocation2 + $0x4b4] ss:$24 sps:$4 sm:$0xff]   ;;  %v16708_v56 = vld [vmem:[#allocation2 + $0x4e4] ss:$24 sps:$4 sm:$0xff]  }
 0xdf2   : > { %v3779_v62 = vadd.f32 %v3778_v59, %v3738_v55  ;;  %v3780_v63 = vpop.f32.mrb[50].mxu1  ;;  %v3821_v33 = vpop.f32.mrb[26].mxu0  ;;  %4492 = vmatprep.subr.bf16.mxu1 %v16702_v52  ;;  %v16703_v55 = vld [vmem:[#allocation2 + $0x4b8] ss:$24 sps:$4 sm:$0xff]   ;;  %v16756_v52 = vld [vmem:[#allocation2 + $0x3d4] ss:$24 sps:$4 sm:$0xff]  }
 0xdf3   : > { %v3818_v4 = vadd.f32 %v3817_v57, %v3777_v58  ;;  %v3781_v7 = vpop.f32.mrb[51].mxu1  ;;  %v3822_v8 = vpop.f32.mrb[27].mxu0  ;;  %4493 = vmatpush1.bf16.msra.mxu1 %v16700_v54  ;;  %v16706_v57 = vld [vmem:[#allocation2 + $0x4e0] ss:$24 sps:$4 sm:$0xff]   ;;  %v16759_v54 = vld [vmem:[#allocation2 + $0x404] ss:$24 sps:$4 sm:$0xff]  }
 0xdf4   : > { %v3820_v43 = vadd.f32 %v3819_v61, %v3779_v62  ;;  %4494 = vmatprep.subr.bf16.mxu1 %v16708_v56  ;;  %v16711_v7 = vld [vmem:[#allocation2 + $0x4ec] ss:$24 sps:$4 sm:$0xff]   ;;  %v16709_v8 = vld [vmem:[#allocation2 + $0x4e8] ss:$24 sps:$4 sm:$0xff]  }
 0xdf5   : > { %v18616_v10 = vadd.f32 %v3818_v4, %v18555_v21  ;;  %v16655_v21 = vld [vmem:[#allocation2 + $0x338] ss:$24 sps:$4 sm:$0xff]   ;;  %v16762_v56 = vld [vmem:[#allocation2 + $0x434] ss:$24 sps:$4 sm:$0xff]  }
 0xdf6   : > { %v18619_v46 = vadd.f32 %v3820_v43, %v18553_v19  ;;  %v16663_v19 = vld [vmem:[#allocation2 + $0x36c] ss:$24 sps:$4 sm:$0xff]   ;;  %4518 = vmatpush1.bf16.msra.mxu0 %v16655_v21  ;;  %v16727_v21 = vld [vmem:[#allocation2 + $0x578] ss:$24 sps:$4 sm:$0xff]  }
 0xdf7   : > { %4519 = vmatprep.subr.bf16.mxu0 %v16663_v19  ;;  %4495 = vmatpush1.bf16.msra.mxu1 %v16706_v57  ;;  %v16714_v43 = vld [vmem:[#allocation2 + $0x514] ss:$24 sps:$4 sm:$0xff]   ;;  %v16730_v19 = vld [vmem:[#allocation2 + $0x5a0] ss:$24 sps:$4 sm:$0xff]   ;;  %v16760_v57 = vld [vmem:[#allocation2 + $0x430] ss:$24 sps:$4 sm:$0xff]  }
 0xdf8   : > { %v3826_v11 = vadd.f32 %v18619_v46, %v18616_v10  ;;  %4496 = vmatprep.subr.bf16.mxu1 %v16714_v43  ;;  %v16775_v43 = vld [vmem:[#allocation2 + $0x520] ss:$24 sps:$4 sm:$0xff]  }
 0xdfa   : > { %3827 = vadd.xlane.f32.xlu1 %v3826_v11  ;;  %4520 = vmatpush1.bf16.msra.mxu0 %v16661_v20  ;;  %v16712_v11 = vld [vmem:[#allocation2 + $0x510] ss:$24 sps:$4 sm:$0xff]  }
 0xdfb   : > { %4521 = vmatprep.subr.bf16.mxu0 %v16669_v24  ;;  %4497 = vmatpush1.bf16.msra.mxu1 %v16712_v11  ;;  %v16733_v20 = vld [vmem:[#allocation2 + $0x5a8] ss:$24 sps:$4 sm:$0xff]   ;;  %v16780_v11 = vld [vmem:[#allocation2 + $0x554] ss:$24 sps:$4 sm:$0xff]  }
 0xdfc   : > { %4498 = vmatprep.subr.bf16.mxu1 %v16720_v60  ;;  %v16736_v24 = vld [vmem:[#allocation2 + $0x5d0] ss:$24 sps:$4 sm:$0xff]   ;;  %v16781_v60 = vld [vmem:[#allocation2 + $0x580] ss:$24 sps:$4 sm:$0xff]  }
 0xdfe   : > { %4522 = vmatpush1.bf16.msra.mxu0 %v16667_v26  ;;  %v16739_v26 = vld [vmem:[#allocation2 + $0x5d8] ss:$24 sps:$4 sm:$0xff]  }
 0xdff   : > { %4523 = vmatprep.subr.bf16.mxu0 %v16675_v28 }
 0xe02   : > { %4524 = vmatpush1.bf16.msra.mxu0 %v16673_v32 }
 0xe03   : > { %4525 = vmatprep.subr.bf16.mxu0 %v16681_v36  ;;  %v3845_v36 = vrot.slane %v18596_v5, %v18541_v9 }
 0xe06   : > { %4526 = vmatpush1.bf16.msra.mxu0 %v16679_v38 }
 0xe07   : > { %4527 = vmatprep.subr.bf16.mxu0 %v16687_v39 }
 0xe0a   : > { %4528 = vmatpush1.bf16.msra.mxu0 %v16685_v40  ;;  %v3859_v40 = vrot.slane %v18581_v37, %v18626_v35  ;;  %v16745_v37 = vld [vmem:[#allocation2 + $0x340] ss:$24 sps:$4 sm:$0xff]  }
 0xe0b   : > { %4529 = vmatprep.subr.bf16.mxu0 %v16693_v42 }
 0xe0e   : > { %4530 = vmatpush1.bf16.msra.mxu0 %v16691_v45  ;;  %v16742_v45 = vld [vmem:[#allocation2 + $0x310] ss:$24 sps:$4 sm:$0xff]  }
 0xe0f   : > { %4531 = vmatprep.subr.bf16.mxu0 %v16699_v48  ;;  %v16748_v48 = vld [vmem:[#allocation2 + $0x370] ss:$24 sps:$4 sm:$0xff]  }
 0xe12   : > { %4532 = vmatpush1.bf16.msra.mxu0 %v16697_v51  ;;  %v16751_v51 = vld [vmem:[#allocation2 + $0x3a0] ss:$24 sps:$4 sm:$0xff]  }
 0xe13   : > { %4533 = vmatprep.subr.bf16.mxu0 %v16705_v53  ;;  %v16754_v53 = vld [vmem:[#allocation2 + $0x3d0] ss:$24 sps:$4 sm:$0xff]  }
 0xe16   : > { %4534 = vmatpush1.bf16.msra.mxu0 %v16703_v55  ;;  %v16757_v55 = vld [vmem:[#allocation2 + $0x400] ss:$24 sps:$4 sm:$0xff]  }
 0xe17   : > { %4535 = vmatprep.subr.bf16.mxu0 %v16711_v7  ;;  %v16772_v7 = vld [vmem:[#allocation2 + $0x4f0] ss:$24 sps:$4 sm:$0xff]  }
 0xe1a   : > { %4536 = vmatpush1.bf16.msra.mxu0 %v16709_v8  ;;  %v16777_v8 = vld [vmem:[#allocation2 + $0x524] ss:$24 sps:$4 sm:$0xff]  }
 0xe1b   : > { %4537 = vmatprep.subr.bf16.mxu0 %v16717_v2  ;;  %v16778_v2 = vld [vmem:[#allocation2 + $0x550] ss:$24 sps:$4 sm:$0xff]  }
 0xe1e   : > { %4538 = vmatpush1.bf16.msra.mxu0 %v16715_v12  ;;  %v16783_v12 = vld [vmem:[#allocation2 + $0x584] ss:$24 sps:$4 sm:$0xff]  }
 0xe1f   : > { %4539 = vmatprep.subr.bf16.mxu0 %v16723_v13  ;;  %v16784_v13 = vld [vmem:[#allocation2 + $0x5b0] ss:$24 sps:$4 sm:$0xff]  }
 0xe87   : > { %v3828_v58 = vpop.xlane.xlu1 %3827 }
 0xe88   : > { %v3829_v59 = vmul.f32 0.00390625, %v3828_v58  ;;  %v16765_v58 = vld [vmem:[#allocation2 + $0x464] ss:$24 sps:$4 sm:$0xff]  }
 0xe8a   : > { %v3830_v61 = vsub.f32 %v18616_v10, %v3829_v59  ;;  %v3831_v62 = vsub.f32 %v18619_v46, %v3829_v59  ;;  %v16718_v10 = vld [vmem:[#allocation2 + $0x540] ss:$24 sps:$4 sm:$0xff]  }
 0xe8b   : > { %v16721_v46 = vld [vmem:[#allocation2 + $0x548] ss:$24 sps:$4 sm:$0xff]   ;;  %4499 = vmatpush1.bf16.msra.mxu1 %v16718_v10  ;;  %v16786_v10 = vld [vmem:[#allocation2 + $0x5b4] ss:$24 sps:$4 sm:$0xff]  }
 0xe8c   : > { %v3832_v63 = vmul.f32 %v3830_v61, %v3830_v61  ;;  %v3833_v33 = vmul.f32 %v3831_v62, %v3831_v62  ;;  %4540 = vmatpush1.bf16.msra.mxu0 %v16721_v46  ;;  %4500 = vmatprep.subr.bf16.mxu1 %v16726_v22  ;;  %v16763_v59 = vld [vmem:[#allocation2 + $0x460] ss:$24 sps:$4 sm:$0xff]   ;;  %v16789_v46 = vld [vmem:[#allocation2 + $0x5e4] ss:$24 sps:$4 sm:$0xff]  }
 0xe8d   : > { %4541 = vmatprep.subr.bf16.mxu0 %v16729_v3  ;;  %v16787_v22 = vld [vmem:[#allocation2 + $0x5e0] ss:$24 sps:$4 sm:$0xff]   ;;  %v18658_v3 = vld [vmem:[%s19386_s7 + $0x50] sm:$0xff] }
 0xe8e   : > { %v3834_v4 = vadd.f32 %v3833_v33, %v3832_v63  ;;  %v16771_v63 = vld [vmem:[#allocation2 + $0x4c4] ss:$24 sps:$4 sm:$0xff]   ;;  %v16769_v33 = vld [vmem:[#allocation2 + $0x4c0] ss:$24 sps:$4 sm:$0xff]  }
 0xe8f   : > { %4501 = vmatpush1.bf16.msra.mxu1 %v16724_v1  ;;  %v14690_v1 = vld [vmem:[%s19386_s7 + $0x40] sm:$0xff] }
 0xe90   : > { %3835 = vadd.xlane.f32.xlu1 %v3834_v4  ;;  %4542 = vmatpush1.bf16.msra.mxu0 %v16727_v21  ;;  %v16774_v4 = vld [vmem:[#allocation2 + $0x4f4] ss:$24 sps:$4 sm:$0xff]   ;;  %v3973_v21 = vrot.slane %v14690_v1, %v18361_v18 }
 0xe91   : > { %4502 = vmatprep.subr.bf16.mxu1 %v16732_v14  ;;  %4543 = vmatprep.subr.bf16.mxu0 %v16735_v16  ;;  %v3981_v14 = vrot.slane %v18658_v3, %v18361_v18 }
 0xe93   : > { %4503 = vmatpush1.bf16.msra.mxu1 %v16730_v19 }
 0xe94   : > { %4544 = vmatpush1.bf16.msra.mxu0 %v16733_v20  ;;  %4504 = vmatprep.subr.bf16.mxu1 %v16738_v23 }
 0xe95   : > { %4545 = vmatprep.subr.bf16.mxu0 %v16741_v25 }
 0xe97   : > { %4505 = vmatpush1.bf16.msra.mxu1 %v16736_v24 }
 0xe98   : > { %4546 = vmatpush1.bf16.msra.mxu0 %v16739_v26  ;;  %4556 = vmatprep.subr.bf16.mxu1 %v16744_v27 }
 0xf1d   : > { %v3836_v28 = vpop.xlane.xlu1 %3835 }
 0xf1e   : > { %v3837_v30 = vmul.f32 0.00390625, %v3836_v28 }
 0xf20   : > { %v3838_v32 = vadd.f32 1e-05, %v3837_v30 }
 0xf22   : > { %17818 = vrsqrt.f32 %v3838_v32 }
 0xf2c   : > { %v17819_v38 = vpop.eup %17818 }
 0xf2d   : > { %v3840_v39 = vmul.f32 %v17819_v38, %v3830_v61  ;;  %v3841_v29 = vmul.f32 %v17819_v38, %v3831_v62  ;;  %v16768_v61 = vld [vmem:[#allocation2 + $0x494] ss:$24 sps:$4 sm:$0xff]   ;;  %v16766_v62 = vld [vmem:[#allocation2 + $0x490] ss:$24 sps:$4 sm:$0xff]  }
 0xf2f   : > { %v3851_v41 = vmul.f32 %v3849_v31, %v3841_v29  ;;  %v3850_v42 = vmul.f32 %v3845_v36, %v3840_v39 }
 0xf31   : > { %v18636_v44 = vadd.f32 %v3859_v40, %v3851_v41  ;;  %v18638_v15 = vadd.f32 %v3855_v6, %v3850_v42  ;;  %v18676_v6 = vld [vmem:[%s19386_s7 + $0x60] sm:$0xff] }
 0xf32   : > { %v3989_v39 = vrot.slane %v18676_v6, %v18361_v18 }
 0xf33   : > { %v3872_v5 = vpack.c.bf16 %v18636_v44, %v18636_v44  ;;  %v18644_v50 = vpack.c.bf16 %v18638_v15, %v18638_v15 }
 0xf35   : > { %4506 = vmatprep.mubr.bf16.mxu1 %v3872_v5  ;;  %4547 = vmatprep.mubr.bf16.mxu0 %v3872_v5 }
 0xf36   : > { %4507 = vmatmul.mubr.bf16.vlgmr.msra.gmra.mrb[52].mxu1 %v18644_v50  ;;  %4548 = vmatmul.mubr.bf16.vlgmr.msra.gmra.mrb[28].mxu0 %v18644_v50 }
 0xf37   : > { %4557 = vmatpush1.bf16.msra.mxu1 %v16742_v45  ;;  %4588 = vmatprep.mubr.bf16.mxu1 %v3872_v5 }
 0xf38   : > { %4558 = vmatprep.subr.bf16.mxu1 %v16747_v34 }
 0xf3b   : > { %4559 = vmatpush1.bf16.msra.mxu1 %v16745_v37  ;;  %v18685_v37 = vld [vmem:[%s18425_s12] ss:$0 sm:$0xff] }
 0xf3c   : > { %4560 = vmatprep.subr.bf16.mxu1 %v16750_v47 }
 0xf3f   : > { %4561 = vmatpush1.bf16.msra.mxu1 %v16748_v48 }
 0xf40   : > { %4562 = vmatprep.subr.bf16.mxu1 %v16753_v49 }
 0xf43   : > { %4563 = vmatpush1.bf16.msra.mxu1 %v16751_v51 }
 0xf44   : > { %4564 = vmatprep.subr.bf16.mxu1 %v16756_v52 }
 0xf47   : > { %4565 = vmatpush1.bf16.msra.mxu1 %v16754_v53 }
 0xf48   : > { %4566 = vmatprep.subr.bf16.mxu1 %v16759_v54 }
 0xf4b   : > { %4567 = vmatpush1.bf16.msra.mxu1 %v16757_v55 }
 0xf4c   : > { %4568 = vmatprep.subr.bf16.mxu1 %v16762_v56 }
 0xf4f   : > { %4569 = vmatpush1.bf16.msra.mxu1 %v16760_v57 }
 0xf50   : > { %4570 = vmatprep.subr.bf16.mxu1 %v16765_v58 }
 0xf53   : > { %4571 = vmatpush1.bf16.msra.mxu1 %v16763_v59 }
 0xf54   : > { %4572 = vmatprep.subr.bf16.mxu1 %v16768_v61 }
 0xf57   : > { %4573 = vmatpush1.bf16.msra.mxu1 %v16766_v62 }
 0xf58   : > { %4574 = vmatprep.subr.bf16.mxu1 %v16771_v63 }
 0xf5b   : > { %4575 = vmatpush1.bf16.msra.mxu1 %v16769_v33 }
 0xf5c   : > { %4576 = vmatprep.subr.bf16.mxu1 %v16774_v4 }
 0xf5f   : > { %4577 = vmatpush1.bf16.msra.mxu1 %v16772_v7 }
 0xf60   : > { %4578 = vmatprep.subr.bf16.mxu1 %v16777_v8 }
 0xf63   : > { %4579 = vmatpush1.bf16.msra.mxu1 %v16775_v43 }
 0xf64   : > { %4580 = vmatprep.subr.bf16.mxu1 %v16780_v11 }
 0xf67   : > { %4581 = vmatpush1.bf16.msra.mxu1 %v16778_v2 }
 0xf68   : > { %4582 = vmatprep.subr.bf16.mxu1 %v16783_v12 }
 0xf6b   : > { %4583 = vmatpush1.bf16.msra.mxu1 %v16781_v60 }
 0xf6c   : > { %4584 = vmatprep.subr.bf16.mxu1 %v16786_v10 }
 0xf6f   : > { %4585 = vmatpush1.bf16.msra.mxu1 %v16784_v13  ;;  %v18712_v13 = vld [vmem:[%s19386_s7 + $0x58] sm:$0xff] }
 0xf70   : > { %4586 = vmatprep.subr.bf16.mxu1 %v16789_v46  ;;  %v3985_v46 = vrot.slane %v18712_v13, %v18361_v18 }
 0xf73   : > { %4587 = vmatpush1.bf16.msra.mxu1 %v16787_v22 }
 0xf74   : > { %16009 = vmatprep.subr.bf16.mxu1 %v18113_v0 }
 0xf76   : > { %4589 = vmatmul.mubr.bf16.vlgmr.msra.gmra.mrb[56].mxu1 %v18644_v50 }
 0xf77   : > { %16011 = vmatprep.mubr.msk.bf16.mxu1 %vm18114_vm0, %v18113_v0 }
0x1009   : > { %v4508_v19 = vpop.f32.mrb[52].mxu1  ;;  %v4549_v16 = vpop.f32.mrb[28].mxu0 }
0x100a   : > { %v4509_v20 = vadd.f32 %v4508_v19, %v3973_v21  ;;  %v4550_v23 = vadd.f32 %v4549_v16, %v3981_v14  ;;  %v18663_v24 = vpop.f32.mrb[53].mxu1  ;;  %v18665_v25 = vpop.f32.mrb[29].mxu0  ;;  %v14691_v16 = vld [vmem:[%s19386_s7 + $0x48] sm:$0xff] }
0x100b   : > { %v4512_v26 = vpop.f32.mrb[54].mxu1  ;;  %v4553_v27 = vpop.f32.mrb[30].mxu0  ;;  %v4552_v22 = vadd.f32 %v18665_v25, %v3985_v46 }
0x100c   : > { %v4597_v28 = vmul.f32 0.125, %v4509_v20  ;;  %v4600_v30 = vpack.c.bf16 %v4550_v23, %v4550_v23  ;;  %v4513_v32 = vpop.f32.mrb[55].mxu1  ;;  %v4554_v36 = vpop.f32.mrb[31].mxu0  ;;  %v18724_v20 = vld [vmem:[%s19386_s7 + $0x68] sm:$0xff]  ;;  %v3977_v23 = vrot.slane %v14691_v16, %v18361_v18 }
0x100d   : > { %v4820_v1 = vpack.c.bf16 %v4552_v22, %v4552_v22  ;;  %v3993_v25 = vrot.slane %v18724_v20, %v18361_v18  ;;  %v16790_v16 = vld [vmem:[#allocation5 + $0x100] ss:$8 sps:$4 sm:$0xff]  }
0x100e   : > { %v4599_v31 = vpack.c.bf16 %v4597_v28, %v4597_v28  ;;  %v4606_v38 = vsel %vm1171_vm1, %v4600_v30, 0  ;;  %v4511_v27 = vadd.f32 %v18663_v24, %v3977_v23  ;;  %v16792_v23 = vld [vmem:[#allocation5 + $0x104] ss:$8 sps:$4 sm:$0xff]  }
0x100f   : > { %16010 = vmatpush3.bf16.xpose.msra.mxu1 %v4606_v38  ;;  %5252 = vmatprep.subr.bf16.mxu0 %v16792_v23 }
0x1010   : > { %4707 = vrot.lane.b32.xlu0 %v4599_v31, %s18115_s23  ;;  %16015 = vmatprep.subr.bf16.mxu1 %v18113_v0  ;;  %v4598_v36 = vmul.f32 0.125, %v4511_v27  ;;  %v16796_v27 = vld [vmem:[#allocation5 + $0x120] ss:$8 sps:$4 sm:$0xff]  }
0x1011   : > { %5253 = vmatpush1.bf16.msra.mxu0 %v16790_v16 }
0x1012   : > { %v4819_v38 = vpack.c.bf16 %v4598_v36, %v4598_v36  ;;  %v16802_v36 = vld [vmem:[#allocation5 + $0x140] ss:$8 sps:$4 sm:$0xff]  }
0x1016   : > { %16012 = vmatmul.mubr.msk.bf16.vlgmr.msra.gmra.mrb[60].mxu1 %vm1171_vm1, %v4599_v31 }
0x1017   : > { %16017 = vmatprep.mubr.msk.bf16.mxu1 %vm18114_vm0, %v18113_v0 }
0x1049   : > { %v4590_v29 = vpop.f32.mrb[56].mxu1 }
0x104a   : > { %v4591_v40 = vadd.f32 %v4590_v29, %v3989_v39  ;;  %v18680_v41 = vpop.f32.mrb[57].mxu1 }
0x104b   : > { %v4594_v42 = vpop.f32.mrb[58].mxu1  ;;  %v4593_v32 = vadd.f32 %v18680_v41, %v3993_v25  ;;  %v16795_v25 = vld [vmem:[#allocation5 + $0x114] ss:$8 sps:$4 sm:$0xff]  }
0x104c   : > { %v4601_v5 = vpack.c.bf16 %v4591_v40, %v4591_v40  ;;  %v4595_v45 = vpop.f32.mrb[59].mxu1  ;;  %5254 = vmatprep.subr.bf16.mxu0 %v16795_v25 }
0x104d   : > { %v4821_v31 = vpack.c.bf16 %v4593_v32, %v4593_v32  ;;  %v16804_v32 = vld [vmem:[#allocation5 + $0x144] ss:$8 sps:$4 sm:$0xff]  }
0x104e   : > { %v4663_v50 = vsel %vm1233_vm2, %v4601_v5, 0 }
0x104f   : > { %16016 = vmatpush3.bf16.msra.mxu1 %v4663_v50  ;;  %v4883_v39 = vsel %vm1233_vm2, %v4821_v31, 0 }
0x1050   : > { %16021 = vmatprep.subr.bf16.mxu1 %v18113_v0 }
0x1082   : > { %v4708_v62 = vpop.permute.xlu0 %4707 }
0x10e9   : > { %v4642_v34 = vpop.f32.mrb[60].mxu1 }
0x10ea   : > { %v4643_v47 = vadd.f32 %v18685_v37, %v4642_v34  ;;  %v16013_v48 = vpop.f32.mrb[61].mxu1 }
0x10eb   : > { %v4645_v49 = vpop.f32.mrb[62].mxu1 }
0x10ec   : > { %v16014_v51 = vpop.f32.mrb[63].mxu1  ;;  %v4648_v52 = vsel %vm1218_vm3, %v4643_v47, -inf }
0x10ed   : > { %4649 = vmax.xlane.f32.xlu1 %v4648_v52 }
0x10fe   : > { %4710 = vrot.lane.b32.xlu1 %v4600_v30, %s18115_s23  ;;  %v4826_v30 = vsel %vm1171_vm1, %v4820_v1, 0 }
0x1102   : > { %4770 = vrot.lane.b32.xlu1 %v4601_v5, %s18115_s23 }
0x117a   : > { %v4650_v53 = vpop.xlane.xlu1 %4649 }
0x117b   : > { %v4651_v54 = vsub.f32 %v4643_v47, %v4650_v53 }
0x117d   : > { %v4652_v55 = vmul.f32 1.442695, %v4651_v54 }
0x117e   : > { %v4711_v57 = vpop.permute.xlu1 %4710 }
0x117f   : > { %17820 = vpow2.f32 %v4652_v55  ;;  %v4716_v59 = vsel %vm1171_vm1, %v4711_v57, 0 }
0x1182   : > { %v4771_v61 = vpop.permute.xlu1 %4770 }
0x1183   : > { %v4776_v63 = vsel %vm1233_vm2, %v4771_v61, 0 }
0x1189   : > { %v18691_v56 = vpop.eup %17820 }
0x118a   : > { %v4658_v58 = vpack.c.bf16 %v18691_v56, %v18691_v56  ;;  %v4654_v46 = vsel %vm1218_vm3, %v18691_v56, 0.0  ;;  %v16798_v56 = vld [vmem:[#allocation5 + $0x124] ss:$8 sps:$4 sm:$0xff]  }
0x118c   : > { %16018 = vmatmul.mubr.msk.bf16.vlgmr.msra.gmra.mrb[64].mxu1 %vm1218_vm3, %v4658_v58 }
0x118d   : > { %16022 = vmatpush3.bf16.xpose.msra.mxu1 %v4716_v59  ;;  %16023 = vmatprep.mubr.msk.bf16.mxu1 %vm18114_vm0, %v18113_v0 }
0x118e   : > { %16027 = vmatprep.subr.bf16.mxu1 %v18113_v0 }
0x1194   : > { %16024 = vmatmul.mubr.msk.bf16.vlgmr.msra.gmra.mrb[68].mxu1 %vm1171_vm1, %v4708_v62 }
0x1195   : > { %16028 = vmatpush3.bf16.msra.mxu1 %v4776_v63  ;;  %16029 = vmatprep.mubr.msk.bf16.mxu1 %vm18114_vm0, %v18113_v0 }
0x1196   : > { %16033 = vmatprep.subr.bf16.mxu1 %v18113_v0 }
0x125f   : > { %v18705_v33 = vpop.f32.mrb[64].mxu1 }
0x1260   : > { %v16019_v4 = vpop.f32.mrb[65].mxu1 }
0x1261   : > { %v4702_v7 = vpop.f32.mrb[66].mxu1 }
0x1262   : > { %v16020_v8 = vpop.f32.mrb[67].mxu1 }
0x1267   : > { %v4752_v43 = vpop.f32.mrb[68].mxu1 }
0x1268   : > { %v4753_v11 = vadd.f32 %v18685_v37, %v4752_v43  ;;  %v16025_v2 = vpop.f32.mrb[69].mxu1 }
0x1269   : > { %v4755_v12 = vpop.f32.mrb[70].mxu1 }
0x126a   : > { %v16026_v60 = vpop.f32.mrb[71].mxu1  ;;  %v4758_v10 = vsel %vm1218_vm3, %v4753_v11, -inf }
0x126b   : > { %4759 = vmax.xlane.f32.xlu0 %v4758_v10 }
0x1281   : > { %4930 = vrot.lane.b32.xlu0 %v4820_v1, %s18115_s23 }
0x12f8   : > { %v4760_v21 = vpop.xlane.xlu0 %4759 }
0x12f9   : > { %v4761_v14 = vsub.f32 %v4753_v11, %v4760_v21 }
0x12fb   : > { %v4762_v19 = vmul.f32 1.442695, %v4761_v14 }
0x12fc   : > { %v4931_v53 = vpop.permute.xlu0 %4930 }
0x12fd   : > { %17822 = vpow2.f32 %v4762_v19  ;;  %v4936_v57 = vsel %vm1171_vm1, %v4931_v53, 0  ;;  %v16831_v53 = vld [vmem:[#allocation5 + $0x1d4] ss:$8 sps:$4 sm:$0xff]  }
0x1307   : > { %v17823_v26 = vpop.eup %17822 }
0x1308   : > { %v4768_v28 = vpack.c.bf16 %v17823_v26, %v17823_v26  ;;  %v4764_v60 = vsel %vm1218_vm3, %v17823_v26, 0.0  ;;  %v16793_v26 = vld [vmem:[#allocation5 + $0x110] ss:$8 sps:$4 sm:$0xff]  }
0x1309   : > { %5255 = vmatpush1.bf16.msra.mxu0 %v16793_v26 }
0x130a   : > { %16030 = vmatmul.mubr.msk.bf16.vlgmr.msra.gmra.mrb[72].mxu1 %vm1218_vm3, %v4768_v28  ;;  %5256 = vmatprep.subr.bf16.mxu0 %v16798_v56  ;;  %v16801_v28 = vld [vmem:[#allocation5 + $0x134] ss:$8 sps:$4 sm:$0xff]  }
0x130b   : > { %16034 = vmatpush3.bf16.xpose.msra.mxu1 %v4826_v30  ;;  %16035 = vmatprep.mubr.msk.bf16.mxu1 %vm18114_vm0, %v18113_v0  ;;  %v16799_v30 = vld [vmem:[#allocation5 + $0x130] ss:$8 sps:$4 sm:$0xff]  }
0x130c   : > { %16039 = vmatprep.subr.bf16.mxu1 %v18113_v0 }
0x130d   : > { %5257 = vmatpush1.bf16.msra.mxu0 %v16796_v27  ;;  %v14696_v27 = vld [vmem:[%s19386_s7 + $0x70] sm:$0xff] }
0x130e   : > { %5258 = vmatprep.subr.bf16.mxu0 %v16801_v28  ;;  %v5087_v28 = vrot.slane %v14696_v27, %v18361_v18 }
0x1311   : > { %5259 = vmatpush1.bf16.msra.mxu0 %v16799_v30 }
0x1312   : > { %16036 = vmatmul.mubr.msk.bf16.vlgmr.msra.gmra.mrb[76].mxu1 %vm1171_vm1, %v4819_v38  ;;  %5260 = vmatprep.subr.bf16.mxu0 %v16804_v32 }
0x1313   : > { %16040 = vmatpush3.bf16.msra.mxu1 %v4883_v39  ;;  %16041 = vmatprep.mubr.msk.bf16.mxu1 %vm18114_vm0, %v18113_v0  ;;  %v16810_v39 = vld [vmem:[#allocation5 + $0x164] ss:$8 sps:$4 sm:$0xff]  }
0x1314   : > { %16045 = vmatprep.subr.bf16.mxu1 %v18113_v0 }
0x1315   : > { %5261 = vmatpush1.bf16.msra.mxu0 %v16802_v36 }
0x13dd   : > { %v18741_v24 = vpop.f32.mrb[72].mxu1 }
0x13de   : > { %v16031_v29 = vpop.f32.mrb[73].mxu1 }
0x13df   : > { %v4815_v40 = vpop.f32.mrb[74].mxu1  ;;  %v16808_v29 = vld [vmem:[#allocation5 + $0x160] ss:$8 sps:$4 sm:$0xff]  }
0x13e0   : > { %v16032_v41 = vpop.f32.mrb[75].mxu1  ;;  %v16813_v40 = vld [vmem:[#allocation5 + $0x174] ss:$8 sps:$4 sm:$0xff]  }
0x13e1   : > { %v16811_v41 = vld [vmem:[#allocation5 + $0x170] ss:$8 sps:$4 sm:$0xff]  }
0x13e5   : > { %v4862_v42 = vpop.f32.mrb[76].mxu1 }
0x13e6   : > { %v4863_v5 = vadd.f32 %v18685_v37, %v4862_v42  ;;  %v16037_v45 = vpop.f32.mrb[77].mxu1  ;;  %v16816_v42 = vld [vmem:[#allocation5 + $0x184] ss:$8 sps:$4 sm:$0xff]  }
0x13e7   : > { %v4865_v50 = vpop.f32.mrb[78].mxu1  ;;  %v16819_v45 = vld [vmem:[#allocation5 + $0x194] ss:$8 sps:$4 sm:$0xff]  }
0x13e8   : > { %v16038_v34 = vpop.f32.mrb[79].mxu1  ;;  %v4868_v47 = vsel %vm1218_vm3, %v4863_v5, -inf  ;;  %v16817_v50 = vld [vmem:[#allocation5 + $0x190] ss:$8 sps:$4 sm:$0xff]  }
0x13e9   : > { %4869 = vmax.xlane.f32.xlu1 %v4868_v47  ;;  %v16822_v34 = vld [vmem:[#allocation5 + $0x1a4] ss:$8 sps:$4 sm:$0xff]   ;;  %v16820_v47 = vld [vmem:[#allocation5 + $0x1a0] ss:$8 sps:$4 sm:$0xff]  }
0x13fa   : > { %4927 = vrot.lane.b32.xlu1 %v4819_v38, %s18115_s23  ;;  %v16805_v38 = vld [vmem:[#allocation5 + $0x150] ss:$8 sps:$4 sm:$0xff]  }
0x13fe   : > { %4990 = vrot.lane.b32.xlu1 %v4821_v31, %s18115_s23  ;;  %v16807_v31 = vld [vmem:[#allocation5 + $0x154] ss:$8 sps:$4 sm:$0xff]  }
0x13ff   : > { %5262 = vmatprep.subr.bf16.mxu0 %v16807_v31 }
0x1400   : > { %5263 = vmatpush1.bf16.msra.mxu0 %v16805_v38 }
0x1401   : > { %5264 = vmatprep.subr.bf16.mxu0 %v16810_v39 }
0x1404   : > { %5265 = vmatpush1.bf16.msra.mxu0 %v16808_v29 }
0x1405   : > { %5266 = vmatprep.subr.bf16.mxu0 %v16813_v40 }
0x1408   : > { %5267 = vmatpush1.bf16.msra.mxu0 %v16811_v41 }
0x1409   : > { %5268 = vmatprep.subr.bf16.mxu0 %v16816_v42  ;;  %v5334_v42 = vld [vmem:[#allocation7 + $0x400] sm:$0xff] }
0x1476   : > { %v4870_v48 = vpop.xlane.xlu1 %4869 }
0x1477   : > { %v4871_v49 = vsub.f32 %v4863_v5, %v4870_v48  ;;  %v16814_v5 = vld [vmem:[#allocation5 + $0x180] ss:$8 sps:$4 sm:$0xff]   ;;  %v16825_v48 = vld [vmem:[#allocation5 + $0x1b4] ss:$8 sps:$4 sm:$0xff]  }
0x1478   : > { %5269 = vmatpush1.bf16.msra.mxu0 %v16814_v5  ;;  %v5338_v5 = vld [vmem:[#allocation7 + $0x420] sm:$0xff] }
0x1479   : > { %v4872_v51 = vmul.f32 1.442695, %v4871_v49  ;;  %5270 = vmatprep.subr.bf16.mxu0 %v16819_v45  ;;  %v16823_v49 = vld [vmem:[#allocation5 + $0x1b0] ss:$8 sps:$4 sm:$0xff]   ;;  %v5335_v45 = vld [vmem:[#allocation7 + $0x408] sm:$0xff] }
0x147a   : > { %v4928_v55 = vpop.permute.xlu1 %4927 }
0x147b   : > { %17824 = vpow2.f32 %v4872_v51  ;;  %v16828_v51 = vld [vmem:[#allocation5 + $0x1c4] ss:$8 sps:$4 sm:$0xff]  }
0x147c   : > { %5271 = vmatpush1.bf16.msra.mxu0 %v16817_v50  ;;  %v14834_v50 = vcombine.low %v5334_v42, %v5338_v5 }
0x147d   : > { %5272 = vmatprep.subr.bf16.mxu0 %v16822_v34  ;;  %v14835_v34 = vcombine.high %v5334_v42, %v5338_v5  ;;  %v5390_v5 = vld [vmem:[#allocation7 + $0x5c0] sm:$0xff] }
0x147e   : > { %v4991_v58 = vpop.permute.xlu1 %4990 }
0x147f   : > { %v4996_v59 = vsel %vm1233_vm2, %v4991_v58, 0 }
0x1480   : > { %5273 = vmatpush1.bf16.msra.mxu0 %v16820_v47  ;;  %v5339_v47 = vld [vmem:[#allocation7 + $0x428] sm:$0xff] }
0x1481   : > { %5274 = vmatprep.subr.bf16.mxu0 %v16825_v48  ;;  %v5342_v48 = vld [vmem:[#allocation7 + $0x440] sm:$0xff] }
0x1484   : > { %5275 = vmatpush1.bf16.msra.mxu0 %v16823_v49  ;;  %v5346_v49 = vld [vmem:[#allocation7 + $0x460] sm:$0xff] }
0x1485   : > { %v17825_v52 = vpop.eup %17824  ;;  %5276 = vmatprep.subr.bf16.mxu0 %v16828_v51  ;;  %v14836_v51 = vcombine.low %v5335_v45, %v5339_v47 }
0x1486   : > { %v4878_v54 = vpack.c.bf16 %v17825_v52, %v17825_v52  ;;  %v4874_v10 = vsel %vm1218_vm3, %v17825_v52, 0.0  ;;  %v16826_v52 = vld [vmem:[#allocation5 + $0x1c0] ss:$8 sps:$4 sm:$0xff]  }
0x1488   : > { %16042 = vmatmul.mubr.msk.bf16.vlgmr.msra.gmra.mrb[80].mxu1 %vm1218_vm3, %v4878_v54  ;;  %5277 = vmatpush1.bf16.msra.mxu0 %v16826_v52  ;;  %v16829_v54 = vld [vmem:[#allocation5 + $0x1d0] ss:$8 sps:$4 sm:$0xff]   ;;  %v14837_v52 = vcombine.high %v5335_v45, %v5339_v47  ;;  %v5394_v45 = vld [vmem:[#allocation7 + $0x5e0] sm:$0xff] }
0x1489   : > { %16046 = vmatpush3.bf16.xpose.msra.mxu1 %v4936_v57  ;;  %16047 = vmatprep.mubr.msk.bf16.mxu1 %vm18114_vm0, %v18113_v0  ;;  %v16832_v57 = vld [vmem:[#allocation5 + $0x1e0] ss:$8 sps:$4 sm:$0xff]  }
0x148a   : > { %16051 = vmatprep.subr.bf16.mxu1 %v18113_v0  ;;  %5278 = vmatprep.subr.bf16.mxu0 %v16831_v53  ;;  %v5343_v53 = vld [vmem:[#allocation7 + $0x448] sm:$0xff] }
0x148c   : > { %5279 = vmatpush1.bf16.msra.mxu0 %v16829_v54  ;;  %v5347_v54 = vld [vmem:[#allocation7 + $0x468] sm:$0xff] }
0x1490   : > { %16048 = vmatmul.mubr.msk.bf16.vlgmr.msra.gmra.mrb[84].mxu1 %vm1171_vm1, %v4928_v55  ;;  %v16834_v55 = vld [vmem:[#allocation5 + $0x1e4] ss:$8 sps:$4 sm:$0xff]  }
0x1491   : > { %16052 = vmatpush3.bf16.msra.mxu1 %v4996_v59  ;;  %16053 = vmatprep.mubr.msk.bf16.mxu1 %vm18114_vm0, %v18113_v0 }
0x1492   : > { %5280 = vmatprep.subr.bf16.mxu0 %v16834_v55  ;;  %v5350_v55 = vld [vmem:[#allocation7 + $0x480] sm:$0xff]  ;;  %6134 = vmatprep.subr.bf16.mxu1 %v14835_v34  ;;  %v5395_v34 = vld [vmem:[#allocation7 + $0x5e8] sm:$0xff] }
0x1493   : > { %5281 = vmatpush1.bf16.msra.mxu0 %v16832_v57  ;;  %v5354_v57 = vld [vmem:[#allocation7 + $0x4a0] sm:$0xff] }
0x155b   : > { %v18756_v61 = vpop.f32.mrb[80].mxu1 }
0x155c   : > { %v16043_v62 = vpop.f32.mrb[81].mxu1 }
0x155d   : > { %v4922_v63 = vpop.f32.mrb[82].mxu1  ;;  %v16837_v62 = vld [vmem:[#allocation5 + $0x1f4] ss:$8 sps:$4 sm:$0xff]  }
0x155e   : > { %v16044_v4 = vpop.f32.mrb[83].mxu1  ;;  %v16835_v63 = vld [vmem:[#allocation5 + $0x1f0] ss:$8 sps:$4 sm:$0xff]   ;;  %5282 = vmatprep.subr.bf16.mxu0 %v16837_v62  ;;  %v14842_v62 = vcombine.low %v5342_v48, %v5346_v49 }
0x155f   : > { %5283 = vmatpush1.bf16.msra.mxu0 %v16835_v63  ;;  %v14844_v63 = vcombine.low %v5343_v53, %v5347_v54 }
0x1560   : > { %6175 = vmatprep.subr.bf16.mxu0 %v14837_v52  ;;  %v5398_v52 = vld [vmem:[#allocation7 + $0x600] sm:$0xff] }
0x1563   : > { %v4972_v7 = vpop.f32.mrb[84].mxu1 }
0x1564   : > { %v4973_v8 = vadd.f32 %v18685_v37, %v4972_v7  ;;  %v16049_v43 = vpop.f32.mrb[85].mxu1 }
0x1565   : > { %v4975_v11 = vpop.f32.mrb[86].mxu1 }
0x1566   : > { %v16050_v2 = vpop.f32.mrb[87].mxu1  ;;  %v4978_v12 = vsel %vm1218_vm3, %v4973_v8, -inf }
0x1567   : > { %4979 = vmax.xlane.f32.xlu0 %v4978_v12 }
0x156b   : > { %4765 = vadd.xlane.f32.xlu0 %v4764_v60 }
0x156f   : > { %4875 = vadd.xlane.f32.xlu0 %v4874_v10 }
0x1573   : > { %4655 = vadd.xlane.f32.xlu0 %v4654_v46 }
0x15f4   : > { %v4980_v22 = vpop.xlane.xlu0 %4979 }
0x15f5   : > { %v4981_v1 = vsub.f32 %v4973_v8, %v4980_v22 }
0x15f7   : > { %v4982_v21 = vmul.f32 1.442695, %v4981_v1 }
0x15f8   : > { %v4766_v58 = vpop.xlane.xlu0 %4765 }
0x15f9   : > { %17826 = vpow2.f32 %v4982_v21 }
0x15fa   : > { %17828 = vrcp.f32 %v4766_v58  ;;  %v5351_v58 = vld [vmem:[#allocation7 + $0x488] sm:$0xff] }
0x15fc   : > { %v4876_v46 = vpop.xlane.xlu0 %4875 }
0x1600   : > { %v4656_v22 = vpop.xlane.xlu0 %4655 }
0x1603   : > { %v17827_v37 = vpop.eup %17826 }
0x1604   : > { %v4984_v14 = vsel %vm1218_vm3, %v17827_v37, 0.0  ;;  %v4988_v19 = vpack.c.bf16 %v17827_v37, %v17827_v37  ;;  %v17829_v4 = vpop.eup %17828 }
0x1605   : > { %4985 = vadd.xlane.f32.xlu1 %v4984_v14  ;;  %v4818_v43 = vmul.f32 %v17829_v4, %v18741_v24  ;;  %v14851_v4 = vcombine.high %v5350_v55, %v5354_v57 }
0x1606   : > { %16054 = vmatmul.mubr.msk.bf16.vlgmr.msra.gmra.mrb[88].mxu1 %vm1218_vm3, %v4988_v19 }
0x1607   : > { %6135 = vmatpush1.bf16.msra.mxu1 %v14834_v50  ;;  %v5391_v50 = vld [vmem:[#allocation7 + $0x5c8] sm:$0xff] }
0x1692   : > { %v4986_v59 = vpop.xlane.xlu1 %4985 }
0x1693   : > { %17830 = vrcp.f32 %v4986_v59  ;;  %v5355_v59 = vld [vmem:[#allocation7 + $0x4a8] sm:$0xff] }
0x1694   : > { %17832 = vrcp.f32 %v4876_v46 }
0x1695   : > { %17834 = vrcp.f32 %v4656_v22  ;;  %v5366_v22 = vld [vmem:[#allocation7 + $0x500] sm:$0xff] }
0x169d   : > { %v17831_v7 = vpop.eup %17830 }
0x169e   : > { %v17833_v1 = vpop.eup %17832 }
0x169f   : > { %v17835_v21 = vpop.eup %17834  ;;  %v4925_v24 = vmul.f32 %v17833_v1, %v18756_v61  ;;  %v5370_v1 = vld [vmem:[#allocation7 + $0x520] sm:$0xff] }
0x16a0   : > { %v4705_v14 = vmul.f32 %v17835_v21, %v18705_v33  ;;  %v14697_v33 = vld [vmem:[%s19386_s7 + $0x78] sm:$0xff]  ;;  %v5367_v21 = vld [vmem:[#allocation7 + $0x508] sm:$0xff]  ;;  %v14866_v27 = vcombine.low %v5366_v22, %v5370_v1 }
0x16a1   : > { %v5091_v61 = vrot.slane %v14697_v33, %v18361_v18 }
0x16d9   : > { %v5032_v8 = vpop.f32.mrb[88].mxu1 }
0x16da   : > { %v5038_v11 = vmul.f32 %v17831_v7, %v5032_v8  ;;  %v16055_v2 = vpop.f32.mrb[89].mxu1  ;;  %v14853_v7 = vcombine.high %v5351_v58, %v5355_v59  ;;  %v5358_v8 = vld [vmem:[#allocation7 + $0x4c0] sm:$0xff] }
0x16db   : > { %v5035_v12 = vpop.f32.mrb[90].mxu1  ;;  %v5363_v2 = vld [vmem:[#allocation7 + $0x4e8] sm:$0xff] }
0x16dc   : > { %v16247_v60 = vpack.i.bf16 %v4818_v43, %v5038_v11  ;;  %v16056_v10 = vpop.f32.mrb[91].mxu1  ;;  %v5362_v43 = vld [vmem:[#allocation7 + $0x4e0] sm:$0xff]  ;;  %v5359_v11 = vld [vmem:[#allocation7 + $0x4c8] sm:$0xff]  ;;  %v14850_v12 = vcombine.low %v5350_v55, %v5354_v57  ;;  %v14890_v55 = vcombine.low %v5390_v5, %v5394_v45 }
0x16dd   : > { %v14859_v10 = vcombine.high %v5358_v8, %v5362_v43  ;;  %v14861_v46 = vcombine.high %v5359_v11, %v5363_v2 }
0x16de   : > { %16248 = vrot.lane.b32.xlu0 %v16247_v60, %s18115_s23  ;;  %v14852_v60 = vcombine.low %v5351_v58, %v5355_v59  ;;  %v5406_v59 = vld [vmem:[#allocation7 + $0x640] sm:$0xff] }
0x1750   : > { %v16249_v37 = vpop.permute.xlu0 %16248 }
0x1751   : > { %v16251_v19 = vunpack.i.h.bf16 %v16249_v37  ;;  %v16250_v16 = vunpack.i.l.bf16 %v16249_v37  ;;  %v5371_v37 = vld [vmem:[#allocation7 + $0x528] sm:$0xff] }
0x1752   : > { %v14868_v33 = vcombine.low %v5367_v21, %v5371_v37 }
0x1753   : > { %v5047_v23 = vsel %vm1171_vm1, %v4705_v14, %v16251_v19  ;;  %v5048_v25 = vsel %vm1171_vm1, %v4925_v24, %v16250_v16  ;;  %v14858_v14 = vcombine.low %v5358_v8, %v5362_v43  ;;  %v14860_v19 = vcombine.low %v5359_v11, %v5363_v2  ;;  %v5414_v2 = vld [vmem:[#allocation7 + $0x680] sm:$0xff] }
0x1754   : > { %v5049_v26 = vpack.c.bf16 %v5047_v23, %v5047_v23  ;;  %v5050_v56 = vpack.c.bf16 %v5048_v25, %v5048_v25  ;;  %v14867_v16 = vcombine.high %v5366_v22, %v5370_v1  ;;  %v14869_v24 = vcombine.high %v5367_v21, %v5371_v37  ;;  %v5374_v23 = vld [vmem:[#allocation7 + $0x540] sm:$0xff] }
0x1755   : > { %v5378_v25 = vld [vmem:[#allocation7 + $0x560] sm:$0xff] }
0x1756   : > { %5284 = vmatprep.mubr.bf16.mxu0 %v5050_v56  ;;  %v5379_v56 = vld [vmem:[#allocation7 + $0x568] sm:$0xff] }
0x1757   : > { %5285 = vmatmul.mubr.bf16.vlgmr.msra.gmra.mrb[32].mxu0 %v5049_v26  ;;  %v5375_v26 = vld [vmem:[#allocation7 + $0x548] sm:$0xff] }
0x1758   : > { %6176 = vmatpush1.bf16.msra.mxu0 %v14836_v51  ;;  %v14893_v51 = vcombine.high %v5391_v50, %v5395_v34 }
0x182a   : > { %v5286_v30 = vpop.f32.mrb[32].mxu0 }
0x182b   : > { %v5287_v32 = vadd.f32 %v5286_v30, %v5087_v28  ;;  %v5288_v36 = vpop.f32.mrb[33].mxu0  ;;  %v14875_v28 = vcombine.high %v5374_v23, %v5378_v25  ;;  %v5382_v30 = vld [vmem:[#allocation7 + $0x580] sm:$0xff] }
0x182c   : > { %v5289_v31 = vadd.f32 %v5288_v36, %v5091_v61  ;;  %v5290_v38 = vpop.f32.mrb[34].mxu0  ;;  %v14877_v61 = vcombine.high %v5375_v26, %v5379_v56  ;;  %v5383_v36 = vld [vmem:[#allocation7 + $0x588] sm:$0xff] }
0x182d   : > { %v18781_v39 = vadd.f32 %v5287_v32, %v18638_v15  ;;  %v5291_v29 = vpop.f32.mrb[35].mxu0  ;;  %v14843_v15 = vcombine.high %v5342_v48, %v5346_v49  ;;  %v5386_v32 = vld [vmem:[#allocation7 + $0x5a0] sm:$0xff]  ;;  %v14874_v38 = vcombine.low %v5374_v23, %v5378_v25  ;;  %v14891_v49 = vcombine.high %v5390_v5, %v5394_v45 }
0x182e   : > { %v18784_v40 = vadd.f32 %v5289_v31, %v18636_v44  ;;  %v14845_v44 = vcombine.high %v5343_v53, %v5347_v54  ;;  %v5387_v31 = vld [vmem:[#allocation7 + $0x5a8] sm:$0xff]  ;;  %v14876_v29 = vcombine.low %v5375_v26, %v5379_v56  ;;  %v14882_v47 = vcombine.low %v5382_v30, %v5386_v32 }
0x182f   : > { %6136 = vmatprep.subr.bf16.mxu1 %v14843_v15  ;;  %v14885_v42 = vcombine.high %v5383_v36, %v5387_v31  ;;  %v14884_v48 = vcombine.low %v5383_v36, %v5387_v31  ;;  %v5402_v15 = vld [vmem:[#allocation7 + $0x620] sm:$0xff]  ;;  %v5399_v53 = vld [vmem:[#allocation7 + $0x608] sm:$0xff] }
0x1830   : > { %v5295_v41 = vadd.f32 %v18784_v40, %v18781_v39  ;;  %6177 = vmatprep.subr.bf16.mxu0 %v14845_v44  ;;  %6137 = vmatpush1.bf16.msra.mxu1 %v14842_v62  ;;  %v5403_v54 = vld [vmem:[#allocation7 + $0x628] sm:$0xff]  ;;  %v14892_v44 = vcombine.low %v5391_v50, %v5395_v34  ;;  %v14899_v57 = vcombine.high %v5398_v52, %v5402_v15  ;;  %v5410_v62 = vld [vmem:[#allocation7 + $0x660] sm:$0xff] }
0x1831   : > { %6178 = vmatpush1.bf16.msra.mxu0 %v14844_v63  ;;  %6138 = vmatprep.subr.bf16.mxu1 %v14851_v4  ;;  %v14901_v58 = vcombine.high %v5399_v53, %v5403_v54  ;;  %v5407_v63 = vld [vmem:[#allocation7 + $0x648] sm:$0xff]  ;;  %v14900_v8 = vcombine.low %v5399_v53, %v5403_v54  ;;  %v14907_v43 = vcombine.high %v5406_v59, %v5410_v62  ;;  %v5434_v31 = vld [vmem:[#allocation7 + $0x720] sm:$0xff] }
0x1832   : > { %5296 = vadd.xlane.f32.xlu1 %v5295_v41  ;;  %6179 = vmatprep.subr.bf16.mxu0 %v14853_v7  ;;  %v14883_v41 = vcombine.high %v5382_v30, %v5386_v32  ;;  %v5411_v4 = vld [vmem:[#allocation7 + $0x668] sm:$0xff]  ;;  %v14898_v7 = vcombine.low %v5398_v52, %v5402_v15  ;;  %v5438_v50 = vld [vmem:[#allocation7 + $0x740] sm:$0xff] }
0x1833   : > { %v14909_v11 = vcombine.high %v5407_v63, %v5411_v4  ;;  %v14908_v22 = vcombine.low %v5407_v63, %v5411_v4  ;;  %v5427_v30 = vld [vmem:[#allocation7 + $0x6e8] sm:$0xff]  ;;  %v5442_v34 = vld [vmem:[#allocation7 + $0x760] sm:$0xff] }
0x1834   : > { %6139 = vmatpush1.bf16.msra.mxu1 %v14850_v12  ;;  %v5418_v12 = vld [vmem:[#allocation7 + $0x6a0] sm:$0xff] }
0x1835   : > { %6180 = vmatpush1.bf16.msra.mxu0 %v14852_v60  ;;  %6140 = vmatprep.subr.bf16.mxu1 %v14859_v10  ;;  %v5415_v60 = vld [vmem:[#allocation7 + $0x688] sm:$0xff]  ;;  %v14915_v1 = vcombine.high %v5414_v2, %v5418_v12  ;;  %v14914_v37 = vcombine.low %v5414_v2, %v5418_v12  ;;  %v5446_v53 = vld [vmem:[#allocation7 + $0x780] sm:$0xff] }
0x1836   : > { %6181 = vmatprep.subr.bf16.mxu0 %v14861_v46  ;;  %v5419_v10 = vld [vmem:[#allocation7 + $0x6a8] sm:$0xff]  ;;  %v14906_v46 = vcombine.low %v5406_v59, %v5410_v62  ;;  %v5450_v54 = vld [vmem:[#allocation7 + $0x7a0] sm:$0xff] }
0x1837   : > { %v14917_v21 = vcombine.high %v5415_v60, %v5419_v10  ;;  %v5454_v63 = vld [vmem:[#allocation7 + $0x7c0] sm:$0xff] }
0x1838   : > { %6141 = vmatpush1.bf16.msra.mxu1 %v14858_v14  ;;  %v14916_v14 = vcombine.low %v5415_v60, %v5419_v10  ;;  %v5458_v4 = vld [vmem:[#allocation7 + $0x7e0] sm:$0xff]  ;;  %v5336_v60 = vld [vmem:[#allocation7 + $0x410] sm:$0xff] }
0x1839   : > { %6182 = vmatpush1.bf16.msra.mxu0 %v14860_v19  ;;  %6142 = vmatprep.subr.bf16.mxu1 %v14867_v16  ;;  %v5340_v10 = vld [vmem:[#allocation7 + $0x430] sm:$0xff] }
0x183a   : > { %6183 = vmatprep.subr.bf16.mxu0 %v14869_v24 }
0x183c   : > { %6143 = vmatpush1.bf16.msra.mxu1 %v14866_v27  ;;  %v5422_v27 = vld [vmem:[#allocation7 + $0x6c0] sm:$0xff] }
0x183d   : > { %6184 = vmatpush1.bf16.msra.mxu0 %v14868_v33  ;;  %6144 = vmatprep.subr.bf16.mxu1 %v14875_v28  ;;  %v5426_v33 = vld [vmem:[#allocation7 + $0x6e0] sm:$0xff]  ;;  %v5423_v28 = vld [vmem:[#allocation7 + $0x6c8] sm:$0xff] }
0x183e   : > { %6185 = vmatprep.subr.bf16.mxu0 %v14877_v61  ;;  %v14923_v61 = vcombine.high %v5422_v27, %v5426_v33  ;;  %v14922_v32 = vcombine.low %v5422_v27, %v5426_v33  ;;  %v14924_v36 = vcombine.low %v5423_v28, %v5427_v30  ;;  %v5324_v33 = vrot.slane %v18676_v6, %v18541_v9 }
0x1840   : > { %6145 = vmatpush1.bf16.msra.mxu1 %v14874_v38  ;;  %v5431_v38 = vld [vmem:[#allocation7 + $0x708] sm:$0xff] }
0x1841   : > { %6186 = vmatpush1.bf16.msra.mxu0 %v14876_v29  ;;  %6146 = vmatprep.subr.bf16.mxu1 %v14883_v41  ;;  %v5435_v41 = vld [vmem:[#allocation7 + $0x728] sm:$0xff] }
0x1842   : > { %6187 = vmatprep.subr.bf16.mxu0 %v14885_v42  ;;  %v14932_v5 = vcombine.low %v5431_v38, %v5435_v41  ;;  %v14933_v45 = vcombine.high %v5431_v38, %v5435_v41  ;;  %v5349_v38 = vld [vmem:[#allocation7 + $0x478] sm:$0xff]  ;;  %v5356_v41 = vld [vmem:[#allocation7 + $0x4b0] sm:$0xff] }
0x1844   : > { %6147 = vmatpush1.bf16.msra.mxu1 %v14882_v47  ;;  %v5439_v47 = vld [vmem:[#allocation7 + $0x748] sm:$0xff] }
0x1845   : > { %6188 = vmatpush1.bf16.msra.mxu0 %v14884_v48  ;;  %6148 = vmatprep.subr.bf16.mxu1 %v14891_v49  ;;  %v14939_v48 = vcombine.high %v5438_v50, %v5442_v34  ;;  %v5443_v49 = vld [vmem:[#allocation7 + $0x768] sm:$0xff] }
0x1846   : > { %6189 = vmatprep.subr.bf16.mxu0 %v14893_v51  ;;  %v14938_v51 = vcombine.low %v5438_v50, %v5442_v34  ;;  %v14940_v52 = vcombine.low %v5439_v47, %v5443_v49  ;;  %v14941_v15 = vcombine.high %v5439_v47, %v5443_v49  ;;  %v5364_v49 = vld [vmem:[#allocation7 + $0x4f0] sm:$0xff] }
0x1848   : > { %6149 = vmatpush1.bf16.msra.mxu1 %v14890_v55  ;;  %v5447_v55 = vld [vmem:[#allocation7 + $0x788] sm:$0xff] }
0x1849   : > { %6190 = vmatpush1.bf16.msra.mxu0 %v14892_v44  ;;  %6150 = vmatprep.subr.bf16.mxu1 %v14899_v57  ;;  %v14947_v44 = vcombine.high %v5446_v53, %v5450_v54  ;;  %v5451_v57 = vld [vmem:[#allocation7 + $0x7a8] sm:$0xff] }
0x184a   : > { %6191 = vmatprep.subr.bf16.mxu0 %v14901_v58  ;;  %v14946_v58 = vcombine.low %v5446_v53, %v5450_v54  ;;  %v14948_v59 = vcombine.low %v5447_v55, %v5451_v57  ;;  %v14949_v62 = vcombine.high %v5447_v55, %v5451_v57  ;;  %v5372_v57 = vld [vmem:[#allocation7 + $0x530] sm:$0xff] }
0x184c   : > { %6151 = vmatpush1.bf16.msra.mxu1 %v14898_v7  ;;  %v5455_v7 = vld [vmem:[#allocation7 + $0x7c8] sm:$0xff] }
0x184d   : > { %6192 = vmatpush1.bf16.msra.mxu0 %v14900_v8  ;;  %6152 = vmatprep.subr.bf16.mxu1 %v14907_v43  ;;  %v14955_v8 = vcombine.high %v5454_v63, %v5458_v4  ;;  %v5459_v43 = vld [vmem:[#allocation7 + $0x7e8] sm:$0xff] }
0x184e   : > { %6193 = vmatprep.subr.bf16.mxu0 %v14909_v11  ;;  %v14954_v11 = vcombine.low %v5454_v63, %v5458_v4  ;;  %v14957_v2 = vcombine.high %v5455_v7, %v5459_v43  ;;  %v14956_v12 = vcombine.low %v5455_v7, %v5459_v43  ;;  %v5380_v43 = vld [vmem:[#allocation7 + $0x570] sm:$0xff] }
0x1850   : > { %6153 = vmatpush1.bf16.msra.mxu1 %v14906_v46  ;;  %v5337_v46 = vld [vmem:[#allocation7 + $0x418] sm:$0xff] }
0x1851   : > { %6194 = vmatpush1.bf16.msra.mxu0 %v14908_v22  ;;  %6154 = vmatprep.subr.bf16.mxu1 %v14915_v1  ;;  %v14839_v22 = vcombine.high %v5336_v60, %v5340_v10  ;;  %v5341_v1 = vld [vmem:[#allocation7 + $0x438] sm:$0xff] }
0x1852   : > { %6195 = vmatprep.subr.bf16.mxu0 %v14917_v21  ;;  %v14838_v21 = vcombine.low %v5336_v60, %v5340_v10 }
0x1854   : > { %6155 = vmatpush1.bf16.msra.mxu1 %v14914_v37  ;;  %v14840_v37 = vcombine.low %v5337_v46, %v5341_v1 }
0x1855   : > { %6196 = vmatpush1.bf16.msra.mxu0 %v14916_v14  ;;  %6156 = vmatprep.subr.bf16.mxu1 %v14923_v61  ;;  %v14841_v14 = vcombine.high %v5337_v46, %v5341_v1  ;;  %v5388_v1 = vld [vmem:[#allocation7 + $0x5b0] sm:$0xff] }
0x1858   : > { %6157 = vmatpush1.bf16.msra.mxu1 %v14922_v32 }
0x18bf   : > { %v5297_v19 = vpop.xlane.xlu1 %5296 }
0x18c0   : > { %v5298_v16 = vmul.f32 0.00390625, %v5297_v19 }
0x18c2   : > { %v18789_v24 = vsub.f32 %v18781_v39, %v5298_v16  ;;  %v18792_v23 = vsub.f32 %v18784_v40, %v5298_v16  ;;  %v14925_v39 = vcombine.high %v5423_v28, %v5427_v30  ;;  %v5430_v40 = vld [vmem:[#allocation7 + $0x700] sm:$0xff]  ;;  %v5328_v28 = vrot.slane %v18724_v20, %v18541_v9 }
0x18c3   : > { %v14931_v29 = vcombine.high %v5430_v40, %v5434_v31  ;;  %v14930_v42 = vcombine.low %v5430_v40, %v5434_v31  ;;  %v5348_v31 = vld [vmem:[#allocation7 + $0x470] sm:$0xff] }
0x18c4   : > { %v5301_v25 = vmul.f32 %v18789_v24, %v18789_v24  ;;  %v5302_v26 = vmul.f32 %v18792_v23, %v18792_v23  ;;  %6197 = vmatprep.subr.bf16.mxu0 %v14925_v39 }
0x18c5   : > { %6198 = vmatpush1.bf16.msra.mxu0 %v14924_v36  ;;  %6158 = vmatprep.subr.bf16.mxu1 %v14931_v29 }
0x18c6   : > { %v5303_v56 = vadd.f32 %v5302_v26, %v5301_v25  ;;  %6199 = vmatprep.subr.bf16.mxu0 %v14933_v45  ;;  %6159 = vmatpush1.bf16.msra.mxu1 %v14930_v42  ;;  %v5314_v26 = vrot.slane %v18658_v3, %v18541_v9  ;;  %v5344_v3 = vld [vmem:[#allocation7 + $0x450] sm:$0xff]  ;;  %v5353_v42 = vld [vmem:[#allocation7 + $0x498] sm:$0xff] }
0x18c7   : > { %6160 = vmatprep.subr.bf16.mxu1 %v14939_v48  ;;  %v14846_v45 = vcombine.low %v5344_v3, %v5348_v31  ;;  %v5360_v48 = vld [vmem:[#allocation7 + $0x4d0] sm:$0xff] }
0x18c8   : > { %5304 = vadd.xlane.f32.xlu1 %v5303_v56  ;;  %v5318_v56 = vrot.slane %v18712_v13, %v18541_v9  ;;  %v5345_v13 = vld [vmem:[#allocation7 + $0x458] sm:$0xff]  ;;  %v14863_v54 = vcombine.high %v5360_v48, %v5364_v49 }
0x18c9   : > { %6200 = vmatpush1.bf16.msra.mxu0 %v14932_v5  ;;  %v14849_v29 = vcombine.high %v5345_v13, %v5349_v38  ;;  %v5357_v5 = vld [vmem:[#allocation7 + $0x4b8] sm:$0xff]  ;;  %v14848_v50 = vcombine.low %v5345_v13, %v5349_v38 }
0x18ca   : > { %6201 = vmatprep.subr.bf16.mxu0 %v14941_v15  ;;  %6161 = vmatpush1.bf16.msra.mxu1 %v14938_v51  ;;  %v14857_v47 = vcombine.high %v5353_v42, %v5357_v5  ;;  %v5361_v51 = vld [vmem:[#allocation7 + $0x4d8] sm:$0xff]  ;;  %v14856_v53 = vcombine.low %v5353_v42, %v5357_v5 }
0x18cb   : > { %6162 = vmatprep.subr.bf16.mxu1 %v14947_v44  ;;  %v5368_v44 = vld [vmem:[#allocation7 + $0x510] sm:$0xff]  ;;  %v5405_v13 = vld [vmem:[#allocation7 + $0x638] sm:$0xff] }
0x18cc   : > { %v14871_v4 = vcombine.high %v5368_v44, %v5372_v57  ;;  %v5409_v42 = vld [vmem:[#allocation7 + $0x658] sm:$0xff] }
0x18cd   : > { %6202 = vmatpush1.bf16.msra.mxu0 %v14940_v52  ;;  %v5365_v52 = vld [vmem:[#allocation7 + $0x4f8] sm:$0xff] }
0x18ce   : > { %6203 = vmatprep.subr.bf16.mxu0 %v14949_v62  ;;  %6163 = vmatpush1.bf16.msra.mxu1 %v14946_v58  ;;  %v14865_v55 = vcombine.high %v5361_v51, %v5365_v52  ;;  %v5369_v58 = vld [vmem:[#allocation7 + $0x518] sm:$0xff]  ;;  %v14862_v62 = vcombine.low %v5360_v48, %v5364_v49  ;;  %v14864_v63 = vcombine.low %v5361_v51, %v5365_v52  ;;  %v5416_v48 = vld [vmem:[#allocation7 + $0x690] sm:$0xff] }
0x18cf   : > { %6164 = vmatprep.subr.bf16.mxu1 %v14955_v8  ;;  %v5376_v8 = vld [vmem:[#allocation7 + $0x550] sm:$0xff]  ;;  %v5413_v5 = vld [vmem:[#allocation7 + $0x678] sm:$0xff] }
0x18d0   : > { %v14879_v10 = vcombine.high %v5376_v8, %v5380_v43  ;;  %v5420_v49 = vld [vmem:[#allocation7 + $0x6b0] sm:$0xff]  ;;  %v5417_v51 = vld [vmem:[#allocation7 + $0x698] sm:$0xff] }
0x18d1   : > { %6204 = vmatpush1.bf16.msra.mxu0 %v14948_v59  ;;  %v5373_v59 = vld [vmem:[#allocation7 + $0x538] sm:$0xff] }
0x18d2   : > { %6205 = vmatprep.subr.bf16.mxu0 %v14957_v2  ;;  %6165 = vmatpush1.bf16.msra.mxu1 %v14954_v11  ;;  %v14873_v7 = vcombine.high %v5369_v58, %v5373_v59  ;;  %v5377_v11 = vld [vmem:[#allocation7 + $0x558] sm:$0xff]  ;;  %v14872_v60 = vcombine.low %v5369_v58, %v5373_v59 }
0x18d3   : > { %6216 = vmatprep.subr.bf16.mxu1 %v14839_v22  ;;  %v5381_v2 = vld [vmem:[#allocation7 + $0x578] sm:$0xff]  ;;  %v5384_v22 = vld [vmem:[#allocation7 + $0x590] sm:$0xff] }
0x18d4   : > { %v14881_v46 = vcombine.high %v5377_v11, %v5381_v2  ;;  %v5421_v52 = vld [vmem:[#allocation7 + $0x6b8] sm:$0xff] }
0x18d5   : > { %6206 = vmatpush1.bf16.msra.mxu0 %v14956_v12  ;;  %v14870_v12 = vcombine.low %v5368_v44, %v5372_v57  ;;  %v5424_v44 = vld [vmem:[#allocation7 + $0x6d0] sm:$0xff]  ;;  %v5425_v58 = vld [vmem:[#allocation7 + $0x6d8] sm:$0xff] }
0x18d6   : > { %6257 = vmatprep.subr.bf16.mxu0 %v14841_v14  ;;  %v14878_v14 = vcombine.low %v5376_v8, %v5380_v43  ;;  %v5428_v57 = vld [vmem:[#allocation7 + $0x6f0] sm:$0xff]  ;;  %v5429_v59 = vld [vmem:[#allocation7 + $0x6f8] sm:$0xff] }
0x18d7   : > { %v5432_v8 = vld [vmem:[#allocation7 + $0x710] sm:$0xff] }
0x18d8   : > { %v5436_v43 = vld [vmem:[#allocation7 + $0x730] sm:$0xff] }
0x1955   : > { %v5305_v19 = vpop.xlane.xlu1 %5304 }
0x1956   : > { %v5306_v16 = vmul.f32 0.00390625, %v5305_v19  ;;  %v14880_v19 = vcombine.low %v5377_v11, %v5381_v2  ;;  %v5433_v11 = vld [vmem:[#allocation7 + $0x718] sm:$0xff] }
0x1957   : > { %v5437_v2 = vld [vmem:[#allocation7 + $0x738] sm:$0xff] }
0x1958   : > { %v5307_v25 = vadd.f32 1e-05, %v5306_v16  ;;  %v14887_v16 = vcombine.high %v5384_v22, %v5388_v1 }
0x195a   : > { %17836 = vrsqrt.f32 %v5307_v25 }
0x1964   : > { %v17837_v27 = vpop.eup %17836 }
0x1965   : > { %v5309_v61 = vmul.f32 %v17837_v27, %v18789_v24  ;;  %v5310_v30 = vmul.f32 %v17837_v27, %v18792_v23  ;;  %v5352_v24 = vld [vmem:[#allocation7 + $0x490] sm:$0xff]  ;;  %v14847_v23 = vcombine.high %v5344_v3, %v5348_v31  ;;  %v5393_v27 = vld [vmem:[#allocation7 + $0x5d8] sm:$0xff] }
0x1966   : > { %v14855_v34 = vcombine.high %v5352_v24, %v5356_v41  ;;  %v14854_v15 = vcombine.low %v5352_v24, %v5356_v41  ;;  %v5404_v3 = vld [vmem:[#allocation7 + $0x630] sm:$0xff]  ;;  %v5401_v31 = vld [vmem:[#allocation7 + $0x618] sm:$0xff] }
0x1967   : > { %v5320_v32 = vmul.f32 %v5318_v56, %v5310_v30  ;;  %v5319_v36 = vmul.f32 %v5314_v26, %v5309_v61  ;;  %v5392_v26 = vld [vmem:[#allocation7 + $0x5d0] sm:$0xff] }
0x1968   : > { %v5396_v56 = vld [vmem:[#allocation7 + $0x5f0] sm:$0xff] }
0x1969   : > { %v18808_v39 = vadd.f32 %v5328_v28, %v5320_v32  ;;  %v18810_v40 = vadd.f32 %v5324_v33, %v5319_v36  ;;  %v5397_v33 = vld [vmem:[#allocation7 + $0x5f8] sm:$0xff]  ;;  %v14886_v28 = vcombine.low %v5384_v22, %v5388_v1  ;;  %v14895_v30 = vcombine.high %v5392_v26, %v5396_v56  ;;  %v5400_v36 = vld [vmem:[#allocation7 + $0x610] sm:$0xff] }
0x196a   : > { %v14897_v32 = vcombine.high %v5393_v27, %v5397_v33  ;;  %v14894_v38 = vcombine.low %v5392_v26, %v5396_v56  ;;  %v14903_v24 = vcombine.high %v5400_v36, %v5404_v3  ;;  %v5412_v41 = vld [vmem:[#allocation7 + $0x670] sm:$0xff] }
0x196b   : > { %v5332_v6 = vpack.c.bf16 %v18808_v39, %v18808_v39  ;;  %v18816_v20 = vpack.c.bf16 %v18810_v40, %v18810_v40  ;;  %v5440_v22 = vld [vmem:[#allocation7 + $0x750] sm:$0xff] }
0x196c   : > { %v5444_v1 = vld [vmem:[#allocation7 + $0x770] sm:$0xff] }
0x196d   : > { %6166 = vmatprep.mubr.bf16.mxu1 %v5332_v6  ;;  %6207 = vmatprep.mubr.bf16.mxu0 %v5332_v6  ;;  %v5448_v26 = vld [vmem:[#allocation7 + $0x790] sm:$0xff] }
0x196e   : > { %6167 = vmatmul.mubr.bf16.vlgmr.msra.gmra.mrb[92].mxu1 %v18816_v20  ;;  %6208 = vmatmul.mubr.bf16.vlgmr.msra.gmra.mrb[36].mxu0 %v18816_v20  ;;  %v5452_v56 = vld [vmem:[#allocation7 + $0x7b0] sm:$0xff] }
0x196f   : > { %6217 = vmatpush1.bf16.msra.mxu1 %v14838_v21  ;;  %6258 = vmatpush1.bf16.msra.mxu0 %v14840_v37  ;;  %v5385_v21 = vld [vmem:[#allocation7 + $0x598] sm:$0xff] }
0x1970   : > { %6248 = vmatprep.mubr.bf16.mxu1 %v5332_v6  ;;  %6289 = vmatprep.mubr.bf16.mxu0 %v5332_v6  ;;  %v5389_v37 = vld [vmem:[#allocation7 + $0x5b8] sm:$0xff]  ;;  %v14896_v6 = vcombine.low %v5393_v27, %v5397_v33 }
0x1971   : > { %6218 = vmatprep.subr.bf16.mxu1 %v14847_v23  ;;  %6259 = vmatprep.subr.bf16.mxu0 %v14849_v29  ;;  %v14889_v25 = vcombine.high %v5385_v21, %v5389_v37  ;;  %v14888_v61 = vcombine.low %v5385_v21, %v5389_v37  ;;  %v14905_v23 = vcombine.high %v5401_v31, %v5405_v13  ;;  %v5408_v29 = vld [vmem:[#allocation7 + $0x650] sm:$0xff]  ;;  %v5441_v21 = vld [vmem:[#allocation7 + $0x758] sm:$0xff] }
0x1972   : > { %v5445_v37 = vld [vmem:[#allocation7 + $0x778] sm:$0xff] }
0x1973   : > { %6219 = vmatpush1.bf16.msra.mxu1 %v14846_v45  ;;  %6260 = vmatpush1.bf16.msra.mxu0 %v14848_v50  ;;  %v14902_v45 = vcombine.low %v5400_v36, %v5404_v3  ;;  %v14904_v50 = vcombine.low %v5401_v31, %v5405_v13  ;;  %v5449_v27 = vld [vmem:[#allocation7 + $0x798] sm:$0xff]  ;;  %v5456_v36 = vld [vmem:[#allocation7 + $0x7d0] sm:$0xff] }
0x1974   : > { %6220 = vmatprep.subr.bf16.mxu1 %v14855_v34  ;;  %6261 = vmatprep.subr.bf16.mxu0 %v14857_v47  ;;  %v14911_v34 = vcombine.high %v5408_v29, %v5412_v41  ;;  %v14913_v47 = vcombine.high %v5409_v42, %v5413_v5  ;;  %v5453_v33 = vld [vmem:[#allocation7 + $0x7b8] sm:$0xff]  ;;  %v5460_v3 = vld [vmem:[#allocation7 + $0x7f0] sm:$0xff] }
0x1975   : > { %v5457_v31 = vld [vmem:[#allocation7 + $0x7d8] sm:$0xff] }
0x1976   : > { %v5461_v13 = vld [vmem:[#allocation7 + $0x7f8] sm:$0xff] }
0x1977   : > { %6221 = vmatpush1.bf16.msra.mxu1 %v14854_v15  ;;  %6262 = vmatpush1.bf16.msra.mxu0 %v14856_v53  ;;  %v14910_v15 = vcombine.low %v5408_v29, %v5412_v41  ;;  %v14912_v53 = vcombine.low %v5409_v42, %v5413_v5  ;;  %v14958_v29 = vcombine.low %v5456_v36, %v5460_v3  ;;  %v16840_v42 = vld [vmem:[#allocation8 + $0x404] ss:$8 sps:$4 sm:$0xff]  }
0x1978   : > { %6222 = vmatprep.subr.bf16.mxu1 %v14863_v54  ;;  %6263 = vmatprep.subr.bf16.mxu0 %v14865_v55  ;;  %v14919_v54 = vcombine.high %v5416_v48, %v5420_v49  ;;  %v14921_v55 = vcombine.high %v5417_v51, %v5421_v52  ;;  %v14960_v41 = vcombine.low %v5457_v31, %v5461_v13  ;;  %v16843_v5 = vld [vmem:[#allocation8 + $0x504] ss:$8 sps:$4 sm:$0xff]  }
0x197b   : > { %6223 = vmatpush1.bf16.msra.mxu1 %v14862_v62  ;;  %6264 = vmatpush1.bf16.msra.mxu0 %v14864_v63  ;;  %v14918_v62 = vcombine.low %v5416_v48, %v5420_v49  ;;  %v14920_v63 = vcombine.low %v5417_v51, %v5421_v52  ;;  %v16844_v48 = vld [vmem:[#allocation8 + $0x410] ss:$8 sps:$4 sm:$0xff]   ;;  %v16852_v51 = vld [vmem:[#allocation8 + $0x424] ss:$8 sps:$4 sm:$0xff]  }
0x197c   : > { %6224 = vmatprep.subr.bf16.mxu1 %v14871_v4  ;;  %6265 = vmatprep.subr.bf16.mxu0 %v14873_v7  ;;  %v14927_v4 = vcombine.high %v5424_v44, %v5428_v57  ;;  %v14929_v7 = vcombine.high %v5425_v58, %v5429_v59  ;;  %v16847_v49 = vld [vmem:[#allocation8 + $0x510] ss:$8 sps:$4 sm:$0xff]   ;;  %v16855_v52 = vld [vmem:[#allocation8 + $0x524] ss:$8 sps:$4 sm:$0xff]  }
0x197f   : > { %6225 = vmatpush1.bf16.msra.mxu1 %v14870_v12  ;;  %6266 = vmatpush1.bf16.msra.mxu0 %v14872_v60  ;;  %v14926_v12 = vcombine.low %v5424_v44, %v5428_v57  ;;  %v14928_v60 = vcombine.low %v5425_v58, %v5429_v59  ;;  %v16856_v44 = vld [vmem:[#allocation8 + $0x430] ss:$8 sps:$4 sm:$0xff]   ;;  %v16864_v57 = vld [vmem:[#allocation8 + $0x444] ss:$8 sps:$4 sm:$0xff]   ;;  %v16862_v59 = vld [vmem:[#allocation8 + $0x440] ss:$8 sps:$4 sm:$0xff]  }
0x1980   : > { %6226 = vmatprep.subr.bf16.mxu1 %v14879_v10  ;;  %6267 = vmatprep.subr.bf16.mxu0 %v14881_v46  ;;  %v14935_v10 = vcombine.high %v5432_v8, %v5436_v43  ;;  %v14937_v46 = vcombine.high %v5433_v11, %v5437_v2  ;;  %v16867_v58 = vld [vmem:[#allocation8 + $0x544] ss:$8 sps:$4 sm:$0xff]  }
0x1983   : > { %6227 = vmatpush1.bf16.msra.mxu1 %v14878_v14  ;;  %6268 = vmatpush1.bf16.msra.mxu0 %v14880_v19  ;;  %v14934_v14 = vcombine.low %v5432_v8, %v5436_v43  ;;  %v14936_v19 = vcombine.low %v5433_v11, %v5437_v2  ;;  %v16871_v8 = vld [vmem:[#allocation8 + $0x550] ss:$8 sps:$4 sm:$0xff]   ;;  %v16876_v43 = vld [vmem:[#allocation8 + $0x464] ss:$8 sps:$4 sm:$0xff]   ;;  %v16874_v2 = vld [vmem:[#allocation8 + $0x460] ss:$8 sps:$4 sm:$0xff]  }
0x1984   : > { %6228 = vmatprep.subr.bf16.mxu1 %v14887_v16  ;;  %6269 = vmatprep.subr.bf16.mxu0 %v14889_v25  ;;  %v14943_v16 = vcombine.high %v5440_v22, %v5444_v1  ;;  %v14945_v25 = vcombine.high %v5441_v21, %v5445_v37  ;;  %v16879_v11 = vld [vmem:[#allocation8 + $0x564] ss:$8 sps:$4 sm:$0xff]  }
0x1987   : > { %6229 = vmatpush1.bf16.msra.mxu1 %v14886_v28  ;;  %6270 = vmatpush1.bf16.msra.mxu0 %v14888_v61  ;;  %v14942_v28 = vcombine.low %v5440_v22, %v5444_v1  ;;  %v14944_v61 = vcombine.low %v5441_v21, %v5445_v37  ;;  %v16883_v22 = vld [vmem:[#allocation8 + $0x570] ss:$8 sps:$4 sm:$0xff]   ;;  %v16888_v1 = vld [vmem:[#allocation8 + $0x484] ss:$8 sps:$4 sm:$0xff]   ;;  %v16886_v37 = vld [vmem:[#allocation8 + $0x480] ss:$8 sps:$4 sm:$0xff]  }
0x1988   : > { %6230 = vmatprep.subr.bf16.mxu1 %v14895_v30  ;;  %6271 = vmatprep.subr.bf16.mxu0 %v14897_v32  ;;  %v14951_v30 = vcombine.high %v5448_v26, %v5452_v56  ;;  %v14953_v32 = vcombine.high %v5449_v27, %v5453_v33  ;;  %v16891_v21 = vld [vmem:[#allocation8 + $0x584] ss:$8 sps:$4 sm:$0xff]  }
0x198b   : > { %6231 = vmatpush1.bf16.msra.mxu1 %v14894_v38  ;;  %6272 = vmatpush1.bf16.msra.mxu0 %v14896_v6  ;;  %v14950_v38 = vcombine.low %v5448_v26, %v5452_v56  ;;  %v14952_v6 = vcombine.low %v5449_v27, %v5453_v33  ;;  %v16895_v26 = vld [vmem:[#allocation8 + $0x590] ss:$8 sps:$4 sm:$0xff]   ;;  %v16900_v56 = vld [vmem:[#allocation8 + $0x4a4] ss:$8 sps:$4 sm:$0xff]   ;;  %v16898_v33 = vld [vmem:[#allocation8 + $0x4a0] ss:$8 sps:$4 sm:$0xff]  }
0x198c   : > { %6232 = vmatprep.subr.bf16.mxu1 %v14903_v24  ;;  %6273 = vmatprep.subr.bf16.mxu0 %v14905_v23  ;;  %v14959_v24 = vcombine.high %v5456_v36, %v5460_v3  ;;  %v14961_v23 = vcombine.high %v5457_v31, %v5461_v13  ;;  %v16903_v27 = vld [vmem:[#allocation8 + $0x5a4] ss:$8 sps:$4 sm:$0xff]   ;;  %v16907_v36 = vld [vmem:[#allocation8 + $0x5b0] ss:$8 sps:$4 sm:$0xff]   ;;  %v16910_v13 = vld [vmem:[#allocation8 + $0x4c0] ss:$8 sps:$4 sm:$0xff]  }
0x198d   : > { %v16912_v3 = vld [vmem:[#allocation8 + $0x4c4] ss:$8 sps:$4 sm:$0xff]  }
0x198e   : > { %v16915_v31 = vld [vmem:[#allocation8 + $0x5c4] ss:$8 sps:$4 sm:$0xff]  }
0x198f   : > { %6233 = vmatpush1.bf16.msra.mxu1 %v14902_v45  ;;  %6274 = vmatpush1.bf16.msra.mxu0 %v14904_v50  ;;  %v16838_v45 = vld [vmem:[#allocation8 + $0x400] ss:$8 sps:$4 sm:$0xff]  }
0x1990   : > { %6234 = vmatprep.subr.bf16.mxu1 %v14911_v34  ;;  %6275 = vmatprep.subr.bf16.mxu0 %v14913_v47  ;;  %v16841_v50 = vld [vmem:[#allocation8 + $0x500] ss:$8 sps:$4 sm:$0xff]   ;;  %v16846_v34 = vld [vmem:[#allocation8 + $0x414] ss:$8 sps:$4 sm:$0xff]  }
0x1991   : > { %v16849_v47 = vld [vmem:[#allocation8 + $0x514] ss:$8 sps:$4 sm:$0xff]  }
0x1993   : > { %6235 = vmatpush1.bf16.msra.mxu1 %v14910_v15  ;;  %6276 = vmatpush1.bf16.msra.mxu0 %v14912_v53  ;;  %v16850_v15 = vld [vmem:[#allocation8 + $0x420] ss:$8 sps:$4 sm:$0xff]  }
0x1994   : > { %6236 = vmatprep.subr.bf16.mxu1 %v14919_v54  ;;  %6277 = vmatprep.subr.bf16.mxu0 %v14921_v55  ;;  %v16853_v53 = vld [vmem:[#allocation8 + $0x520] ss:$8 sps:$4 sm:$0xff]   ;;  %v16858_v54 = vld [vmem:[#allocation8 + $0x434] ss:$8 sps:$4 sm:$0xff]  }
0x1995   : > { %v16861_v55 = vld [vmem:[#allocation8 + $0x534] ss:$8 sps:$4 sm:$0xff]  }
0x1997   : > { %6237 = vmatpush1.bf16.msra.mxu1 %v14918_v62  ;;  %6278 = vmatpush1.bf16.msra.mxu0 %v14920_v63  ;;  %v16865_v62 = vld [vmem:[#allocation8 + $0x540] ss:$8 sps:$4 sm:$0xff]   ;;  %v16870_v63 = vld [vmem:[#allocation8 + $0x454] ss:$8 sps:$4 sm:$0xff]  }
0x1998   : > { %6238 = vmatprep.subr.bf16.mxu1 %v14927_v4  ;;  %6279 = vmatprep.subr.bf16.mxu0 %v14929_v7  ;;  %v16873_v4 = vld [vmem:[#allocation8 + $0x554] ss:$8 sps:$4 sm:$0xff]   ;;  %v16868_v7 = vld [vmem:[#allocation8 + $0x450] ss:$8 sps:$4 sm:$0xff]  }
0x199b   : > { %6239 = vmatpush1.bf16.msra.mxu1 %v14926_v12  ;;  %6280 = vmatpush1.bf16.msra.mxu0 %v14928_v60  ;;  %v16877_v12 = vld [vmem:[#allocation8 + $0x560] ss:$8 sps:$4 sm:$0xff]   ;;  %v16882_v60 = vld [vmem:[#allocation8 + $0x474] ss:$8 sps:$4 sm:$0xff]  }
0x199c   : > { %6240 = vmatprep.subr.bf16.mxu1 %v14935_v10  ;;  %6281 = vmatprep.subr.bf16.mxu0 %v14937_v46  ;;  %v16885_v10 = vld [vmem:[#allocation8 + $0x574] ss:$8 sps:$4 sm:$0xff]   ;;  %v16880_v46 = vld [vmem:[#allocation8 + $0x470] ss:$8 sps:$4 sm:$0xff]  }
0x199f   : > { %6241 = vmatpush1.bf16.msra.mxu1 %v14934_v14  ;;  %6282 = vmatpush1.bf16.msra.mxu0 %v14936_v19  ;;  %v16889_v14 = vld [vmem:[#allocation8 + $0x580] ss:$8 sps:$4 sm:$0xff]   ;;  %v16894_v19 = vld [vmem:[#allocation8 + $0x494] ss:$8 sps:$4 sm:$0xff]  }
0x19a0   : > { %6242 = vmatprep.subr.bf16.mxu1 %v14943_v16  ;;  %6283 = vmatprep.subr.bf16.mxu0 %v14945_v25  ;;  %v16897_v16 = vld [vmem:[#allocation8 + $0x594] ss:$8 sps:$4 sm:$0xff]   ;;  %v16892_v25 = vld [vmem:[#allocation8 + $0x490] ss:$8 sps:$4 sm:$0xff]  }
0x19a3   : > { %6243 = vmatpush1.bf16.msra.mxu1 %v14942_v28  ;;  %6284 = vmatpush1.bf16.msra.mxu0 %v14944_v61  ;;  %v16901_v28 = vld [vmem:[#allocation8 + $0x5a0] ss:$8 sps:$4 sm:$0xff]   ;;  %v16906_v61 = vld [vmem:[#allocation8 + $0x4b4] ss:$8 sps:$4 sm:$0xff]  }
0x19a4   : > { %6244 = vmatprep.subr.bf16.mxu1 %v14951_v30  ;;  %6285 = vmatprep.subr.bf16.mxu0 %v14953_v32  ;;  %v16909_v30 = vld [vmem:[#allocation8 + $0x5b4] ss:$8 sps:$4 sm:$0xff]   ;;  %v16904_v32 = vld [vmem:[#allocation8 + $0x4b0] ss:$8 sps:$4 sm:$0xff]  }
0x19a7   : > { %6245 = vmatpush1.bf16.msra.mxu1 %v14950_v38  ;;  %6286 = vmatpush1.bf16.msra.mxu0 %v14952_v6  ;;  %v16913_v38 = vld [vmem:[#allocation8 + $0x5c0] ss:$8 sps:$4 sm:$0xff]   ;;  %v16918_v6 = vld [vmem:[#allocation8 + $0x4d4] ss:$8 sps:$4 sm:$0xff]  }
0x19a8   : > { %6246 = vmatprep.subr.bf16.mxu1 %v14959_v24  ;;  %6287 = vmatprep.subr.bf16.mxu0 %v14961_v23  ;;  %v16921_v24 = vld [vmem:[#allocation8 + $0x5d4] ss:$8 sps:$4 sm:$0xff]   ;;  %v16916_v23 = vld [vmem:[#allocation8 + $0x4d0] ss:$8 sps:$4 sm:$0xff]  }
0x19ab   : > { %6247 = vmatpush1.bf16.msra.mxu1 %v14958_v29  ;;  %6288 = vmatpush1.bf16.msra.mxu0 %v14960_v41  ;;  %v16919_v29 = vld [vmem:[#allocation8 + $0x5d0] ss:$8 sps:$4 sm:$0xff]   ;;  %v16924_v41 = vld [vmem:[#allocation8 + $0x4e4] ss:$8 sps:$4 sm:$0xff]  }
0x19ac   : > { %7091 = vmatprep.subr.bf16.mxu1 %v16840_v42  ;;  %7132 = vmatprep.subr.bf16.mxu0 %v16843_v5  ;;  %v16927_v42 = vld [vmem:[#allocation8 + $0x5e4] ss:$8 sps:$4 sm:$0xff]   ;;  %v16922_v5 = vld [vmem:[#allocation8 + $0x4e0] ss:$8 sps:$4 sm:$0xff]  }
0x19ae   : > { %6249 = vmatmul.mubr.bf16.vlgmr.msra.gmra.mrb[96].mxu1 %v18816_v20  ;;  %6290 = vmatmul.mubr.bf16.vlgmr.msra.gmra.mrb[40].mxu0 %v18816_v20  ;;  %v16859_v20 = vld [vmem:[#allocation8 + $0x530] ss:$8 sps:$4 sm:$0xff]  }
0x19af   : > { %7092 = vmatpush1.bf16.msra.mxu1 %v16838_v45  ;;  %7133 = vmatpush1.bf16.msra.mxu0 %v16841_v50  ;;  %v16925_v45 = vld [vmem:[#allocation8 + $0x5e0] ss:$8 sps:$4 sm:$0xff]   ;;  %v16930_v50 = vld [vmem:[#allocation8 + $0x4f4] ss:$8 sps:$4 sm:$0xff]  }
0x19b0   : > { %7093 = vmatprep.subr.bf16.mxu1 %v16846_v34  ;;  %7134 = vmatprep.subr.bf16.mxu0 %v16849_v47  ;;  %v16933_v34 = vld [vmem:[#allocation8 + $0x5f4] ss:$8 sps:$4 sm:$0xff]   ;;  %v16928_v47 = vld [vmem:[#allocation8 + $0x4f0] ss:$8 sps:$4 sm:$0xff]  }
0x19b3   : > { %7094 = vmatpush1.bf16.msra.mxu1 %v16844_v48  ;;  %7135 = vmatpush1.bf16.msra.mxu0 %v16847_v49  ;;  %v16931_v48 = vld [vmem:[#allocation8 + $0x5f0] ss:$8 sps:$4 sm:$0xff]   ;;  %v16936_v49 = vld [vmem:[#allocation8 + $0x604] ss:$8 sps:$4 sm:$0xff]  }
0x19b4   : > { %7095 = vmatprep.subr.bf16.mxu1 %v16852_v51  ;;  %7136 = vmatprep.subr.bf16.mxu0 %v16855_v52  ;;  %v16939_v51 = vld [vmem:[#allocation8 + $0x704] ss:$8 sps:$4 sm:$0xff]  }
0x19b5   : > { %v18825_v52 = vld [vmem:[%s19386_s7 + $0x40] sm:$0xff] }
0x19b7   : > { %7096 = vmatpush1.bf16.msra.mxu1 %v16850_v15  ;;  %7137 = vmatpush1.bf16.msra.mxu0 %v16853_v53  ;;  %v5465_v15 = vrot.slane %v18825_v52, %v18358_v17  ;;  %v17890_v53 = vld [vmem:[%s19386_s7 + $0x50] sm:$0xff] }
0x19b8   : > { %7097 = vmatprep.subr.bf16.mxu1 %v16858_v54  ;;  %7138 = vmatprep.subr.bf16.mxu0 %v16861_v55  ;;  %v5473_v54 = vrot.slane %v17890_v53, %v18358_v17  ;;  %v18836_v55 = vld [vmem:[%s19386_s7 + $0x48] sm:$0xff] }
0x19b9   : > { %v16984_v53 = vld [vmem:[#allocation8 + $0x684] ss:$8 sps:$4 sm:$0xff]  }
0x19bb   : > { %7098 = vmatpush1.bf16.msra.mxu1 %v16856_v44  ;;  %7139 = vmatpush1.bf16.msra.mxu0 %v16859_v20  ;;  %v5469_v44 = vrot.slane %v18836_v55, %v18358_v17  ;;  %v17892_v20 = vld [vmem:[%s19386_s7 + $0x58] sm:$0xff] }
0x19bc   : > { %7099 = vmatprep.subr.bf16.mxu1 %v16864_v57  ;;  %7140 = vmatprep.subr.bf16.mxu0 %v16867_v58  ;;  %v5477_v57 = vrot.slane %v17892_v20, %v18358_v17  ;;  %v16985_v20 = vld [vmem:[#allocation8 + $0x780] ss:$8 sps:$4 sm:$0xff]  }
0x19bf   : > { %7100 = vmatpush1.bf16.msra.mxu1 %v16862_v59  ;;  %7141 = vmatpush1.bf16.msra.mxu0 %v16865_v62 }
0x19c0   : > { %7101 = vmatprep.subr.bf16.mxu1 %v16870_v63  ;;  %7142 = vmatprep.subr.bf16.mxu0 %v16873_v4 }
0x19c3   : > { %7102 = vmatpush1.bf16.msra.mxu1 %v16868_v7  ;;  %7143 = vmatpush1.bf16.msra.mxu0 %v16871_v8 }
0x19c4   : > { %7103 = vmatprep.subr.bf16.mxu1 %v16876_v43  ;;  %7144 = vmatprep.subr.bf16.mxu0 %v16879_v11 }
0x19c7   : > { %7104 = vmatpush1.bf16.msra.mxu1 %v16874_v2  ;;  %7145 = vmatpush1.bf16.msra.mxu0 %v16877_v12 }
0x19c8   : > { %7105 = vmatprep.subr.bf16.mxu1 %v16882_v60  ;;  %7146 = vmatprep.subr.bf16.mxu0 %v16885_v10 }
0x19cb   : > { %7106 = vmatpush1.bf16.msra.mxu1 %v16880_v46  ;;  %7147 = vmatpush1.bf16.msra.mxu0 %v16883_v22 }
0x19cc   : > { %7107 = vmatprep.subr.bf16.mxu1 %v16888_v1  ;;  %7148 = vmatprep.subr.bf16.mxu0 %v16891_v21 }
0x19cf   : > { %7108 = vmatpush1.bf16.msra.mxu1 %v16886_v37  ;;  %7149 = vmatpush1.bf16.msra.mxu0 %v16889_v14  ;;  %v16934_v14 = vld [vmem:[#allocation8 + $0x600] ss:$8 sps:$4 sm:$0xff]  }
0x19d0   : > { %7109 = vmatprep.subr.bf16.mxu1 %v16894_v19  ;;  %7150 = vmatprep.subr.bf16.mxu0 %v16897_v16  ;;  %v16937_v19 = vld [vmem:[#allocation8 + $0x700] ss:$8 sps:$4 sm:$0xff]  }
0x19d3   : > { %7110 = vmatpush1.bf16.msra.mxu1 %v16892_v25  ;;  %7151 = vmatpush1.bf16.msra.mxu0 %v16895_v26  ;;  %v16942_v26 = vld [vmem:[#allocation8 + $0x614] ss:$8 sps:$4 sm:$0xff]  }
0x19d4   : > { %7111 = vmatprep.subr.bf16.mxu1 %v16900_v56  ;;  %7152 = vmatprep.subr.bf16.mxu0 %v16903_v27  ;;  %v16945_v56 = vld [vmem:[#allocation8 + $0x714] ss:$8 sps:$4 sm:$0xff]   ;;  %v16940_v27 = vld [vmem:[#allocation8 + $0x610] ss:$8 sps:$4 sm:$0xff]  }
0x19d7   : > { %7112 = vmatpush1.bf16.msra.mxu1 %v16898_v33  ;;  %7153 = vmatpush1.bf16.msra.mxu0 %v16901_v28  ;;  %v16943_v33 = vld [vmem:[#allocation8 + $0x710] ss:$8 sps:$4 sm:$0xff]   ;;  %v16948_v28 = vld [vmem:[#allocation8 + $0x624] ss:$8 sps:$4 sm:$0xff]  }
0x19d8   : > { %7113 = vmatprep.subr.bf16.mxu1 %v16906_v61  ;;  %7154 = vmatprep.subr.bf16.mxu0 %v16909_v30  ;;  %v16951_v61 = vld [vmem:[#allocation8 + $0x724] ss:$8 sps:$4 sm:$0xff]   ;;  %v16946_v30 = vld [vmem:[#allocation8 + $0x620] ss:$8 sps:$4 sm:$0xff]  }
0x19db   : > { %7114 = vmatpush1.bf16.msra.mxu1 %v16904_v32  ;;  %7155 = vmatpush1.bf16.msra.mxu0 %v16907_v36  ;;  %v16949_v32 = vld [vmem:[#allocation8 + $0x720] ss:$8 sps:$4 sm:$0xff]   ;;  %v16954_v36 = vld [vmem:[#allocation8 + $0x634] ss:$8 sps:$4 sm:$0xff]  }
0x19dc   : > { %7115 = vmatprep.subr.bf16.mxu1 %v16912_v3  ;;  %7156 = vmatprep.subr.bf16.mxu0 %v16915_v31  ;;  %v16957_v3 = vld [vmem:[#allocation8 + $0x734] ss:$8 sps:$4 sm:$0xff]   ;;  %v16952_v31 = vld [vmem:[#allocation8 + $0x630] ss:$8 sps:$4 sm:$0xff]  }
0x19df   : > { %7116 = vmatpush1.bf16.msra.mxu1 %v16910_v13  ;;  %7157 = vmatpush1.bf16.msra.mxu0 %v16913_v38  ;;  %v16955_v13 = vld [vmem:[#allocation8 + $0x730] ss:$8 sps:$4 sm:$0xff]   ;;  %v16960_v38 = vld [vmem:[#allocation8 + $0x644] ss:$8 sps:$4 sm:$0xff]  }
0x19e0   : > { %7117 = vmatprep.subr.bf16.mxu1 %v16918_v6  ;;  %7158 = vmatprep.subr.bf16.mxu0 %v16921_v24  ;;  %v16963_v6 = vld [vmem:[#allocation8 + $0x744] ss:$8 sps:$4 sm:$0xff]   ;;  %v16958_v24 = vld [vmem:[#allocation8 + $0x640] ss:$8 sps:$4 sm:$0xff]  }
0x19e3   : > { %7118 = vmatpush1.bf16.msra.mxu1 %v16916_v23  ;;  %7159 = vmatpush1.bf16.msra.mxu0 %v16919_v29  ;;  %v16961_v23 = vld [vmem:[#allocation8 + $0x740] ss:$8 sps:$4 sm:$0xff]   ;;  %v16966_v29 = vld [vmem:[#allocation8 + $0x654] ss:$8 sps:$4 sm:$0xff]  }
0x19e4   : > { %7119 = vmatprep.subr.bf16.mxu1 %v16924_v41  ;;  %7160 = vmatprep.subr.bf16.mxu0 %v16927_v42  ;;  %v16969_v41 = vld [vmem:[#allocation8 + $0x754] ss:$8 sps:$4 sm:$0xff]   ;;  %v16964_v42 = vld [vmem:[#allocation8 + $0x650] ss:$8 sps:$4 sm:$0xff]  }
0x19e7   : > { %7120 = vmatpush1.bf16.msra.mxu1 %v16922_v5  ;;  %7161 = vmatpush1.bf16.msra.mxu0 %v16925_v45  ;;  %v16967_v5 = vld [vmem:[#allocation8 + $0x750] ss:$8 sps:$4 sm:$0xff]   ;;  %v16972_v45 = vld [vmem:[#allocation8 + $0x664] ss:$8 sps:$4 sm:$0xff]  }
0x19e8   : > { %7121 = vmatprep.subr.bf16.mxu1 %v16930_v50  ;;  %7162 = vmatprep.subr.bf16.mxu0 %v16933_v34  ;;  %v16975_v50 = vld [vmem:[#allocation8 + $0x764] ss:$8 sps:$4 sm:$0xff]   ;;  %v16970_v34 = vld [vmem:[#allocation8 + $0x660] ss:$8 sps:$4 sm:$0xff]  }
0x19eb   : > { %7122 = vmatpush1.bf16.msra.mxu1 %v16928_v47  ;;  %7163 = vmatpush1.bf16.msra.mxu0 %v16931_v48  ;;  %v16973_v47 = vld [vmem:[#allocation8 + $0x760] ss:$8 sps:$4 sm:$0xff]   ;;  %v16978_v48 = vld [vmem:[#allocation8 + $0x674] ss:$8 sps:$4 sm:$0xff]  }
0x19ec   : > { %7173 = vmatprep.subr.bf16.mxu1 %v16936_v49  ;;  %7214 = vmatprep.subr.bf16.mxu0 %v16939_v51  ;;  %v16981_v49 = vld [vmem:[#allocation8 + $0x774] ss:$8 sps:$4 sm:$0xff]   ;;  %v16976_v51 = vld [vmem:[#allocation8 + $0x670] ss:$8 sps:$4 sm:$0xff]  }
0x1a41   : > { %v6168_v58 = vpop.f32.mrb[92].mxu1  ;;  %v6209_v59 = vpop.f32.mrb[36].mxu0 }
0x1a42   : > { %v6169_v62 = vadd.f32 %v6168_v58, %v5465_v15  ;;  %v6210_v63 = vadd.f32 %v6209_v59, %v5473_v54  ;;  %v6170_v4 = vpop.f32.mrb[93].mxu1  ;;  %v6211_v7 = vpop.f32.mrb[37].mxu0  ;;  %v16979_v15 = vld [vmem:[#allocation8 + $0x770] ss:$8 sps:$4 sm:$0xff]   ;;  %v16987_v54 = vld [vmem:[#allocation8 + $0x784] ss:$8 sps:$4 sm:$0xff]  }
0x1a43   : > { %v6171_v8 = vadd.f32 %v6170_v4, %v5469_v44  ;;  %v6212_v43 = vadd.f32 %v6211_v7, %v5477_v57  ;;  %v6172_v11 = vpop.f32.mrb[94].mxu1  ;;  %v6213_v2 = vpop.f32.mrb[38].mxu0  ;;  %v16982_v44 = vld [vmem:[#allocation8 + $0x680] ss:$8 sps:$4 sm:$0xff]   ;;  %v16990_v57 = vld [vmem:[#allocation8 + $0x694] ss:$8 sps:$4 sm:$0xff]  }
0x1a44   : > { %v6298_v12 = vmax.f32 %v6169_v62, 0.0  ;;  %v6300_v60 = vmax.f32 %v6210_v63, 0.0  ;;  %v6173_v10 = vpop.f32.mrb[95].mxu1  ;;  %v6214_v46 = vpop.f32.mrb[39].mxu0  ;;  %v16993_v58 = vld [vmem:[#allocation8 + $0x794] ss:$8 sps:$4 sm:$0xff]  }
0x1a45   : > { %v6299_v22 = vmax.f32 %v6171_v8, 0.0  ;;  %v6301_v1 = vmax.f32 %v6212_v43, 0.0  ;;  %v16988_v59 = vld [vmem:[#allocation8 + $0x690] ss:$8 sps:$4 sm:$0xff]   ;;  %v16996_v63 = vld [vmem:[#allocation8 + $0x6a4] ss:$8 sps:$4 sm:$0xff]  }
0x1a46   : > { %v6306_v16 = vpack.c.bf16 %v6298_v12, %v6298_v12  ;;  %v6308_v25 = vpack.c.bf16 %v6300_v60, %v6300_v60  ;;  %v16991_v62 = vld [vmem:[#allocation8 + $0x790] ss:$8 sps:$4 sm:$0xff]   ;;  %v16999_v4 = vld [vmem:[#allocation8 + $0x7a4] ss:$8 sps:$4 sm:$0xff]   ;;  %v16994_v7 = vld [vmem:[#allocation8 + $0x6a0] ss:$8 sps:$4 sm:$0xff]  }
0x1a47   : > { %v6307_v21 = vpack.c.bf16 %v6299_v22, %v6299_v22  ;;  %v6309_v37 = vpack.c.bf16 %v6301_v1, %v6301_v1  ;;  %v16997_v8 = vld [vmem:[#allocation8 + $0x7a0] ss:$8 sps:$4 sm:$0xff]   ;;  %v17002_v43 = vld [vmem:[#allocation8 + $0x6b4] ss:$8 sps:$4 sm:$0xff]   ;;  %v17000_v2 = vld [vmem:[#allocation8 + $0x6b0] ss:$8 sps:$4 sm:$0xff]  }
0x1a48   : > { %v17005_v11 = vld [vmem:[#allocation8 + $0x7b4] ss:$8 sps:$4 sm:$0xff]   ;;  %v17003_v12 = vld [vmem:[#allocation8 + $0x7b0] ss:$8 sps:$4 sm:$0xff]   ;;  %v17008_v60 = vld [vmem:[#allocation8 + $0x6c4] ss:$8 sps:$4 sm:$0xff]  }
0x1a49   : > { %7123 = vmatprep.mubr.bf16.mxu1 %v6307_v21  ;;  %7164 = vmatprep.mubr.bf16.mxu0 %v6309_v37  ;;  %v17011_v10 = vld [vmem:[#allocation8 + $0x7c4] ss:$8 sps:$4 sm:$0xff]   ;;  %v17006_v46 = vld [vmem:[#allocation8 + $0x6c0] ss:$8 sps:$4 sm:$0xff]   ;;  %v17014_v1 = vld [vmem:[#allocation8 + $0x6d4] ss:$8 sps:$4 sm:$0xff]  }
0x1a4a   : > { %7124 = vmatmul.mubr.bf16.vlgmr.msra.gmra.mrb[100].mxu1 %v6306_v16  ;;  %7165 = vmatmul.mubr.bf16.vlgmr.msra.gmra.mrb[44].mxu0 %v6308_v25  ;;  %v17009_v22 = vld [vmem:[#allocation8 + $0x7c0] ss:$8 sps:$4 sm:$0xff]   ;;  %v17017_v21 = vld [vmem:[#allocation8 + $0x7d4] ss:$8 sps:$4 sm:$0xff]   ;;  %v17012_v37 = vld [vmem:[#allocation8 + $0x6d0] ss:$8 sps:$4 sm:$0xff]  }
0x1a4b   : > { %7174 = vmatpush1.bf16.msra.mxu1 %v16934_v14  ;;  %7215 = vmatpush1.bf16.msra.mxu0 %v16937_v19  ;;  %v17015_v14 = vld [vmem:[#allocation8 + $0x7d0] ss:$8 sps:$4 sm:$0xff]   ;;  %v17020_v19 = vld [vmem:[#allocation8 + $0x6e4] ss:$8 sps:$4 sm:$0xff]  }
0x1a4c   : > { %7175 = vmatprep.subr.bf16.mxu1 %v16942_v26  ;;  %7216 = vmatprep.subr.bf16.mxu0 %v16945_v56  ;;  %v17023_v16 = vld [vmem:[#allocation8 + $0x7e4] ss:$8 sps:$4 sm:$0xff]   ;;  %v18851_v56 = vld [vmem:[%s19386_s7 + $0x70] sm:$0xff] }
0x1a4d   : > { %v17893_v25 = vld [vmem:[%s19386_s7 + $0x60] sm:$0xff] }
0x1a4e   : > { %v5481_v26 = vrot.slane %v17893_v25, %v18358_v17 }
0x1a4f   : > { %7176 = vmatpush1.bf16.msra.mxu1 %v16940_v27  ;;  %7217 = vmatpush1.bf16.msra.mxu0 %v16943_v33  ;;  %v5489_v27 = vrot.slane %v18851_v56, %v18358_v17  ;;  %v17895_v33 = vld [vmem:[%s19386_s7 + $0x68] sm:$0xff] }
0x1a50   : > { %7177 = vmatprep.subr.bf16.mxu1 %v16948_v28  ;;  %7218 = vmatprep.subr.bf16.mxu0 %v16951_v61  ;;  %v5485_v28 = vrot.slane %v17895_v33, %v18358_v17  ;;  %v18862_v61 = vld [vmem:[%s19386_s7 + $0x78] sm:$0xff] }
0x1a53   : > { %7178 = vmatpush1.bf16.msra.mxu1 %v16946_v30  ;;  %7219 = vmatpush1.bf16.msra.mxu0 %v16949_v32  ;;  %v5493_v30 = vrot.slane %v18862_v61, %v18358_v17  ;;  %v17018_v32 = vld [vmem:[#allocation8 + $0x6e0] ss:$8 sps:$4 sm:$0xff]  }
0x1a54   : > { %7179 = vmatprep.subr.bf16.mxu1 %v16954_v36  ;;  %7220 = vmatprep.subr.bf16.mxu0 %v16957_v3  ;;  %v17021_v36 = vld [vmem:[#allocation8 + $0x7e0] ss:$8 sps:$4 sm:$0xff]   ;;  %v17026_v3 = vld [vmem:[#allocation8 + $0x6f4] ss:$8 sps:$4 sm:$0xff]  }
0x1a57   : > { %7180 = vmatpush1.bf16.msra.mxu1 %v16952_v31  ;;  %7221 = vmatpush1.bf16.msra.mxu0 %v16955_v13  ;;  %v17029_v31 = vld [vmem:[#allocation8 + $0x7f4] ss:$8 sps:$4 sm:$0xff]  }
0x1a58   : > { %7181 = vmatprep.subr.bf16.mxu1 %v16960_v38  ;;  %7222 = vmatprep.subr.bf16.mxu0 %v16963_v6 }
0x1a5b   : > { %7182 = vmatpush1.bf16.msra.mxu1 %v16958_v24  ;;  %7223 = vmatpush1.bf16.msra.mxu0 %v16961_v23 }
0x1a5c   : > { %7183 = vmatprep.subr.bf16.mxu1 %v16966_v29  ;;  %7224 = vmatprep.subr.bf16.mxu0 %v16969_v41 }
0x1a5f   : > { %7184 = vmatpush1.bf16.msra.mxu1 %v16964_v42  ;;  %7225 = vmatpush1.bf16.msra.mxu0 %v16967_v5 }
0x1a60   : > { %7185 = vmatprep.subr.bf16.mxu1 %v16972_v45  ;;  %7226 = vmatprep.subr.bf16.mxu0 %v16975_v50  ;;  %v17024_v50 = vld [vmem:[#allocation8 + $0x6f0] ss:$8 sps:$4 sm:$0xff]  }
0x1a63   : > { %7186 = vmatpush1.bf16.msra.mxu1 %v16970_v34  ;;  %7227 = vmatpush1.bf16.msra.mxu0 %v16973_v47  ;;  %v17027_v34 = vld [vmem:[#allocation8 + $0x7f0] ss:$8 sps:$4 sm:$0xff]  }
0x1a64   : > { %7187 = vmatprep.subr.bf16.mxu1 %v16978_v48  ;;  %7228 = vmatprep.subr.bf16.mxu0 %v16981_v49 }
0x1a67   : > { %7188 = vmatpush1.bf16.msra.mxu1 %v16976_v51  ;;  %7229 = vmatpush1.bf16.msra.mxu0 %v16979_v15 }
0x1a68   : > { %7189 = vmatprep.subr.bf16.mxu1 %v16984_v53  ;;  %7230 = vmatprep.subr.bf16.mxu0 %v16987_v54 }
0x1a6b   : > { %7190 = vmatpush1.bf16.msra.mxu1 %v16982_v44  ;;  %7231 = vmatpush1.bf16.msra.mxu0 %v16985_v20 }
0x1a6c   : > { %7191 = vmatprep.subr.bf16.mxu1 %v16990_v57  ;;  %7232 = vmatprep.subr.bf16.mxu0 %v16993_v58  ;;  %v6446_v58 = vrot.slane %v18825_v52, %v18541_v9 }
0x1a6f   : > { %7192 = vmatpush1.bf16.msra.mxu1 %v16988_v59  ;;  %7233 = vmatpush1.bf16.msra.mxu0 %v16991_v62  ;;  %v6450_v59 = vrot.slane %v18836_v55, %v18541_v9 }
0x1a70   : > { %7193 = vmatprep.subr.bf16.mxu1 %v16996_v63  ;;  %7234 = vmatprep.subr.bf16.mxu0 %v16999_v4 }
0x1a73   : > { %7194 = vmatpush1.bf16.msra.mxu1 %v16994_v7  ;;  %7235 = vmatpush1.bf16.msra.mxu0 %v16997_v8 }
0x1a74   : > { %7195 = vmatprep.subr.bf16.mxu1 %v17002_v43  ;;  %7236 = vmatprep.subr.bf16.mxu0 %v17005_v11 }
0x1a77   : > { %7196 = vmatpush1.bf16.msra.mxu1 %v17000_v2  ;;  %7237 = vmatpush1.bf16.msra.mxu0 %v17003_v12 }
0x1a78   : > { %7197 = vmatprep.subr.bf16.mxu1 %v17008_v60  ;;  %7238 = vmatprep.subr.bf16.mxu0 %v17011_v10 }
0x1a7b   : > { %7198 = vmatpush1.bf16.msra.mxu1 %v17006_v46  ;;  %7239 = vmatpush1.bf16.msra.mxu0 %v17009_v22 }
0x1a7c   : > { %7199 = vmatprep.subr.bf16.mxu1 %v17014_v1  ;;  %7240 = vmatprep.subr.bf16.mxu0 %v17017_v21 }
0x1a7f   : > { %7200 = vmatpush1.bf16.msra.mxu1 %v17012_v37  ;;  %7241 = vmatpush1.bf16.msra.mxu0 %v17015_v14 }
0x1a80   : > { %7201 = vmatprep.subr.bf16.mxu1 %v17020_v19  ;;  %7242 = vmatprep.subr.bf16.mxu0 %v17023_v16 }
0x1a81   : > { %v6250_v13 = vpop.f32.mrb[96].mxu1  ;;  %v6291_v38 = vpop.f32.mrb[40].mxu0 }
0x1a82   : > { %v6251_v6 = vadd.f32 %v6250_v13, %v5481_v26  ;;  %v6292_v24 = vadd.f32 %v6291_v38, %v5489_v27  ;;  %v6252_v23 = vpop.f32.mrb[97].mxu1  ;;  %v6293_v29 = vpop.f32.mrb[41].mxu0  ;;  %v17033_v13 = vld [vmem:[#allocation2 + $0x608] ss:$24 sps:$4 sm:$0xff]   ;;  %v17035_v38 = vld [vmem:[#allocation2 + $0x60c] ss:$24 sps:$4 sm:$0xff]  }
0x1a83   : > { %v6253_v41 = vadd.f32 %v6252_v23, %v5485_v28  ;;  %v6294_v42 = vadd.f32 %v6293_v29, %v5493_v30  ;;  %v6254_v5 = vpop.f32.mrb[98].mxu1  ;;  %v6295_v45 = vpop.f32.mrb[42].mxu0  ;;  %7202 = vmatpush1.bf16.msra.mxu1 %v17018_v32  ;;  %7243 = vmatpush1.bf16.msra.mxu0 %v17021_v36  ;;  %v17036_v23 = vld [vmem:[#allocation2 + $0x630] ss:$24 sps:$4 sm:$0xff]   ;;  %v17044_v29 = vld [vmem:[#allocation2 + $0x664] ss:$24 sps:$4 sm:$0xff]  }
0x1a84   : > { %v6302_v47 = vmax.f32 %v6251_v6, 0.0  ;;  %v6304_v48 = vmax.f32 %v6292_v24, 0.0  ;;  %v6255_v49 = vpop.f32.mrb[99].mxu1  ;;  %v6296_v51 = vpop.f32.mrb[43].mxu0  ;;  %7203 = vmatprep.subr.bf16.mxu1 %v17026_v3  ;;  %7244 = vmatprep.subr.bf16.mxu0 %v17029_v31  ;;  %v17030_v3 = vld [vmem:[#allocation2 + $0x600] ss:$24 sps:$4 sm:$0xff]  }
0x1a85   : > { %v6303_v15 = vmax.f32 %v6253_v41, 0.0  ;;  %v6305_v53 = vmax.f32 %v6294_v42, 0.0  ;;  %v17032_v31 = vld [vmem:[#allocation2 + $0x604] ss:$24 sps:$4 sm:$0xff]   ;;  %v17038_v6 = vld [vmem:[#allocation2 + $0x634] ss:$24 sps:$4 sm:$0xff]  }
0x1a86   : > { %v6310_v20 = vpack.c.bf16 %v6302_v47, %v6302_v47  ;;  %v6312_v57 = vpack.c.bf16 %v6304_v48, %v6304_v48  ;;  %v17041_v24 = vld [vmem:[#allocation2 + $0x63c] ss:$24 sps:$4 sm:$0xff]   ;;  %v17042_v41 = vld [vmem:[#allocation2 + $0x660] ss:$24 sps:$4 sm:$0xff]   ;;  %v17059_v48 = vld [vmem:[#allocation2 + $0x6cc] ss:$24 sps:$4 sm:$0xff]  }
0x1a87   : > { %v6311_v54 = vpack.c.bf16 %v6303_v15, %v6303_v15  ;;  %v6313_v44 = vpack.c.bf16 %v6305_v53, %v6305_v53  ;;  %7204 = vmatpush1.bf16.msra.mxu1 %v17024_v50  ;;  %7245 = vmatpush1.bf16.msra.mxu0 %v17027_v34  ;;  %v17045_v42 = vld [vmem:[#allocation2 + $0x668] ss:$24 sps:$4 sm:$0xff]   ;;  %v17050_v5 = vld [vmem:[#allocation2 + $0x694] ss:$24 sps:$4 sm:$0xff]   ;;  %v17051_v34 = vld [vmem:[#allocation2 + $0x698] ss:$24 sps:$4 sm:$0xff]  }
0x1a88   : > { %7905 = vmatprep.subr.bf16.mxu1 %v17032_v31  ;;  %7946 = vmatprep.subr.bf16.mxu0 %v17035_v38  ;;  %v17053_v45 = vld [vmem:[#allocation2 + $0x69c] ss:$24 sps:$4 sm:$0xff]   ;;  %v17048_v50 = vld [vmem:[#allocation2 + $0x690] ss:$24 sps:$4 sm:$0xff]   ;;  %v17054_v49 = vld [vmem:[#allocation2 + $0x6c0] ss:$24 sps:$4 sm:$0xff]  }
0x1a89   : > { %7205 = vmatprep.mubr.bf16.mxu1 %v6311_v54  ;;  %7246 = vmatprep.mubr.bf16.mxu0 %v6313_v44  ;;  %v17056_v47 = vld [vmem:[#allocation2 + $0x6c4] ss:$24 sps:$4 sm:$0xff]   ;;  %v17057_v51 = vld [vmem:[#allocation2 + $0x6c8] ss:$24 sps:$4 sm:$0xff]   ;;  %v17062_v15 = vld [vmem:[#allocation2 + $0x6f4] ss:$24 sps:$4 sm:$0xff]  }
0x1a8a   : > { %7206 = vmatmul.mubr.bf16.vlgmr.msra.gmra.mrb[104].mxu1 %v6310_v20  ;;  %7247 = vmatmul.mubr.bf16.vlgmr.msra.gmra.mrb[48].mxu0 %v6312_v57  ;;  %v17065_v53 = vld [vmem:[#allocation2 + $0x6fc] ss:$24 sps:$4 sm:$0xff]   ;;  %v17060_v54 = vld [vmem:[#allocation2 + $0x6f0] ss:$24 sps:$4 sm:$0xff]   ;;  %v17071_v57 = vld [vmem:[#allocation2 + $0x72c] ss:$24 sps:$4 sm:$0xff]  }
0x1a8b   : > { %7906 = vmatpush1.bf16.msra.mxu1 %v17030_v3  ;;  %7947 = vmatpush1.bf16.msra.mxu0 %v17033_v13  ;;  %v17063_v44 = vld [vmem:[#allocation2 + $0x6f8] ss:$24 sps:$4 sm:$0xff]   ;;  %v17068_v20 = vld [vmem:[#allocation2 + $0x724] ss:$24 sps:$4 sm:$0xff]  }
0x1a8c   : > { %7907 = vmatprep.subr.bf16.mxu1 %v17038_v6  ;;  %7948 = vmatprep.subr.bf16.mxu0 %v17041_v24  ;;  %v17101_v3 = vld [vmem:[#allocation2 + $0x81c] ss:$24 sps:$4 sm:$0xff]   ;;  %v17099_v31 = vld [vmem:[#allocation2 + $0x818] ss:$24 sps:$4 sm:$0xff]   ;;  %v17107_v38 = vld [vmem:[#allocation2 + $0x84c] ss:$24 sps:$4 sm:$0xff]  }
0x1a8d   : > { %v17104_v13 = vld [vmem:[#allocation2 + $0x844] ss:$24 sps:$4 sm:$0xff]   ;;  %v17110_v6 = vld [vmem:[#allocation2 + $0x874] ss:$24 sps:$4 sm:$0xff]   ;;  %v17108_v24 = vld [vmem:[#allocation2 + $0x870] ss:$24 sps:$4 sm:$0xff]  }
0x1a8f   : > { %7908 = vmatpush1.bf16.msra.mxu1 %v17036_v23  ;;  %v17113_v23 = vld [vmem:[#allocation2 + $0x87c] ss:$24 sps:$4 sm:$0xff]  }
0x1a90   : > { %7909 = vmatprep.subr.bf16.mxu1 %v17044_v29  ;;  %v17116_v29 = vld [vmem:[#allocation2 + $0x8a4] ss:$24 sps:$4 sm:$0xff]  }
0x1a93   : > { %7910 = vmatpush1.bf16.msra.mxu1 %v17042_v41  ;;  %v17119_v41 = vld [vmem:[#allocation2 + $0x8ac] ss:$24 sps:$4 sm:$0xff]  }
0x1a94   : > { %7911 = vmatprep.subr.bf16.mxu1 %v17050_v5  ;;  %v17122_v5 = vld [vmem:[#allocation2 + $0x8d4] ss:$24 sps:$4 sm:$0xff]  }
0x1a97   : > { %7912 = vmatpush1.bf16.msra.mxu1 %v17048_v50  ;;  %v17125_v50 = vld [vmem:[#allocation2 + $0x8dc] ss:$24 sps:$4 sm:$0xff]  }
0x1a98   : > { %7913 = vmatprep.subr.bf16.mxu1 %v17056_v47  ;;  %v17128_v47 = vld [vmem:[#allocation2 + $0x614] ss:$24 sps:$4 sm:$0xff]  }
0x1a9b   : > { %7914 = vmatpush1.bf16.msra.mxu1 %v17054_v49 }
0x1a9c   : > { %7915 = vmatprep.subr.bf16.mxu1 %v17062_v15  ;;  %v7276_v15 = vrot.slane %v18851_v56, %v18541_v9 }
0x1a9f   : > { %7916 = vmatpush1.bf16.msra.mxu1 %v17060_v54 }
0x1aa0   : > { %7917 = vmatprep.subr.bf16.mxu1 %v17068_v20 }
0x1b1d   : > { %v7125_v62 = vpop.f32.mrb[100].mxu1  ;;  %v7166_v63 = vpop.f32.mrb[44].mxu0 }
0x1b1e   : > { %v7126_v4 = vadd.f32 %v7125_v62, %v6446_v58  ;;  %v7127_v7 = vpop.f32.mrb[101].mxu1  ;;  %v7168_v8 = vpop.f32.mrb[45].mxu0  ;;  %v17066_v58 = vld [vmem:[#allocation2 + $0x720] ss:$24 sps:$4 sm:$0xff]   ;;  %v17074_v62 = vld [vmem:[#allocation2 + $0x754] ss:$24 sps:$4 sm:$0xff]  }
0x1b1f   : > { %v7128_v43 = vadd.f32 %v7127_v7, %v6450_v59  ;;  %v7129_v11 = vpop.f32.mrb[102].mxu1  ;;  %v7170_v2 = vpop.f32.mrb[46].mxu0  ;;  %v17069_v59 = vld [vmem:[#allocation2 + $0x728] ss:$24 sps:$4 sm:$0xff]   ;;  %7918 = vmatpush1.bf16.msra.mxu1 %v17066_v58  ;;  %v17075_v7 = vld [vmem:[#allocation2 + $0x758] ss:$24 sps:$4 sm:$0xff]   ;;  %v7290_v58 = vrot.slane %v18836_v55, %v18626_v35 }
0x1b20   : > { %v7167_v12 = vadd.f32 %v7166_v63, %v7126_v4  ;;  %v7130_v60 = vpop.f32.mrb[103].mxu1  ;;  %v7171_v10 = vpop.f32.mrb[47].mxu0  ;;  %v17077_v63 = vld [vmem:[#allocation2 + $0x75c] ss:$24 sps:$4 sm:$0xff]   ;;  %v17072_v4 = vld [vmem:[#allocation2 + $0x750] ss:$24 sps:$4 sm:$0xff]   ;;  %7919 = vmatprep.subr.bf16.mxu1 %v17074_v62 }
0x1b21   : > { %v7169_v46 = vadd.f32 %v7168_v8, %v7128_v43  ;;  %v17080_v8 = vld [vmem:[#allocation2 + $0x784] ss:$24 sps:$4 sm:$0xff]   ;;  %v17078_v11 = vld [vmem:[#allocation2 + $0x780] ss:$24 sps:$4 sm:$0xff]   ;;  %v17084_v10 = vld [vmem:[#allocation2 + $0x7b0] ss:$24 sps:$4 sm:$0xff]  }
0x1b22   : > { %v17083_v43 = vld [vmem:[#allocation2 + $0x78c] ss:$24 sps:$4 sm:$0xff]   ;;  %v17081_v2 = vld [vmem:[#allocation2 + $0x788] ss:$24 sps:$4 sm:$0xff]   ;;  %v17089_v60 = vld [vmem:[#allocation2 + $0x7bc] ss:$24 sps:$4 sm:$0xff]  }
0x1b23   : > { %7920 = vmatpush1.bf16.msra.mxu1 %v17072_v4  ;;  %v17129_v55 = vld [vmem:[#allocation2 + $0x640] ss:$24 sps:$4 sm:$0xff]  }
0x1b24   : > { %7921 = vmatprep.subr.bf16.mxu1 %v17080_v8  ;;  %v17134_v8 = vld [vmem:[#allocation2 + $0x674] ss:$24 sps:$4 sm:$0xff]  }
0x1b27   : > { %7922 = vmatpush1.bf16.msra.mxu1 %v17078_v11  ;;  %v17137_v11 = vld [vmem:[#allocation2 + $0x6a4] ss:$24 sps:$4 sm:$0xff]  }
0x1b5d   : > { %v7207_v22 = vpop.f32.mrb[104].mxu1  ;;  %v7248_v1 = vpop.f32.mrb[48].mxu0 }
0x1b5e   : > { %v7208_v21 = vadd.f32 %v7207_v22, %v7167_v12  ;;  %v7209_v37 = vpop.f32.mrb[105].mxu1  ;;  %v7250_v14 = vpop.f32.mrb[49].mxu0  ;;  %v17086_v12 = vld [vmem:[#allocation2 + $0x7b4] ss:$24 sps:$4 sm:$0xff]   ;;  %v17092_v22 = vld [vmem:[#allocation2 + $0x7e4] ss:$24 sps:$4 sm:$0xff]  }
0x1b5f   : > { %v7210_v19 = vadd.f32 %v7209_v37, %v7169_v46  ;;  %v7211_v16 = vpop.f32.mrb[106].mxu1  ;;  %v7252_v25 = vpop.f32.mrb[50].mxu0  ;;  %7923 = vmatprep.subr.bf16.mxu1 %v17086_v12  ;;  %v17087_v46 = vld [vmem:[#allocation2 + $0x7b8] ss:$24 sps:$4 sm:$0xff]   ;;  %v17140_v12 = vld [vmem:[#allocation2 + $0x6d4] ss:$24 sps:$4 sm:$0xff]  }
0x1b60   : > { %v7249_v26 = vadd.f32 %v7248_v1, %v7208_v21  ;;  %v7212_v27 = vpop.f32.mrb[107].mxu1  ;;  %v7253_v33 = vpop.f32.mrb[51].mxu0  ;;  %7924 = vmatpush1.bf16.msra.mxu1 %v17084_v10  ;;  %v17090_v1 = vld [vmem:[#allocation2 + $0x7e0] ss:$24 sps:$4 sm:$0xff]   ;;  %v17143_v10 = vld [vmem:[#allocation2 + $0x704] ss:$24 sps:$4 sm:$0xff]  }
0x1b61   : > { %v7251_v28 = vadd.f32 %v7250_v14, %v7210_v19  ;;  %7925 = vmatprep.subr.bf16.mxu1 %v17092_v22  ;;  %v17095_v27 = vld [vmem:[#allocation2 + $0x7ec] ss:$24 sps:$4 sm:$0xff]   ;;  %v17093_v33 = vld [vmem:[#allocation2 + $0x7e8] ss:$24 sps:$4 sm:$0xff]  }
0x1b62   : > { %v18871_v30 = vadd.f32 %v7249_v26, %v18810_v40  ;;  %v17039_v40 = vld [vmem:[#allocation2 + $0x638] ss:$24 sps:$4 sm:$0xff]   ;;  %v17146_v22 = vld [vmem:[#allocation2 + $0x734] ss:$24 sps:$4 sm:$0xff]  }
0x1b63   : > { %v18874_v32 = vadd.f32 %v7251_v28, %v18808_v39  ;;  %v17047_v39 = vld [vmem:[#allocation2 + $0x66c] ss:$24 sps:$4 sm:$0xff]   ;;  %7949 = vmatpush1.bf16.msra.mxu0 %v17039_v40  ;;  %v17111_v40 = vld [vmem:[#allocation2 + $0x878] ss:$24 sps:$4 sm:$0xff]  }
0x1b64   : > { %7950 = vmatprep.subr.bf16.mxu0 %v17047_v39  ;;  %7926 = vmatpush1.bf16.msra.mxu1 %v17090_v1  ;;  %v17098_v28 = vld [vmem:[#allocation2 + $0x814] ss:$24 sps:$4 sm:$0xff]   ;;  %v17114_v39 = vld [vmem:[#allocation2 + $0x8a0] ss:$24 sps:$4 sm:$0xff]   ;;  %v17144_v1 = vld [vmem:[#allocation2 + $0x730] ss:$24 sps:$4 sm:$0xff]  }
0x1b65   : > { %v7257_v36 = vadd.f32 %v18874_v32, %v18871_v30  ;;  %7927 = vmatprep.subr.bf16.mxu1 %v17098_v28  ;;  %v17159_v28 = vld [vmem:[#allocation2 + $0x820] ss:$24 sps:$4 sm:$0xff]  }
0x1b67   : > { %7258 = vadd.xlane.f32.xlu1 %v7257_v36  ;;  %7951 = vmatpush1.bf16.msra.mxu0 %v17045_v42  ;;  %v17096_v36 = vld [vmem:[#allocation2 + $0x810] ss:$24 sps:$4 sm:$0xff]  }
0x1b68   : > { %7952 = vmatprep.subr.bf16.mxu0 %v17053_v45  ;;  %7928 = vmatpush1.bf16.msra.mxu1 %v17096_v36  ;;  %v17117_v42 = vld [vmem:[#allocation2 + $0x8a8] ss:$24 sps:$4 sm:$0xff]   ;;  %v17164_v36 = vld [vmem:[#allocation2 + $0x854] ss:$24 sps:$4 sm:$0xff]  }
0x1b69   : > { %7929 = vmatprep.subr.bf16.mxu1 %v17104_v13  ;;  %v17120_v45 = vld [vmem:[#allocation2 + $0x8d0] ss:$24 sps:$4 sm:$0xff]   ;;  %v17165_v13 = vld [vmem:[#allocation2 + $0x880] ss:$24 sps:$4 sm:$0xff]  }
0x1b6b   : > { %7953 = vmatpush1.bf16.msra.mxu0 %v17051_v34  ;;  %v17123_v34 = vld [vmem:[#allocation2 + $0x8d8] ss:$24 sps:$4 sm:$0xff]  }
0x1b6c   : > { %7954 = vmatprep.subr.bf16.mxu0 %v17059_v48 }
0x1b6f   : > { %7955 = vmatpush1.bf16.msra.mxu0 %v17057_v51 }
0x1b70   : > { %7956 = vmatprep.subr.bf16.mxu0 %v17065_v53  ;;  %v7280_v53 = vrot.slane %v18862_v61, %v18541_v9 }
0x1b73   : > { %7957 = vmatpush1.bf16.msra.mxu0 %v17063_v44  ;;  %v7286_v44 = vrot.slane %v18825_v52, %v18626_v35  ;;  %v17131_v52 = vld [vmem:[#allocation2 + $0x644] ss:$24 sps:$4 sm:$0xff]  }
0x1b74   : > { %7958 = vmatprep.subr.bf16.mxu0 %v17071_v57 }
0x1b77   : > { %7959 = vmatpush1.bf16.msra.mxu0 %v17069_v59 }
0x1b78   : > { %7960 = vmatprep.subr.bf16.mxu0 %v17077_v63 }
0x1b7b   : > { %7961 = vmatpush1.bf16.msra.mxu0 %v17075_v7  ;;  %v17126_v7 = vld [vmem:[#allocation2 + $0x610] ss:$24 sps:$4 sm:$0xff]  }
0x1b7c   : > { %7962 = vmatprep.subr.bf16.mxu0 %v17083_v43  ;;  %v17132_v43 = vld [vmem:[#allocation2 + $0x670] ss:$24 sps:$4 sm:$0xff]  }
0x1b7f   : > { %7963 = vmatpush1.bf16.msra.mxu0 %v17081_v2  ;;  %v17135_v2 = vld [vmem:[#allocation2 + $0x6a0] ss:$24 sps:$4 sm:$0xff]  }
0x1b80   : > { %7964 = vmatprep.subr.bf16.mxu0 %v17089_v60  ;;  %v17138_v60 = vld [vmem:[#allocation2 + $0x6d0] ss:$24 sps:$4 sm:$0xff]  }
0x1b83   : > { %7965 = vmatpush1.bf16.msra.mxu0 %v17087_v46  ;;  %v17141_v46 = vld [vmem:[#allocation2 + $0x700] ss:$24 sps:$4 sm:$0xff]  }
0x1b84   : > { %7966 = vmatprep.subr.bf16.mxu0 %v17095_v27  ;;  %v17156_v27 = vld [vmem:[#allocation2 + $0x7f0] ss:$24 sps:$4 sm:$0xff]  }
0x1b87   : > { %7967 = vmatpush1.bf16.msra.mxu0 %v17093_v33  ;;  %v17161_v33 = vld [vmem:[#allocation2 + $0x824] ss:$24 sps:$4 sm:$0xff]  }
0x1b88   : > { %7968 = vmatprep.subr.bf16.mxu0 %v17101_v3  ;;  %v17162_v3 = vld [vmem:[#allocation2 + $0x850] ss:$24 sps:$4 sm:$0xff]  }
0x1b8b   : > { %7969 = vmatpush1.bf16.msra.mxu0 %v17099_v31  ;;  %v17167_v31 = vld [vmem:[#allocation2 + $0x884] ss:$24 sps:$4 sm:$0xff]  }
0x1b8c   : > { %7970 = vmatprep.subr.bf16.mxu0 %v17107_v38  ;;  %v17168_v38 = vld [vmem:[#allocation2 + $0x8b0] ss:$24 sps:$4 sm:$0xff]  }
0x1bf4   : > { %v7259_v21 = vpop.xlane.xlu1 %7258 }
0x1bf5   : > { %v7260_v37 = vmul.f32 0.00390625, %v7259_v21  ;;  %v17149_v21 = vld [vmem:[#allocation2 + $0x764] ss:$24 sps:$4 sm:$0xff]  }
0x1bf7   : > { %v7261_v14 = vsub.f32 %v18871_v30, %v7260_v37  ;;  %v7262_v19 = vsub.f32 %v18874_v32, %v7260_v37  ;;  %v17102_v30 = vld [vmem:[#allocation2 + $0x840] ss:$24 sps:$4 sm:$0xff]  }
0x1bf8   : > { %v17105_v32 = vld [vmem:[#allocation2 + $0x848] ss:$24 sps:$4 sm:$0xff]   ;;  %7930 = vmatpush1.bf16.msra.mxu1 %v17102_v30  ;;  %v17170_v30 = vld [vmem:[#allocation2 + $0x8b4] ss:$24 sps:$4 sm:$0xff]  }
0x1bf9   : > { %v7263_v16 = vmul.f32 %v7261_v14, %v7261_v14  ;;  %v7264_v25 = vmul.f32 %v7262_v19, %v7262_v19  ;;  %7971 = vmatpush1.bf16.msra.mxu0 %v17105_v32  ;;  %7931 = vmatprep.subr.bf16.mxu1 %v17110_v6  ;;  %v17147_v37 = vld [vmem:[#allocation2 + $0x760] ss:$24 sps:$4 sm:$0xff]   ;;  %v17173_v32 = vld [vmem:[#allocation2 + $0x8e4] ss:$24 sps:$4 sm:$0xff]  }
0x1bfa   : > { %7972 = vmatprep.subr.bf16.mxu0 %v17113_v23  ;;  %v17171_v6 = vld [vmem:[#allocation2 + $0x8e0] ss:$24 sps:$4 sm:$0xff]   ;;  %v18913_v23 = vld [vmem:[%s19386_s7 + $0x90] sm:$0xff] }
0x1bfb   : > { %v7265_v26 = vadd.f32 %v7264_v25, %v7263_v16  ;;  %v17155_v16 = vld [vmem:[#allocation2 + $0x7c4] ss:$24 sps:$4 sm:$0xff]   ;;  %v17153_v25 = vld [vmem:[#allocation2 + $0x7c0] ss:$24 sps:$4 sm:$0xff]  }
0x1bfc   : > { %7932 = vmatpush1.bf16.msra.mxu1 %v17108_v24  ;;  %v15090_v24 = vld [vmem:[%s19386_s7 + $0x80] sm:$0xff] }
0x1bfd   : > { %7266 = vadd.xlane.f32.xlu0 %v7265_v26  ;;  %7973 = vmatpush1.bf16.msra.mxu0 %v17111_v40  ;;  %v17158_v26 = vld [vmem:[#allocation2 + $0x7f4] ss:$24 sps:$4 sm:$0xff]   ;;  %v7404_v40 = vrot.slane %v15090_v24, %v18361_v18 }
0x1bfe   : > { %7933 = vmatprep.subr.bf16.mxu1 %v17116_v29  ;;  %7974 = vmatprep.subr.bf16.mxu0 %v17119_v41  ;;  %v7412_v29 = vrot.slane %v18913_v23, %v18361_v18 }
0x1c00   : > { %7934 = vmatpush1.bf16.msra.mxu1 %v17114_v39 }
0x1c01   : > { %7975 = vmatpush1.bf16.msra.mxu0 %v17117_v42  ;;  %7935 = vmatprep.subr.bf16.mxu1 %v17122_v5  ;;  %v15091_v42 = vld [vmem:[%s19386_s7 + $0x88] sm:$0xff]  ;;  %v18924_v5 = vld [vmem:[%s19386_s7 + $0x98] sm:$0xff] }
0x1c02   : > { %7976 = vmatprep.subr.bf16.mxu0 %v17125_v50 }
0x1c04   : > { %7936 = vmatpush1.bf16.msra.mxu1 %v17120_v45 }
0x1c05   : > { %7977 = vmatpush1.bf16.msra.mxu0 %v17123_v34  ;;  %7987 = vmatprep.subr.bf16.mxu1 %v17128_v47 }
0x1c06   : > { %16057 = vmatprep.subr.bf16.mxu0 %v18113_v0 }
0x1c8a   : > { %v7267_v48 = vpop.xlane.xlu0 %7266 }
0x1c8b   : > { %v7268_v49 = vmul.f32 0.00390625, %v7267_v48 }
0x1c8d   : > { %v7269_v51 = vadd.f32 1e-05, %v7268_v49 }
0x1c8f   : > { %17838 = vrsqrt.f32 %v7269_v51 }
0x1c99   : > { %v17839_v54 = vpop.eup %17838 }
0x1c9a   : > { %v7271_v20 = vmul.f32 %v17839_v54, %v7261_v14  ;;  %v7272_v57 = vmul.f32 %v17839_v54, %v7262_v19  ;;  %v17152_v14 = vld [vmem:[#allocation2 + $0x794] ss:$24 sps:$4 sm:$0xff]   ;;  %v17150_v19 = vld [vmem:[#allocation2 + $0x790] ss:$24 sps:$4 sm:$0xff]   ;;  %v7416_v54 = vrot.slane %v18924_v5, %v18361_v18 }
0x1c9c   : > { %v7282_v59 = vmul.f32 %v7280_v53, %v7272_v57  ;;  %v7281_v62 = vmul.f32 %v7276_v15, %v7271_v20  ;;  %v7408_v53 = vrot.slane %v15091_v42, %v18361_v18 }
0x1c9e   : > { %v18889_v63 = vadd.f32 %v7290_v58, %v7282_v59  ;;  %v18891_v4 = vadd.f32 %v7286_v44, %v7281_v62 }
0x1ca0   : > { %v7303_v56 = vpack.c.bf16 %v18889_v63, %v18889_v63  ;;  %v18897_v61 = vpack.c.bf16 %v18891_v4, %v18891_v4 }
0x1ca2   : > { %7937 = vmatprep.mubr.bf16.mxu1 %v7303_v56  ;;  %7978 = vmatprep.mubr.bf16.mxu0 %v7303_v56 }
0x1ca3   : > { %7938 = vmatmul.mubr.bf16.vlgmr.msra.gmra.mrb[108].mxu1 %v18897_v61  ;;  %7979 = vmatmul.mubr.bf16.vlgmr.msra.gmra.mrb[52].mxu0 %v18897_v61 }
0x1ca4   : > { %7988 = vmatpush1.bf16.msra.mxu1 %v17126_v7  ;;  %8019 = vmatprep.mubr.bf16.mxu1 %v7303_v56 }
0x1ca5   : > { %7989 = vmatprep.subr.bf16.mxu1 %v17131_v52  ;;  %16059 = vmatprep.mubr.msk.bf16.mxu0 %vm18114_vm0, %v18113_v0  ;;  %v18941_v52 = vld [vmem:[%s19386_s7 + $0xa0] sm:$0xff] }
0x1ca8   : > { %7990 = vmatpush1.bf16.msra.mxu1 %v17129_v55  ;;  %v7420_v55 = vrot.slane %v18941_v52, %v18361_v18 }
0x1ca9   : > { %7991 = vmatprep.subr.bf16.mxu1 %v17134_v8 }
0x1cac   : > { %7992 = vmatpush1.bf16.msra.mxu1 %v17132_v43 }
0x1cad   : > { %7993 = vmatprep.subr.bf16.mxu1 %v17137_v11 }
0x1cb0   : > { %7994 = vmatpush1.bf16.msra.mxu1 %v17135_v2 }
0x1cb1   : > { %7995 = vmatprep.subr.bf16.mxu1 %v17140_v12 }
0x1cb4   : > { %7996 = vmatpush1.bf16.msra.mxu1 %v17138_v60 }
0x1cb5   : > { %7997 = vmatprep.subr.bf16.mxu1 %v17143_v10 }
0x1cb8   : > { %7998 = vmatpush1.bf16.msra.mxu1 %v17141_v46 }
0x1cb9   : > { %7999 = vmatprep.subr.bf16.mxu1 %v17146_v22 }
0x1cbc   : > { %8000 = vmatpush1.bf16.msra.mxu1 %v17144_v1 }
0x1cbd   : > { %8001 = vmatprep.subr.bf16.mxu1 %v17149_v21 }
0x1cc0   : > { %8002 = vmatpush1.bf16.msra.mxu1 %v17147_v37 }
0x1cc1   : > { %8003 = vmatprep.subr.bf16.mxu1 %v17152_v14 }
0x1cc4   : > { %8004 = vmatpush1.bf16.msra.mxu1 %v17150_v19 }
0x1cc5   : > { %8005 = vmatprep.subr.bf16.mxu1 %v17155_v16 }
0x1cc8   : > { %8006 = vmatpush1.bf16.msra.mxu1 %v17153_v25  ;;  %v17897_v25 = vld [vmem:[%s18425_s12] ss:$0 sm:$0xff] }
0x1cc9   : > { %8007 = vmatprep.subr.bf16.mxu1 %v17158_v26 }
0x1ccc   : > { %8008 = vmatpush1.bf16.msra.mxu1 %v17156_v27 }
0x1ccd   : > { %8009 = vmatprep.subr.bf16.mxu1 %v17161_v33 }
0x1cd0   : > { %8010 = vmatpush1.bf16.msra.mxu1 %v17159_v28 }
0x1cd1   : > { %8011 = vmatprep.subr.bf16.mxu1 %v17164_v36 }
0x1cd4   : > { %8012 = vmatpush1.bf16.msra.mxu1 %v17162_v3 }
0x1cd5   : > { %8013 = vmatprep.subr.bf16.mxu1 %v17167_v31 }
0x1cd8   : > { %8014 = vmatpush1.bf16.msra.mxu1 %v17165_v13 }
0x1cd9   : > { %8015 = vmatprep.subr.bf16.mxu1 %v17170_v30 }
0x1cdc   : > { %8016 = vmatpush1.bf16.msra.mxu1 %v17168_v38 }
0x1cdd   : > { %8017 = vmatprep.subr.bf16.mxu1 %v17173_v32 }
0x1ce0   : > { %8018 = vmatpush1.bf16.msra.mxu1 %v17171_v6 }
0x1ce1   : > { %16063 = vmatprep.subr.bf16.mxu1 %v18113_v0 }
0x1ce3   : > { %8020 = vmatmul.mubr.bf16.vlgmr.msra.gmra.mrb[112].mxu1 %v18897_v61 }
0x1ce4   : > { %16065 = vmatprep.mubr.msk.bf16.mxu1 %vm18114_vm0, %v18113_v0 }
0x1d76   : > { %v7939_v39 = vpop.f32.mrb[108].mxu1  ;;  %v7980_v41 = vpop.f32.mrb[52].mxu0 }
0x1d77   : > { %v7940_v45 = vadd.f32 %v7939_v39, %v7404_v40  ;;  %v7981_v50 = vadd.f32 %v7980_v41, %v7412_v29  ;;  %v7941_v34 = vpop.f32.mrb[109].mxu1  ;;  %v7982_v47 = vpop.f32.mrb[53].mxu0 }
0x1d78   : > { %v7943_v48 = vpop.f32.mrb[110].mxu1  ;;  %v7984_v49 = vpop.f32.mrb[54].mxu0  ;;  %v7942_v59 = vadd.f32 %v7941_v34, %v7408_v53  ;;  %v7983_v62 = vadd.f32 %v7982_v47, %v7416_v54 }
0x1d79   : > { %v8028_v51 = vmul.f32 0.125, %v7940_v45  ;;  %v8031_v15 = vpack.c.bf16 %v7981_v50, %v7981_v50  ;;  %v7944_v44 = vpop.f32.mrb[111].mxu1  ;;  %v7985_v20 = vpop.f32.mrb[55].mxu0  ;;  %v18968_v49 = vld [vmem:[%s19386_s7 + $0xa8] sm:$0xff] }
0x1d7a   : > { %v8029_v56 = vmul.f32 0.125, %v7942_v59  ;;  %v8251_v7 = vpack.c.bf16 %v7983_v62, %v7983_v62  ;;  %v7424_v53 = vrot.slane %v18968_v49, %v18361_v18 }
0x1d7b   : > { %v8037_v57 = vsel %vm1171_vm1, %v8031_v15, 0  ;;  %8141 = vrot.lane.b32.xlu1 %v8031_v15, %s18115_s23  ;;  %v8030_v58 = vpack.c.bf16 %v8028_v51, %v8028_v51 }
0x1d7c   : > { %16058 = vmatpush3.bf16.xpose.msra.mxu0 %v8037_v57  ;;  %v8250_v61 = vpack.c.bf16 %v8029_v56, %v8029_v56  ;;  %v8257_v21 = vsel %vm1171_vm1, %v8251_v7, 0 }
0x1d7d   : > { %16069 = vmatprep.subr.bf16.mxu0 %v18113_v0 }
0x1d7f   : > { %8138 = vrot.lane.b32.xlu1 %v8030_v58, %s18115_s23 }
0x1d83   : > { %8361 = vrot.lane.b32.xlu1 %v8251_v7, %s18115_s23  ;;  %16060 = vmatmul.mubr.msk.bf16.vlgmr.msra.gmra.mrb[56].mxu0 %vm1171_vm1, %v8030_v58 }
0x1d84   : > { %16071 = vmatprep.mubr.msk.bf16.mxu0 %vm18114_vm0, %v18113_v0 }
0x1d87   : > { %8358 = vrot.lane.b32.xlu1 %v8250_v61, %s18115_s23 }
0x1db6   : > { %v8021_v8 = vpop.f32.mrb[112].mxu1 }
0x1db7   : > { %v8022_v43 = vadd.f32 %v8021_v8, %v7420_v55  ;;  %v8023_v11 = vpop.f32.mrb[113].mxu1 }
0x1db8   : > { %v8025_v2 = vpop.f32.mrb[114].mxu1  ;;  %v8024_v44 = vadd.f32 %v8023_v11, %v7424_v53  ;;  %v17201_v53 = vld [vmem:[#allocation5 + $0x290] ss:$8 sps:$4 sm:$0xff]  }
0x1db9   : > { %v8032_v12 = vpack.c.bf16 %v8022_v43, %v8022_v43  ;;  %v8026_v60 = vpop.f32.mrb[115].mxu1 }
0x1dba   : > { %v8252_v20 = vpack.c.bf16 %v8024_v44, %v8024_v44  ;;  %v17204_v44 = vld [vmem:[#allocation5 + $0x2a0] ss:$8 sps:$4 sm:$0xff]  }
0x1dbb   : > { %v8094_v10 = vsel %vm1233_vm2, %v8032_v12, 0 }
0x1dbc   : > { %16064 = vmatpush3.bf16.msra.mxu1 %v8094_v10 }
0x1dbd   : > { %16075 = vmatprep.subr.bf16.mxu1 %v18113_v0 }
0x1ded   : > { %v8142_v46 = vpop.permute.xlu1 %8141 }
0x1dee   : > { %v8147_v22 = vsel %vm1171_vm1, %v8142_v46, 0  ;;  %v8314_v46 = vsel %vm1233_vm2, %v8252_v20, 0 }
0x1def   : > { %16070 = vmatpush3.bf16.xpose.msra.mxu0 %v8147_v22 }
0x1df0   : > { %16081 = vmatprep.subr.bf16.mxu0 %v18113_v0 }
0x1df1   : > { %v8139_v1 = vpop.permute.xlu1 %8138 }
0x1df5   : > { %v8362_v37 = vpop.permute.xlu1 %8361 }
0x1df6   : > { %16072 = vmatmul.mubr.msk.bf16.vlgmr.msra.gmra.mrb[60].mxu0 %vm1171_vm1, %v8139_v1  ;;  %v8367_v14 = vsel %vm1171_vm1, %v8362_v37, 0 }
0x1df7   : > { %16082 = vmatpush3.bf16.xpose.msra.mxu0 %v8257_v21  ;;  %16083 = vmatprep.mubr.msk.bf16.mxu0 %vm18114_vm0, %v18113_v0 }
0x1df8   : > { %16093 = vmatprep.subr.bf16.mxu0 %v18113_v0 }
0x1df9   : > { %v8359_v19 = vpop.permute.xlu1 %8358 }
0x1dfe   : > { %16084 = vmatmul.mubr.msk.bf16.vlgmr.msra.gmra.mrb[64].mxu0 %vm1171_vm1, %v8250_v61 }
0x1dff   : > { %16094 = vmatpush3.bf16.xpose.msra.mxu0 %v8367_v14  ;;  %16095 = vmatprep.mubr.msk.bf16.mxu0 %vm18114_vm0, %v18113_v0 }
0x1e06   : > { %16096 = vmatmul.mubr.msk.bf16.vlgmr.msra.gmra.mrb[68].mxu0 %vm1171_vm1, %v8359_v19 }
0x1e56   : > { %v8073_v16 = vpop.f32.mrb[56].mxu0 }
0x1e57   : > { %v8074_v26 = vadd.f32 %v17897_v25, %v8073_v16  ;;  %v16061_v27 = vpop.f32.mrb[57].mxu0 }
0x1e58   : > { %v8076_v33 = vpop.f32.mrb[58].mxu0 }
0x1e59   : > { %v16062_v28 = vpop.f32.mrb[59].mxu0  ;;  %v8079_v36 = vsel %vm1218_vm3, %v8074_v26, -inf }
0x1e5a   : > { %8080 = vmax.xlane.f32.xlu0 %v8079_v36 }
0x1e70   : > { %8201 = vrot.lane.b32.xlu0 %v8032_v12, %s18115_s23 }
0x1ec9   : > { %v8183_v3 = vpop.f32.mrb[60].mxu0 }
0x1eca   : > { %v8184_v31 = vadd.f32 %v17897_v25, %v8183_v3  ;;  %v16073_v13 = vpop.f32.mrb[61].mxu0 }
0x1ecb   : > { %v8186_v30 = vpop.f32.mrb[62].mxu0  ;;  %v17176_v13 = vld [vmem:[#allocation5 + $0x204] ss:$8 sps:$4 sm:$0xff]  }
0x1ecc   : > { %v16074_v38 = vpop.f32.mrb[63].mxu0  ;;  %v8189_v32 = vsel %vm1218_vm3, %v8184_v31, -inf  ;;  %v17179_v30 = vld [vmem:[#allocation5 + $0x214] ss:$8 sps:$4 sm:$0xff]   ;;  %8683 = vmatprep.subr.bf16.mxu0 %v17176_v13 }
0x1ecd   : > { %8190 = vmax.xlane.f32.xlu1 %v8189_v32  ;;  %v17177_v38 = vld [vmem:[#allocation5 + $0x210] ss:$8 sps:$4 sm:$0xff]   ;;  %v17182_v32 = vld [vmem:[#allocation5 + $0x224] ss:$8 sps:$4 sm:$0xff]  }
0x1ed1   : > { %v8293_v6 = vpop.f32.mrb[64].mxu0 }
0x1ed2   : > { %v8294_v24 = vadd.f32 %v17897_v25, %v8293_v6  ;;  %v16085_v40 = vpop.f32.mrb[65].mxu0  ;;  %v17180_v6 = vld [vmem:[#allocation5 + $0x220] ss:$8 sps:$4 sm:$0xff]  }
0x1ed3   : > { %v8296_v29 = vpop.f32.mrb[66].mxu0  ;;  %v17183_v40 = vld [vmem:[#allocation5 + $0x230] ss:$8 sps:$4 sm:$0xff]  }
0x1ed4   : > { %v16086_v39 = vpop.f32.mrb[67].mxu0  ;;  %v8299_v41 = vsel %vm1218_vm3, %v8294_v24, -inf  ;;  %v17188_v29 = vld [vmem:[#allocation5 + $0x244] ss:$8 sps:$4 sm:$0xff]  }
0x1ed5   : > { %8300 = vmax.xlane.f32.xlu0 %v8299_v41  ;;  %v17186_v39 = vld [vmem:[#allocation5 + $0x240] ss:$8 sps:$4 sm:$0xff]   ;;  %v17191_v41 = vld [vmem:[#allocation5 + $0x254] ss:$8 sps:$4 sm:$0xff]  }
0x1ed9   : > { %v8403_v42 = vpop.f32.mrb[68].mxu0 }
0x1eda   : > { %v8404_v45 = vadd.f32 %v17897_v25, %v8403_v42  ;;  %v16097_v50 = vpop.f32.mrb[69].mxu0  ;;  %v17189_v42 = vld [vmem:[#allocation5 + $0x250] ss:$8 sps:$4 sm:$0xff]  }
0x1edb   : > { %v8406_v34 = vpop.f32.mrb[70].mxu0  ;;  %v17192_v50 = vld [vmem:[#allocation5 + $0x260] ss:$8 sps:$4 sm:$0xff]  }
0x1edc   : > { %v16098_v47 = vpop.f32.mrb[71].mxu0  ;;  %v8409_v48 = vsel %vm1218_vm3, %v8404_v45, -inf  ;;  %v17197_v34 = vld [vmem:[#allocation5 + $0x274] ss:$8 sps:$4 sm:$0xff]  }
0x1edd   : > { %8410 = vmax.xlane.f32.xlu0 %v8409_v48  ;;  %v17195_v47 = vld [vmem:[#allocation5 + $0x270] ss:$8 sps:$4 sm:$0xff]   ;;  %v17200_v48 = vld [vmem:[#allocation5 + $0x284] ss:$8 sps:$4 sm:$0xff]  }
0x1ee7   : > { %v8081_v51 = vpop.xlane.xlu0 %8080 }
0x1ee8   : > { %v8082_v15 = vsub.f32 %v8074_v26, %v8081_v51  ;;  %v17198_v51 = vld [vmem:[#allocation5 + $0x280] ss:$8 sps:$4 sm:$0xff]  }
0x1eea   : > { %v8083_v54 = vmul.f32 1.442695, %v8082_v15  ;;  %v17203_v15 = vld [vmem:[#allocation5 + $0x294] ss:$8 sps:$4 sm:$0xff]  }
0x1eeb   : > { %v8202_v58 = vpop.permute.xlu0 %8201 }
0x1eec   : > { %17840 = vpow2.f32 %v8083_v54  ;;  %v8207_v62 = vsel %vm1233_vm2, %v8202_v58, 0  ;;  %v17206_v54 = vld [vmem:[#allocation5 + $0x2a4] ss:$8 sps:$4 sm:$0xff]  }
0x1eed   : > { %v17212_v58 = vld [vmem:[#allocation5 + $0x2c4] ss:$8 sps:$4 sm:$0xff]  }
0x1ef3   : > { %8421 = vrot.lane.b32.xlu0 %v8252_v20, %s18115_s23  ;;  %v17209_v20 = vld [vmem:[#allocation5 + $0x2b4] ss:$8 sps:$4 sm:$0xff]  }
0x1ef6   : > { %v17841_v57 = vpop.eup %17840 }
0x1ef7   : > { %v8089_v59 = vpack.c.bf16 %v17841_v57, %v17841_v57  ;;  %v8085_v27 = vsel %vm1218_vm3, %v17841_v57, 0.0  ;;  %v17207_v57 = vld [vmem:[#allocation5 + $0x2b0] ss:$8 sps:$4 sm:$0xff]  }
0x1ef9   : > { %16066 = vmatmul.mubr.msk.bf16.vlgmr.msra.gmra.mrb[116].mxu1 %vm1218_vm3, %v8089_v59  ;;  %v17210_v59 = vld [vmem:[#allocation5 + $0x2c0] ss:$8 sps:$4 sm:$0xff]  }
0x1efa   : > { %16076 = vmatpush3.bf16.msra.mxu1 %v8207_v62  ;;  %16077 = vmatprep.mubr.msk.bf16.mxu1 %vm18114_vm0, %v18113_v0  ;;  %v17215_v62 = vld [vmem:[#allocation5 + $0x2d4] ss:$8 sps:$4 sm:$0xff]  }
0x1efb   : > { %16087 = vmatprep.subr.bf16.mxu1 %v18113_v0 }
0x1f5a   : > { %v8191_v56 = vpop.xlane.xlu1 %8190 }
0x1f5b   : > { %v8192_v7 = vsub.f32 %v8184_v31, %v8191_v56  ;;  %v17174_v31 = vld [vmem:[#allocation5 + $0x200] ss:$8 sps:$4 sm:$0xff]   ;;  %v17213_v56 = vld [vmem:[#allocation5 + $0x2d0] ss:$8 sps:$4 sm:$0xff]  }
0x1f5c   : > { %8684 = vmatpush1.bf16.msra.mxu0 %v17174_v31 }
0x1f5d   : > { %v8193_v61 = vmul.f32 1.442695, %v8192_v7  ;;  %8685 = vmatprep.subr.bf16.mxu0 %v17179_v30  ;;  %v17218_v7 = vld [vmem:[#allocation5 + $0x2e4] ss:$8 sps:$4 sm:$0xff]  }
0x1f5f   : > { %17842 = vpow2.f32 %v8193_v61  ;;  %v17216_v61 = vld [vmem:[#allocation5 + $0x2e0] ss:$8 sps:$4 sm:$0xff]  }
0x1f60   : > { %8686 = vmatpush1.bf16.msra.mxu0 %v17177_v38 }
0x1f61   : > { %8687 = vmatprep.subr.bf16.mxu0 %v17182_v32 }
0x1f62   : > { %v8301_v55 = vpop.xlane.xlu0 %8300 }
0x1f63   : > { %v8302_v8 = vsub.f32 %v8294_v24, %v8301_v55  ;;  %v17185_v24 = vld [vmem:[#allocation5 + $0x234] ss:$8 sps:$4 sm:$0xff]  }
0x1f64   : > { %8688 = vmatpush1.bf16.msra.mxu0 %v17180_v6 }
0x1f65   : > { %v8303_v43 = vmul.f32 1.442695, %v8302_v8  ;;  %8689 = vmatprep.subr.bf16.mxu0 %v17185_v24 }
0x1f67   : > { %17844 = vpow2.f32 %v8303_v43 }
0x1f68   : > { %8690 = vmatpush1.bf16.msra.mxu0 %v17183_v40 }
0x1f69   : > { %v17843_v11 = vpop.eup %17842  ;;  %8691 = vmatprep.subr.bf16.mxu0 %v17188_v29 }
0x1f6a   : > { %v8411_v2 = vpop.xlane.xlu0 %8410  ;;  %v8195_v12 = vsel %vm1218_vm3, %v17843_v11, 0.0  ;;  %v8199_v60 = vpack.c.bf16 %v17843_v11, %v17843_v11 }
0x1f6b   : > { %v8412_v10 = vsub.f32 %v8404_v45, %v8411_v2  ;;  %8196 = vadd.xlane.f32.xlu0 %v8195_v12  ;;  %v17194_v45 = vld [vmem:[#allocation5 + $0x264] ss:$8 sps:$4 sm:$0xff]  }
0x1f6c   : > { %16078 = vmatmul.mubr.msk.bf16.vlgmr.msra.gmra.mrb[120].mxu1 %vm1218_vm3, %v8199_v60  ;;  %8692 = vmatpush1.bf16.msra.mxu0 %v17186_v39 }
0x1f6d   : > { %v8413_v22 = vmul.f32 1.442695, %v8412_v10  ;;  %16088 = vmatpush3.bf16.msra.mxu1 %v8314_v46  ;;  %16089 = vmatprep.mubr.msk.bf16.mxu1 %vm18114_vm0, %v18113_v0  ;;  %v17221_v46 = vld [vmem:[#allocation5 + $0x2f4] ss:$8 sps:$4 sm:$0xff]  }
0x1f6e   : > { %16099 = vmatprep.subr.bf16.mxu1 %v18113_v0  ;;  %v8422_v21 = vpop.permute.xlu0 %8421  ;;  %8693 = vmatprep.subr.bf16.mxu0 %v17191_v41 }
0x1f6f   : > { %17846 = vpow2.f32 %v8413_v22  ;;  %v8427_v14 = vsel %vm1233_vm2, %v8422_v21, 0 }
0x1f70   : > { %8694 = vmatpush1.bf16.msra.mxu0 %v17189_v42 }
0x1f71   : > { %v17845_v1 = vpop.eup %17844  ;;  %8695 = vmatprep.subr.bf16.mxu0 %v17194_v45  ;;  %v15096_v45 = vld [vmem:[%s19386_s7 + $0xb0] sm:$0xff] }
0x1f72   : > { %v8309_v37 = vpack.c.bf16 %v17845_v1, %v17845_v1  ;;  %v8305_v26 = vsel %vm1218_vm3, %v17845_v1, 0.0  ;;  %v17219_v1 = vld [vmem:[#allocation5 + $0x2f0] ss:$8 sps:$4 sm:$0xff]  }
0x1f74   : > { %16090 = vmatmul.mubr.msk.bf16.vlgmr.msra.gmra.mrb[124].mxu1 %vm1218_vm3, %v8309_v37  ;;  %8696 = vmatpush1.bf16.msra.mxu0 %v17192_v50  ;;  %v15097_v50 = vld [vmem:[%s19386_s7 + $0xb8] sm:$0xff] }
0x1f75   : > { %16100 = vmatpush3.bf16.msra.mxu1 %v8427_v14  ;;  %16101 = vmatprep.mubr.msk.bf16.mxu1 %vm18114_vm0, %v18113_v0 }
0x1f76   : > { %8697 = vmatprep.subr.bf16.mxu0 %v17197_v34  ;;  %v8522_v34 = vrot.slane %v15097_v50, %v18361_v18 }
0x1f78   : > { %8698 = vmatpush1.bf16.msra.mxu0 %v17195_v47 }
0x1f79   : > { %v17847_v19 = vpop.eup %17846  ;;  %8699 = vmatprep.subr.bf16.mxu0 %v17200_v48 }
0x1f7a   : > { %v8415_v16 = vsel %vm1218_vm3, %v17847_v19, 0.0  ;;  %v8419_v25 = vpack.c.bf16 %v17847_v19, %v17847_v19 }
0x1f7b   : > { %8416 = vadd.xlane.f32.xlu1 %v8415_v16 }
0x1f7c   : > { %16102 = vmatmul.mubr.msk.bf16.vlgmr.msra.gmra.mrb[128].mxu1 %vm1218_vm3, %v8419_v25  ;;  %8700 = vmatpush1.bf16.msra.mxu0 %v17198_v51 }
0x1f7d   : > { %8701 = vmatprep.subr.bf16.mxu0 %v17203_v15 }
0x1f7f   : > { %8306 = vadd.xlane.f32.xlu1 %v8305_v26 }
0x1f80   : > { %8702 = vmatpush1.bf16.msra.mxu0 %v17201_v53 }
0x1f81   : > { %8703 = vmatprep.subr.bf16.mxu0 %v17206_v54 }
0x1f83   : > { %8086 = vadd.xlane.f32.xlu1 %v8085_v27 }
0x1f84   : > { %8704 = vmatpush1.bf16.msra.mxu0 %v17204_v44 }
0x1f85   : > { %8705 = vmatprep.subr.bf16.mxu0 %v17209_v20 }
0x1f88   : > { %8706 = vmatpush1.bf16.msra.mxu0 %v17207_v57 }
0x1f89   : > { %8707 = vmatprep.subr.bf16.mxu0 %v17212_v58  ;;  %v8765_v58 = vld [vmem:[#allocation7 + $0x800] sm:$0xff] }
0x1f8c   : > { %8708 = vmatpush1.bf16.msra.mxu0 %v17210_v59  ;;  %v8769_v59 = vld [vmem:[#allocation7 + $0x820] sm:$0xff] }
0x1f8d   : > { %8709 = vmatprep.subr.bf16.mxu0 %v17215_v62  ;;  %v8766_v62 = vld [vmem:[#allocation7 + $0x808] sm:$0xff] }
0x1f90   : > { %8710 = vmatpush1.bf16.msra.mxu0 %v17213_v56  ;;  %v15234_v56 = vcombine.low %v8765_v58, %v8769_v59 }
0x1f91   : > { %8711 = vmatprep.subr.bf16.mxu0 %v17218_v7  ;;  %v15235_v7 = vcombine.high %v8765_v58, %v8769_v59  ;;  %v8821_v59 = vld [vmem:[#allocation7 + $0x9c0] sm:$0xff] }
0x1f93   : > { %9565 = vmatprep.subr.bf16.mxu1 %v15235_v7  ;;  %v8826_v7 = vld [vmem:[#allocation7 + $0x9e8] sm:$0xff] }
0x1f94   : > { %8712 = vmatpush1.bf16.msra.mxu0 %v17216_v61  ;;  %v8770_v61 = vld [vmem:[#allocation7 + $0x828] sm:$0xff]  ;;  %9566 = vmatpush1.bf16.msra.mxu1 %v15234_v56 }
0x1f95   : > { %8713 = vmatprep.subr.bf16.mxu0 %v17221_v46  ;;  %v8782_v46 = vld [vmem:[#allocation7 + $0x888] sm:$0xff] }
0x1f96   : > { %v8822_v56 = vld [vmem:[#allocation7 + $0x9c8] sm:$0xff] }
0x1f98   : > { %8714 = vmatpush1.bf16.msra.mxu0 %v17219_v1 }
0x1fcc   : > { %v18992_v33 = vpop.f32.mrb[116].mxu1 }
0x1fcd   : > { %v16067_v28 = vpop.f32.mrb[117].mxu1 }
0x1fce   : > { %v8133_v36 = vpop.f32.mrb[118].mxu1 }
0x1fcf   : > { %v16068_v3 = vpop.f32.mrb[119].mxu1 }
0x1ff8   : > { %v8197_v43 = vpop.xlane.xlu0 %8196 }
0x1ff9   : > { %17848 = vrcp.f32 %v8197_v43  ;;  %v15236_v43 = vcombine.low %v8766_v62, %v8770_v61 }
0x2003   : > { %v17849_v37 = vpop.eup %17848 }
0x2008   : > { %v8417_v2 = vpop.xlane.xlu1 %8416 }
0x2009   : > { %17850 = vrcp.f32 %v8417_v2  ;;  %v8774_v2 = vld [vmem:[#allocation7 + $0x848] sm:$0xff] }
0x200c   : > { %v8307_v3 = vpop.xlane.xlu1 %8306 }
0x2010   : > { %v8087_v31 = vpop.xlane.xlu1 %8086 }
0x2011   : > { %17852 = vrcp.f32 %v8087_v31  ;;  %v8797_v31 = vld [vmem:[#allocation7 + $0x900] sm:$0xff] }
0x2012   : > { %17854 = vrcp.f32 %v8307_v3 }
0x2013   : > { %v17851_v14 = vpop.eup %17850 }
0x201b   : > { %v17853_v13 = vpop.eup %17852 }
0x201c   : > { %v17855_v30 = vpop.eup %17854  ;;  %v8136_v6 = vmul.f32 %v17853_v13, %v18992_v33  ;;  %v8518_v33 = vrot.slane %v15096_v45, %v18361_v18  ;;  %v8801_v13 = vld [vmem:[#allocation7 + $0x920] sm:$0xff] }
0x201d   : > { %v15266_v45 = vcombine.low %v8797_v31, %v8801_v13 }
0x203f   : > { %v8243_v55 = vpop.f32.mrb[120].mxu1 }
0x2040   : > { %v16079_v8 = vpop.f32.mrb[121].mxu1  ;;  %v8249_v16 = vmul.f32 %v17849_v37, %v8243_v55  ;;  %v8773_v55 = vld [vmem:[#allocation7 + $0x840] sm:$0xff] }
0x2041   : > { %v8246_v11 = vpop.f32.mrb[122].mxu1  ;;  %v8777_v8 = vld [vmem:[#allocation7 + $0x860] sm:$0xff] }
0x2042   : > { %v16080_v12 = vpop.f32.mrb[123].mxu1  ;;  %v15237_v11 = vcombine.high %v8766_v62, %v8770_v61  ;;  %v15242_v1 = vcombine.low %v8773_v55, %v8777_v8  ;;  %v8825_v62 = vld [vmem:[#allocation7 + $0x9e0] sm:$0xff] }
0x2043   : > { %v8778_v12 = vld [vmem:[#allocation7 + $0x868] sm:$0xff] }
0x2044   : > { %9606 = vmatprep.subr.bf16.mxu0 %v15237_v11  ;;  %v8829_v11 = vld [vmem:[#allocation7 + $0xa00] sm:$0xff] }
0x2047   : > { %v8350_v60 = vpop.f32.mrb[124].mxu1 }
0x2048   : > { %v16091_v10 = vpop.f32.mrb[125].mxu1  ;;  %v8356_v32 = vmul.f32 %v17855_v30, %v8350_v60  ;;  %v8781_v60 = vld [vmem:[#allocation7 + $0x880] sm:$0xff]  ;;  %v8798_v30 = vld [vmem:[#allocation7 + $0x908] sm:$0xff] }
0x2049   : > { %v8353_v22 = vpop.f32.mrb[126].mxu1  ;;  %v8785_v10 = vld [vmem:[#allocation7 + $0x8a0] sm:$0xff] }
0x204a   : > { %v16092_v21 = vpop.f32.mrb[127].mxu1  ;;  %v8786_v22 = vld [vmem:[#allocation7 + $0x8a8] sm:$0xff]  ;;  %v15251_v37 = vcombine.high %v8781_v60, %v8785_v10 }
0x204b   : > { %v15244_v21 = vcombine.low %v8774_v2, %v8778_v12 }
0x204f   : > { %v8463_v19 = vpop.f32.mrb[128].mxu1 }
0x2050   : > { %v8469_v25 = vmul.f32 %v17851_v14, %v8463_v19  ;;  %v16103_v26 = vpop.f32.mrb[129].mxu1  ;;  %v15253_v14 = vcombine.high %v8782_v46, %v8786_v22  ;;  %v8789_v19 = vld [vmem:[#allocation7 + $0x8c0] sm:$0xff] }
0x2051   : > { %v8466_v27 = vpop.f32.mrb[130].mxu1  ;;  %v8794_v26 = vld [vmem:[#allocation7 + $0x8e8] sm:$0xff] }
0x2052   : > { %v16252_v28 = vpack.i.bf16 %v8249_v16, %v8469_v25  ;;  %v16104_v36 = vpop.f32.mrb[131].mxu1  ;;  %v8793_v16 = vld [vmem:[#allocation7 + $0x8e0] sm:$0xff]  ;;  %v8790_v25 = vld [vmem:[#allocation7 + $0x8c8] sm:$0xff]  ;;  %v15250_v27 = vcombine.low %v8781_v60, %v8785_v10  ;;  %v15290_v60 = vcombine.low %v8821_v59, %v8825_v62 }
0x2053   : > { %v15259_v36 = vcombine.high %v8789_v19, %v8793_v16  ;;  %v15261_v3 = vcombine.high %v8790_v25, %v8794_v26 }
0x2054   : > { %16253 = vrot.lane.b32.xlu1 %v16252_v28, %s18115_s23  ;;  %v15252_v28 = vcombine.low %v8782_v46, %v8786_v22  ;;  %v8837_v22 = vld [vmem:[#allocation7 + $0xa40] sm:$0xff] }
0x20c6   : > { %v16254_v38 = vpop.permute.xlu1 %16253 }
0x20c7   : > { %v16256_v24 = vunpack.i.h.bf16 %v16254_v38  ;;  %v16255_v40 = vunpack.i.l.bf16 %v16254_v38  ;;  %v8802_v38 = vld [vmem:[#allocation7 + $0x928] sm:$0xff] }
0x20c8   : > { %v15268_v50 = vcombine.low %v8798_v30, %v8802_v38 }
0x20c9   : > { %v8478_v29 = vsel %vm1171_vm1, %v8136_v6, %v16256_v24  ;;  %v8479_v39 = vsel %vm1171_vm1, %v8356_v32, %v16255_v40  ;;  %v15258_v32 = vcombine.low %v8789_v19, %v8793_v16  ;;  %v15260_v6 = vcombine.low %v8790_v25, %v8794_v26  ;;  %v8845_v26 = vld [vmem:[#allocation7 + $0xa80] sm:$0xff] }
0x20ca   : > { %v8480_v41 = vpack.c.bf16 %v8478_v29, %v8478_v29  ;;  %v8481_v42 = vpack.c.bf16 %v8479_v39, %v8479_v39  ;;  %v15267_v24 = vcombine.high %v8797_v31, %v8801_v13  ;;  %v15269_v40 = vcombine.high %v8798_v30, %v8802_v38  ;;  %v8805_v29 = vld [vmem:[#allocation7 + $0x940] sm:$0xff] }
0x20cb   : > { %v8809_v39 = vld [vmem:[#allocation7 + $0x960] sm:$0xff] }
0x20cc   : > { %8715 = vmatprep.mubr.bf16.mxu0 %v8481_v42  ;;  %v8810_v42 = vld [vmem:[#allocation7 + $0x968] sm:$0xff] }
0x20cd   : > { %8716 = vmatmul.mubr.bf16.vlgmr.msra.gmra.mrb[72].mxu0 %v8480_v41  ;;  %v8806_v41 = vld [vmem:[#allocation7 + $0x948] sm:$0xff] }
0x20ce   : > { %9607 = vmatpush1.bf16.msra.mxu0 %v15236_v43  ;;  %v15293_v43 = vcombine.high %v8822_v56, %v8826_v7 }
0x21a0   : > { %v8717_v47 = vpop.f32.mrb[72].mxu0 }
0x21a1   : > { %v8718_v48 = vadd.f32 %v8717_v47, %v8518_v33  ;;  %v8719_v51 = vpop.f32.mrb[73].mxu0  ;;  %v15275_v33 = vcombine.high %v8805_v29, %v8809_v39  ;;  %v8813_v47 = vld [vmem:[#allocation7 + $0x980] sm:$0xff] }
0x21a2   : > { %v8720_v15 = vadd.f32 %v8719_v51, %v8522_v34  ;;  %v8721_v53 = vpop.f32.mrb[74].mxu0  ;;  %v15277_v34 = vcombine.high %v8806_v41, %v8810_v42  ;;  %v8814_v51 = vld [vmem:[#allocation7 + $0x988] sm:$0xff] }
0x21a3   : > { %v19007_v54 = vadd.f32 %v8718_v48, %v18891_v4  ;;  %v8722_v44 = vpop.f32.mrb[75].mxu0  ;;  %v15243_v4 = vcombine.high %v8773_v55, %v8777_v8  ;;  %v8817_v48 = vld [vmem:[#allocation7 + $0x9a0] sm:$0xff]  ;;  %v15274_v53 = vcombine.low %v8805_v29, %v8809_v39  ;;  %v15291_v8 = vcombine.high %v8821_v59, %v8825_v62 }
0x21a4   : > { %v19010_v20 = vadd.f32 %v8720_v15, %v18889_v63  ;;  %v15245_v63 = vcombine.high %v8774_v2, %v8778_v12  ;;  %v8818_v15 = vld [vmem:[#allocation7 + $0x9a8] sm:$0xff]  ;;  %v15276_v44 = vcombine.low %v8806_v41, %v8810_v42  ;;  %v15282_v61 = vcombine.low %v8813_v47, %v8817_v48 }
0x21a5   : > { %9567 = vmatprep.subr.bf16.mxu1 %v15243_v4  ;;  %v15285_v58 = vcombine.high %v8814_v51, %v8818_v15  ;;  %v15284_v55 = vcombine.low %v8814_v51, %v8818_v15  ;;  %v8833_v4 = vld [vmem:[#allocation7 + $0xa20] sm:$0xff]  ;;  %v8830_v2 = vld [vmem:[#allocation7 + $0xa08] sm:$0xff] }
0x21a6   : > { %v8726_v57 = vadd.f32 %v19010_v20, %v19007_v54  ;;  %9608 = vmatprep.subr.bf16.mxu0 %v15245_v63  ;;  %9568 = vmatpush1.bf16.msra.mxu1 %v15242_v1  ;;  %v8834_v12 = vld [vmem:[#allocation7 + $0xa28] sm:$0xff]  ;;  %v15292_v63 = vcombine.low %v8822_v56, %v8826_v7  ;;  %v15299_v10 = vcombine.high %v8829_v11, %v8833_v4  ;;  %v8841_v1 = vld [vmem:[#allocation7 + $0xa60] sm:$0xff] }
0x21a7   : > { %9609 = vmatpush1.bf16.msra.mxu0 %v15244_v21  ;;  %9569 = vmatprep.subr.bf16.mxu1 %v15251_v37  ;;  %v15301_v46 = vcombine.high %v8830_v2, %v8834_v12  ;;  %v8838_v21 = vld [vmem:[#allocation7 + $0xa48] sm:$0xff]  ;;  %v15300_v19 = vcombine.low %v8830_v2, %v8834_v12  ;;  %v15307_v16 = vcombine.high %v8837_v22, %v8841_v1  ;;  %v8865_v15 = vld [vmem:[#allocation7 + $0xb20] sm:$0xff] }
0x21a8   : > { %8727 = vadd.xlane.f32.xlu1 %v8726_v57  ;;  %9610 = vmatprep.subr.bf16.mxu0 %v15253_v14  ;;  %v15283_v57 = vcombine.high %v8813_v47, %v8817_v48  ;;  %v8842_v37 = vld [vmem:[#allocation7 + $0xa68] sm:$0xff]  ;;  %v15298_v14 = vcombine.low %v8829_v11, %v8833_v4  ;;  %v8869_v56 = vld [vmem:[#allocation7 + $0xb40] sm:$0xff] }
0x21a9   : > { %v15309_v25 = vcombine.high %v8838_v21, %v8842_v37  ;;  %v15308_v31 = vcombine.low %v8838_v21, %v8842_v37  ;;  %v8858_v47 = vld [vmem:[#allocation7 + $0xae8] sm:$0xff]  ;;  %v8873_v7 = vld [vmem:[#allocation7 + $0xb60] sm:$0xff] }
0x21aa   : > { %9570 = vmatpush1.bf16.msra.mxu1 %v15250_v27  ;;  %v8849_v27 = vld [vmem:[#allocation7 + $0xaa0] sm:$0xff] }
0x21ab   : > { %9611 = vmatpush1.bf16.msra.mxu0 %v15252_v28  ;;  %9571 = vmatprep.subr.bf16.mxu1 %v15259_v36  ;;  %v8846_v28 = vld [vmem:[#allocation7 + $0xa88] sm:$0xff]  ;;  %v15315_v13 = vcombine.high %v8845_v26, %v8849_v27  ;;  %v15314_v38 = vcombine.low %v8845_v26, %v8849_v27  ;;  %v8877_v2 = vld [vmem:[#allocation7 + $0xb80] sm:$0xff] }
0x21ac   : > { %9612 = vmatprep.subr.bf16.mxu0 %v15261_v3  ;;  %v8850_v36 = vld [vmem:[#allocation7 + $0xaa8] sm:$0xff]  ;;  %v15306_v3 = vcombine.low %v8837_v22, %v8841_v1  ;;  %v8881_v12 = vld [vmem:[#allocation7 + $0xba0] sm:$0xff] }
0x21ad   : > { %v15317_v30 = vcombine.high %v8846_v28, %v8850_v36  ;;  %v8885_v21 = vld [vmem:[#allocation7 + $0xbc0] sm:$0xff] }
0x21ae   : > { %9572 = vmatpush1.bf16.msra.mxu1 %v15258_v32  ;;  %v15316_v32 = vcombine.low %v8846_v28, %v8850_v36  ;;  %v8889_v37 = vld [vmem:[#allocation7 + $0xbe0] sm:$0xff]  ;;  %v8767_v28 = vld [vmem:[#allocation7 + $0x810] sm:$0xff] }
0x21af   : > { %9613 = vmatpush1.bf16.msra.mxu0 %v15260_v6  ;;  %9573 = vmatprep.subr.bf16.mxu1 %v15267_v24  ;;  %v8771_v36 = vld [vmem:[#allocation7 + $0x830] sm:$0xff] }
0x21b0   : > { %9614 = vmatprep.subr.bf16.mxu0 %v15269_v40 }
0x21b2   : > { %9574 = vmatpush1.bf16.msra.mxu1 %v15266_v45  ;;  %v8853_v45 = vld [vmem:[#allocation7 + $0xac0] sm:$0xff] }
0x21b3   : > { %9615 = vmatpush1.bf16.msra.mxu0 %v15268_v50  ;;  %9575 = vmatprep.subr.bf16.mxu1 %v15275_v33  ;;  %v8857_v50 = vld [vmem:[#allocation7 + $0xae0] sm:$0xff]  ;;  %v8854_v33 = vld [vmem:[#allocation7 + $0xac8] sm:$0xff] }
0x21b4   : > { %9616 = vmatprep.subr.bf16.mxu0 %v15277_v34  ;;  %v15323_v34 = vcombine.high %v8853_v45, %v8857_v50  ;;  %v15322_v48 = vcombine.low %v8853_v45, %v8857_v50  ;;  %v15324_v51 = vcombine.low %v8854_v33, %v8858_v47  ;;  %v8755_v50 = vrot.slane %v18941_v52, %v18541_v9 }
0x21b6   : > { %9576 = vmatpush1.bf16.msra.mxu1 %v15274_v53  ;;  %v8862_v53 = vld [vmem:[#allocation7 + $0xb08] sm:$0xff] }
0x21b7   : > { %9617 = vmatpush1.bf16.msra.mxu0 %v15276_v44  ;;  %9577 = vmatprep.subr.bf16.mxu1 %v15283_v57  ;;  %v8866_v57 = vld [vmem:[#allocation7 + $0xb28] sm:$0xff] }
0x21b8   : > { %9618 = vmatprep.subr.bf16.mxu0 %v15285_v58  ;;  %v15332_v59 = vcombine.low %v8862_v53, %v8866_v57  ;;  %v15333_v62 = vcombine.high %v8862_v53, %v8866_v57  ;;  %v8780_v53 = vld [vmem:[#allocation7 + $0x878] sm:$0xff]  ;;  %v8787_v57 = vld [vmem:[#allocation7 + $0x8b0] sm:$0xff] }
0x21ba   : > { %9578 = vmatpush1.bf16.msra.mxu1 %v15282_v61  ;;  %v8870_v61 = vld [vmem:[#allocation7 + $0xb48] sm:$0xff] }
0x21bb   : > { %9619 = vmatpush1.bf16.msra.mxu0 %v15284_v55  ;;  %9579 = vmatprep.subr.bf16.mxu1 %v15291_v8  ;;  %v15339_v55 = vcombine.high %v8869_v56, %v8873_v7  ;;  %v8874_v8 = vld [vmem:[#allocation7 + $0xb68] sm:$0xff] }
0x21bc   : > { %9620 = vmatprep.subr.bf16.mxu0 %v15293_v43  ;;  %v15338_v43 = vcombine.low %v8869_v56, %v8873_v7  ;;  %v15340_v11 = vcombine.low %v8870_v61, %v8874_v8  ;;  %v15341_v4 = vcombine.high %v8870_v61, %v8874_v8  ;;  %v8795_v8 = vld [vmem:[#allocation7 + $0x8f0] sm:$0xff] }
0x21be   : > { %9580 = vmatpush1.bf16.msra.mxu1 %v15290_v60  ;;  %v8878_v60 = vld [vmem:[#allocation7 + $0xb88] sm:$0xff] }
0x21bf   : > { %9621 = vmatpush1.bf16.msra.mxu0 %v15292_v63  ;;  %9581 = vmatprep.subr.bf16.mxu1 %v15299_v10  ;;  %v15347_v63 = vcombine.high %v8877_v2, %v8881_v12  ;;  %v8882_v10 = vld [vmem:[#allocation7 + $0xba8] sm:$0xff] }
0x21c0   : > { %9622 = vmatprep.subr.bf16.mxu0 %v15301_v46  ;;  %v15346_v46 = vcombine.low %v8877_v2, %v8881_v12  ;;  %v15348_v22 = vcombine.low %v8878_v60, %v8882_v10  ;;  %v15349_v1 = vcombine.high %v8878_v60, %v8882_v10  ;;  %v8803_v10 = vld [vmem:[#allocation7 + $0x930] sm:$0xff] }
0x21c2   : > { %9582 = vmatpush1.bf16.msra.mxu1 %v15298_v14  ;;  %v8886_v14 = vld [vmem:[#allocation7 + $0xbc8] sm:$0xff] }
0x21c3   : > { %9623 = vmatpush1.bf16.msra.mxu0 %v15300_v19  ;;  %9583 = vmatprep.subr.bf16.mxu1 %v15307_v16  ;;  %v15355_v19 = vcombine.high %v8885_v21, %v8889_v37  ;;  %v8890_v16 = vld [vmem:[#allocation7 + $0xbe8] sm:$0xff] }
0x21c4   : > { %9624 = vmatprep.subr.bf16.mxu0 %v15309_v25  ;;  %v15354_v25 = vcombine.low %v8885_v21, %v8889_v37  ;;  %v15357_v26 = vcombine.high %v8886_v14, %v8890_v16  ;;  %v15356_v27 = vcombine.low %v8886_v14, %v8890_v16  ;;  %v8811_v16 = vld [vmem:[#allocation7 + $0x970] sm:$0xff] }
0x21c6   : > { %9584 = vmatpush1.bf16.msra.mxu1 %v15306_v3  ;;  %v8768_v3 = vld [vmem:[#allocation7 + $0x818] sm:$0xff] }
0x21c7   : > { %9625 = vmatpush1.bf16.msra.mxu0 %v15308_v31  ;;  %9585 = vmatprep.subr.bf16.mxu1 %v15315_v13  ;;  %v15239_v31 = vcombine.high %v8767_v28, %v8771_v36  ;;  %v8772_v13 = vld [vmem:[#allocation7 + $0x838] sm:$0xff] }
0x21c8   : > { %9626 = vmatprep.subr.bf16.mxu0 %v15317_v30  ;;  %v15238_v30 = vcombine.low %v8767_v28, %v8771_v36 }
0x21ca   : > { %9586 = vmatpush1.bf16.msra.mxu1 %v15314_v38  ;;  %v15240_v38 = vcombine.low %v8768_v3, %v8772_v13 }
0x21cb   : > { %9627 = vmatpush1.bf16.msra.mxu0 %v15316_v32  ;;  %9587 = vmatprep.subr.bf16.mxu1 %v15323_v34  ;;  %v15241_v32 = vcombine.high %v8768_v3, %v8772_v13  ;;  %v8819_v13 = vld [vmem:[#allocation7 + $0x9b0] sm:$0xff] }
0x21ce   : > { %9588 = vmatpush1.bf16.msra.mxu1 %v15322_v48 }
0x2235   : > { %v8728_v6 = vpop.xlane.xlu1 %8727 }
0x2236   : > { %v8729_v24 = vmul.f32 0.00390625, %v8728_v6 }
0x2238   : > { %v19015_v40 = vsub.f32 %v19007_v54, %v8729_v24  ;;  %v19018_v29 = vsub.f32 %v19010_v20, %v8729_v24  ;;  %v15325_v54 = vcombine.high %v8854_v33, %v8858_v47  ;;  %v8861_v20 = vld [vmem:[#allocation7 + $0xb00] sm:$0xff]  ;;  %v8759_v33 = vrot.slane %v18968_v49, %v18541_v9 }
0x2239   : > { %v15331_v44 = vcombine.high %v8861_v20, %v8865_v15  ;;  %v15330_v58 = vcombine.low %v8861_v20, %v8865_v15  ;;  %v8779_v15 = vld [vmem:[#allocation7 + $0x870] sm:$0xff] }
0x223a   : > { %v8732_v39 = vmul.f32 %v19015_v40, %v19015_v40  ;;  %v8733_v41 = vmul.f32 %v19018_v29, %v19018_v29  ;;  %9628 = vmatprep.subr.bf16.mxu0 %v15325_v54 }
0x223b   : > { %9629 = vmatpush1.bf16.msra.mxu0 %v15324_v51  ;;  %9589 = vmatprep.subr.bf16.mxu1 %v15331_v44 }
0x223c   : > { %v8734_v42 = vadd.f32 %v8733_v41, %v8732_v39  ;;  %9630 = vmatprep.subr.bf16.mxu0 %v15333_v62  ;;  %9590 = vmatpush1.bf16.msra.mxu1 %v15330_v58  ;;  %v8745_v41 = vrot.slane %v18913_v23, %v18541_v9  ;;  %v8775_v23 = vld [vmem:[#allocation7 + $0x850] sm:$0xff]  ;;  %v8784_v58 = vld [vmem:[#allocation7 + $0x898] sm:$0xff] }
0x223d   : > { %9591 = vmatprep.subr.bf16.mxu1 %v15339_v55  ;;  %v15246_v62 = vcombine.low %v8775_v23, %v8779_v15  ;;  %v8791_v55 = vld [vmem:[#allocation7 + $0x8d0] sm:$0xff] }
0x223e   : > { %8735 = vadd.xlane.f32.xlu0 %v8734_v42  ;;  %v8749_v42 = vrot.slane %v18924_v5, %v18541_v9  ;;  %v8776_v5 = vld [vmem:[#allocation7 + $0x858] sm:$0xff]  ;;  %v15263_v12 = vcombine.high %v8791_v55, %v8795_v8 }
0x223f   : > { %9631 = vmatpush1.bf16.msra.mxu0 %v15332_v59  ;;  %v15249_v44 = vcombine.high %v8776_v5, %v8780_v53  ;;  %v8788_v59 = vld [vmem:[#allocation7 + $0x8b8] sm:$0xff]  ;;  %v15248_v56 = vcombine.low %v8776_v5, %v8780_v53 }
0x2240   : > { %9632 = vmatprep.subr.bf16.mxu0 %v15341_v4  ;;  %9592 = vmatpush1.bf16.msra.mxu1 %v15338_v43  ;;  %v15257_v61 = vcombine.high %v8784_v58, %v8788_v59  ;;  %v8792_v43 = vld [vmem:[#allocation7 + $0x8d8] sm:$0xff]  ;;  %v15256_v2 = vcombine.low %v8784_v58, %v8788_v59 }
0x2241   : > { %9593 = vmatprep.subr.bf16.mxu1 %v15347_v63  ;;  %v8799_v63 = vld [vmem:[#allocation7 + $0x910] sm:$0xff]  ;;  %v8836_v5 = vld [vmem:[#allocation7 + $0xa38] sm:$0xff] }
0x2242   : > { %v15271_v37 = vcombine.high %v8799_v63, %v8803_v10  ;;  %v8840_v58 = vld [vmem:[#allocation7 + $0xa58] sm:$0xff] }
0x2243   : > { %9633 = vmatpush1.bf16.msra.mxu0 %v15340_v11  ;;  %v8796_v11 = vld [vmem:[#allocation7 + $0x8f8] sm:$0xff] }
0x2244   : > { %9634 = vmatprep.subr.bf16.mxu0 %v15349_v1  ;;  %9594 = vmatpush1.bf16.msra.mxu1 %v15346_v46  ;;  %v15265_v60 = vcombine.high %v8792_v43, %v8796_v11  ;;  %v8800_v46 = vld [vmem:[#allocation7 + $0x918] sm:$0xff]  ;;  %v15262_v1 = vcombine.low %v8791_v55, %v8795_v8  ;;  %v15264_v21 = vcombine.low %v8792_v43, %v8796_v11  ;;  %v8847_v55 = vld [vmem:[#allocation7 + $0xa90] sm:$0xff] }
0x2245   : > { %9595 = vmatprep.subr.bf16.mxu1 %v15355_v19  ;;  %v8807_v19 = vld [vmem:[#allocation7 + $0x950] sm:$0xff]  ;;  %v8844_v59 = vld [vmem:[#allocation7 + $0xa78] sm:$0xff] }
0x2246   : > { %v15279_v36 = vcombine.high %v8807_v19, %v8811_v16  ;;  %v8851_v8 = vld [vmem:[#allocation7 + $0xab0] sm:$0xff]  ;;  %v8848_v43 = vld [vmem:[#allocation7 + $0xa98] sm:$0xff] }
0x2247   : > { %9635 = vmatpush1.bf16.msra.mxu0 %v15348_v22  ;;  %v8804_v22 = vld [vmem:[#allocation7 + $0x938] sm:$0xff] }
0x2248   : > { %9636 = vmatprep.subr.bf16.mxu0 %v15357_v26  ;;  %9596 = vmatpush1.bf16.msra.mxu1 %v15354_v25  ;;  %v15273_v14 = vcombine.high %v8800_v46, %v8804_v22  ;;  %v8808_v25 = vld [vmem:[#allocation7 + $0x958] sm:$0xff]  ;;  %v15272_v28 = vcombine.low %v8800_v46, %v8804_v22 }
0x2249   : > { %9647 = vmatprep.subr.bf16.mxu1 %v15239_v31  ;;  %v8812_v26 = vld [vmem:[#allocation7 + $0x978] sm:$0xff]  ;;  %v8815_v31 = vld [vmem:[#allocation7 + $0x990] sm:$0xff] }
0x224a   : > { %v15281_v3 = vcombine.high %v8808_v25, %v8812_v26  ;;  %v8852_v11 = vld [vmem:[#allocation7 + $0xab8] sm:$0xff] }
0x224b   : > { %9637 = vmatpush1.bf16.msra.mxu0 %v15356_v27  ;;  %v15270_v27 = vcombine.low %v8799_v63, %v8803_v10  ;;  %v8855_v63 = vld [vmem:[#allocation7 + $0xad0] sm:$0xff]  ;;  %v8856_v46 = vld [vmem:[#allocation7 + $0xad8] sm:$0xff] }
0x224c   : > { %9688 = vmatprep.subr.bf16.mxu0 %v15241_v32  ;;  %v15278_v32 = vcombine.low %v8807_v19, %v8811_v16  ;;  %v8859_v10 = vld [vmem:[#allocation7 + $0xaf0] sm:$0xff]  ;;  %v8860_v22 = vld [vmem:[#allocation7 + $0xaf8] sm:$0xff] }
0x224d   : > { %v8863_v19 = vld [vmem:[#allocation7 + $0xb10] sm:$0xff] }
0x224e   : > { %v8867_v16 = vld [vmem:[#allocation7 + $0xb30] sm:$0xff] }
0x22cb   : > { %v8736_v6 = vpop.xlane.xlu0 %8735 }
0x22cc   : > { %v8737_v24 = vmul.f32 0.00390625, %v8736_v6  ;;  %v15280_v6 = vcombine.low %v8808_v25, %v8812_v26  ;;  %v8864_v25 = vld [vmem:[#allocation7 + $0xb18] sm:$0xff] }
0x22cd   : > { %v8868_v26 = vld [vmem:[#allocation7 + $0xb38] sm:$0xff] }
0x22ce   : > { %v8738_v39 = vadd.f32 1e-05, %v8737_v24  ;;  %v15287_v24 = vcombine.high %v8815_v31, %v8819_v13 }
0x22d0   : > { %17856 = vrsqrt.f32 %v8738_v39 }
0x22da   : > { %v17857_v45 = vpop.eup %17856 }
0x22db   : > { %v8740_v34 = vmul.f32 %v17857_v45, %v19015_v40  ;;  %v8741_v47 = vmul.f32 %v17857_v45, %v19018_v29  ;;  %v8783_v40 = vld [vmem:[#allocation7 + $0x890] sm:$0xff]  ;;  %v15247_v29 = vcombine.high %v8775_v23, %v8779_v15  ;;  %v8824_v45 = vld [vmem:[#allocation7 + $0x9d8] sm:$0xff] }
0x22dc   : > { %v15255_v7 = vcombine.high %v8783_v40, %v8787_v57  ;;  %v15254_v4 = vcombine.low %v8783_v40, %v8787_v57  ;;  %v8835_v23 = vld [vmem:[#allocation7 + $0xa30] sm:$0xff]  ;;  %v8832_v15 = vld [vmem:[#allocation7 + $0xa18] sm:$0xff] }
0x22dd   : > { %v8751_v48 = vmul.f32 %v8749_v42, %v8741_v47  ;;  %v8750_v51 = vmul.f32 %v8745_v41, %v8740_v34  ;;  %v8823_v41 = vld [vmem:[#allocation7 + $0x9d0] sm:$0xff] }
0x22de   : > { %v8827_v42 = vld [vmem:[#allocation7 + $0x9f0] sm:$0xff] }
0x22df   : > { %v19034_v54 = vadd.f32 %v8759_v33, %v8751_v48  ;;  %v19036_v20 = vadd.f32 %v8755_v50, %v8750_v51  ;;  %v8828_v50 = vld [vmem:[#allocation7 + $0x9f8] sm:$0xff]  ;;  %v15286_v33 = vcombine.low %v8815_v31, %v8819_v13  ;;  %v15295_v47 = vcombine.high %v8823_v41, %v8827_v42  ;;  %v8831_v51 = vld [vmem:[#allocation7 + $0xa10] sm:$0xff] }
0x22e0   : > { %v15297_v48 = vcombine.high %v8824_v45, %v8828_v50  ;;  %v15294_v53 = vcombine.low %v8823_v41, %v8827_v42  ;;  %v15303_v40 = vcombine.high %v8831_v51, %v8835_v23  ;;  %v8843_v57 = vld [vmem:[#allocation7 + $0xa70] sm:$0xff] }
0x22e1   : > { %v8763_v52 = vpack.c.bf16 %v19034_v54, %v19034_v54  ;;  %v19042_v49 = vpack.c.bf16 %v19036_v20, %v19036_v20  ;;  %v8871_v31 = vld [vmem:[#allocation7 + $0xb50] sm:$0xff] }
0x22e2   : > { %v8875_v13 = vld [vmem:[#allocation7 + $0xb70] sm:$0xff] }
0x22e3   : > { %9597 = vmatprep.mubr.bf16.mxu1 %v8763_v52  ;;  %9638 = vmatprep.mubr.bf16.mxu0 %v8763_v52  ;;  %v8879_v41 = vld [vmem:[#allocation7 + $0xb90] sm:$0xff] }
0x22e4   : > { %9598 = vmatmul.mubr.bf16.vlgmr.msra.gmra.mrb[132].mxu1 %v19042_v49  ;;  %9639 = vmatmul.mubr.bf16.vlgmr.msra.gmra.mrb[76].mxu0 %v19042_v49  ;;  %v8883_v42 = vld [vmem:[#allocation7 + $0xbb0] sm:$0xff] }
0x22e5   : > { %9648 = vmatpush1.bf16.msra.mxu1 %v15238_v30  ;;  %9689 = vmatpush1.bf16.msra.mxu0 %v15240_v38  ;;  %v8816_v30 = vld [vmem:[#allocation7 + $0x998] sm:$0xff] }
0x22e6   : > { %9679 = vmatprep.mubr.bf16.mxu1 %v8763_v52  ;;  %9720 = vmatprep.mubr.bf16.mxu0 %v8763_v52  ;;  %v8820_v38 = vld [vmem:[#allocation7 + $0x9b8] sm:$0xff]  ;;  %v15296_v52 = vcombine.low %v8824_v45, %v8828_v50 }
0x22e7   : > { %9649 = vmatprep.subr.bf16.mxu1 %v15247_v29  ;;  %9690 = vmatprep.subr.bf16.mxu0 %v15249_v44  ;;  %v15289_v39 = vcombine.high %v8816_v30, %v8820_v38  ;;  %v15288_v34 = vcombine.low %v8816_v30, %v8820_v38  ;;  %v15305_v29 = vcombine.high %v8832_v15, %v8836_v5  ;;  %v8839_v44 = vld [vmem:[#allocation7 + $0xa50] sm:$0xff]  ;;  %v8872_v30 = vld [vmem:[#allocation7 + $0xb58] sm:$0xff] }
0x22e8   : > { %v8876_v38 = vld [vmem:[#allocation7 + $0xb78] sm:$0xff] }
0x22e9   : > { %9650 = vmatpush1.bf16.msra.mxu1 %v15246_v62  ;;  %9691 = vmatpush1.bf16.msra.mxu0 %v15248_v56  ;;  %v15302_v62 = vcombine.low %v8831_v51, %v8835_v23  ;;  %v15304_v56 = vcombine.low %v8832_v15, %v8836_v5  ;;  %v8880_v45 = vld [vmem:[#allocation7 + $0xb98] sm:$0xff]  ;;  %v8887_v51 = vld [vmem:[#allocation7 + $0xbd0] sm:$0xff] }
0x22ea   : > { %9651 = vmatprep.subr.bf16.mxu1 %v15255_v7  ;;  %9692 = vmatprep.subr.bf16.mxu0 %v15257_v61  ;;  %v15311_v7 = vcombine.high %v8839_v44, %v8843_v57  ;;  %v15313_v61 = vcombine.high %v8840_v58, %v8844_v59  ;;  %v8884_v50 = vld [vmem:[#allocation7 + $0xbb8] sm:$0xff]  ;;  %v8891_v23 = vld [vmem:[#allocation7 + $0xbf0] sm:$0xff] }
0x22eb   : > { %v8888_v15 = vld [vmem:[#allocation7 + $0xbd8] sm:$0xff] }
0x22ec   : > { %v8892_v5 = vld [vmem:[#allocation7 + $0xbf8] sm:$0xff] }
0x22ed   : > { %9652 = vmatpush1.bf16.msra.mxu1 %v15254_v4  ;;  %9693 = vmatpush1.bf16.msra.mxu0 %v15256_v2  ;;  %v15310_v4 = vcombine.low %v8839_v44, %v8843_v57  ;;  %v15312_v2 = vcombine.low %v8840_v58, %v8844_v59  ;;  %v15358_v44 = vcombine.low %v8887_v51, %v8891_v23  ;;  %v17224_v58 = vld [vmem:[#allocation8 + $0x804] ss:$8 sps:$4 sm:$0xff]  }
0x22ee   : > { %9653 = vmatprep.subr.bf16.mxu1 %v15263_v12  ;;  %9694 = vmatprep.subr.bf16.mxu0 %v15265_v60  ;;  %v15319_v12 = vcombine.high %v8847_v55, %v8851_v8  ;;  %v15321_v60 = vcombine.high %v8848_v43, %v8852_v11  ;;  %v15360_v57 = vcombine.low %v8888_v15, %v8892_v5  ;;  %v17227_v59 = vld [vmem:[#allocation8 + $0x904] ss:$8 sps:$4 sm:$0xff]  }
0x22f1   : > { %9654 = vmatpush1.bf16.msra.mxu1 %v15262_v1  ;;  %9695 = vmatpush1.bf16.msra.mxu0 %v15264_v21  ;;  %v15318_v1 = vcombine.low %v8847_v55, %v8851_v8  ;;  %v15320_v21 = vcombine.low %v8848_v43, %v8852_v11  ;;  %v17228_v55 = vld [vmem:[#allocation8 + $0x810] ss:$8 sps:$4 sm:$0xff]   ;;  %v17236_v43 = vld [vmem:[#allocation8 + $0x824] ss:$8 sps:$4 sm:$0xff]  }
0x22f2   : > { %9655 = vmatprep.subr.bf16.mxu1 %v15271_v37  ;;  %9696 = vmatprep.subr.bf16.mxu0 %v15273_v14  ;;  %v15327_v37 = vcombine.high %v8855_v63, %v8859_v10  ;;  %v15329_v14 = vcombine.high %v8856_v46, %v8860_v22  ;;  %v17231_v8 = vld [vmem:[#allocation8 + $0x910] ss:$8 sps:$4 sm:$0xff]   ;;  %v17239_v11 = vld [vmem:[#allocation8 + $0x924] ss:$8 sps:$4 sm:$0xff]  }
0x22f5   : > { %9656 = vmatpush1.bf16.msra.mxu1 %v15270_v27  ;;  %9697 = vmatpush1.bf16.msra.mxu0 %v15272_v28  ;;  %v15326_v27 = vcombine.low %v8855_v63, %v8859_v10  ;;  %v15328_v28 = vcombine.low %v8856_v46, %v8860_v22  ;;  %v17240_v63 = vld [vmem:[#allocation8 + $0x830] ss:$8 sps:$4 sm:$0xff]   ;;  %v17248_v10 = vld [vmem:[#allocation8 + $0x844] ss:$8 sps:$4 sm:$0xff]   ;;  %v17246_v22 = vld [vmem:[#allocation8 + $0x840] ss:$8 sps:$4 sm:$0xff]  }
0x22f6   : > { %9657 = vmatprep.subr.bf16.mxu1 %v15279_v36  ;;  %9698 = vmatprep.subr.bf16.mxu0 %v15281_v3  ;;  %v15335_v36 = vcombine.high %v8863_v19, %v8867_v16  ;;  %v15337_v3 = vcombine.high %v8864_v25, %v8868_v26  ;;  %v17251_v46 = vld [vmem:[#allocation8 + $0x944] ss:$8 sps:$4 sm:$0xff]  }
0x22f9   : > { %9658 = vmatpush1.bf16.msra.mxu1 %v15278_v32  ;;  %9699 = vmatpush1.bf16.msra.mxu0 %v15280_v6  ;;  %v15334_v32 = vcombine.low %v8863_v19, %v8867_v16  ;;  %v15336_v6 = vcombine.low %v8864_v25, %v8868_v26  ;;  %v17255_v19 = vld [vmem:[#allocation8 + $0x950] ss:$8 sps:$4 sm:$0xff]   ;;  %v17260_v16 = vld [vmem:[#allocation8 + $0x864] ss:$8 sps:$4 sm:$0xff]   ;;  %v17258_v26 = vld [vmem:[#allocation8 + $0x860] ss:$8 sps:$4 sm:$0xff]  }
0x22fa   : > { %9659 = vmatprep.subr.bf16.mxu1 %v15287_v24  ;;  %9700 = vmatprep.subr.bf16.mxu0 %v15289_v39  ;;  %v15343_v24 = vcombine.high %v8871_v31, %v8875_v13  ;;  %v15345_v39 = vcombine.high %v8872_v30, %v8876_v38  ;;  %v17263_v25 = vld [vmem:[#allocation8 + $0x964] ss:$8 sps:$4 sm:$0xff]  }
0x22fd   : > { %9660 = vmatpush1.bf16.msra.mxu1 %v15286_v33  ;;  %9701 = vmatpush1.bf16.msra.mxu0 %v15288_v34  ;;  %v15342_v33 = vcombine.low %v8871_v31, %v8875_v13  ;;  %v15344_v34 = vcombine.low %v8872_v30, %v8876_v38  ;;  %v17267_v31 = vld [vmem:[#allocation8 + $0x970] ss:$8 sps:$4 sm:$0xff]   ;;  %v17272_v13 = vld [vmem:[#allocation8 + $0x884] ss:$8 sps:$4 sm:$0xff]   ;;  %v17270_v38 = vld [vmem:[#allocation8 + $0x880] ss:$8 sps:$4 sm:$0xff]  }
0x22fe   : > { %9661 = vmatprep.subr.bf16.mxu1 %v15295_v47  ;;  %9702 = vmatprep.subr.bf16.mxu0 %v15297_v48  ;;  %v15351_v47 = vcombine.high %v8879_v41, %v8883_v42  ;;  %v15353_v48 = vcombine.high %v8880_v45, %v8884_v50  ;;  %v17275_v30 = vld [vmem:[#allocation8 + $0x984] ss:$8 sps:$4 sm:$0xff]  }
0x2301   : > { %9662 = vmatpush1.bf16.msra.mxu1 %v15294_v53  ;;  %9703 = vmatpush1.bf16.msra.mxu0 %v15296_v52  ;;  %v15350_v53 = vcombine.low %v8879_v41, %v8883_v42  ;;  %v15352_v52 = vcombine.low %v8880_v45, %v8884_v50  ;;  %v17279_v41 = vld [vmem:[#allocation8 + $0x990] ss:$8 sps:$4 sm:$0xff]   ;;  %v17284_v42 = vld [vmem:[#allocation8 + $0x8a4] ss:$8 sps:$4 sm:$0xff]   ;;  %v17282_v50 = vld [vmem:[#allocation8 + $0x8a0] ss:$8 sps:$4 sm:$0xff]  }
0x2302   : > { %9663 = vmatprep.subr.bf16.mxu1 %v15303_v40  ;;  %9704 = vmatprep.subr.bf16.mxu0 %v15305_v29  ;;  %v15359_v40 = vcombine.high %v8887_v51, %v8891_v23  ;;  %v15361_v29 = vcombine.high %v8888_v15, %v8892_v5  ;;  %v17287_v45 = vld [vmem:[#allocation8 + $0x9a4] ss:$8 sps:$4 sm:$0xff]   ;;  %v17291_v51 = vld [vmem:[#allocation8 + $0x9b0] ss:$8 sps:$4 sm:$0xff]   ;;  %v17294_v5 = vld [vmem:[#allocation8 + $0x8c0] ss:$8 sps:$4 sm:$0xff]  }
0x2303   : > { %v17296_v23 = vld [vmem:[#allocation8 + $0x8c4] ss:$8 sps:$4 sm:$0xff]  }
0x2304   : > { %v17299_v15 = vld [vmem:[#allocation8 + $0x9c4] ss:$8 sps:$4 sm:$0xff]  }
0x2305   : > { %9664 = vmatpush1.bf16.msra.mxu1 %v15302_v62  ;;  %9705 = vmatpush1.bf16.msra.mxu0 %v15304_v56  ;;  %v17222_v62 = vld [vmem:[#allocation8 + $0x800] ss:$8 sps:$4 sm:$0xff]  }
0x2306   : > { %9665 = vmatprep.subr.bf16.mxu1 %v15311_v7  ;;  %9706 = vmatprep.subr.bf16.mxu0 %v15313_v61  ;;  %v17225_v56 = vld [vmem:[#allocation8 + $0x900] ss:$8 sps:$4 sm:$0xff]   ;;  %v17230_v7 = vld [vmem:[#allocation8 + $0x814] ss:$8 sps:$4 sm:$0xff]  }
0x2307   : > { %v17233_v61 = vld [vmem:[#allocation8 + $0x914] ss:$8 sps:$4 sm:$0xff]  }
0x2309   : > { %9666 = vmatpush1.bf16.msra.mxu1 %v15310_v4  ;;  %9707 = vmatpush1.bf16.msra.mxu0 %v15312_v2  ;;  %v17234_v4 = vld [vmem:[#allocation8 + $0x820] ss:$8 sps:$4 sm:$0xff]  }
0x230a   : > { %9667 = vmatprep.subr.bf16.mxu1 %v15319_v12  ;;  %9708 = vmatprep.subr.bf16.mxu0 %v15321_v60  ;;  %v17237_v2 = vld [vmem:[#allocation8 + $0x920] ss:$8 sps:$4 sm:$0xff]   ;;  %v17242_v12 = vld [vmem:[#allocation8 + $0x834] ss:$8 sps:$4 sm:$0xff]  }
0x230b   : > { %v17245_v60 = vld [vmem:[#allocation8 + $0x934] ss:$8 sps:$4 sm:$0xff]  }
0x230d   : > { %9668 = vmatpush1.bf16.msra.mxu1 %v15318_v1  ;;  %9709 = vmatpush1.bf16.msra.mxu0 %v15320_v21  ;;  %v17249_v1 = vld [vmem:[#allocation8 + $0x940] ss:$8 sps:$4 sm:$0xff]   ;;  %v17254_v21 = vld [vmem:[#allocation8 + $0x854] ss:$8 sps:$4 sm:$0xff]  }
0x230e   : > { %9669 = vmatprep.subr.bf16.mxu1 %v15327_v37  ;;  %9710 = vmatprep.subr.bf16.mxu0 %v15329_v14  ;;  %v17257_v37 = vld [vmem:[#allocation8 + $0x954] ss:$8 sps:$4 sm:$0xff]   ;;  %v17252_v14 = vld [vmem:[#allocation8 + $0x850] ss:$8 sps:$4 sm:$0xff]  }
0x2311   : > { %9670 = vmatpush1.bf16.msra.mxu1 %v15326_v27  ;;  %9711 = vmatpush1.bf16.msra.mxu0 %v15328_v28  ;;  %v17261_v27 = vld [vmem:[#allocation8 + $0x960] ss:$8 sps:$4 sm:$0xff]   ;;  %v17266_v28 = vld [vmem:[#allocation8 + $0x874] ss:$8 sps:$4 sm:$0xff]  }
0x2312   : > { %9671 = vmatprep.subr.bf16.mxu1 %v15335_v36  ;;  %9712 = vmatprep.subr.bf16.mxu0 %v15337_v3  ;;  %v17269_v36 = vld [vmem:[#allocation8 + $0x974] ss:$8 sps:$4 sm:$0xff]   ;;  %v17264_v3 = vld [vmem:[#allocation8 + $0x870] ss:$8 sps:$4 sm:$0xff]  }
0x2315   : > { %9672 = vmatpush1.bf16.msra.mxu1 %v15334_v32  ;;  %9713 = vmatpush1.bf16.msra.mxu0 %v15336_v6  ;;  %v17273_v32 = vld [vmem:[#allocation8 + $0x980] ss:$8 sps:$4 sm:$0xff]   ;;  %v17278_v6 = vld [vmem:[#allocation8 + $0x894] ss:$8 sps:$4 sm:$0xff]  }
0x2316   : > { %9673 = vmatprep.subr.bf16.mxu1 %v15343_v24  ;;  %9714 = vmatprep.subr.bf16.mxu0 %v15345_v39  ;;  %v17281_v24 = vld [vmem:[#allocation8 + $0x994] ss:$8 sps:$4 sm:$0xff]   ;;  %v17276_v39 = vld [vmem:[#allocation8 + $0x890] ss:$8 sps:$4 sm:$0xff]  }
0x2319   : > { %9674 = vmatpush1.bf16.msra.mxu1 %v15342_v33  ;;  %9715 = vmatpush1.bf16.msra.mxu0 %v15344_v34  ;;  %v17285_v33 = vld [vmem:[#allocation8 + $0x9a0] ss:$8 sps:$4 sm:$0xff]   ;;  %v17290_v34 = vld [vmem:[#allocation8 + $0x8b4] ss:$8 sps:$4 sm:$0xff]  }
0x231a   : > { %9675 = vmatprep.subr.bf16.mxu1 %v15351_v47  ;;  %9716 = vmatprep.subr.bf16.mxu0 %v15353_v48  ;;  %v17293_v47 = vld [vmem:[#allocation8 + $0x9b4] ss:$8 sps:$4 sm:$0xff]   ;;  %v17288_v48 = vld [vmem:[#allocation8 + $0x8b0] ss:$8 sps:$4 sm:$0xff]  }
0x231d   : > { %9676 = vmatpush1.bf16.msra.mxu1 %v15350_v53  ;;  %9717 = vmatpush1.bf16.msra.mxu0 %v15352_v52  ;;  %v17297_v53 = vld [vmem:[#allocation8 + $0x9c0] ss:$8 sps:$4 sm:$0xff]   ;;  %v17302_v52 = vld [vmem:[#allocation8 + $0x8d4] ss:$8 sps:$4 sm:$0xff]  }
0x231e   : > { %9677 = vmatprep.subr.bf16.mxu1 %v15359_v40  ;;  %9718 = vmatprep.subr.bf16.mxu0 %v15361_v29  ;;  %v17305_v40 = vld [vmem:[#allocation8 + $0x9d4] ss:$8 sps:$4 sm:$0xff]   ;;  %v17300_v29 = vld [vmem:[#allocation8 + $0x8d0] ss:$8 sps:$4 sm:$0xff]  }
0x2321   : > { %9678 = vmatpush1.bf16.msra.mxu1 %v15358_v44  ;;  %9719 = vmatpush1.bf16.msra.mxu0 %v15360_v57  ;;  %v17303_v44 = vld [vmem:[#allocation8 + $0x9d0] ss:$8 sps:$4 sm:$0xff]   ;;  %v17308_v57 = vld [vmem:[#allocation8 + $0x8e4] ss:$8 sps:$4 sm:$0xff]  }
0x2322   : > { %10522 = vmatprep.subr.bf16.mxu1 %v17224_v58  ;;  %10563 = vmatprep.subr.bf16.mxu0 %v17227_v59  ;;  %v17311_v58 = vld [vmem:[#allocation8 + $0x9e4] ss:$8 sps:$4 sm:$0xff]   ;;  %v17306_v59 = vld [vmem:[#allocation8 + $0x8e0] ss:$8 sps:$4 sm:$0xff]  }
0x2324   : > { %9680 = vmatmul.mubr.bf16.vlgmr.msra.gmra.mrb[136].mxu1 %v19042_v49  ;;  %9721 = vmatmul.mubr.bf16.vlgmr.msra.gmra.mrb[80].mxu0 %v19042_v49  ;;  %v17243_v49 = vld [vmem:[#allocation8 + $0x930] ss:$8 sps:$4 sm:$0xff]  }
0x2325   : > { %10523 = vmatpush1.bf16.msra.mxu1 %v17222_v62  ;;  %10564 = vmatpush1.bf16.msra.mxu0 %v17225_v56  ;;  %v17309_v62 = vld [vmem:[#allocation8 + $0x9e0] ss:$8 sps:$4 sm:$0xff]   ;;  %v17314_v56 = vld [vmem:[#allocation8 + $0x8f4] ss:$8 sps:$4 sm:$0xff]  }
0x2326   : > { %10524 = vmatprep.subr.bf16.mxu1 %v17230_v7  ;;  %10565 = vmatprep.subr.bf16.mxu0 %v17233_v61  ;;  %v17317_v7 = vld [vmem:[#allocation8 + $0x9f4] ss:$8 sps:$4 sm:$0xff]   ;;  %v17312_v61 = vld [vmem:[#allocation8 + $0x8f0] ss:$8 sps:$4 sm:$0xff]  }
0x2329   : > { %10525 = vmatpush1.bf16.msra.mxu1 %v17228_v55  ;;  %10566 = vmatpush1.bf16.msra.mxu0 %v17231_v8  ;;  %v17315_v55 = vld [vmem:[#allocation8 + $0x9f0] ss:$8 sps:$4 sm:$0xff]   ;;  %v17320_v8 = vld [vmem:[#allocation8 + $0xa04] ss:$8 sps:$4 sm:$0xff]  }
0x232a   : > { %10526 = vmatprep.subr.bf16.mxu1 %v17236_v43  ;;  %10567 = vmatprep.subr.bf16.mxu0 %v17239_v11  ;;  %v17323_v43 = vld [vmem:[#allocation8 + $0xb04] ss:$8 sps:$4 sm:$0xff]  }
0x232b   : > { %v19051_v11 = vld [vmem:[%s19386_s7 + $0x80] sm:$0xff] }
0x232d   : > { %10527 = vmatpush1.bf16.msra.mxu1 %v17234_v4  ;;  %10568 = vmatpush1.bf16.msra.mxu0 %v17237_v2  ;;  %v8896_v4 = vrot.slane %v19051_v11, %v18358_v17  ;;  %v17899_v2 = vld [vmem:[%s19386_s7 + $0x90] sm:$0xff] }
0x232e   : > { %10528 = vmatprep.subr.bf16.mxu1 %v17242_v12  ;;  %10569 = vmatprep.subr.bf16.mxu0 %v17245_v60  ;;  %v8904_v12 = vrot.slane %v17899_v2, %v18358_v17  ;;  %v19062_v60 = vld [vmem:[%s19386_s7 + $0x88] sm:$0xff] }
0x232f   : > { %v17368_v2 = vld [vmem:[#allocation8 + $0xa84] ss:$8 sps:$4 sm:$0xff]  }
0x2331   : > { %10529 = vmatpush1.bf16.msra.mxu1 %v17240_v63  ;;  %10570 = vmatpush1.bf16.msra.mxu0 %v17243_v49  ;;  %v8900_v63 = vrot.slane %v19062_v60, %v18358_v17  ;;  %v17901_v49 = vld [vmem:[%s19386_s7 + $0x98] sm:$0xff] }
0x2332   : > { %10530 = vmatprep.subr.bf16.mxu1 %v17248_v10  ;;  %10571 = vmatprep.subr.bf16.mxu0 %v17251_v46  ;;  %v8908_v10 = vrot.slane %v17901_v49, %v18358_v17  ;;  %v17369_v49 = vld [vmem:[#allocation8 + $0xb80] ss:$8 sps:$4 sm:$0xff]  }
0x2335   : > { %10531 = vmatpush1.bf16.msra.mxu1 %v17246_v22  ;;  %10572 = vmatpush1.bf16.msra.mxu0 %v17249_v1 }
0x2336   : > { %10532 = vmatprep.subr.bf16.mxu1 %v17254_v21  ;;  %10573 = vmatprep.subr.bf16.mxu0 %v17257_v37 }
0x2339   : > { %10533 = vmatpush1.bf16.msra.mxu1 %v17252_v14  ;;  %10574 = vmatpush1.bf16.msra.mxu0 %v17255_v19 }
0x233a   : > { %10534 = vmatprep.subr.bf16.mxu1 %v17260_v16  ;;  %10575 = vmatprep.subr.bf16.mxu0 %v17263_v25 }
0x233d   : > { %10535 = vmatpush1.bf16.msra.mxu1 %v17258_v26  ;;  %10576 = vmatpush1.bf16.msra.mxu0 %v17261_v27 }
0x233e   : > { %10536 = vmatprep.subr.bf16.mxu1 %v17266_v28  ;;  %10577 = vmatprep.subr.bf16.mxu0 %v17269_v36 }
0x2341   : > { %10537 = vmatpush1.bf16.msra.mxu1 %v17264_v3  ;;  %10578 = vmatpush1.bf16.msra.mxu0 %v17267_v31 }
0x2342   : > { %10538 = vmatprep.subr.bf16.mxu1 %v17272_v13  ;;  %10579 = vmatprep.subr.bf16.mxu0 %v17275_v30 }
0x2345   : > { %10539 = vmatpush1.bf16.msra.mxu1 %v17270_v38  ;;  %10580 = vmatpush1.bf16.msra.mxu0 %v17273_v32  ;;  %v17318_v32 = vld [vmem:[#allocation8 + $0xa00] ss:$8 sps:$4 sm:$0xff]  }
0x2346   : > { %10540 = vmatprep.subr.bf16.mxu1 %v17278_v6  ;;  %10581 = vmatprep.subr.bf16.mxu0 %v17281_v24  ;;  %v17321_v6 = vld [vmem:[#allocation8 + $0xb00] ss:$8 sps:$4 sm:$0xff]  }
0x2349   : > { %10541 = vmatpush1.bf16.msra.mxu1 %v17276_v39  ;;  %10582 = vmatpush1.bf16.msra.mxu0 %v17279_v41  ;;  %v17326_v41 = vld [vmem:[#allocation8 + $0xa14] ss:$8 sps:$4 sm:$0xff]  }
0x234a   : > { %10542 = vmatprep.subr.bf16.mxu1 %v17284_v42  ;;  %10583 = vmatprep.subr.bf16.mxu0 %v17287_v45  ;;  %v17329_v42 = vld [vmem:[#allocation8 + $0xb14] ss:$8 sps:$4 sm:$0xff]   ;;  %v17324_v45 = vld [vmem:[#allocation8 + $0xa10] ss:$8 sps:$4 sm:$0xff]  }
0x234d   : > { %10543 = vmatpush1.bf16.msra.mxu1 %v17282_v50  ;;  %10584 = vmatpush1.bf16.msra.mxu0 %v17285_v33  ;;  %v17327_v50 = vld [vmem:[#allocation8 + $0xb10] ss:$8 sps:$4 sm:$0xff]   ;;  %v17332_v33 = vld [vmem:[#allocation8 + $0xa24] ss:$8 sps:$4 sm:$0xff]  }
0x234e   : > { %10544 = vmatprep.subr.bf16.mxu1 %v17290_v34  ;;  %10585 = vmatprep.subr.bf16.mxu0 %v17293_v47  ;;  %v17335_v34 = vld [vmem:[#allocation8 + $0xb24] ss:$8 sps:$4 sm:$0xff]   ;;  %v17330_v47 = vld [vmem:[#allocation8 + $0xa20] ss:$8 sps:$4 sm:$0xff]  }
0x2351   : > { %10545 = vmatpush1.bf16.msra.mxu1 %v17288_v48  ;;  %10586 = vmatpush1.bf16.msra.mxu0 %v17291_v51  ;;  %v17333_v48 = vld [vmem:[#allocation8 + $0xb20] ss:$8 sps:$4 sm:$0xff]   ;;  %v17338_v51 = vld [vmem:[#allocation8 + $0xa34] ss:$8 sps:$4 sm:$0xff]  }
0x2352   : > { %10546 = vmatprep.subr.bf16.mxu1 %v17296_v23  ;;  %10587 = vmatprep.subr.bf16.mxu0 %v17299_v15  ;;  %v17341_v23 = vld [vmem:[#allocation8 + $0xb34] ss:$8 sps:$4 sm:$0xff]   ;;  %v17336_v15 = vld [vmem:[#allocation8 + $0xa30] ss:$8 sps:$4 sm:$0xff]  }
0x2355   : > { %10547 = vmatpush1.bf16.msra.mxu1 %v17294_v5  ;;  %10588 = vmatpush1.bf16.msra.mxu0 %v17297_v53  ;;  %v17339_v5 = vld [vmem:[#allocation8 + $0xb30] ss:$8 sps:$4 sm:$0xff]   ;;  %v17344_v53 = vld [vmem:[#allocation8 + $0xa44] ss:$8 sps:$4 sm:$0xff]  }
0x2356   : > { %10548 = vmatprep.subr.bf16.mxu1 %v17302_v52  ;;  %10589 = vmatprep.subr.bf16.mxu0 %v17305_v40  ;;  %v17347_v52 = vld [vmem:[#allocation8 + $0xb44] ss:$8 sps:$4 sm:$0xff]   ;;  %v17342_v40 = vld [vmem:[#allocation8 + $0xa40] ss:$8 sps:$4 sm:$0xff]  }
0x2359   : > { %10549 = vmatpush1.bf16.msra.mxu1 %v17300_v29  ;;  %10590 = vmatpush1.bf16.msra.mxu0 %v17303_v44  ;;  %v17345_v29 = vld [vmem:[#allocation8 + $0xb40] ss:$8 sps:$4 sm:$0xff]   ;;  %v17350_v44 = vld [vmem:[#allocation8 + $0xa54] ss:$8 sps:$4 sm:$0xff]  }
0x235a   : > { %10550 = vmatprep.subr.bf16.mxu1 %v17308_v57  ;;  %10591 = vmatprep.subr.bf16.mxu0 %v17311_v58  ;;  %v17353_v57 = vld [vmem:[#allocation8 + $0xb54] ss:$8 sps:$4 sm:$0xff]   ;;  %v17348_v58 = vld [vmem:[#allocation8 + $0xa50] ss:$8 sps:$4 sm:$0xff]  }
0x235d   : > { %10551 = vmatpush1.bf16.msra.mxu1 %v17306_v59  ;;  %10592 = vmatpush1.bf16.msra.mxu0 %v17309_v62  ;;  %v17351_v59 = vld [vmem:[#allocation8 + $0xb50] ss:$8 sps:$4 sm:$0xff]   ;;  %v17356_v62 = vld [vmem:[#allocation8 + $0xa64] ss:$8 sps:$4 sm:$0xff]  }
0x235e   : > { %10552 = vmatprep.subr.bf16.mxu1 %v17314_v56  ;;  %10593 = vmatprep.subr.bf16.mxu0 %v17317_v7  ;;  %v17359_v56 = vld [vmem:[#allocation8 + $0xb64] ss:$8 sps:$4 sm:$0xff]   ;;  %v17354_v7 = vld [vmem:[#allocation8 + $0xa60] ss:$8 sps:$4 sm:$0xff]  }
0x2361   : > { %10553 = vmatpush1.bf16.msra.mxu1 %v17312_v61  ;;  %10594 = vmatpush1.bf16.msra.mxu0 %v17315_v55  ;;  %v17357_v61 = vld [vmem:[#allocation8 + $0xb60] ss:$8 sps:$4 sm:$0xff]   ;;  %v17362_v55 = vld [vmem:[#allocation8 + $0xa74] ss:$8 sps:$4 sm:$0xff]  }
0x2362   : > { %10604 = vmatprep.subr.bf16.mxu1 %v17320_v8  ;;  %10645 = vmatprep.subr.bf16.mxu0 %v17323_v43  ;;  %v17365_v8 = vld [vmem:[#allocation8 + $0xb74] ss:$8 sps:$4 sm:$0xff]   ;;  %v17360_v43 = vld [vmem:[#allocation8 + $0xa70] ss:$8 sps:$4 sm:$0xff]  }
0x23b7   : > { %v9599_v46 = vpop.f32.mrb[132].mxu1  ;;  %v9640_v22 = vpop.f32.mrb[76].mxu0 }
0x23b8   : > { %v9600_v1 = vadd.f32 %v9599_v46, %v8896_v4  ;;  %v9641_v21 = vadd.f32 %v9640_v22, %v8904_v12  ;;  %v9601_v37 = vpop.f32.mrb[133].mxu1  ;;  %v9642_v14 = vpop.f32.mrb[77].mxu0  ;;  %v17363_v4 = vld [vmem:[#allocation8 + $0xb70] ss:$8 sps:$4 sm:$0xff]   ;;  %v17371_v12 = vld [vmem:[#allocation8 + $0xb84] ss:$8 sps:$4 sm:$0xff]  }
0x23b9   : > { %v9602_v19 = vadd.f32 %v9601_v37, %v8900_v63  ;;  %v9643_v16 = vadd.f32 %v9642_v14, %v8908_v10  ;;  %v9603_v25 = vpop.f32.mrb[134].mxu1  ;;  %v9644_v26 = vpop.f32.mrb[78].mxu0  ;;  %v17366_v63 = vld [vmem:[#allocation8 + $0xa80] ss:$8 sps:$4 sm:$0xff]   ;;  %v17374_v10 = vld [vmem:[#allocation8 + $0xa94] ss:$8 sps:$4 sm:$0xff]  }
0x23ba   : > { %v9729_v27 = vmax.f32 %v9600_v1, 0.0  ;;  %v9731_v28 = vmax.f32 %v9641_v21, 0.0  ;;  %v9604_v36 = vpop.f32.mrb[135].mxu1  ;;  %v9645_v3 = vpop.f32.mrb[79].mxu0  ;;  %v17377_v46 = vld [vmem:[#allocation8 + $0xb94] ss:$8 sps:$4 sm:$0xff]  }
0x23bb   : > { %v9730_v31 = vmax.f32 %v9602_v19, 0.0  ;;  %v9732_v13 = vmax.f32 %v9643_v16, 0.0  ;;  %v17372_v22 = vld [vmem:[#allocation8 + $0xa90] ss:$8 sps:$4 sm:$0xff]   ;;  %v17380_v21 = vld [vmem:[#allocation8 + $0xaa4] ss:$8 sps:$4 sm:$0xff]  }
0x23bc   : > { %v9737_v24 = vpack.c.bf16 %v9729_v27, %v9729_v27  ;;  %v9739_v39 = vpack.c.bf16 %v9731_v28, %v9731_v28  ;;  %v17375_v1 = vld [vmem:[#allocation8 + $0xb90] ss:$8 sps:$4 sm:$0xff]   ;;  %v17383_v37 = vld [vmem:[#allocation8 + $0xba4] ss:$8 sps:$4 sm:$0xff]   ;;  %v17378_v14 = vld [vmem:[#allocation8 + $0xaa0] ss:$8 sps:$4 sm:$0xff]  }
0x23bd   : > { %v9738_v30 = vpack.c.bf16 %v9730_v31, %v9730_v31  ;;  %v9740_v38 = vpack.c.bf16 %v9732_v13, %v9732_v13  ;;  %v17381_v19 = vld [vmem:[#allocation8 + $0xba0] ss:$8 sps:$4 sm:$0xff]   ;;  %v17386_v16 = vld [vmem:[#allocation8 + $0xab4] ss:$8 sps:$4 sm:$0xff]   ;;  %v17384_v26 = vld [vmem:[#allocation8 + $0xab0] ss:$8 sps:$4 sm:$0xff]  }
0x23be   : > { %v17389_v25 = vld [vmem:[#allocation8 + $0xbb4] ss:$8 sps:$4 sm:$0xff]   ;;  %v17387_v27 = vld [vmem:[#allocation8 + $0xbb0] ss:$8 sps:$4 sm:$0xff]   ;;  %v17392_v28 = vld [vmem:[#allocation8 + $0xac4] ss:$8 sps:$4 sm:$0xff]  }
0x23bf   : > { %10554 = vmatprep.mubr.bf16.mxu1 %v9738_v30  ;;  %10595 = vmatprep.mubr.bf16.mxu0 %v9740_v38  ;;  %v17395_v36 = vld [vmem:[#allocation8 + $0xbc4] ss:$8 sps:$4 sm:$0xff]   ;;  %v17390_v3 = vld [vmem:[#allocation8 + $0xac0] ss:$8 sps:$4 sm:$0xff]   ;;  %v17398_v13 = vld [vmem:[#allocation8 + $0xad4] ss:$8 sps:$4 sm:$0xff]  }
0x23c0   : > { %10555 = vmatmul.mubr.bf16.vlgmr.msra.gmra.mrb[140].mxu1 %v9737_v24  ;;  %10596 = vmatmul.mubr.bf16.vlgmr.msra.gmra.mrb[84].mxu0 %v9739_v39  ;;  %v17393_v31 = vld [vmem:[#allocation8 + $0xbc0] ss:$8 sps:$4 sm:$0xff]   ;;  %v17401_v30 = vld [vmem:[#allocation8 + $0xbd4] ss:$8 sps:$4 sm:$0xff]   ;;  %v17396_v38 = vld [vmem:[#allocation8 + $0xad0] ss:$8 sps:$4 sm:$0xff]  }
0x23c1   : > { %10605 = vmatpush1.bf16.msra.mxu1 %v17318_v32  ;;  %10646 = vmatpush1.bf16.msra.mxu0 %v17321_v6  ;;  %v17399_v32 = vld [vmem:[#allocation8 + $0xbd0] ss:$8 sps:$4 sm:$0xff]   ;;  %v17404_v6 = vld [vmem:[#allocation8 + $0xae4] ss:$8 sps:$4 sm:$0xff]  }
0x23c2   : > { %10606 = vmatprep.subr.bf16.mxu1 %v17326_v41  ;;  %10647 = vmatprep.subr.bf16.mxu0 %v17329_v42  ;;  %v17407_v24 = vld [vmem:[#allocation8 + $0xbe4] ss:$8 sps:$4 sm:$0xff]   ;;  %v19077_v42 = vld [vmem:[%s19386_s7 + $0xb0] sm:$0xff] }
0x23c3   : > { %v17902_v39 = vld [vmem:[%s19386_s7 + $0xa0] sm:$0xff] }
0x23c4   : > { %v8912_v41 = vrot.slane %v17902_v39, %v18358_v17 }
0x23c5   : > { %10607 = vmatpush1.bf16.msra.mxu1 %v17324_v45  ;;  %10648 = vmatpush1.bf16.msra.mxu0 %v17327_v50  ;;  %v8920_v45 = vrot.slane %v19077_v42, %v18358_v17  ;;  %v17904_v50 = vld [vmem:[%s19386_s7 + $0xa8] sm:$0xff] }
0x23c6   : > { %10608 = vmatprep.subr.bf16.mxu1 %v17332_v33  ;;  %10649 = vmatprep.subr.bf16.mxu0 %v17335_v34  ;;  %v8916_v33 = vrot.slane %v17904_v50, %v18358_v17  ;;  %v19088_v34 = vld [vmem:[%s19386_s7 + $0xb8] sm:$0xff] }
0x23c9   : > { %10609 = vmatpush1.bf16.msra.mxu1 %v17330_v47  ;;  %10650 = vmatpush1.bf16.msra.mxu0 %v17333_v48  ;;  %v8924_v47 = vrot.slane %v19088_v34, %v18358_v17  ;;  %v17402_v48 = vld [vmem:[#allocation8 + $0xae0] ss:$8 sps:$4 sm:$0xff]  }
0x23ca   : > { %10610 = vmatprep.subr.bf16.mxu1 %v17338_v51  ;;  %10651 = vmatprep.subr.bf16.mxu0 %v17341_v23  ;;  %v17405_v51 = vld [vmem:[#allocation8 + $0xbe0] ss:$8 sps:$4 sm:$0xff]   ;;  %v17410_v23 = vld [vmem:[#allocation8 + $0xaf4] ss:$8 sps:$4 sm:$0xff]  }
0x23cd   : > { %10611 = vmatpush1.bf16.msra.mxu1 %v17336_v15  ;;  %10652 = vmatpush1.bf16.msra.mxu0 %v17339_v5  ;;  %v17413_v15 = vld [vmem:[#allocation8 + $0xbf4] ss:$8 sps:$4 sm:$0xff]  }
0x23ce   : > { %10612 = vmatprep.subr.bf16.mxu1 %v17344_v53  ;;  %10653 = vmatprep.subr.bf16.mxu0 %v17347_v52 }
0x23d1   : > { %10613 = vmatpush1.bf16.msra.mxu1 %v17342_v40  ;;  %10654 = vmatpush1.bf16.msra.mxu0 %v17345_v29 }
0x23d2   : > { %10614 = vmatprep.subr.bf16.mxu1 %v17350_v44  ;;  %10655 = vmatprep.subr.bf16.mxu0 %v17353_v57 }
0x23d5   : > { %10615 = vmatpush1.bf16.msra.mxu1 %v17348_v58  ;;  %10656 = vmatpush1.bf16.msra.mxu0 %v17351_v59 }
0x23d6   : > { %10616 = vmatprep.subr.bf16.mxu1 %v17356_v62  ;;  %10657 = vmatprep.subr.bf16.mxu0 %v17359_v56  ;;  %v17408_v56 = vld [vmem:[#allocation8 + $0xaf0] ss:$8 sps:$4 sm:$0xff]  }
0x23d9   : > { %10617 = vmatpush1.bf16.msra.mxu1 %v17354_v7  ;;  %10658 = vmatpush1.bf16.msra.mxu0 %v17357_v61  ;;  %v17411_v7 = vld [vmem:[#allocation8 + $0xbf0] ss:$8 sps:$4 sm:$0xff]  }
0x23da   : > { %10618 = vmatprep.subr.bf16.mxu1 %v17362_v55  ;;  %10659 = vmatprep.subr.bf16.mxu0 %v17365_v8 }
0x23dd   : > { %10619 = vmatpush1.bf16.msra.mxu1 %v17360_v43  ;;  %10660 = vmatpush1.bf16.msra.mxu0 %v17363_v4 }
0x23de   : > { %10620 = vmatprep.subr.bf16.mxu1 %v17368_v2  ;;  %10661 = vmatprep.subr.bf16.mxu0 %v17371_v12 }
0x23e1   : > { %10621 = vmatpush1.bf16.msra.mxu1 %v17366_v63  ;;  %10662 = vmatpush1.bf16.msra.mxu0 %v17369_v49 }
0x23e2   : > { %10622 = vmatprep.subr.bf16.mxu1 %v17374_v10  ;;  %10663 = vmatprep.subr.bf16.mxu0 %v17377_v46  ;;  %v9877_v46 = vrot.slane %v19051_v11, %v18541_v9 }
0x23e5   : > { %10623 = vmatpush1.bf16.msra.mxu1 %v17372_v22  ;;  %10664 = vmatpush1.bf16.msra.mxu0 %v17375_v1  ;;  %v9881_v22 = vrot.slane %v19062_v60, %v18541_v9 }
0x23e6   : > { %10624 = vmatprep.subr.bf16.mxu1 %v17380_v21  ;;  %10665 = vmatprep.subr.bf16.mxu0 %v17383_v37 }
0x23e9   : > { %10625 = vmatpush1.bf16.msra.mxu1 %v17378_v14  ;;  %10666 = vmatpush1.bf16.msra.mxu0 %v17381_v19 }
0x23ea   : > { %10626 = vmatprep.subr.bf16.mxu1 %v17386_v16  ;;  %10667 = vmatprep.subr.bf16.mxu0 %v17389_v25 }
0x23ed   : > { %10627 = vmatpush1.bf16.msra.mxu1 %v17384_v26  ;;  %10668 = vmatpush1.bf16.msra.mxu0 %v17387_v27 }
0x23ee   : > { %10628 = vmatprep.subr.bf16.mxu1 %v17392_v28  ;;  %10669 = vmatprep.subr.bf16.mxu0 %v17395_v36 }
0x23f1   : > { %10629 = vmatpush1.bf16.msra.mxu1 %v17390_v3  ;;  %10670 = vmatpush1.bf16.msra.mxu0 %v17393_v31 }
0x23f2   : > { %10630 = vmatprep.subr.bf16.mxu1 %v17398_v13  ;;  %10671 = vmatprep.subr.bf16.mxu0 %v17401_v30 }
0x23f5   : > { %10631 = vmatpush1.bf16.msra.mxu1 %v17396_v38  ;;  %10672 = vmatpush1.bf16.msra.mxu0 %v17399_v32 }
0x23f6   : > { %10632 = vmatprep.subr.bf16.mxu1 %v17404_v6  ;;  %10673 = vmatprep.subr.bf16.mxu0 %v17407_v24 }
0x23f7   : > { %v9681_v5 = vpop.f32.mrb[136].mxu1  ;;  %v9722_v53 = vpop.f32.mrb[80].mxu0 }
0x23f8   : > { %v9682_v52 = vadd.f32 %v9681_v5, %v8912_v41  ;;  %v9723_v40 = vadd.f32 %v9722_v53, %v8920_v45  ;;  %v9683_v29 = vpop.f32.mrb[137].mxu1  ;;  %v9724_v44 = vpop.f32.mrb[81].mxu0  ;;  %v17417_v5 = vld [vmem:[#allocation2 + $0x908] ss:$24 sps:$4 sm:$0xff]   ;;  %v17419_v53 = vld [vmem:[#allocation2 + $0x90c] ss:$24 sps:$4 sm:$0xff]  }
0x23f9   : > { %v9684_v57 = vadd.f32 %v9683_v29, %v8916_v33  ;;  %v9725_v58 = vadd.f32 %v9724_v44, %v8924_v47  ;;  %v9685_v59 = vpop.f32.mrb[138].mxu1  ;;  %v9726_v62 = vpop.f32.mrb[82].mxu0  ;;  %10633 = vmatpush1.bf16.msra.mxu1 %v17402_v48  ;;  %10674 = vmatpush1.bf16.msra.mxu0 %v17405_v51  ;;  %v17420_v29 = vld [vmem:[#allocation2 + $0x930] ss:$24 sps:$4 sm:$0xff]   ;;  %v17428_v44 = vld [vmem:[#allocation2 + $0x964] ss:$24 sps:$4 sm:$0xff]  }
0x23fa   : > { %v9733_v61 = vmax.f32 %v9682_v52, 0.0  ;;  %v9735_v55 = vmax.f32 %v9723_v40, 0.0  ;;  %v9686_v8 = vpop.f32.mrb[139].mxu1  ;;  %v9727_v43 = vpop.f32.mrb[83].mxu0  ;;  %10634 = vmatprep.subr.bf16.mxu1 %v17410_v23  ;;  %10675 = vmatprep.subr.bf16.mxu0 %v17413_v15  ;;  %v17414_v23 = vld [vmem:[#allocation2 + $0x900] ss:$24 sps:$4 sm:$0xff]  }
0x23fb   : > { %v9734_v4 = vmax.f32 %v9684_v57, 0.0  ;;  %v9736_v2 = vmax.f32 %v9725_v58, 0.0  ;;  %v17416_v15 = vld [vmem:[#allocation2 + $0x904] ss:$24 sps:$4 sm:$0xff]   ;;  %v17422_v52 = vld [vmem:[#allocation2 + $0x934] ss:$24 sps:$4 sm:$0xff]  }
0x23fc   : > { %v9741_v49 = vpack.c.bf16 %v9733_v61, %v9733_v61  ;;  %v9743_v10 = vpack.c.bf16 %v9735_v55, %v9735_v55  ;;  %v17425_v40 = vld [vmem:[#allocation2 + $0x93c] ss:$24 sps:$4 sm:$0xff]   ;;  %v17426_v57 = vld [vmem:[#allocation2 + $0x960] ss:$24 sps:$4 sm:$0xff]   ;;  %v17443_v55 = vld [vmem:[#allocation2 + $0x9cc] ss:$24 sps:$4 sm:$0xff]  }
0x23fd   : > { %v9742_v12 = vpack.c.bf16 %v9734_v4, %v9734_v4  ;;  %v9744_v63 = vpack.c.bf16 %v9736_v2, %v9736_v2  ;;  %10635 = vmatpush1.bf16.msra.mxu1 %v17408_v56  ;;  %10676 = vmatpush1.bf16.msra.mxu0 %v17411_v7  ;;  %v17429_v58 = vld [vmem:[#allocation2 + $0x968] ss:$24 sps:$4 sm:$0xff]   ;;  %v17434_v59 = vld [vmem:[#allocation2 + $0x994] ss:$24 sps:$4 sm:$0xff]   ;;  %v17435_v7 = vld [vmem:[#allocation2 + $0x998] ss:$24 sps:$4 sm:$0xff]  }
0x23fe   : > { %11336 = vmatprep.subr.bf16.mxu1 %v17416_v15  ;;  %11377 = vmatprep.subr.bf16.mxu0 %v17419_v53  ;;  %v17437_v62 = vld [vmem:[#allocation2 + $0x99c] ss:$24 sps:$4 sm:$0xff]   ;;  %v17432_v56 = vld [vmem:[#allocation2 + $0x990] ss:$24 sps:$4 sm:$0xff]   ;;  %v17438_v8 = vld [vmem:[#allocation2 + $0x9c0] ss:$24 sps:$4 sm:$0xff]  }
0x23ff   : > { %10636 = vmatprep.mubr.bf16.mxu1 %v9742_v12  ;;  %10677 = vmatprep.mubr.bf16.mxu0 %v9744_v63  ;;  %v17440_v61 = vld [vmem:[#allocation2 + $0x9c4] ss:$24 sps:$4 sm:$0xff]   ;;  %v17441_v43 = vld [vmem:[#allocation2 + $0x9c8] ss:$24 sps:$4 sm:$0xff]   ;;  %v17446_v4 = vld [vmem:[#allocation2 + $0x9f4] ss:$24 sps:$4 sm:$0xff]  }
0x2400   : > { %10637 = vmatmul.mubr.bf16.vlgmr.msra.gmra.mrb[144].mxu1 %v9741_v49  ;;  %10678 = vmatmul.mubr.bf16.vlgmr.msra.gmra.mrb[88].mxu0 %v9743_v10  ;;  %v17449_v2 = vld [vmem:[#allocation2 + $0x9fc] ss:$24 sps:$4 sm:$0xff]   ;;  %v17444_v12 = vld [vmem:[#allocation2 + $0x9f0] ss:$24 sps:$4 sm:$0xff]   ;;  %v17455_v10 = vld [vmem:[#allocation2 + $0xa2c] ss:$24 sps:$4 sm:$0xff]  }
0x2401   : > { %11337 = vmatpush1.bf16.msra.mxu1 %v17414_v23  ;;  %11378 = vmatpush1.bf16.msra.mxu0 %v17417_v5  ;;  %v17447_v63 = vld [vmem:[#allocation2 + $0x9f8] ss:$24 sps:$4 sm:$0xff]   ;;  %v17452_v49 = vld [vmem:[#allocation2 + $0xa24] ss:$24 sps:$4 sm:$0xff]  }
0x2402   : > { %11338 = vmatprep.subr.bf16.mxu1 %v17422_v52  ;;  %11379 = vmatprep.subr.bf16.mxu0 %v17425_v40  ;;  %v17485_v23 = vld [vmem:[#allocation2 + $0xb1c] ss:$24 sps:$4 sm:$0xff]   ;;  %v17483_v15 = vld [vmem:[#allocation2 + $0xb18] ss:$24 sps:$4 sm:$0xff]   ;;  %v17491_v53 = vld [vmem:[#allocation2 + $0xb4c] ss:$24 sps:$4 sm:$0xff]  }
0x2403   : > { %v17488_v5 = vld [vmem:[#allocation2 + $0xb44] ss:$24 sps:$4 sm:$0xff]   ;;  %v17494_v52 = vld [vmem:[#allocation2 + $0xb74] ss:$24 sps:$4 sm:$0xff]   ;;  %v17492_v40 = vld [vmem:[#allocation2 + $0xb70] ss:$24 sps:$4 sm:$0xff]  }
0x2405   : > { %11339 = vmatpush1.bf16.msra.mxu1 %v17420_v29  ;;  %v17497_v29 = vld [vmem:[#allocation2 + $0xb7c] ss:$24 sps:$4 sm:$0xff]  }
0x2406   : > { %11340 = vmatprep.subr.bf16.mxu1 %v17428_v44  ;;  %v17500_v44 = vld [vmem:[#allocation2 + $0xba4] ss:$24 sps:$4 sm:$0xff]  }
0x2409   : > { %11341 = vmatpush1.bf16.msra.mxu1 %v17426_v57  ;;  %v17503_v57 = vld [vmem:[#allocation2 + $0xbac] ss:$24 sps:$4 sm:$0xff]  }
0x240a   : > { %11342 = vmatprep.subr.bf16.mxu1 %v17434_v59  ;;  %v17506_v59 = vld [vmem:[#allocation2 + $0xbd4] ss:$24 sps:$4 sm:$0xff]  }
0x240d   : > { %11343 = vmatpush1.bf16.msra.mxu1 %v17432_v56  ;;  %v17509_v56 = vld [vmem:[#allocation2 + $0xbdc] ss:$24 sps:$4 sm:$0xff]  }
0x240e   : > { %11344 = vmatprep.subr.bf16.mxu1 %v17440_v61  ;;  %v17512_v61 = vld [vmem:[#allocation2 + $0x914] ss:$24 sps:$4 sm:$0xff]  }
0x2411   : > { %11345 = vmatpush1.bf16.msra.mxu1 %v17438_v8 }
0x2412   : > { %11346 = vmatprep.subr.bf16.mxu1 %v17446_v4  ;;  %v10707_v4 = vrot.slane %v19077_v42, %v18541_v9 }
0x2415   : > { %11347 = vmatpush1.bf16.msra.mxu1 %v17444_v12 }
0x2416   : > { %11348 = vmatprep.subr.bf16.mxu1 %v17452_v49 }
0x2493   : > { %v10556_v1 = vpop.f32.mrb[140].mxu1  ;;  %v10597_v21 = vpop.f32.mrb[84].mxu0 }
0x2494   : > { %v10557_v37 = vadd.f32 %v10556_v1, %v9877_v46  ;;  %v10558_v14 = vpop.f32.mrb[141].mxu1  ;;  %v10599_v19 = vpop.f32.mrb[85].mxu0  ;;  %v17450_v46 = vld [vmem:[#allocation2 + $0xa20] ss:$24 sps:$4 sm:$0xff]   ;;  %v17458_v1 = vld [vmem:[#allocation2 + $0xa54] ss:$24 sps:$4 sm:$0xff]  }
0x2495   : > { %v10559_v16 = vadd.f32 %v10558_v14, %v9881_v22  ;;  %v10560_v25 = vpop.f32.mrb[142].mxu1  ;;  %v10601_v26 = vpop.f32.mrb[86].mxu0  ;;  %v17453_v22 = vld [vmem:[#allocation2 + $0xa28] ss:$24 sps:$4 sm:$0xff]   ;;  %11349 = vmatpush1.bf16.msra.mxu1 %v17450_v46  ;;  %v17459_v14 = vld [vmem:[#allocation2 + $0xa58] ss:$24 sps:$4 sm:$0xff]   ;;  %v10721_v46 = vrot.slane %v19062_v60, %v18626_v35 }
0x2496   : > { %v10598_v27 = vadd.f32 %v10597_v21, %v10557_v37  ;;  %v10561_v28 = vpop.f32.mrb[143].mxu1  ;;  %v10602_v36 = vpop.f32.mrb[87].mxu0  ;;  %v17461_v21 = vld [vmem:[#allocation2 + $0xa5c] ss:$24 sps:$4 sm:$0xff]   ;;  %v17456_v37 = vld [vmem:[#allocation2 + $0xa50] ss:$24 sps:$4 sm:$0xff]   ;;  %11350 = vmatprep.subr.bf16.mxu1 %v17458_v1 }
0x2497   : > { %v10600_v3 = vadd.f32 %v10599_v19, %v10559_v16  ;;  %v17464_v19 = vld [vmem:[#allocation2 + $0xa84] ss:$24 sps:$4 sm:$0xff]   ;;  %v17462_v25 = vld [vmem:[#allocation2 + $0xa80] ss:$24 sps:$4 sm:$0xff]   ;;  %v17468_v36 = vld [vmem:[#allocation2 + $0xab0] ss:$24 sps:$4 sm:$0xff]  }
0x2498   : > { %v17467_v16 = vld [vmem:[#allocation2 + $0xa8c] ss:$24 sps:$4 sm:$0xff]   ;;  %v17465_v26 = vld [vmem:[#allocation2 + $0xa88] ss:$24 sps:$4 sm:$0xff]   ;;  %v17473_v28 = vld [vmem:[#allocation2 + $0xabc] ss:$24 sps:$4 sm:$0xff]  }
0x2499   : > { %11351 = vmatpush1.bf16.msra.mxu1 %v17456_v37  ;;  %v17513_v60 = vld [vmem:[#allocation2 + $0x940] ss:$24 sps:$4 sm:$0xff]  }
0x249a   : > { %11352 = vmatprep.subr.bf16.mxu1 %v17464_v19  ;;  %v17518_v19 = vld [vmem:[#allocation2 + $0x974] ss:$24 sps:$4 sm:$0xff]  }
0x249d   : > { %11353 = vmatpush1.bf16.msra.mxu1 %v17462_v25  ;;  %v17521_v25 = vld [vmem:[#allocation2 + $0x9a4] ss:$24 sps:$4 sm:$0xff]  }
0x24d3   : > { %v10638_v31 = vpop.f32.mrb[144].mxu1  ;;  %v10679_v13 = vpop.f32.mrb[88].mxu0 }
0x24d4   : > { %v10639_v30 = vadd.f32 %v10638_v31, %v10598_v27  ;;  %v10640_v38 = vpop.f32.mrb[145].mxu1  ;;  %v10681_v32 = vpop.f32.mrb[89].mxu0  ;;  %v17470_v27 = vld [vmem:[#allocation2 + $0xab4] ss:$24 sps:$4 sm:$0xff]   ;;  %v17476_v31 = vld [vmem:[#allocation2 + $0xae4] ss:$24 sps:$4 sm:$0xff]  }
0x24d5   : > { %v10641_v6 = vadd.f32 %v10640_v38, %v10600_v3  ;;  %v10642_v24 = vpop.f32.mrb[146].mxu1  ;;  %v10683_v39 = vpop.f32.mrb[90].mxu0  ;;  %11354 = vmatprep.subr.bf16.mxu1 %v17470_v27  ;;  %v17471_v3 = vld [vmem:[#allocation2 + $0xab8] ss:$24 sps:$4 sm:$0xff]   ;;  %v17524_v27 = vld [vmem:[#allocation2 + $0x9d4] ss:$24 sps:$4 sm:$0xff]  }
0x24d6   : > { %v10680_v41 = vadd.f32 %v10679_v13, %v10639_v30  ;;  %v10643_v45 = vpop.f32.mrb[147].mxu1  ;;  %v10684_v50 = vpop.f32.mrb[91].mxu0  ;;  %11355 = vmatpush1.bf16.msra.mxu1 %v17468_v36  ;;  %v17474_v13 = vld [vmem:[#allocation2 + $0xae0] ss:$24 sps:$4 sm:$0xff]   ;;  %v17527_v36 = vld [vmem:[#allocation2 + $0xa04] ss:$24 sps:$4 sm:$0xff]  }
0x24d7   : > { %v10682_v33 = vadd.f32 %v10681_v32, %v10641_v6  ;;  %11356 = vmatprep.subr.bf16.mxu1 %v17476_v31  ;;  %v17479_v45 = vld [vmem:[#allocation2 + $0xaec] ss:$24 sps:$4 sm:$0xff]   ;;  %v17477_v50 = vld [vmem:[#allocation2 + $0xae8] ss:$24 sps:$4 sm:$0xff]  }
0x24d8   : > { %v19097_v47 = vadd.f32 %v10680_v41, %v19036_v20  ;;  %v17423_v20 = vld [vmem:[#allocation2 + $0x938] ss:$24 sps:$4 sm:$0xff]   ;;  %v17530_v31 = vld [vmem:[#allocation2 + $0xa34] ss:$24 sps:$4 sm:$0xff]  }
0x24d9   : > { %v19100_v48 = vadd.f32 %v10682_v33, %v19034_v54  ;;  %v17431_v54 = vld [vmem:[#allocation2 + $0x96c] ss:$24 sps:$4 sm:$0xff]   ;;  %11380 = vmatpush1.bf16.msra.mxu0 %v17423_v20  ;;  %v17495_v20 = vld [vmem:[#allocation2 + $0xb78] ss:$24 sps:$4 sm:$0xff]  }
0x24da   : > { %11381 = vmatprep.subr.bf16.mxu0 %v17431_v54  ;;  %11357 = vmatpush1.bf16.msra.mxu1 %v17474_v13  ;;  %v17482_v33 = vld [vmem:[#allocation2 + $0xb14] ss:$24 sps:$4 sm:$0xff]   ;;  %v17498_v54 = vld [vmem:[#allocation2 + $0xba0] ss:$24 sps:$4 sm:$0xff]   ;;  %v17528_v13 = vld [vmem:[#allocation2 + $0xa30] ss:$24 sps:$4 sm:$0xff]  }
0x24db   : > { %v10688_v51 = vadd.f32 %v19100_v48, %v19097_v47  ;;  %11358 = vmatprep.subr.bf16.mxu1 %v17482_v33  ;;  %v17543_v33 = vld [vmem:[#allocation2 + $0xb20] ss:$24 sps:$4 sm:$0xff]  }
0x24dd   : > { %10689 = vadd.xlane.f32.xlu0 %v10688_v51  ;;  %11382 = vmatpush1.bf16.msra.mxu0 %v17429_v58  ;;  %v17480_v51 = vld [vmem:[#allocation2 + $0xb10] ss:$24 sps:$4 sm:$0xff]  }
0x24de   : > { %11383 = vmatprep.subr.bf16.mxu0 %v17437_v62  ;;  %11359 = vmatpush1.bf16.msra.mxu1 %v17480_v51  ;;  %v17501_v58 = vld [vmem:[#allocation2 + $0xba8] ss:$24 sps:$4 sm:$0xff]   ;;  %v17548_v51 = vld [vmem:[#allocation2 + $0xb54] ss:$24 sps:$4 sm:$0xff]  }
0x24df   : > { %11360 = vmatprep.subr.bf16.mxu1 %v17488_v5  ;;  %v17504_v62 = vld [vmem:[#allocation2 + $0xbd0] ss:$24 sps:$4 sm:$0xff]   ;;  %v17549_v5 = vld [vmem:[#allocation2 + $0xb80] ss:$24 sps:$4 sm:$0xff]  }
0x24e1   : > { %11384 = vmatpush1.bf16.msra.mxu0 %v17435_v7  ;;  %v17507_v7 = vld [vmem:[#allocation2 + $0xbd8] ss:$24 sps:$4 sm:$0xff]  }
0x24e2   : > { %11385 = vmatprep.subr.bf16.mxu0 %v17443_v55 }
0x24e5   : > { %11386 = vmatpush1.bf16.msra.mxu0 %v17441_v43 }
0x24e6   : > { %11387 = vmatprep.subr.bf16.mxu0 %v17449_v2  ;;  %v10711_v2 = vrot.slane %v19088_v34, %v18541_v9 }
0x24e9   : > { %11388 = vmatpush1.bf16.msra.mxu0 %v17447_v63  ;;  %v10717_v63 = vrot.slane %v19051_v11, %v18626_v35  ;;  %v17515_v11 = vld [vmem:[#allocation2 + $0x944] ss:$24 sps:$4 sm:$0xff]  }
0x24ea   : > { %11389 = vmatprep.subr.bf16.mxu0 %v17455_v10 }
0x24ed   : > { %11390 = vmatpush1.bf16.msra.mxu0 %v17453_v22 }
0x24ee   : > { %11391 = vmatprep.subr.bf16.mxu0 %v17461_v21 }
0x24f1   : > { %11392 = vmatpush1.bf16.msra.mxu0 %v17459_v14  ;;  %v17510_v14 = vld [vmem:[#allocation2 + $0x910] ss:$24 sps:$4 sm:$0xff]  }
0x24f2   : > { %11393 = vmatprep.subr.bf16.mxu0 %v17467_v16  ;;  %v17516_v16 = vld [vmem:[#allocation2 + $0x970] ss:$24 sps:$4 sm:$0xff]  }
0x24f5   : > { %11394 = vmatpush1.bf16.msra.mxu0 %v17465_v26  ;;  %v17519_v26 = vld [vmem:[#allocation2 + $0x9a0] ss:$24 sps:$4 sm:$0xff]  }
0x24f6   : > { %11395 = vmatprep.subr.bf16.mxu0 %v17473_v28  ;;  %v17522_v28 = vld [vmem:[#allocation2 + $0x9d0] ss:$24 sps:$4 sm:$0xff]  }
0x24f9   : > { %11396 = vmatpush1.bf16.msra.mxu0 %v17471_v3  ;;  %v17525_v3 = vld [vmem:[#allocation2 + $0xa00] ss:$24 sps:$4 sm:$0xff]  }
0x24fa   : > { %11397 = vmatprep.subr.bf16.mxu0 %v17479_v45  ;;  %v17540_v45 = vld [vmem:[#allocation2 + $0xaf0] ss:$24 sps:$4 sm:$0xff]  }
0x24fd   : > { %11398 = vmatpush1.bf16.msra.mxu0 %v17477_v50  ;;  %v17545_v50 = vld [vmem:[#allocation2 + $0xb24] ss:$24 sps:$4 sm:$0xff]  }
0x24fe   : > { %11399 = vmatprep.subr.bf16.mxu0 %v17485_v23  ;;  %v17546_v23 = vld [vmem:[#allocation2 + $0xb50] ss:$24 sps:$4 sm:$0xff]  }
0x2501   : > { %11400 = vmatpush1.bf16.msra.mxu0 %v17483_v15  ;;  %v17551_v15 = vld [vmem:[#allocation2 + $0xb84] ss:$24 sps:$4 sm:$0xff]  }
0x2502   : > { %11401 = vmatprep.subr.bf16.mxu0 %v17491_v53  ;;  %v17552_v53 = vld [vmem:[#allocation2 + $0xbb0] ss:$24 sps:$4 sm:$0xff]  }
0x256a   : > { %v10690_v30 = vpop.xlane.xlu0 %10689 }
0x256b   : > { %v10691_v38 = vmul.f32 0.00390625, %v10690_v30  ;;  %v17533_v30 = vld [vmem:[#allocation2 + $0xa64] ss:$24 sps:$4 sm:$0xff]  }
0x256d   : > { %v10692_v32 = vsub.f32 %v19097_v47, %v10691_v38  ;;  %v10693_v6 = vsub.f32 %v19100_v48, %v10691_v38  ;;  %v17486_v47 = vld [vmem:[#allocation2 + $0xb40] ss:$24 sps:$4 sm:$0xff]  }
0x256e   : > { %v17489_v48 = vld [vmem:[#allocation2 + $0xb48] ss:$24 sps:$4 sm:$0xff]   ;;  %11361 = vmatpush1.bf16.msra.mxu1 %v17486_v47  ;;  %v17554_v47 = vld [vmem:[#allocation2 + $0xbb4] ss:$24 sps:$4 sm:$0xff]  }
0x256f   : > { %v10694_v24 = vmul.f32 %v10692_v32, %v10692_v32  ;;  %v10695_v39 = vmul.f32 %v10693_v6, %v10693_v6  ;;  %11402 = vmatpush1.bf16.msra.mxu0 %v17489_v48  ;;  %11362 = vmatprep.subr.bf16.mxu1 %v17494_v52  ;;  %v17531_v38 = vld [vmem:[#allocation2 + $0xa60] ss:$24 sps:$4 sm:$0xff]   ;;  %v17557_v48 = vld [vmem:[#allocation2 + $0xbe4] ss:$24 sps:$4 sm:$0xff]  }
0x2570   : > { %11403 = vmatprep.subr.bf16.mxu0 %v17497_v29  ;;  %v17555_v52 = vld [vmem:[#allocation2 + $0xbe0] ss:$24 sps:$4 sm:$0xff]   ;;  %v19139_v29 = vld [vmem:[%s19386_s7 + $0xd0] sm:$0xff] }
0x2571   : > { %v10696_v41 = vadd.f32 %v10695_v39, %v10694_v24  ;;  %v17539_v24 = vld [vmem:[#allocation2 + $0xac4] ss:$24 sps:$4 sm:$0xff]   ;;  %v17537_v39 = vld [vmem:[#allocation2 + $0xac0] ss:$24 sps:$4 sm:$0xff]  }
0x2572   : > { %11363 = vmatpush1.bf16.msra.mxu1 %v17492_v40  ;;  %v15490_v40 = vld [vmem:[%s19386_s7 + $0xc0] sm:$0xff] }
0x2573   : > { %10697 = vadd.xlane.f32.xlu0 %v10696_v41  ;;  %11404 = vmatpush1.bf16.msra.mxu0 %v17495_v20  ;;  %v17542_v41 = vld [vmem:[#allocation2 + $0xaf4] ss:$24 sps:$4 sm:$0xff]  }
0x2574   : > { %11364 = vmatprep.subr.bf16.mxu1 %v17500_v44  ;;  %11405 = vmatprep.subr.bf16.mxu0 %v17503_v57  ;;  %v15491_v20 = vld [vmem:[%s19386_s7 + $0xc8] sm:$0xff]  ;;  %v19147_v44 = vld [vmem:[%s19386_s7 + $0xd8] sm:$0xff]  ;;  %v10843_v57 = vrot.slane %v19139_v29, %v18361_v18 }
0x2576   : > { %11365 = vmatpush1.bf16.msra.mxu1 %v17498_v54  ;;  %v10835_v54 = vrot.slane %v15490_v40, %v18361_v18 }
0x2577   : > { %11406 = vmatpush1.bf16.msra.mxu0 %v17501_v58  ;;  %11366 = vmatprep.subr.bf16.mxu1 %v17506_v59  ;;  %v10839_v58 = vrot.slane %v15491_v20, %v18361_v18  ;;  %v10847_v59 = vrot.slane %v19147_v44, %v18361_v18 }
0x2578   : > { %11407 = vmatprep.subr.bf16.mxu0 %v17509_v56 }
0x257a   : > { %11367 = vmatpush1.bf16.msra.mxu1 %v17504_v62 }
0x257b   : > { %11408 = vmatpush1.bf16.msra.mxu0 %v17507_v7  ;;  %11418 = vmatprep.subr.bf16.mxu1 %v17512_v61 }
0x257c   : > { %16105 = vmatprep.subr.bf16.mxu0 %v18113_v0 }
0x2600   : > { %v10698_v55 = vpop.xlane.xlu0 %10697 }
0x2601   : > { %v10699_v8 = vmul.f32 0.00390625, %v10698_v55 }
0x2603   : > { %v10700_v43 = vadd.f32 1e-05, %v10699_v8 }
0x2605   : > { %17858 = vrsqrt.f32 %v10700_v43 }
0x260f   : > { %v17859_v12 = vpop.eup %17858 }
0x2610   : > { %v10702_v49 = vmul.f32 %v17859_v12, %v10692_v32  ;;  %v10703_v10 = vmul.f32 %v17859_v12, %v10693_v6  ;;  %v17536_v32 = vld [vmem:[#allocation2 + $0xa94] ss:$24 sps:$4 sm:$0xff]   ;;  %v17534_v6 = vld [vmem:[#allocation2 + $0xa90] ss:$24 sps:$4 sm:$0xff]  }
0x2612   : > { %v10713_v22 = vmul.f32 %v10711_v2, %v10703_v10  ;;  %v10712_v1 = vmul.f32 %v10707_v4, %v10702_v49 }
0x2614   : > { %v19115_v21 = vadd.f32 %v10721_v46, %v10713_v22  ;;  %v19117_v37 = vadd.f32 %v10717_v63, %v10712_v1 }
0x2616   : > { %v10734_v42 = vpack.c.bf16 %v19115_v21, %v19115_v21  ;;  %v19123_v34 = vpack.c.bf16 %v19117_v37, %v19117_v37 }
0x2618   : > { %11368 = vmatprep.mubr.bf16.mxu1 %v10734_v42  ;;  %11409 = vmatprep.mubr.bf16.mxu0 %v10734_v42 }
0x2619   : > { %11369 = vmatmul.mubr.bf16.vlgmr.msra.gmra.mrb[148].mxu1 %v19123_v34  ;;  %11410 = vmatmul.mubr.bf16.vlgmr.msra.gmra.mrb[92].mxu0 %v19123_v34 }
0x261a   : > { %11419 = vmatpush1.bf16.msra.mxu1 %v17510_v14  ;;  %11450 = vmatprep.mubr.bf16.mxu1 %v10734_v42 }
0x261b   : > { %11420 = vmatprep.subr.bf16.mxu1 %v17515_v11  ;;  %16107 = vmatprep.mubr.msk.bf16.mxu0 %vm18114_vm0, %v18113_v0  ;;  %v19167_v11 = vld [vmem:[%s19386_s7 + $0xe0] sm:$0xff] }
0x261e   : > { %11421 = vmatpush1.bf16.msra.mxu1 %v17513_v60  ;;  %v10851_v60 = vrot.slane %v19167_v11, %v18361_v18 }
0x261f   : > { %11422 = vmatprep.subr.bf16.mxu1 %v17518_v19 }
0x2622   : > { %11423 = vmatpush1.bf16.msra.mxu1 %v17516_v16 }
0x2623   : > { %11424 = vmatprep.subr.bf16.mxu1 %v17521_v25 }
0x2626   : > { %11425 = vmatpush1.bf16.msra.mxu1 %v17519_v26 }
0x2627   : > { %11426 = vmatprep.subr.bf16.mxu1 %v17524_v27 }
0x262a   : > { %11427 = vmatpush1.bf16.msra.mxu1 %v17522_v28 }
0x262b   : > { %11428 = vmatprep.subr.bf16.mxu1 %v17527_v36 }
0x262e   : > { %11429 = vmatpush1.bf16.msra.mxu1 %v17525_v3 }
0x262f   : > { %11430 = vmatprep.subr.bf16.mxu1 %v17530_v31 }
0x2632   : > { %11431 = vmatpush1.bf16.msra.mxu1 %v17528_v13 }
0x2633   : > { %11432 = vmatprep.subr.bf16.mxu1 %v17533_v30 }
0x2636   : > { %11433 = vmatpush1.bf16.msra.mxu1 %v17531_v38 }
0x2637   : > { %11434 = vmatprep.subr.bf16.mxu1 %v17536_v32 }
0x263a   : > { %11435 = vmatpush1.bf16.msra.mxu1 %v17534_v6 }
0x263b   : > { %11436 = vmatprep.subr.bf16.mxu1 %v17539_v24 }
0x263e   : > { %11437 = vmatpush1.bf16.msra.mxu1 %v17537_v39  ;;  %v17906_v39 = vld [vmem:[%s18425_s12] ss:$0 sm:$0xff] }
0x263f   : > { %11438 = vmatprep.subr.bf16.mxu1 %v17542_v41 }
0x2642   : > { %11439 = vmatpush1.bf16.msra.mxu1 %v17540_v45 }
0x2643   : > { %11440 = vmatprep.subr.bf16.mxu1 %v17545_v50 }
0x2646   : > { %11441 = vmatpush1.bf16.msra.mxu1 %v17543_v33 }
0x2647   : > { %11442 = vmatprep.subr.bf16.mxu1 %v17548_v51 }
0x264a   : > { %11443 = vmatpush1.bf16.msra.mxu1 %v17546_v23 }
0x264b   : > { %11444 = vmatprep.subr.bf16.mxu1 %v17551_v15 }
0x264e   : > { %11445 = vmatpush1.bf16.msra.mxu1 %v17549_v5 }
0x264f   : > { %11446 = vmatprep.subr.bf16.mxu1 %v17554_v47 }
0x2652   : > { %11447 = vmatpush1.bf16.msra.mxu1 %v17552_v53 }
0x2653   : > { %11448 = vmatprep.subr.bf16.mxu1 %v17557_v48 }
0x2656   : > { %11449 = vmatpush1.bf16.msra.mxu1 %v17555_v52  ;;  %v19191_v52 = vld [vmem:[%s19386_s7 + $0xe8] sm:$0xff] }
0x2657   : > { %16111 = vmatprep.subr.bf16.mxu1 %v18113_v0 }
0x2659   : > { %11451 = vmatmul.mubr.bf16.vlgmr.msra.gmra.mrb[152].mxu1 %v19123_v34 }
0x265a   : > { %16113 = vmatprep.mubr.msk.bf16.mxu1 %vm18114_vm0, %v18113_v0 }
0x26ec   : > { %v11370_v62 = vpop.f32.mrb[148].mxu1  ;;  %v11411_v56 = vpop.f32.mrb[92].mxu0 }
0x26ed   : > { %v11371_v7 = vadd.f32 %v11370_v62, %v10835_v54  ;;  %v11412_v61 = vadd.f32 %v11411_v56, %v10843_v57  ;;  %v11372_v55 = vpop.f32.mrb[149].mxu1  ;;  %v11413_v8 = vpop.f32.mrb[93].mxu0 }
0x26ee   : > { %v11374_v43 = vpop.f32.mrb[150].mxu1  ;;  %v11415_v4 = vpop.f32.mrb[94].mxu0  ;;  %v11373_v63 = vadd.f32 %v11372_v55, %v10839_v58  ;;  %v11414_v49 = vadd.f32 %v11413_v8, %v10847_v59  ;;  %v10855_v58 = vrot.slane %v19191_v52, %v18361_v18 }
0x26ef   : > { %v11459_v2 = vmul.f32 0.125, %v11371_v7  ;;  %v11462_v12 = vpack.c.bf16 %v11412_v61, %v11412_v61  ;;  %v11375_v10 = vpop.f32.mrb[151].mxu1  ;;  %v11416_v46 = vpop.f32.mrb[95].mxu0 }
0x26f0   : > { %v11460_v42 = vmul.f32 0.125, %v11373_v63  ;;  %v11682_v14 = vpack.c.bf16 %v11414_v49, %v11414_v49 }
0x26f1   : > { %v11461_v22 = vpack.c.bf16 %v11459_v2, %v11459_v2  ;;  %v11468_v1 = vsel %vm1171_vm1, %v11462_v12, 0  ;;  %11572 = vrot.lane.b32.xlu0 %v11462_v12, %s18115_s23 }
0x26f2   : > { %16106 = vmatpush3.bf16.xpose.msra.mxu0 %v11468_v1  ;;  %v11681_v34 = vpack.c.bf16 %v11460_v42, %v11460_v42  ;;  %v11688_v30 = vsel %vm1171_vm1, %v11682_v14, 0 }
0x26f3   : > { %11569 = vrot.lane.b32.xlu1 %v11461_v22, %s18115_s23  ;;  %16117 = vmatprep.subr.bf16.mxu0 %v18113_v0 }
0x26f5   : > { %11792 = vrot.lane.b32.xlu0 %v11682_v14, %s18115_s23 }
0x26f9   : > { %11789 = vrot.lane.b32.xlu0 %v11681_v34, %s18115_s23  ;;  %16108 = vmatmul.mubr.msk.bf16.vlgmr.msra.gmra.mrb[96].mxu0 %vm1171_vm1, %v11461_v22 }
0x26fa   : > { %16119 = vmatprep.mubr.msk.bf16.mxu0 %vm18114_vm0, %v18113_v0 }
0x272c   : > { %v11452_v19 = vpop.f32.mrb[152].mxu1 }
0x272d   : > { %v11453_v16 = vadd.f32 %v11452_v19, %v10851_v60  ;;  %v11454_v25 = vpop.f32.mrb[153].mxu1 }
0x272e   : > { %v11456_v26 = vpop.f32.mrb[154].mxu1  ;;  %v11455_v56 = vadd.f32 %v11454_v25, %v10855_v58  ;;  %v17575_v58 = vld [vmem:[#allocation5 + $0x354] ss:$8 sps:$4 sm:$0xff]  }
0x272f   : > { %v11463_v27 = vpack.c.bf16 %v11453_v16, %v11453_v16  ;;  %v11457_v28 = vpop.f32.mrb[155].mxu1 }
0x2730   : > { %v11683_v43 = vpack.c.bf16 %v11455_v56, %v11455_v56  ;;  %v17576_v56 = vld [vmem:[#allocation5 + $0x360] ss:$8 sps:$4 sm:$0xff]  }
0x2731   : > { %v11525_v36 = vsel %vm1233_vm2, %v11463_v27, 0 }
0x2732   : > { %16112 = vmatpush3.bf16.msra.mxu1 %v11525_v36 }
0x2733   : > { %16123 = vmatprep.subr.bf16.mxu1 %v18113_v0 }
0x2763   : > { %v11573_v3 = vpop.permute.xlu0 %11572 }
0x2764   : > { %v11578_v31 = vsel %vm1171_vm1, %v11573_v3, 0 }
0x2765   : > { %16118 = vmatpush3.bf16.xpose.msra.mxu0 %v11578_v31  ;;  %v11570_v13 = vpop.permute.xlu1 %11569 }
0x2766   : > { %16129 = vmatprep.subr.bf16.mxu0 %v18113_v0 }
0x2767   : > { %v11793_v38 = vpop.permute.xlu0 %11792 }
0x2768   : > { %v11798_v32 = vsel %vm1171_vm1, %v11793_v38, 0 }
0x276b   : > { %v11790_v6 = vpop.permute.xlu0 %11789 }
0x276c   : > { %16120 = vmatmul.mubr.msk.bf16.vlgmr.msra.gmra.mrb[100].mxu0 %vm1171_vm1, %v11570_v13 }
0x276d   : > { %16130 = vmatpush3.bf16.xpose.msra.mxu0 %v11688_v30  ;;  %16131 = vmatprep.mubr.msk.bf16.mxu0 %vm18114_vm0, %v18113_v0  ;;  %v11745_v30 = vsel %vm1233_vm2, %v11683_v43, 0 }
0x276e   : > { %16141 = vmatprep.subr.bf16.mxu0 %v18113_v0 }
0x2774   : > { %16132 = vmatmul.mubr.msk.bf16.vlgmr.msra.gmra.mrb[104].mxu0 %vm1171_vm1, %v11681_v34 }
0x2775   : > { %16142 = vmatpush3.bf16.xpose.msra.mxu0 %v11798_v32  ;;  %16143 = vmatprep.mubr.msk.bf16.mxu0 %vm18114_vm0, %v18113_v0 }
0x277c   : > { %16144 = vmatmul.mubr.msk.bf16.vlgmr.msra.gmra.mrb[108].mxu0 %vm1171_vm1, %v11790_v6 }
0x27cc   : > { %v11504_v24 = vpop.f32.mrb[96].mxu0 }
0x27cd   : > { %v11505_v41 = vadd.f32 %v17906_v39, %v11504_v24  ;;  %v16109_v45 = vpop.f32.mrb[97].mxu0 }
0x27ce   : > { %v11507_v50 = vpop.f32.mrb[98].mxu0 }
0x27cf   : > { %v16110_v33 = vpop.f32.mrb[99].mxu0  ;;  %v11510_v51 = vsel %vm1218_vm3, %v11505_v41, -inf }
0x27d0   : > { %11511 = vmax.xlane.f32.xlu0 %v11510_v51 }
0x283f   : > { %v11614_v23 = vpop.f32.mrb[100].mxu0 }
0x2840   : > { %v11615_v15 = vadd.f32 %v17906_v39, %v11614_v23  ;;  %v16121_v5 = vpop.f32.mrb[101].mxu0 }
0x2841   : > { %v11617_v47 = vpop.f32.mrb[102].mxu0  ;;  %v17560_v5 = vld [vmem:[#allocation5 + $0x304] ss:$8 sps:$4 sm:$0xff]  }
0x2842   : > { %v16122_v53 = vpop.f32.mrb[103].mxu0  ;;  %v11620_v48 = vsel %vm1218_vm3, %v11615_v15, -inf  ;;  %v17563_v47 = vld [vmem:[#allocation5 + $0x314] ss:$8 sps:$4 sm:$0xff]   ;;  %12114 = vmatprep.subr.bf16.mxu0 %v17560_v5 }
0x2843   : > { %11621 = vmax.xlane.f32.xlu1 %v11620_v48  ;;  %v17561_v53 = vld [vmem:[#allocation5 + $0x310] ss:$8 sps:$4 sm:$0xff]   ;;  %v17566_v48 = vld [vmem:[#allocation5 + $0x324] ss:$8 sps:$4 sm:$0xff]  }
0x2847   : > { %v11724_v40 = vpop.f32.mrb[104].mxu0 }
0x2848   : > { %v11725_v20 = vadd.f32 %v17906_v39, %v11724_v40  ;;  %v16133_v54 = vpop.f32.mrb[105].mxu0  ;;  %v17564_v40 = vld [vmem:[#allocation5 + $0x320] ss:$8 sps:$4 sm:$0xff]  }
0x2849   : > { %v11727_v57 = vpop.f32.mrb[106].mxu0  ;;  %v17572_v54 = vld [vmem:[#allocation5 + $0x344] ss:$8 sps:$4 sm:$0xff]  }
0x284a   : > { %v16134_v59 = vpop.f32.mrb[107].mxu0  ;;  %v11730_v62 = vsel %vm1218_vm3, %v11725_v20, -inf  ;;  %v17570_v57 = vld [vmem:[#allocation5 + $0x340] ss:$8 sps:$4 sm:$0xff]  }
0x284b   : > { %11731 = vmax.xlane.f32.xlu0 %v11730_v62  ;;  %v17573_v59 = vld [vmem:[#allocation5 + $0x350] ss:$8 sps:$4 sm:$0xff]   ;;  %v17578_v62 = vld [vmem:[#allocation5 + $0x364] ss:$8 sps:$4 sm:$0xff]  }
0x284f   : > { %v11834_v7 = vpop.f32.mrb[108].mxu0 }
0x2850   : > { %v11835_v61 = vadd.f32 %v17906_v39, %v11834_v7  ;;  %v16145_v55 = vpop.f32.mrb[109].mxu0  ;;  %v17581_v7 = vld [vmem:[#allocation5 + $0x374] ss:$8 sps:$4 sm:$0xff]  }
0x2851   : > { %v11837_v8 = vpop.f32.mrb[110].mxu0  ;;  %v17584_v55 = vld [vmem:[#allocation5 + $0x384] ss:$8 sps:$4 sm:$0xff]  }
0x2852   : > { %v16146_v4 = vpop.f32.mrb[111].mxu0  ;;  %v11840_v2 = vsel %vm1218_vm3, %v11835_v61, -inf  ;;  %v17582_v8 = vld [vmem:[#allocation5 + $0x380] ss:$8 sps:$4 sm:$0xff]  }
0x2853   : > { %11841 = vmax.xlane.f32.xlu0 %v11840_v2  ;;  %v17585_v4 = vld [vmem:[#allocation5 + $0x390] ss:$8 sps:$4 sm:$0xff]   ;;  %v17590_v2 = vld [vmem:[#allocation5 + $0x3a4] ss:$8 sps:$4 sm:$0xff]  }
0x2854   : > { %11852 = vrot.lane.b32.xlu1 %v11683_v43, %s18115_s23  ;;  %v17587_v43 = vld [vmem:[#allocation5 + $0x394] ss:$8 sps:$4 sm:$0xff]  }
0x285d   : > { %v11512_v12 = vpop.xlane.xlu0 %11511 }
0x285e   : > { %v11513_v63 = vsub.f32 %v11505_v41, %v11512_v12  ;;  %v17588_v12 = vld [vmem:[#allocation5 + $0x3a0] ss:$8 sps:$4 sm:$0xff]  }
0x2860   : > { %v11514_v49 = vmul.f32 1.442695, %v11513_v63  ;;  %v17593_v63 = vld [vmem:[#allocation5 + $0x3b4] ss:$8 sps:$4 sm:$0xff]  }
0x2862   : > { %17860 = vpow2.f32 %v11514_v49  ;;  %v17591_v49 = vld [vmem:[#allocation5 + $0x3b0] ss:$8 sps:$4 sm:$0xff]  }
0x2869   : > { %11632 = vrot.lane.b32.xlu0 %v11463_v27, %s18115_s23 }
0x286c   : > { %v17861_v10 = vpop.eup %17860 }
0x286d   : > { %v11520_v46 = vpack.c.bf16 %v17861_v10, %v17861_v10  ;;  %v11516_v38 = vsel %vm1218_vm3, %v17861_v10, 0.0  ;;  %v17596_v10 = vld [vmem:[#allocation5 + $0x3c4] ss:$8 sps:$4 sm:$0xff]  }
0x286f   : > { %16114 = vmatmul.mubr.msk.bf16.vlgmr.msra.gmra.mrb[156].mxu1 %vm1218_vm3, %v11520_v46  ;;  %v17594_v46 = vld [vmem:[#allocation5 + $0x3c0] ss:$8 sps:$4 sm:$0xff]  }
0x2870   : > { %16125 = vmatprep.mubr.msk.bf16.mxu1 %vm18114_vm0, %v18113_v0 }
0x28d0   : > { %v11622_v22 = vpop.xlane.xlu1 %11621 }
0x28d1   : > { %v11623_v1 = vsub.f32 %v11615_v15, %v11622_v22  ;;  %v17558_v15 = vld [vmem:[#allocation5 + $0x300] ss:$8 sps:$4 sm:$0xff]   ;;  %v17599_v22 = vld [vmem:[#allocation5 + $0x3d4] ss:$8 sps:$4 sm:$0xff]  }
0x28d2   : > { %12115 = vmatpush1.bf16.msra.mxu0 %v17558_v15 }
0x28d3   : > { %v11624_v42 = vmul.f32 1.442695, %v11623_v1  ;;  %12116 = vmatprep.subr.bf16.mxu0 %v17563_v47  ;;  %v17597_v1 = vld [vmem:[#allocation5 + $0x3d0] ss:$8 sps:$4 sm:$0xff]  }
0x28d4   : > { %v11853_v32 = vpop.permute.xlu1 %11852 }
0x28d5   : > { %17862 = vpow2.f32 %v11624_v42  ;;  %v11858_v41 = vsel %vm1233_vm2, %v11853_v32, 0  ;;  %v17602_v42 = vld [vmem:[#allocation5 + $0x3e4] ss:$8 sps:$4 sm:$0xff]  }
0x28d6   : > { %12117 = vmatpush1.bf16.msra.mxu0 %v17561_v53 }
0x28d7   : > { %12118 = vmatprep.subr.bf16.mxu0 %v17566_v48 }
0x28d8   : > { %v11732_v14 = vpop.xlane.xlu0 %11731 }
0x28d9   : > { %v11733_v34 = vsub.f32 %v11725_v20, %v11732_v14  ;;  %v17567_v20 = vld [vmem:[#allocation5 + $0x330] ss:$8 sps:$4 sm:$0xff]   ;;  %v17600_v14 = vld [vmem:[#allocation5 + $0x3e0] ss:$8 sps:$4 sm:$0xff]  }
0x28da   : > { %12119 = vmatpush1.bf16.msra.mxu0 %v17564_v40 }
0x28db   : > { %v11734_v60 = vmul.f32 1.442695, %v11733_v34 }
0x28dd   : > { %17864 = vpow2.f32 %v11734_v60 }
0x28df   : > { %v17863_v19 = vpop.eup %17862 }
0x28e0   : > { %v11842_v16 = vpop.xlane.xlu0 %11841  ;;  %v11626_v25 = vsel %vm1218_vm3, %v17863_v19, 0.0  ;;  %v11630_v31 = vpack.c.bf16 %v17863_v19, %v17863_v19 }
0x28e1   : > { %v11843_v26 = vsub.f32 %v11835_v61, %v11842_v16  ;;  %11627 = vadd.xlane.f32.xlu0 %v11626_v25  ;;  %v17579_v61 = vld [vmem:[#allocation5 + $0x370] ss:$8 sps:$4 sm:$0xff]  }
0x28e3   : > { %v11844_v27 = vmul.f32 1.442695, %v11843_v26 }
0x28e4   : > { %v11633_v28 = vpop.permute.xlu0 %11632 }
0x28e5   : > { %17866 = vpow2.f32 %v11844_v27  ;;  %v11638_v36 = vsel %vm1233_vm2, %v11633_v28, 0 }
0x28e6   : > { %16124 = vmatpush3.bf16.msra.mxu1 %v11638_v36  ;;  %v17605_v36 = vld [vmem:[#allocation5 + $0x3f4] ss:$8 sps:$4 sm:$0xff]  }
0x28e7   : > { %v17865_v3 = vpop.eup %17864  ;;  %16135 = vmatprep.subr.bf16.mxu1 %v18113_v0 }
0x28e8   : > { %v11736_v13 = vsel %vm1218_vm3, %v17865_v3, 0.0  ;;  %v11740_v24 = vpack.c.bf16 %v17865_v3, %v17865_v3 }
0x28e9   : > { %11737 = vadd.xlane.f32.xlu0 %v11736_v13  ;;  %16126 = vmatmul.mubr.msk.bf16.vlgmr.msra.gmra.mrb[160].mxu1 %vm1218_vm3, %v11630_v31  ;;  %v17603_v31 = vld [vmem:[#allocation5 + $0x3f0] ss:$8 sps:$4 sm:$0xff]  }
0x28ea   : > { %16136 = vmatpush3.bf16.msra.mxu1 %v11745_v30  ;;  %16137 = vmatprep.mubr.msk.bf16.mxu1 %vm18114_vm0, %v18113_v0 }
0x28eb   : > { %16147 = vmatprep.subr.bf16.mxu1 %v18113_v0 }
0x28ed   : > { %11517 = vadd.xlane.f32.xlu0 %v11516_v38 }
0x28ef   : > { %v17867_v6 = vpop.eup %17866 }
0x28f0   : > { %v11846_v39 = vsel %vm1218_vm3, %v17867_v6, 0.0  ;;  %v11850_v45 = vpack.c.bf16 %v17867_v6, %v17867_v6 }
0x28f1   : > { %11847 = vadd.xlane.f32.xlu1 %v11846_v39  ;;  %16138 = vmatmul.mubr.msk.bf16.vlgmr.msra.gmra.mrb[164].mxu1 %vm1218_vm3, %v11740_v24 }
0x28f2   : > { %16148 = vmatpush3.bf16.msra.mxu1 %v11858_v41  ;;  %16149 = vmatprep.mubr.msk.bf16.mxu1 %vm18114_vm0, %v18113_v0  ;;  %v17569_v0 = vld [vmem:[#allocation5 + $0x334] ss:$8 sps:$4 sm:$0xff]  }
0x28f3   : > { %12120 = vmatprep.subr.bf16.mxu0 %v17569_v0 }
0x28f4   : > { %12121 = vmatpush1.bf16.msra.mxu0 %v17567_v20 }
0x28f5   : > { %12122 = vmatprep.subr.bf16.mxu0 %v17572_v54 }
0x28f8   : > { %12123 = vmatpush1.bf16.msra.mxu0 %v17570_v57 }
0x28f9   : > { %16150 = vmatmul.mubr.msk.bf16.vlgmr.msra.gmra.mrb[168].mxu1 %vm1218_vm3, %v11850_v45  ;;  %12124 = vmatprep.subr.bf16.mxu0 %v17575_v58 }
0x28fc   : > { %12125 = vmatpush1.bf16.msra.mxu0 %v17573_v59  ;;  %v15496_v59 = vld [vmem:[%s19386_s7 + $0xf0] sm:$0xff] }
0x28fd   : > { %12126 = vmatprep.subr.bf16.mxu0 %v17578_v62  ;;  %v15497_v62 = vld [vmem:[%s19386_s7 + $0xf8] sm:$0xff] }
0x2900   : > { %12127 = vmatpush1.bf16.msra.mxu0 %v17576_v56  ;;  %v11949_v56 = vrot.slane %v15496_v59, %v18361_v18 }
0x2901   : > { %12128 = vmatprep.subr.bf16.mxu0 %v17581_v7 }
0x2904   : > { %12129 = vmatpush1.bf16.msra.mxu0 %v17579_v61 }
0x2905   : > { %12130 = vmatprep.subr.bf16.mxu0 %v17584_v55 }
0x2908   : > { %12131 = vmatpush1.bf16.msra.mxu0 %v17582_v8 }
0x2909   : > { %12132 = vmatprep.subr.bf16.mxu0 %v17587_v43 }
0x290c   : > { %12133 = vmatpush1.bf16.msra.mxu0 %v17585_v4 }
0x290d   : > { %12134 = vmatprep.subr.bf16.mxu0 %v17590_v2 }
0x2910   : > { %12135 = vmatpush1.bf16.msra.mxu0 %v17588_v12 }
0x2911   : > { %12136 = vmatprep.subr.bf16.mxu0 %v17593_v63 }
0x2914   : > { %12137 = vmatpush1.bf16.msra.mxu0 %v17591_v49  ;;  %v12196_v49 = vld [vmem:[#allocation7 + $0xc00] sm:$0xff] }
0x2915   : > { %12138 = vmatprep.subr.bf16.mxu0 %v17596_v10  ;;  %v12200_v10 = vld [vmem:[#allocation7 + $0xc20] sm:$0xff] }
0x2918   : > { %12139 = vmatpush1.bf16.msra.mxu0 %v17594_v46  ;;  %v12197_v46 = vld [vmem:[#allocation7 + $0xc08] sm:$0xff] }
0x2919   : > { %12140 = vmatprep.subr.bf16.mxu0 %v17599_v22  ;;  %v15635_v22 = vcombine.high %v12196_v49, %v12200_v10 }
0x291b   : > { %12996 = vmatprep.subr.bf16.mxu1 %v15635_v22 }
0x291c   : > { %12141 = vmatpush1.bf16.msra.mxu0 %v17597_v1  ;;  %v12201_v1 = vld [vmem:[#allocation7 + $0xc28] sm:$0xff] }
0x291d   : > { %12142 = vmatprep.subr.bf16.mxu0 %v17602_v42  ;;  %v12204_v42 = vld [vmem:[#allocation7 + $0xc40] sm:$0xff] }
0x2920   : > { %12143 = vmatpush1.bf16.msra.mxu0 %v17600_v14  ;;  %v12208_v14 = vld [vmem:[#allocation7 + $0xc60] sm:$0xff] }
0x2921   : > { %12144 = vmatprep.subr.bf16.mxu0 %v17605_v36  ;;  %v15642_v36 = vcombine.low %v12204_v42, %v12208_v14 }
0x2924   : > { %12145 = vmatpush1.bf16.msra.mxu0 %v17603_v31 }
0x2942   : > { %v19218_v50 = vpop.f32.mrb[156].mxu1 }
0x2943   : > { %v16115_v33 = vpop.f32.mrb[157].mxu1 }
0x2944   : > { %v11564_v51 = vpop.f32.mrb[158].mxu1 }
0x2945   : > { %v16116_v23 = vpop.f32.mrb[159].mxu1 }
0x296e   : > { %v11628_v19 = vpop.xlane.xlu0 %11627 }
0x296f   : > { %17868 = vrcp.f32 %v11628_v19  ;;  %v12205_v19 = vld [vmem:[#allocation7 + $0xc48] sm:$0xff] }
0x2976   : > { %v11738_v51 = vpop.xlane.xlu0 %11737 }
0x2979   : > { %v17869_v30 = vpop.eup %17868 }
0x297a   : > { %v11518_v23 = vpop.xlane.xlu0 %11517 }
0x297e   : > { %v11848_v25 = vpop.xlane.xlu1 %11847 }
0x297f   : > { %17870 = vrcp.f32 %v11848_v25  ;;  %v12212_v25 = vld [vmem:[#allocation7 + $0xc80] sm:$0xff] }
0x2980   : > { %17872 = vrcp.f32 %v11518_v23  ;;  %v12229_v23 = vld [vmem:[#allocation7 + $0xd08] sm:$0xff] }
0x2981   : > { %17874 = vrcp.f32 %v11738_v51  ;;  %v12232_v51 = vld [vmem:[#allocation7 + $0xd20] sm:$0xff] }
0x2989   : > { %v17871_v38 = vpop.eup %17870 }
0x298a   : > { %v17873_v15 = vpop.eup %17872 }
0x298b   : > { %v17875_v5 = vpop.eup %17874  ;;  %v11567_v0 = vmul.f32 %v17873_v15, %v19218_v50  ;;  %v11953_v50 = vrot.slane %v15497_v62, %v18361_v18  ;;  %v15634_v18 = vcombine.low %v12196_v49, %v12200_v10  ;;  %v12233_v15 = vld [vmem:[#allocation7 + $0xd28] sm:$0xff]  ;;  %v12256_v49 = vld [vmem:[#allocation7 + $0xde0] sm:$0xff] }
0x298c   : > { %v12253_v10 = vld [vmem:[#allocation7 + $0xdc8] sm:$0xff] }
0x298d   : > { %12997 = vmatpush1.bf16.msra.mxu1 %v15634_v18 }
0x29bc   : > { %v11674_v34 = vpop.f32.mrb[160].mxu1 }
0x29bd   : > { %v16127_v60 = vpop.f32.mrb[161].mxu1  ;;  %v11680_v6 = vmul.f32 %v17869_v30, %v11674_v34  ;;  %v15636_v34 = vcombine.low %v12197_v46, %v12201_v1  ;;  %v12220_v30 = vld [vmem:[#allocation7 + $0xcc0] sm:$0xff] }
0x29be   : > { %v11677_v16 = vpop.f32.mrb[162].mxu1  ;;  %v15637_v60 = vcombine.high %v12197_v46, %v12201_v1  ;;  %v12257_v46 = vld [vmem:[#allocation7 + $0xde8] sm:$0xff] }
0x29bf   : > { %v16128_v26 = vpop.f32.mrb[163].mxu1  ;;  %v12209_v16 = vld [vmem:[#allocation7 + $0xc68] sm:$0xff] }
0x29c0   : > { %v12216_v26 = vld [vmem:[#allocation7 + $0xca0] sm:$0xff]  ;;  %13037 = vmatprep.subr.bf16.mxu0 %v15637_v60  ;;  %v12261_v60 = vld [vmem:[#allocation7 + $0xe08] sm:$0xff] }
0x29c1   : > { %v15651_v31 = vcombine.high %v12212_v25, %v12216_v26 }
0x29c4   : > { %v11781_v27 = vpop.f32.mrb[164].mxu1 }
0x29c5   : > { %v16139_v28 = vpop.f32.mrb[165].mxu1  ;;  %v11787_v53 = vmul.f32 %v17875_v5, %v11781_v27  ;;  %v12213_v27 = vld [vmem:[#allocation7 + $0xc88] sm:$0xff] }
0x29c6   : > { %v11784_v3 = vpop.f32.mrb[166].mxu1  ;;  %v12217_v28 = vld [vmem:[#allocation7 + $0xca8] sm:$0xff] }
0x29c7   : > { %v16140_v13 = vpop.f32.mrb[167].mxu1  ;;  %v15644_v3 = vcombine.low %v12205_v19, %v12209_v16 }
0x29c8   : > { %v15653_v13 = vcombine.high %v12213_v27, %v12217_v28 }
0x29cc   : > { %v11894_v32 = vpop.f32.mrb[168].mxu1 }
0x29cd   : > { %v11900_v24 = vmul.f32 %v17871_v38, %v11894_v32  ;;  %v16151_v39 = vpop.f32.mrb[169].mxu1  ;;  %v12224_v38 = vld [vmem:[#allocation7 + $0xce0] sm:$0xff]  ;;  %v12221_v32 = vld [vmem:[#allocation7 + $0xcc8] sm:$0xff] }
0x29ce   : > { %v11897_v41 = vpop.f32.mrb[170].mxu1  ;;  %v15652_v39 = vcombine.low %v12213_v27, %v12217_v28  ;;  %v15658_v5 = vcombine.low %v12220_v30, %v12224_v38  ;;  %v12272_v27 = vld [vmem:[#allocation7 + $0xe60] sm:$0xff]  ;;  %v12269_v28 = vld [vmem:[#allocation7 + $0xe48] sm:$0xff] }
0x29cf   : > { %v16257_v45 = vpack.i.bf16 %v11680_v6, %v11900_v24  ;;  %v16152_v33 = vpop.f32.mrb[171].mxu1  ;;  %v12225_v6 = vld [vmem:[#allocation7 + $0xce8] sm:$0xff]  ;;  %v15650_v24 = vcombine.low %v12212_v25, %v12216_v26  ;;  %v15659_v41 = vcombine.high %v12220_v30, %v12224_v38  ;;  %v12268_v26 = vld [vmem:[#allocation7 + $0xe40] sm:$0xff] }
0x29d0   : > { %v12228_v33 = vld [vmem:[#allocation7 + $0xd00] sm:$0xff] }
0x29d1   : > { %16258 = vrot.lane.b32.xlu1 %v16257_v45, %s18115_s23  ;;  %v15661_v45 = vcombine.high %v12221_v32, %v12225_v6  ;;  %v12276_v38 = vld [vmem:[#allocation7 + $0xe80] sm:$0xff] }
0x2a43   : > { %v16259_v47 = vpop.permute.xlu1 %16258 }
0x2a44   : > { %v16261_v48 = vunpack.i.h.bf16 %v16259_v47  ;;  %v16260_v40 = vunpack.i.l.bf16 %v16259_v47  ;;  %v15660_v47 = vcombine.low %v12221_v32, %v12225_v6  ;;  %v12280_v32 = vld [vmem:[#allocation7 + $0xea0] sm:$0xff]  ;;  %v12277_v6 = vld [vmem:[#allocation7 + $0xe88] sm:$0xff] }
0x2a46   : > { %v11909_v20 = vsel %vm1171_vm1, %v11567_v0, %v16261_v48  ;;  %v11910_v54 = vsel %vm1171_vm1, %v11787_v53, %v16260_v40  ;;  %v15667_v53 = vcombine.high %v12228_v33, %v12232_v51  ;;  %v15669_v48 = vcombine.high %v12229_v23, %v12233_v15  ;;  %v12236_v40 = vld [vmem:[#allocation7 + $0xd40] sm:$0xff] }
0x2a47   : > { %v11911_v57 = vpack.c.bf16 %v11909_v20, %v11909_v20  ;;  %v11912_v58 = vpack.c.bf16 %v11910_v54, %v11910_v54  ;;  %v12240_v0 = vld [vmem:[#allocation7 + $0xd60] sm:$0xff]  ;;  %v12237_v20 = vld [vmem:[#allocation7 + $0xd48] sm:$0xff] }
0x2a48   : > { %v12241_v54 = vld [vmem:[#allocation7 + $0xd68] sm:$0xff]  ;;  %v15675_v59 = vcombine.high %v12236_v40, %v12240_v0 }
0x2a49   : > { %12146 = vmatprep.mubr.bf16.mxu0 %v11912_v58  ;;  %v15668_v58 = vcombine.low %v12229_v23, %v12233_v15  ;;  %v15677_v62 = vcombine.high %v12237_v20, %v12241_v54 }
0x2a4a   : > { %12147 = vmatmul.mubr.bf16.vlgmr.msra.gmra.mrb[112].mxu0 %v11911_v57  ;;  %v15666_v57 = vcombine.low %v12228_v33, %v12232_v51  ;;  %v15714_v51 = vcombine.low %v12276_v38, %v12280_v32 }
0x2a4b   : > { %13038 = vmatpush1.bf16.msra.mxu0 %v15636_v34  ;;  %v12264_v34 = vld [vmem:[#allocation7 + $0xe20] sm:$0xff] }
0x2b1d   : > { %v12148_v7 = vpop.f32.mrb[112].mxu0 }
0x2b1e   : > { %v12149_v61 = vadd.f32 %v12148_v7, %v11949_v56  ;;  %v12150_v55 = vpop.f32.mrb[113].mxu0  ;;  %v12244_v56 = vld [vmem:[#allocation7 + $0xd80] sm:$0xff]  ;;  %v12245_v7 = vld [vmem:[#allocation7 + $0xd88] sm:$0xff] }
0x2b1f   : > { %v12151_v8 = vadd.f32 %v12150_v55, %v11953_v50  ;;  %v12152_v43 = vpop.f32.mrb[114].mxu0  ;;  %v12248_v50 = vld [vmem:[#allocation7 + $0xda0] sm:$0xff]  ;;  %v15674_v55 = vcombine.low %v12236_v40, %v12240_v0 }
0x2b20   : > { %v19233_v4 = vadd.f32 %v12149_v61, %v19117_v37  ;;  %v12153_v2 = vpop.f32.mrb[115].mxu0  ;;  %v15643_v37 = vcombine.high %v12204_v42, %v12208_v14  ;;  %v12249_v61 = vld [vmem:[#allocation7 + $0xda8] sm:$0xff]  ;;  %v15683_v43 = vcombine.high %v12244_v56, %v12248_v50  ;;  %v15682_v18 = vcombine.low %v12244_v56, %v12248_v50  ;;  %v12260_v14 = vld [vmem:[#allocation7 + $0xe00] sm:$0xff] }
0x2b21   : > { %v19236_v12 = vadd.f32 %v12151_v8, %v19115_v21  ;;  %v15645_v21 = vcombine.high %v12205_v19, %v12209_v16  ;;  %v15676_v8 = vcombine.low %v12237_v20, %v12241_v54  ;;  %v15685_v2 = vcombine.high %v12245_v7, %v12249_v61  ;;  %v12284_v20 = vld [vmem:[#allocation7 + $0xec0] sm:$0xff] }
0x2b22   : > { %12998 = vmatprep.subr.bf16.mxu1 %v15643_v37  ;;  %v15684_v22 = vcombine.low %v12245_v7, %v12249_v61  ;;  %v15693_v42 = vcombine.high %v12253_v10, %v12257_v46  ;;  %v12265_v37 = vld [vmem:[#allocation7 + $0xe28] sm:$0xff]  ;;  %v15692_v16 = vcombine.low %v12253_v10, %v12257_v46  ;;  %v15699_v25 = vcombine.high %v12260_v14, %v12264_v34  ;;  %v12288_v54 = vld [vmem:[#allocation7 + $0xee0] sm:$0xff] }
0x2b23   : > { %v12157_v63 = vadd.f32 %v19236_v12, %v19233_v4  ;;  %13039 = vmatprep.subr.bf16.mxu0 %v15645_v21  ;;  %12999 = vmatpush1.bf16.msra.mxu1 %v15642_v36  ;;  %v15701_v21 = vcombine.high %v12261_v60, %v12265_v37  ;;  %v12273_v36 = vld [vmem:[#allocation7 + $0xe68] sm:$0xff]  ;;  %v12296_v50 = vld [vmem:[#allocation7 + $0xf20] sm:$0xff] }
0x2b24   : > { %13040 = vmatpush1.bf16.msra.mxu0 %v15644_v3  ;;  %13000 = vmatprep.subr.bf16.mxu1 %v15651_v31  ;;  %v15698_v3 = vcombine.low %v12260_v14, %v12264_v34  ;;  %v15700_v31 = vcombine.low %v12261_v60, %v12265_v37  ;;  %v15709_v30 = vcombine.high %v12269_v28, %v12273_v36  ;;  %v12293_v7 = vld [vmem:[#allocation7 + $0xf08] sm:$0xff]  ;;  %v12308_v14 = vld [vmem:[#allocation7 + $0xf80] sm:$0xff] }
0x2b25   : > { %12158 = vadd.xlane.f32.xlu0 %v12157_v63  ;;  %13041 = vmatprep.subr.bf16.mxu0 %v15653_v13  ;;  %v12252_v63 = vld [vmem:[#allocation7 + $0xdc0] sm:$0xff]  ;;  %v15707_v13 = vcombine.high %v12268_v26, %v12272_v27  ;;  %v12301_v10 = vld [vmem:[#allocation7 + $0xf48] sm:$0xff] }
0x2b26   : > { %v15691_v1 = vcombine.high %v12252_v63, %v12256_v49  ;;  %v15690_v19 = vcombine.low %v12252_v63, %v12256_v49  ;;  %v12300_v63 = vld [vmem:[#allocation7 + $0xf40] sm:$0xff]  ;;  %v12309_v60 = vld [vmem:[#allocation7 + $0xf88] sm:$0xff] }
0x2b27   : > { %13001 = vmatpush1.bf16.msra.mxu1 %v15650_v24  ;;  %v12281_v24 = vld [vmem:[#allocation7 + $0xea8] sm:$0xff]  ;;  %v12304_v49 = vld [vmem:[#allocation7 + $0xf60] sm:$0xff] }
0x2b28   : > { %13042 = vmatpush1.bf16.msra.mxu0 %v15652_v39  ;;  %13002 = vmatprep.subr.bf16.mxu1 %v15659_v41  ;;  %v15706_v39 = vcombine.low %v12268_v26, %v12272_v27  ;;  %v15708_v41 = vcombine.low %v12269_v28, %v12273_v36  ;;  %v15717_v33 = vcombine.high %v12277_v6, %v12281_v24  ;;  %v12312_v34 = vld [vmem:[#allocation7 + $0xfa0] sm:$0xff]  ;;  %v12317_v28 = vld [vmem:[#allocation7 + $0xfc8] sm:$0xff] }
0x2b29   : > { %13043 = vmatprep.subr.bf16.mxu0 %v15661_v45  ;;  %v15715_v45 = vcombine.high %v12276_v38, %v12280_v32  ;;  %v15716_v23 = vcombine.low %v12277_v6, %v12281_v24  ;;  %v15739_v46 = vcombine.high %v12300_v63, %v12304_v49  ;;  %v15747_v37 = vcombine.high %v12308_v14, %v12312_v34  ;;  %v12316_v26 = vld [vmem:[#allocation7 + $0xfc0] sm:$0xff]  ;;  %v12198_v38 = vld [vmem:[#allocation7 + $0xc10] sm:$0xff]  ;;  %v12199_v6 = vld [vmem:[#allocation7 + $0xc18] sm:$0xff] }
0x2b2a   : > { %v12320_v27 = vld [vmem:[#allocation7 + $0xfe0] sm:$0xff]  ;;  %v12202_v32 = vld [vmem:[#allocation7 + $0xc30] sm:$0xff] }
0x2b2b   : > { %13003 = vmatpush1.bf16.msra.mxu1 %v15658_v5  ;;  %v15755_v36 = vcombine.high %v12316_v26, %v12320_v27  ;;  %v15639_v24 = vcombine.high %v12198_v38, %v12202_v32 }
0x2b2c   : > { %13044 = vmatpush1.bf16.msra.mxu0 %v15660_v47  ;;  %13004 = vmatprep.subr.bf16.mxu1 %v15667_v53 }
0x2b2d   : > { %13045 = vmatprep.subr.bf16.mxu0 %v15669_v48 }
0x2b2f   : > { %13005 = vmatpush1.bf16.msra.mxu1 %v15666_v57  ;;  %v12285_v57 = vld [vmem:[#allocation7 + $0xec8] sm:$0xff] }
0x2b30   : > { %13046 = vmatpush1.bf16.msra.mxu0 %v15668_v58  ;;  %13006 = vmatprep.subr.bf16.mxu1 %v15675_v59  ;;  %v15723_v58 = vcombine.high %v12284_v20, %v12288_v54  ;;  %v12289_v59 = vld [vmem:[#allocation7 + $0xee8] sm:$0xff] }
0x2b31   : > { %13047 = vmatprep.subr.bf16.mxu0 %v15677_v62  ;;  %v15722_v62 = vcombine.low %v12284_v20, %v12288_v54  ;;  %v15724_v56 = vcombine.low %v12285_v57, %v12289_v59  ;;  %v12190_v20 = vrot.slane %v19191_v52, %v18541_v9 }
0x2b33   : > { %13007 = vmatpush1.bf16.msra.mxu1 %v15674_v55  ;;  %v12297_v55 = vld [vmem:[#allocation7 + $0xf28] sm:$0xff] }
0x2b34   : > { %13048 = vmatpush1.bf16.msra.mxu0 %v15676_v8  ;;  %13008 = vmatprep.subr.bf16.mxu1 %v15683_v43  ;;  %v15732_v43 = vcombine.low %v12293_v7, %v12297_v55 }
0x2b35   : > { %13049 = vmatprep.subr.bf16.mxu0 %v15685_v2  ;;  %v15733_v2 = vcombine.high %v12293_v7, %v12297_v55  ;;  %v12218_v7 = vld [vmem:[#allocation7 + $0xcb0] sm:$0xff]  ;;  %v12219_v55 = vld [vmem:[#allocation7 + $0xcb8] sm:$0xff] }
0x2b37   : > { %13009 = vmatpush1.bf16.msra.mxu1 %v15682_v18  ;;  %v12305_v18 = vld [vmem:[#allocation7 + $0xf68] sm:$0xff] }
0x2b38   : > { %13050 = vmatpush1.bf16.msra.mxu0 %v15684_v22  ;;  %13010 = vmatprep.subr.bf16.mxu1 %v15691_v1  ;;  %v15738_v22 = vcombine.low %v12300_v63, %v12304_v49  ;;  %v15740_v1 = vcombine.low %v12301_v10, %v12305_v18  ;;  %v12222_v49 = vld [vmem:[#allocation7 + $0xcd0] sm:$0xff] }
0x2b39   : > { %13051 = vmatprep.subr.bf16.mxu0 %v15693_v42  ;;  %v15741_v42 = vcombine.high %v12301_v10, %v12305_v18  ;;  %v12226_v10 = vld [vmem:[#allocation7 + $0xcf0] sm:$0xff]  ;;  %v12227_v18 = vld [vmem:[#allocation7 + $0xcf8] sm:$0xff] }
0x2b3b   : > { %13011 = vmatpush1.bf16.msra.mxu1 %v15690_v19  ;;  %v12313_v19 = vld [vmem:[#allocation7 + $0xfa8] sm:$0xff] }
0x2b3c   : > { %13052 = vmatpush1.bf16.msra.mxu0 %v15692_v16  ;;  %13012 = vmatprep.subr.bf16.mxu1 %v15699_v25  ;;  %v15746_v16 = vcombine.low %v12308_v14, %v12312_v34  ;;  %v15748_v25 = vcombine.low %v12309_v60, %v12313_v19  ;;  %v12230_v34 = vld [vmem:[#allocation7 + $0xd10] sm:$0xff] }
0x2b3d   : > { %13053 = vmatprep.subr.bf16.mxu0 %v15701_v21  ;;  %v15749_v21 = vcombine.high %v12309_v60, %v12313_v19  ;;  %v12234_v60 = vld [vmem:[#allocation7 + $0xd30] sm:$0xff]  ;;  %v12235_v19 = vld [vmem:[#allocation7 + $0xd38] sm:$0xff] }
0x2b3f   : > { %13013 = vmatpush1.bf16.msra.mxu1 %v15698_v3  ;;  %v12321_v3 = vld [vmem:[#allocation7 + $0xfe8] sm:$0xff] }
0x2b40   : > { %13054 = vmatpush1.bf16.msra.mxu0 %v15700_v31  ;;  %13014 = vmatprep.subr.bf16.mxu1 %v15707_v13  ;;  %v15754_v31 = vcombine.low %v12316_v26, %v12320_v27  ;;  %v15757_v13 = vcombine.high %v12317_v28, %v12321_v3  ;;  %v12238_v27 = vld [vmem:[#allocation7 + $0xd50] sm:$0xff] }
0x2b41   : > { %13055 = vmatprep.subr.bf16.mxu0 %v15709_v30  ;;  %v15756_v30 = vcombine.low %v12317_v28, %v12321_v3  ;;  %v12242_v28 = vld [vmem:[#allocation7 + $0xd70] sm:$0xff]  ;;  %v12243_v3 = vld [vmem:[#allocation7 + $0xd78] sm:$0xff] }
0x2b43   : > { %13015 = vmatpush1.bf16.msra.mxu1 %v15706_v39  ;;  %v12203_v39 = vld [vmem:[#allocation7 + $0xc38] sm:$0xff] }
0x2b44   : > { %13056 = vmatpush1.bf16.msra.mxu0 %v15708_v41  ;;  %13016 = vmatprep.subr.bf16.mxu1 %v15715_v45  ;;  %v15638_v41 = vcombine.low %v12198_v38, %v12202_v32  ;;  %v15640_v45 = vcombine.low %v12199_v6, %v12203_v39  ;;  %v12246_v32 = vld [vmem:[#allocation7 + $0xd90] sm:$0xff] }
0x2b45   : > { %13057 = vmatprep.subr.bf16.mxu0 %v15717_v33  ;;  %v15641_v33 = vcombine.high %v12199_v6, %v12203_v39  ;;  %v12250_v6 = vld [vmem:[#allocation7 + $0xdb0] sm:$0xff]  ;;  %v12251_v39 = vld [vmem:[#allocation7 + $0xdb8] sm:$0xff] }
0x2b47   : > { %13017 = vmatpush1.bf16.msra.mxu1 %v15714_v51 }
0x2b48   : > { %13058 = vmatpush1.bf16.msra.mxu0 %v15716_v23  ;;  %13018 = vmatprep.subr.bf16.mxu1 %v15723_v58 }
0x2b4b   : > { %13019 = vmatpush1.bf16.msra.mxu1 %v15722_v62 }
0x2bb2   : > { %v12159_v15 = vpop.xlane.xlu0 %12158 }
0x2bb3   : > { %v12160_v5 = vmul.f32 0.00390625, %v12159_v15 }
0x2bb5   : > { %v19241_v47 = vsub.f32 %v19233_v4, %v12160_v5  ;;  %v19244_v53 = vsub.f32 %v19236_v12, %v12160_v5  ;;  %v15725_v4 = vcombine.high %v12285_v57, %v12289_v59  ;;  %v12292_v12 = vld [vmem:[#allocation7 + $0xf00] sm:$0xff]  ;;  %v12176_v5 = vrot.slane %v19139_v29, %v18541_v9  ;;  %v12206_v29 = vld [vmem:[#allocation7 + $0xc50] sm:$0xff] }
0x2bb6   : > { %v15731_v61 = vcombine.high %v12292_v12, %v12296_v50  ;;  %v15730_v8 = vcombine.low %v12292_v12, %v12296_v50  ;;  %v12211_v12 = vld [vmem:[#allocation7 + $0xc78] sm:$0xff] }
0x2bb7   : > { %v12163_v48 = vmul.f32 %v19241_v47, %v19241_v47  ;;  %v12164_v40 = vmul.f32 %v19244_v53, %v19244_v53  ;;  %13059 = vmatprep.subr.bf16.mxu0 %v15725_v4  ;;  %v12210_v4 = vld [vmem:[#allocation7 + $0xc70] sm:$0xff] }
0x2bb8   : > { %13060 = vmatpush1.bf16.msra.mxu0 %v15724_v56  ;;  %13020 = vmatprep.subr.bf16.mxu1 %v15731_v61  ;;  %v12215_v61 = vld [vmem:[#allocation7 + $0xc98] sm:$0xff] }
0x2bb9   : > { %v12165_v0 = vadd.f32 %v12164_v40, %v12163_v48  ;;  %13061 = vmatprep.subr.bf16.mxu0 %v15733_v2  ;;  %13021 = vmatpush1.bf16.msra.mxu1 %v15730_v8  ;;  %v12180_v48 = vrot.slane %v19147_v44, %v18541_v9  ;;  %v12207_v44 = vld [vmem:[#allocation7 + $0xc58] sm:$0xff]  ;;  %v15646_v8 = vcombine.low %v12206_v29, %v12210_v4 }
0x2bba   : > { %13022 = vmatprep.subr.bf16.mxu1 %v15739_v46  ;;  %v15649_v50 = vcombine.high %v12207_v44, %v12211_v12  ;;  %v15657_v63 = vcombine.high %v12215_v61, %v12219_v55  ;;  %v12223_v46 = vld [vmem:[#allocation7 + $0xcd8] sm:$0xff] }
0x2bbb   : > { %12166 = vadd.xlane.f32.xlu0 %v12165_v0  ;;  %v12186_v0 = vrot.slane %v19167_v11, %v18541_v9  ;;  %v15665_v14 = vcombine.high %v12223_v46, %v12227_v18 }
0x2bbc   : > { %13062 = vmatpush1.bf16.msra.mxu0 %v15732_v43  ;;  %v15648_v43 = vcombine.low %v12207_v44, %v12211_v12 }
0x2bbd   : > { %13063 = vmatprep.subr.bf16.mxu0 %v15741_v42  ;;  %13023 = vmatpush1.bf16.msra.mxu1 %v15738_v22  ;;  %v15663_v42 = vcombine.high %v12222_v49, %v12226_v10 }
0x2bbe   : > { %13024 = vmatprep.subr.bf16.mxu1 %v15747_v37  ;;  %v12231_v37 = vld [vmem:[#allocation7 + $0xd18] sm:$0xff] }
0x2bbf   : > { %v15673_v26 = vcombine.high %v12231_v37, %v12235_v19 }
0x2bc0   : > { %13064 = vmatpush1.bf16.msra.mxu0 %v15740_v1  ;;  %v15656_v1 = vcombine.low %v12215_v61, %v12219_v55 }
0x2bc1   : > { %13065 = vmatprep.subr.bf16.mxu0 %v15749_v21  ;;  %13025 = vmatpush1.bf16.msra.mxu1 %v15746_v16  ;;  %v15662_v16 = vcombine.low %v12222_v49, %v12226_v10  ;;  %v15671_v21 = vcombine.high %v12230_v34, %v12234_v60  ;;  %v12279_v49 = vld [vmem:[#allocation7 + $0xe98] sm:$0xff] }
0x2bc2   : > { %13026 = vmatprep.subr.bf16.mxu1 %v15755_v36  ;;  %v12239_v36 = vld [vmem:[#allocation7 + $0xd58] sm:$0xff] }
0x2bc3   : > { %v15681_v38 = vcombine.high %v12239_v36, %v12243_v3  ;;  %v12283_v10 = vld [vmem:[#allocation7 + $0xeb8] sm:$0xff] }
0x2bc4   : > { %13066 = vmatpush1.bf16.msra.mxu0 %v15748_v25  ;;  %v15664_v25 = vcombine.low %v12223_v46, %v12227_v18 }
0x2bc5   : > { %13067 = vmatprep.subr.bf16.mxu0 %v15757_v13  ;;  %13027 = vmatpush1.bf16.msra.mxu1 %v15754_v31  ;;  %v15670_v31 = vcombine.low %v12230_v34, %v12234_v60  ;;  %v15672_v13 = vcombine.low %v12231_v37, %v12235_v19  ;;  %v12287_v34 = vld [vmem:[#allocation7 + $0xed8] sm:$0xff]  ;;  %v15720_v19 = vcombine.low %v12279_v49, %v12283_v10 }
0x2bc6   : > { %13078 = vmatprep.subr.bf16.mxu1 %v15639_v24  ;;  %v12247_v24 = vld [vmem:[#allocation7 + $0xd98] sm:$0xff] }
0x2bc7   : > { %v12291_v60 = vld [vmem:[#allocation7 + $0xef8] sm:$0xff] }
0x2bc8   : > { %13068 = vmatpush1.bf16.msra.mxu0 %v15756_v30  ;;  %v15679_v30 = vcombine.high %v12238_v27, %v12242_v28 }
0x2bc9   : > { %13119 = vmatprep.subr.bf16.mxu0 %v15641_v33  ;;  %v15687_v33 = vcombine.high %v12246_v32, %v12250_v6 }
0x2c48   : > { %v12167_v51 = vpop.xlane.xlu0 %12166 }
0x2c49   : > { %v12168_v23 = vmul.f32 0.00390625, %v12167_v51  ;;  %v15689_v51 = vcombine.high %v12247_v24, %v12251_v39 }
0x2c4b   : > { %v12169_v15 = vadd.f32 1e-05, %v12168_v23  ;;  %v12254_v23 = vld [vmem:[#allocation7 + $0xdd0] sm:$0xff] }
0x2c4d   : > { %17876 = vrsqrt.f32 %v12169_v15  ;;  %v12258_v15 = vld [vmem:[#allocation7 + $0xdf0] sm:$0xff] }
0x2c57   : > { %v17877_v40 = vpop.eup %17876 }
0x2c58   : > { %v12171_v54 = vmul.f32 %v17877_v40, %v19241_v47  ;;  %v12172_v57 = vmul.f32 %v17877_v40, %v19244_v53  ;;  %v12214_v47 = vld [vmem:[#allocation7 + $0xc90] sm:$0xff]  ;;  %v15647_v53 = vcombine.high %v12206_v29, %v12210_v4  ;;  %v15686_v40 = vcombine.low %v12246_v32, %v12250_v6  ;;  %v12267_v29 = vld [vmem:[#allocation7 + $0xe38] sm:$0xff] }
0x2c59   : > { %v15655_v2 = vcombine.high %v12214_v47, %v12218_v7  ;;  %v15654_v22 = vcombine.low %v12214_v47, %v12218_v7  ;;  %v15694_v4 = vcombine.low %v12254_v23, %v12258_v15  ;;  %v12270_v47 = vld [vmem:[#allocation7 + $0xe50] sm:$0xff]  ;;  %v12275_v7 = vld [vmem:[#allocation7 + $0xe78] sm:$0xff] }
0x2c5a   : > { %v12182_v58 = vmul.f32 %v12180_v48, %v12172_v57  ;;  %v12181_v59 = vmul.f32 %v12176_v5, %v12171_v54  ;;  %v12255_v5 = vld [vmem:[#allocation7 + $0xdd8] sm:$0xff]  ;;  %v12262_v57 = vld [vmem:[#allocation7 + $0xe10] sm:$0xff] }
0x2c5b   : > { %v12259_v48 = vld [vmem:[#allocation7 + $0xdf8] sm:$0xff] }
0x2c5c   : > { %v19260_v62 = vadd.f32 %v12190_v20, %v12182_v58  ;;  %v19262_v56 = vadd.f32 %v12186_v0, %v12181_v59  ;;  %v15688_v0 = vcombine.low %v12247_v24, %v12251_v39  ;;  %v15695_v20 = vcombine.high %v12254_v23, %v12258_v15  ;;  %v12266_v58 = vld [vmem:[#allocation7 + $0xe30] sm:$0xff]  ;;  %v12263_v59 = vld [vmem:[#allocation7 + $0xe18] sm:$0xff] }
0x2c5d   : > { %v15697_v54 = vcombine.high %v12255_v5, %v12259_v48  ;;  %v15696_v44 = vcombine.low %v12255_v5, %v12259_v48  ;;  %v15703_v12 = vcombine.high %v12262_v57, %v12266_v58  ;;  %v15702_v61 = vcombine.low %v12262_v57, %v12266_v58  ;;  %v12303_v32 = vld [vmem:[#allocation7 + $0xf58] sm:$0xff] }
0x2c5e   : > { %v12194_v11 = vpack.c.bf16 %v19260_v62, %v19260_v62  ;;  %v19268_v52 = vpack.c.bf16 %v19262_v56, %v19262_v56  ;;  %v15704_v55 = vcombine.low %v12263_v59, %v12267_v29  ;;  %v12307_v6 = vld [vmem:[#allocation7 + $0xf78] sm:$0xff] }
0x2c5f   : > { %v12311_v23 = vld [vmem:[#allocation7 + $0xf98] sm:$0xff]  ;;  %v15744_v48 = vcombine.low %v12303_v32, %v12307_v6 }
0x2c60   : > { %13028 = vmatprep.mubr.bf16.mxu1 %v12194_v11  ;;  %13069 = vmatprep.mubr.bf16.mxu0 %v12194_v11  ;;  %v12315_v15 = vld [vmem:[#allocation7 + $0xfb8] sm:$0xff] }
0x2c61   : > { %13029 = vmatmul.mubr.bf16.vlgmr.msra.gmra.mrb[172].mxu1 %v19268_v52  ;;  %13070 = vmatmul.mubr.bf16.vlgmr.msra.gmra.mrb[116].mxu0 %v19268_v52  ;;  %v12319_v57 = vld [vmem:[#allocation7 + $0xfd8] sm:$0xff] }
0x2c62   : > { %13079 = vmatpush1.bf16.msra.mxu1 %v15638_v41  ;;  %13120 = vmatpush1.bf16.msra.mxu0 %v15640_v45  ;;  %v15678_v41 = vcombine.low %v12238_v27, %v12242_v28  ;;  %v15680_v45 = vcombine.low %v12239_v36, %v12243_v3  ;;  %v12295_v27 = vld [vmem:[#allocation7 + $0xf18] sm:$0xff]  ;;  %v15728_v3 = vcombine.low %v12287_v34, %v12291_v60 }
0x2c63   : > { %13110 = vmatprep.mubr.bf16.mxu1 %v12194_v11  ;;  %13151 = vmatprep.mubr.bf16.mxu0 %v12194_v11  ;;  %v15705_v11 = vcombine.high %v12263_v59, %v12267_v29  ;;  %v12299_v28 = vld [vmem:[#allocation7 + $0xf38] sm:$0xff]  ;;  %v15752_v29 = vcombine.low %v12311_v23, %v12315_v15 }
0x2c64   : > { %13080 = vmatprep.subr.bf16.mxu1 %v15647_v53  ;;  %13121 = vmatprep.subr.bf16.mxu0 %v15649_v50  ;;  %v12274_v53 = vld [vmem:[#allocation7 + $0xe70] sm:$0xff]  ;;  %v12271_v50 = vld [vmem:[#allocation7 + $0xe58] sm:$0xff]  ;;  %v15736_v39 = vcombine.low %v12295_v27, %v12299_v28 }
0x2c65   : > { %v15710_v46 = vcombine.low %v12270_v47, %v12274_v53  ;;  %v15712_v18 = vcombine.low %v12271_v50, %v12275_v7  ;;  %v12323_v58 = vld [vmem:[#allocation7 + $0xff8] sm:$0xff] }
0x2c66   : > { %13081 = vmatpush1.bf16.msra.mxu1 %v15646_v8  ;;  %13122 = vmatpush1.bf16.msra.mxu0 %v15648_v43  ;;  %v15711_v8 = vcombine.high %v12270_v47, %v12274_v53  ;;  %v15713_v43 = vcombine.high %v12271_v50, %v12275_v7  ;;  %v17608_v47 = vld [vmem:[#allocation8 + $0xc04] ss:$8 sps:$4 sm:$0xff]   ;;  %v17606_v50 = vld [vmem:[#allocation8 + $0xc00] ss:$8 sps:$4 sm:$0xff]  }
0x2c67   : > { %13082 = vmatprep.subr.bf16.mxu1 %v15655_v2  ;;  %13123 = vmatprep.subr.bf16.mxu0 %v15657_v63  ;;  %v12278_v2 = vld [vmem:[#allocation7 + $0xe90] sm:$0xff]  ;;  %v17611_v53 = vld [vmem:[#allocation8 + $0xd04] ss:$8 sps:$4 sm:$0xff]   ;;  %v17609_v7 = vld [vmem:[#allocation8 + $0xd00] ss:$8 sps:$4 sm:$0xff]  }
0x2c68   : > { %v12282_v63 = vld [vmem:[#allocation7 + $0xeb0] sm:$0xff] }
0x2c69   : > { %v15718_v37 = vcombine.low %v12278_v2, %v12282_v63 }
0x2c6a   : > { %13083 = vmatpush1.bf16.msra.mxu1 %v15654_v22  ;;  %13124 = vmatpush1.bf16.msra.mxu0 %v15656_v1  ;;  %v15719_v22 = vcombine.high %v12278_v2, %v12282_v63  ;;  %v15721_v1 = vcombine.high %v12279_v49, %v12283_v10  ;;  %v17620_v2 = vld [vmem:[#allocation8 + $0xc24] ss:$8 sps:$4 sm:$0xff]   ;;  %v17618_v49 = vld [vmem:[#allocation8 + $0xc20] ss:$8 sps:$4 sm:$0xff]  }
0x2c6b   : > { %13084 = vmatprep.subr.bf16.mxu1 %v15663_v42  ;;  %13125 = vmatprep.subr.bf16.mxu0 %v15665_v14  ;;  %v12286_v42 = vld [vmem:[#allocation7 + $0xed0] sm:$0xff]  ;;  %v17623_v63 = vld [vmem:[#allocation8 + $0xd24] ss:$8 sps:$4 sm:$0xff]   ;;  %v17621_v10 = vld [vmem:[#allocation8 + $0xd20] ss:$8 sps:$4 sm:$0xff]  }
0x2c6c   : > { %v12290_v14 = vld [vmem:[#allocation7 + $0xef0] sm:$0xff] }
0x2c6d   : > { %v15726_v36 = vcombine.low %v12286_v42, %v12290_v14 }
0x2c6e   : > { %13085 = vmatpush1.bf16.msra.mxu1 %v15662_v16  ;;  %13126 = vmatpush1.bf16.msra.mxu0 %v15664_v25  ;;  %v15727_v16 = vcombine.high %v12286_v42, %v12290_v14  ;;  %v15729_v25 = vcombine.high %v12287_v34, %v12291_v60  ;;  %v17635_v42 = vld [vmem:[#allocation8 + $0xd44] ss:$8 sps:$4 sm:$0xff]   ;;  %v17630_v14 = vld [vmem:[#allocation8 + $0xc40] ss:$8 sps:$4 sm:$0xff]   ;;  %v17638_v60 = vld [vmem:[#allocation8 + $0xc54] ss:$8 sps:$4 sm:$0xff]  }
0x2c6f   : > { %13086 = vmatprep.subr.bf16.mxu1 %v15671_v21  ;;  %13127 = vmatprep.subr.bf16.mxu0 %v15673_v26  ;;  %v12294_v21 = vld [vmem:[#allocation7 + $0xf10] sm:$0xff]  ;;  %v17633_v34 = vld [vmem:[#allocation8 + $0xd40] ss:$8 sps:$4 sm:$0xff]  }
0x2c70   : > { %v12298_v26 = vld [vmem:[#allocation7 + $0xf30] sm:$0xff] }
0x2c71   : > { %v15734_v24 = vcombine.low %v12294_v21, %v12298_v26 }
0x2c72   : > { %13087 = vmatpush1.bf16.msra.mxu1 %v15670_v31  ;;  %13128 = vmatpush1.bf16.msra.mxu0 %v15672_v13  ;;  %v15735_v31 = vcombine.high %v12294_v21, %v12298_v26  ;;  %v15737_v13 = vcombine.high %v12295_v27, %v12299_v28  ;;  %v17647_v21 = vld [vmem:[#allocation8 + $0xd64] ss:$8 sps:$4 sm:$0xff]   ;;  %v17642_v26 = vld [vmem:[#allocation8 + $0xc60] ss:$8 sps:$4 sm:$0xff]   ;;  %v17650_v28 = vld [vmem:[#allocation8 + $0xc74] ss:$8 sps:$4 sm:$0xff]  }
0x2c73   : > { %13088 = vmatprep.subr.bf16.mxu1 %v15679_v30  ;;  %13129 = vmatprep.subr.bf16.mxu0 %v15681_v38  ;;  %v12302_v30 = vld [vmem:[#allocation7 + $0xf50] sm:$0xff]  ;;  %v17645_v27 = vld [vmem:[#allocation8 + $0xd60] ss:$8 sps:$4 sm:$0xff]  }
0x2c74   : > { %v12306_v38 = vld [vmem:[#allocation7 + $0xf70] sm:$0xff] }
0x2c75   : > { %v15742_v5 = vcombine.low %v12302_v30, %v12306_v38 }
0x2c76   : > { %13089 = vmatpush1.bf16.msra.mxu1 %v15678_v41  ;;  %13130 = vmatpush1.bf16.msra.mxu0 %v15680_v45  ;;  %v15743_v41 = vcombine.high %v12302_v30, %v12306_v38  ;;  %v15745_v45 = vcombine.high %v12303_v32, %v12307_v6  ;;  %v17659_v30 = vld [vmem:[#allocation8 + $0xd84] ss:$8 sps:$4 sm:$0xff]   ;;  %v17654_v38 = vld [vmem:[#allocation8 + $0xc80] ss:$8 sps:$4 sm:$0xff]   ;;  %v17662_v6 = vld [vmem:[#allocation8 + $0xc94] ss:$8 sps:$4 sm:$0xff]  }
0x2c77   : > { %13090 = vmatprep.subr.bf16.mxu1 %v15687_v33  ;;  %13131 = vmatprep.subr.bf16.mxu0 %v15689_v51  ;;  %v12310_v33 = vld [vmem:[#allocation7 + $0xf90] sm:$0xff]  ;;  %v17657_v32 = vld [vmem:[#allocation8 + $0xd80] ss:$8 sps:$4 sm:$0xff]  }
0x2c78   : > { %v12314_v51 = vld [vmem:[#allocation7 + $0xfb0] sm:$0xff] }
0x2c79   : > { %v15750_v59 = vcombine.low %v12310_v33, %v12314_v51 }
0x2c7a   : > { %13091 = vmatpush1.bf16.msra.mxu1 %v15686_v40  ;;  %13132 = vmatpush1.bf16.msra.mxu0 %v15688_v0  ;;  %v15751_v40 = vcombine.high %v12310_v33, %v12314_v51  ;;  %v15753_v0 = vcombine.high %v12311_v23, %v12315_v15  ;;  %v17671_v33 = vld [vmem:[#allocation8 + $0xda4] ss:$8 sps:$4 sm:$0xff]   ;;  %v17666_v51 = vld [vmem:[#allocation8 + $0xca0] ss:$8 sps:$4 sm:$0xff]   ;;  %v17674_v15 = vld [vmem:[#allocation8 + $0xcb4] ss:$8 sps:$4 sm:$0xff]  }
0x2c7b   : > { %13092 = vmatprep.subr.bf16.mxu1 %v15695_v20  ;;  %13133 = vmatprep.subr.bf16.mxu0 %v15697_v54  ;;  %v12318_v20 = vld [vmem:[#allocation7 + $0xfd0] sm:$0xff]  ;;  %v17669_v23 = vld [vmem:[#allocation8 + $0xda0] ss:$8 sps:$4 sm:$0xff]  }
0x2c7c   : > { %v12322_v54 = vld [vmem:[#allocation7 + $0xff0] sm:$0xff] }
0x2c7e   : > { %13093 = vmatpush1.bf16.msra.mxu1 %v15694_v4  ;;  %13134 = vmatpush1.bf16.msra.mxu0 %v15696_v44  ;;  %v15759_v4 = vcombine.high %v12318_v20, %v12322_v54  ;;  %v15761_v44 = vcombine.high %v12319_v57, %v12323_v58 }
0x2c7f   : > { %13094 = vmatprep.subr.bf16.mxu1 %v15703_v12  ;;  %13135 = vmatprep.subr.bf16.mxu0 %v15705_v11  ;;  %v15758_v12 = vcombine.low %v12318_v20, %v12322_v54  ;;  %v15760_v11 = vcombine.low %v12319_v57, %v12323_v58  ;;  %v17683_v20 = vld [vmem:[#allocation8 + $0xdc4] ss:$8 sps:$4 sm:$0xff]   ;;  %v17678_v54 = vld [vmem:[#allocation8 + $0xcc0] ss:$8 sps:$4 sm:$0xff]   ;;  %v17686_v58 = vld [vmem:[#allocation8 + $0xcd4] ss:$8 sps:$4 sm:$0xff]  }
0x2c80   : > { %v17681_v57 = vld [vmem:[#allocation8 + $0xdc0] ss:$8 sps:$4 sm:$0xff]  }
0x2c82   : > { %13095 = vmatpush1.bf16.msra.mxu1 %v15702_v61  ;;  %13136 = vmatpush1.bf16.msra.mxu0 %v15704_v55  ;;  %v17614_v61 = vld [vmem:[#allocation8 + $0xc14] ss:$8 sps:$4 sm:$0xff]  }
0x2c83   : > { %13096 = vmatprep.subr.bf16.mxu1 %v15711_v8  ;;  %13137 = vmatprep.subr.bf16.mxu0 %v15713_v43  ;;  %v17617_v55 = vld [vmem:[#allocation8 + $0xd14] ss:$8 sps:$4 sm:$0xff]   ;;  %v17612_v8 = vld [vmem:[#allocation8 + $0xc10] ss:$8 sps:$4 sm:$0xff]  }
0x2c84   : > { %v17615_v43 = vld [vmem:[#allocation8 + $0xd10] ss:$8 sps:$4 sm:$0xff]  }
0x2c86   : > { %13097 = vmatpush1.bf16.msra.mxu1 %v15710_v46  ;;  %13138 = vmatpush1.bf16.msra.mxu0 %v15712_v18  ;;  %v17626_v46 = vld [vmem:[#allocation8 + $0xc34] ss:$8 sps:$4 sm:$0xff]  }
0x2c87   : > { %13098 = vmatprep.subr.bf16.mxu1 %v15719_v22  ;;  %13139 = vmatprep.subr.bf16.mxu0 %v15721_v1  ;;  %v17629_v18 = vld [vmem:[#allocation8 + $0xd34] ss:$8 sps:$4 sm:$0xff]   ;;  %v17624_v22 = vld [vmem:[#allocation8 + $0xc30] ss:$8 sps:$4 sm:$0xff]   ;;  %v17632_v1 = vld [vmem:[#allocation8 + $0xc44] ss:$8 sps:$4 sm:$0xff]  }
0x2c8a   : > { %13099 = vmatpush1.bf16.msra.mxu1 %v15718_v37  ;;  %13140 = vmatpush1.bf16.msra.mxu0 %v15720_v19  ;;  %v17641_v37 = vld [vmem:[#allocation8 + $0xd54] ss:$8 sps:$4 sm:$0xff]   ;;  %v17636_v19 = vld [vmem:[#allocation8 + $0xc50] ss:$8 sps:$4 sm:$0xff]  }
0x2c8b   : > { %13100 = vmatprep.subr.bf16.mxu1 %v15727_v16  ;;  %13141 = vmatprep.subr.bf16.mxu0 %v15729_v25  ;;  %v17639_v16 = vld [vmem:[#allocation8 + $0xd50] ss:$8 sps:$4 sm:$0xff]   ;;  %v17644_v25 = vld [vmem:[#allocation8 + $0xc64] ss:$8 sps:$4 sm:$0xff]  }
0x2c8e   : > { %13101 = vmatpush1.bf16.msra.mxu1 %v15726_v36  ;;  %13142 = vmatpush1.bf16.msra.mxu0 %v15728_v3  ;;  %v17653_v36 = vld [vmem:[#allocation8 + $0xd74] ss:$8 sps:$4 sm:$0xff]   ;;  %v17648_v3 = vld [vmem:[#allocation8 + $0xc70] ss:$8 sps:$4 sm:$0xff]  }
0x2c8f   : > { %13102 = vmatprep.subr.bf16.mxu1 %v15735_v31  ;;  %13143 = vmatprep.subr.bf16.mxu0 %v15737_v13  ;;  %v17651_v31 = vld [vmem:[#allocation8 + $0xd70] ss:$8 sps:$4 sm:$0xff]   ;;  %v17656_v13 = vld [vmem:[#allocation8 + $0xc84] ss:$8 sps:$4 sm:$0xff]  }
0x2c92   : > { %13103 = vmatpush1.bf16.msra.mxu1 %v15734_v24  ;;  %13144 = vmatpush1.bf16.msra.mxu0 %v15736_v39  ;;  %v17665_v24 = vld [vmem:[#allocation8 + $0xd94] ss:$8 sps:$4 sm:$0xff]   ;;  %v17660_v39 = vld [vmem:[#allocation8 + $0xc90] ss:$8 sps:$4 sm:$0xff]  }
0x2c93   : > { %13104 = vmatprep.subr.bf16.mxu1 %v15743_v41  ;;  %13145 = vmatprep.subr.bf16.mxu0 %v15745_v45  ;;  %v17663_v41 = vld [vmem:[#allocation8 + $0xd90] ss:$8 sps:$4 sm:$0xff]   ;;  %v17668_v45 = vld [vmem:[#allocation8 + $0xca4] ss:$8 sps:$4 sm:$0xff]  }
0x2c96   : > { %13105 = vmatpush1.bf16.msra.mxu1 %v15742_v5  ;;  %13146 = vmatpush1.bf16.msra.mxu0 %v15744_v48  ;;  %v17677_v5 = vld [vmem:[#allocation8 + $0xdb4] ss:$8 sps:$4 sm:$0xff]   ;;  %v17672_v48 = vld [vmem:[#allocation8 + $0xcb0] ss:$8 sps:$4 sm:$0xff]  }
0x2c97   : > { %13106 = vmatprep.subr.bf16.mxu1 %v15751_v40  ;;  %13147 = vmatprep.subr.bf16.mxu0 %v15753_v0  ;;  %v17675_v40 = vld [vmem:[#allocation8 + $0xdb0] ss:$8 sps:$4 sm:$0xff]   ;;  %v17680_v0 = vld [vmem:[#allocation8 + $0xcc4] ss:$8 sps:$4 sm:$0xff]  }
0x2c9a   : > { %13107 = vmatpush1.bf16.msra.mxu1 %v15750_v59  ;;  %13148 = vmatpush1.bf16.msra.mxu0 %v15752_v29  ;;  %v17689_v59 = vld [vmem:[#allocation8 + $0xdd4] ss:$8 sps:$4 sm:$0xff]   ;;  %v17684_v29 = vld [vmem:[#allocation8 + $0xcd0] ss:$8 sps:$4 sm:$0xff]  }
0x2c9b   : > { %13108 = vmatprep.subr.bf16.mxu1 %v15759_v4  ;;  %13149 = vmatprep.subr.bf16.mxu0 %v15761_v44  ;;  %v17687_v4 = vld [vmem:[#allocation8 + $0xdd0] ss:$8 sps:$4 sm:$0xff]   ;;  %v17692_v44 = vld [vmem:[#allocation8 + $0xce4] ss:$8 sps:$4 sm:$0xff]  }
0x2c9e   : > { %13109 = vmatpush1.bf16.msra.mxu1 %v15758_v12  ;;  %13150 = vmatpush1.bf16.msra.mxu0 %v15760_v11  ;;  %v17695_v12 = vld [vmem:[#allocation8 + $0xde4] ss:$8 sps:$4 sm:$0xff]   ;;  %v17690_v11 = vld [vmem:[#allocation8 + $0xce0] ss:$8 sps:$4 sm:$0xff]  }
0x2c9f   : > { %13953 = vmatprep.subr.bf16.mxu1 %v17608_v47  ;;  %13994 = vmatprep.subr.bf16.mxu0 %v17611_v53  ;;  %v17693_v47 = vld [vmem:[#allocation8 + $0xde0] ss:$8 sps:$4 sm:$0xff]   ;;  %v17698_v53 = vld [vmem:[#allocation8 + $0xcf4] ss:$8 sps:$4 sm:$0xff]  }
0x2ca1   : > { %13111 = vmatmul.mubr.bf16.vlgmr.msra.gmra.mrb[176].mxu1 %v19268_v52  ;;  %13152 = vmatmul.mubr.bf16.vlgmr.msra.gmra.mrb[120].mxu0 %v19268_v52  ;;  %v17627_v52 = vld [vmem:[#allocation8 + $0xd30] ss:$8 sps:$4 sm:$0xff]  }
0x2ca2   : > { %13954 = vmatpush1.bf16.msra.mxu1 %v17606_v50  ;;  %13995 = vmatpush1.bf16.msra.mxu0 %v17609_v7  ;;  %v17701_v50 = vld [vmem:[#allocation8 + $0xdf4] ss:$8 sps:$4 sm:$0xff]   ;;  %v17696_v7 = vld [vmem:[#allocation8 + $0xcf0] ss:$8 sps:$4 sm:$0xff]  }
0x2ca3   : > { %13955 = vmatprep.subr.bf16.mxu1 %v17614_v61  ;;  %13996 = vmatprep.subr.bf16.mxu0 %v17617_v55  ;;  %v17699_v61 = vld [vmem:[#allocation8 + $0xdf0] ss:$8 sps:$4 sm:$0xff]   ;;  %v17704_v55 = vld [vmem:[#allocation8 + $0xe04] ss:$8 sps:$4 sm:$0xff]  }
0x2ca6   : > { %13956 = vmatpush1.bf16.msra.mxu1 %v17612_v8  ;;  %13997 = vmatpush1.bf16.msra.mxu0 %v17615_v43  ;;  %v17707_v8 = vld [vmem:[#allocation8 + $0xf04] ss:$8 sps:$4 sm:$0xff]  }
0x2ca7   : > { %13957 = vmatprep.subr.bf16.mxu1 %v17620_v2  ;;  %13998 = vmatprep.subr.bf16.mxu0 %v17623_v63  ;;  %v19277_v43 = vld [vmem:[%s19386_s7 + $0xc0] sm:$0xff]  ;;  %v17908_v63 = vld [vmem:[%s19386_s7 + $0xd0] sm:$0xff] }
0x2ca8   : > { %v12327_v2 = vrot.slane %v19277_v43, %v18358_v17 }
0x2caa   : > { %13958 = vmatpush1.bf16.msra.mxu1 %v17618_v49  ;;  %13999 = vmatpush1.bf16.msra.mxu0 %v17621_v10  ;;  %v12335_v49 = vrot.slane %v17908_v63, %v18358_v17  ;;  %v19288_v10 = vld [vmem:[%s19386_s7 + $0xc8] sm:$0xff] }
0x2cab   : > { %13959 = vmatprep.subr.bf16.mxu1 %v17626_v46  ;;  %14000 = vmatprep.subr.bf16.mxu0 %v17629_v18  ;;  %v12331_v46 = vrot.slane %v19288_v10, %v18358_v17  ;;  %v17910_v18 = vld [vmem:[%s19386_s7 + $0xd8] sm:$0xff]  ;;  %v17750_v63 = vld [vmem:[#allocation8 + $0xe80] ss:$8 sps:$4 sm:$0xff]  }
0x2cae   : > { %13960 = vmatpush1.bf16.msra.mxu1 %v17624_v22  ;;  %14001 = vmatpush1.bf16.msra.mxu0 %v17627_v52  ;;  %v12339_v22 = vrot.slane %v17910_v18, %v18358_v17  ;;  %v17761_v18 = vld [vmem:[#allocation8 + $0xf94] ss:$8 sps:$4 sm:$0xff]  }
0x2caf   : > { %13961 = vmatprep.subr.bf16.mxu1 %v17632_v1  ;;  %14002 = vmatprep.subr.bf16.mxu0 %v17635_v42 }
0x2cb2   : > { %13962 = vmatpush1.bf16.msra.mxu1 %v17630_v14  ;;  %14003 = vmatpush1.bf16.msra.mxu0 %v17633_v34 }
0x2cb3   : > { %13963 = vmatprep.subr.bf16.mxu1 %v17638_v60  ;;  %14004 = vmatprep.subr.bf16.mxu0 %v17641_v37 }
0x2cb6   : > { %13964 = vmatpush1.bf16.msra.mxu1 %v17636_v19  ;;  %14005 = vmatpush1.bf16.msra.mxu0 %v17639_v16 }
0x2cb7   : > { %13965 = vmatprep.subr.bf16.mxu1 %v17644_v25  ;;  %14006 = vmatprep.subr.bf16.mxu0 %v17647_v21 }
0x2cba   : > { %13966 = vmatpush1.bf16.msra.mxu1 %v17642_v26  ;;  %14007 = vmatpush1.bf16.msra.mxu0 %v17645_v27 }
0x2cbb   : > { %13967 = vmatprep.subr.bf16.mxu1 %v17650_v28  ;;  %14008 = vmatprep.subr.bf16.mxu0 %v17653_v36 }
0x2cbe   : > { %13968 = vmatpush1.bf16.msra.mxu1 %v17648_v3  ;;  %14009 = vmatpush1.bf16.msra.mxu0 %v17651_v31 }
0x2cbf   : > { %13969 = vmatprep.subr.bf16.mxu1 %v17656_v13  ;;  %14010 = vmatprep.subr.bf16.mxu0 %v17659_v30  ;;  %v17702_v30 = vld [vmem:[#allocation8 + $0xe00] ss:$8 sps:$4 sm:$0xff]  }
0x2cc2   : > { %13970 = vmatpush1.bf16.msra.mxu1 %v17654_v38  ;;  %14011 = vmatpush1.bf16.msra.mxu0 %v17657_v32  ;;  %v17705_v38 = vld [vmem:[#allocation8 + $0xf00] ss:$8 sps:$4 sm:$0xff]  }
0x2cc3   : > { %13971 = vmatprep.subr.bf16.mxu1 %v17662_v6  ;;  %14012 = vmatprep.subr.bf16.mxu0 %v17665_v24  ;;  %v17710_v24 = vld [vmem:[#allocation8 + $0xe14] ss:$8 sps:$4 sm:$0xff]  }
0x2cc6   : > { %13972 = vmatpush1.bf16.msra.mxu1 %v17660_v39  ;;  %14013 = vmatpush1.bf16.msra.mxu0 %v17663_v41  ;;  %v17713_v39 = vld [vmem:[#allocation8 + $0xf14] ss:$8 sps:$4 sm:$0xff]   ;;  %v17708_v41 = vld [vmem:[#allocation8 + $0xe10] ss:$8 sps:$4 sm:$0xff]  }
0x2cc7   : > { %13973 = vmatprep.subr.bf16.mxu1 %v17668_v45  ;;  %14014 = vmatprep.subr.bf16.mxu0 %v17671_v33  ;;  %v17711_v45 = vld [vmem:[#allocation8 + $0xf10] ss:$8 sps:$4 sm:$0xff]   ;;  %v17716_v33 = vld [vmem:[#allocation8 + $0xe24] ss:$8 sps:$4 sm:$0xff]  }
0x2cca   : > { %13974 = vmatpush1.bf16.msra.mxu1 %v17666_v51  ;;  %14015 = vmatpush1.bf16.msra.mxu0 %v17669_v23  ;;  %v17719_v51 = vld [vmem:[#allocation8 + $0xf24] ss:$8 sps:$4 sm:$0xff]   ;;  %v17714_v23 = vld [vmem:[#allocation8 + $0xe20] ss:$8 sps:$4 sm:$0xff]  }
0x2ccb   : > { %13975 = vmatprep.subr.bf16.mxu1 %v17674_v15  ;;  %14016 = vmatprep.subr.bf16.mxu0 %v17677_v5  ;;  %v17717_v15 = vld [vmem:[#allocation8 + $0xf20] ss:$8 sps:$4 sm:$0xff]   ;;  %v17722_v5 = vld [vmem:[#allocation8 + $0xe34] ss:$8 sps:$4 sm:$0xff]  }
0x2cce   : > { %13976 = vmatpush1.bf16.msra.mxu1 %v17672_v48  ;;  %14017 = vmatpush1.bf16.msra.mxu0 %v17675_v40  ;;  %v17725_v48 = vld [vmem:[#allocation8 + $0xf34] ss:$8 sps:$4 sm:$0xff]   ;;  %v17720_v40 = vld [vmem:[#allocation8 + $0xe30] ss:$8 sps:$4 sm:$0xff]  }
0x2ccf   : > { %13977 = vmatprep.subr.bf16.mxu1 %v17680_v0  ;;  %14018 = vmatprep.subr.bf16.mxu0 %v17683_v20  ;;  %v17723_v0 = vld [vmem:[#allocation8 + $0xf30] ss:$8 sps:$4 sm:$0xff]   ;;  %v17728_v20 = vld [vmem:[#allocation8 + $0xe44] ss:$8 sps:$4 sm:$0xff]  }
0x2cd2   : > { %13978 = vmatpush1.bf16.msra.mxu1 %v17678_v54  ;;  %14019 = vmatpush1.bf16.msra.mxu0 %v17681_v57  ;;  %v17731_v54 = vld [vmem:[#allocation8 + $0xf44] ss:$8 sps:$4 sm:$0xff]   ;;  %v17726_v57 = vld [vmem:[#allocation8 + $0xe40] ss:$8 sps:$4 sm:$0xff]  }
0x2cd3   : > { %13979 = vmatprep.subr.bf16.mxu1 %v17686_v58  ;;  %14020 = vmatprep.subr.bf16.mxu0 %v17689_v59  ;;  %v17729_v58 = vld [vmem:[#allocation8 + $0xf40] ss:$8 sps:$4 sm:$0xff]   ;;  %v17734_v59 = vld [vmem:[#allocation8 + $0xe54] ss:$8 sps:$4 sm:$0xff]  }
0x2cd6   : > { %13980 = vmatpush1.bf16.msra.mxu1 %v17684_v29  ;;  %14021 = vmatpush1.bf16.msra.mxu0 %v17687_v4  ;;  %v17737_v29 = vld [vmem:[#allocation8 + $0xf54] ss:$8 sps:$4 sm:$0xff]   ;;  %v17732_v4 = vld [vmem:[#allocation8 + $0xe50] ss:$8 sps:$4 sm:$0xff]  }
0x2cd7   : > { %13981 = vmatprep.subr.bf16.mxu1 %v17692_v44  ;;  %14022 = vmatprep.subr.bf16.mxu0 %v17695_v12  ;;  %v17735_v44 = vld [vmem:[#allocation8 + $0xf50] ss:$8 sps:$4 sm:$0xff]   ;;  %v17740_v12 = vld [vmem:[#allocation8 + $0xe64] ss:$8 sps:$4 sm:$0xff]  }
0x2cda   : > { %13982 = vmatpush1.bf16.msra.mxu1 %v17690_v11  ;;  %14023 = vmatpush1.bf16.msra.mxu0 %v17693_v47  ;;  %v17743_v11 = vld [vmem:[#allocation8 + $0xf64] ss:$8 sps:$4 sm:$0xff]   ;;  %v17738_v47 = vld [vmem:[#allocation8 + $0xe60] ss:$8 sps:$4 sm:$0xff]  }
0x2cdb   : > { %13983 = vmatprep.subr.bf16.mxu1 %v17698_v53  ;;  %14024 = vmatprep.subr.bf16.mxu0 %v17701_v50  ;;  %v17741_v53 = vld [vmem:[#allocation8 + $0xf60] ss:$8 sps:$4 sm:$0xff]   ;;  %v17746_v50 = vld [vmem:[#allocation8 + $0xe74] ss:$8 sps:$4 sm:$0xff]  }
0x2cde   : > { %13984 = vmatpush1.bf16.msra.mxu1 %v17696_v7  ;;  %14025 = vmatpush1.bf16.msra.mxu0 %v17699_v61  ;;  %v17749_v7 = vld [vmem:[#allocation8 + $0xf74] ss:$8 sps:$4 sm:$0xff]   ;;  %v17744_v61 = vld [vmem:[#allocation8 + $0xe70] ss:$8 sps:$4 sm:$0xff]  }
0x2cdf   : > { %14035 = vmatprep.subr.bf16.mxu1 %v17704_v55  ;;  %14076 = vmatprep.subr.bf16.mxu0 %v17707_v8  ;;  %v17747_v55 = vld [vmem:[#allocation8 + $0xf70] ss:$8 sps:$4 sm:$0xff]   ;;  %v17752_v8 = vld [vmem:[#allocation8 + $0xe84] ss:$8 sps:$4 sm:$0xff]  }
0x2d34   : > { %v13030_v52 = vpop.f32.mrb[172].mxu1  ;;  %v13071_v1 = vpop.f32.mrb[116].mxu0 }
0x2d35   : > { %v13031_v42 = vadd.f32 %v13030_v52, %v12327_v2  ;;  %v13072_v14 = vadd.f32 %v13071_v1, %v12335_v49  ;;  %v13032_v34 = vpop.f32.mrb[173].mxu1  ;;  %v13073_v60 = vpop.f32.mrb[117].mxu0  ;;  %v17755_v2 = vld [vmem:[#allocation8 + $0xf84] ss:$8 sps:$4 sm:$0xff]   ;;  %v17753_v49 = vld [vmem:[#allocation8 + $0xf80] ss:$8 sps:$4 sm:$0xff]  }
0x2d36   : > { %v13033_v37 = vadd.f32 %v13032_v34, %v12331_v46  ;;  %v13074_v19 = vadd.f32 %v13073_v60, %v12339_v22  ;;  %v13034_v16 = vpop.f32.mrb[174].mxu1  ;;  %v13075_v25 = vpop.f32.mrb[118].mxu0  ;;  %v17758_v46 = vld [vmem:[#allocation8 + $0xe94] ss:$8 sps:$4 sm:$0xff]   ;;  %v17756_v22 = vld [vmem:[#allocation8 + $0xe90] ss:$8 sps:$4 sm:$0xff]  }
0x2d37   : > { %v13160_v21 = vmax.f32 %v13031_v42, 0.0  ;;  %v13162_v26 = vmax.f32 %v13072_v14, 0.0  ;;  %v13035_v27 = vpop.f32.mrb[175].mxu1  ;;  %v13076_v28 = vpop.f32.mrb[119].mxu0  ;;  %v17759_v52 = vld [vmem:[#allocation8 + $0xf90] ss:$8 sps:$4 sm:$0xff]  }
0x2d38   : > { %v13161_v36 = vmax.f32 %v13033_v37, 0.0  ;;  %v13163_v3 = vmax.f32 %v13074_v19, 0.0  ;;  %v17764_v1 = vld [vmem:[#allocation8 + $0xea4] ss:$8 sps:$4 sm:$0xff]   ;;  %v17762_v14 = vld [vmem:[#allocation8 + $0xea0] ss:$8 sps:$4 sm:$0xff]  }
0x2d39   : > { %v13168_v32 = vpack.c.bf16 %v13160_v21, %v13160_v21  ;;  %v13170_v6 = vpack.c.bf16 %v13162_v26, %v13162_v26  ;;  %v17767_v42 = vld [vmem:[#allocation8 + $0xfa4] ss:$8 sps:$4 sm:$0xff]   ;;  %v17765_v34 = vld [vmem:[#allocation8 + $0xfa0] ss:$8 sps:$4 sm:$0xff]   ;;  %v17770_v60 = vld [vmem:[#allocation8 + $0xeb4] ss:$8 sps:$4 sm:$0xff]  }
0x2d3a   : > { %v13169_v31 = vpack.c.bf16 %v13161_v36, %v13161_v36  ;;  %v13171_v13 = vpack.c.bf16 %v13163_v3, %v13163_v3  ;;  %v17773_v37 = vld [vmem:[#allocation8 + $0xfb4] ss:$8 sps:$4 sm:$0xff]   ;;  %v17768_v19 = vld [vmem:[#allocation8 + $0xeb0] ss:$8 sps:$4 sm:$0xff]   ;;  %v17776_v25 = vld [vmem:[#allocation8 + $0xec4] ss:$8 sps:$4 sm:$0xff]  }
0x2d3b   : > { %v17771_v16 = vld [vmem:[#allocation8 + $0xfb0] ss:$8 sps:$4 sm:$0xff]   ;;  %v17779_v21 = vld [vmem:[#allocation8 + $0xfc4] ss:$8 sps:$4 sm:$0xff]   ;;  %v17774_v26 = vld [vmem:[#allocation8 + $0xec0] ss:$8 sps:$4 sm:$0xff]  }
0x2d3c   : > { %13985 = vmatprep.mubr.bf16.mxu1 %v13169_v31  ;;  %14026 = vmatprep.mubr.bf16.mxu0 %v13171_v13  ;;  %v17777_v27 = vld [vmem:[#allocation8 + $0xfc0] ss:$8 sps:$4 sm:$0xff]   ;;  %v17782_v28 = vld [vmem:[#allocation8 + $0xed4] ss:$8 sps:$4 sm:$0xff]   ;;  %v17780_v3 = vld [vmem:[#allocation8 + $0xed0] ss:$8 sps:$4 sm:$0xff]  }
0x2d3d   : > { %13986 = vmatmul.mubr.bf16.vlgmr.msra.gmra.mrb[180].mxu1 %v13168_v32  ;;  %14027 = vmatmul.mubr.bf16.vlgmr.msra.gmra.mrb[124].mxu0 %v13170_v6  ;;  %v17785_v36 = vld [vmem:[#allocation8 + $0xfd4] ss:$8 sps:$4 sm:$0xff]   ;;  %v17783_v31 = vld [vmem:[#allocation8 + $0xfd0] ss:$8 sps:$4 sm:$0xff]   ;;  %v17788_v13 = vld [vmem:[#allocation8 + $0xee4] ss:$8 sps:$4 sm:$0xff]  }
0x2d3e   : > { %14036 = vmatpush1.bf16.msra.mxu1 %v17702_v30  ;;  %14077 = vmatpush1.bf16.msra.mxu0 %v17705_v38  ;;  %v17791_v30 = vld [vmem:[#allocation8 + $0xfe4] ss:$8 sps:$4 sm:$0xff]   ;;  %v19303_v6 = vld [vmem:[%s19386_s7 + $0xf0] sm:$0xff] }
0x2d3f   : > { %14037 = vmatprep.subr.bf16.mxu1 %v17710_v24  ;;  %14078 = vmatprep.subr.bf16.mxu0 %v17713_v39  ;;  %v17911_v38 = vld [vmem:[%s19386_s7 + $0xe0] sm:$0xff]  ;;  %v12351_v24 = vrot.slane %v19303_v6, %v18358_v17  ;;  %v17913_v39 = vld [vmem:[%s19386_s7 + $0xe8] sm:$0xff] }
0x2d40   : > { %v12343_v32 = vrot.slane %v17911_v38, %v18358_v17 }
0x2d42   : > { %14038 = vmatpush1.bf16.msra.mxu1 %v17708_v41  ;;  %14079 = vmatpush1.bf16.msra.mxu0 %v17711_v45  ;;  %v12347_v41 = vrot.slane %v17913_v39, %v18358_v17  ;;  %v19314_v45 = vld [vmem:[%s19386_s7 + $0xf8] sm:$0xff] }
0x2d43   : > { %14039 = vmatprep.subr.bf16.mxu1 %v17716_v33  ;;  %14080 = vmatprep.subr.bf16.mxu0 %v17719_v51  ;;  %v12355_v33 = vrot.slane %v19314_v45, %v18358_v17  ;;  %v17786_v51 = vld [vmem:[#allocation8 + $0xee0] ss:$8 sps:$4 sm:$0xff]   ;;  %v17795_v17 = vld [vmem:[#allocation8 + $0xff0] ss:$8 sps:$4 sm:$0xff]  }
0x2d46   : > { %14040 = vmatpush1.bf16.msra.mxu1 %v17714_v23  ;;  %14081 = vmatpush1.bf16.msra.mxu0 %v17717_v15  ;;  %v17789_v23 = vld [vmem:[#allocation8 + $0xfe0] ss:$8 sps:$4 sm:$0xff]   ;;  %v17794_v15 = vld [vmem:[#allocation8 + $0xef4] ss:$8 sps:$4 sm:$0xff]  }
0x2d47   : > { %14041 = vmatprep.subr.bf16.mxu1 %v17722_v5  ;;  %14082 = vmatprep.subr.bf16.mxu0 %v17725_v48  ;;  %v17797_v5 = vld [vmem:[#allocation8 + $0xff4] ss:$8 sps:$4 sm:$0xff]  }
0x2d4a   : > { %14042 = vmatpush1.bf16.msra.mxu1 %v17720_v40  ;;  %14083 = vmatpush1.bf16.msra.mxu0 %v17723_v0 }
0x2d4b   : > { %14043 = vmatprep.subr.bf16.mxu1 %v17728_v20  ;;  %14084 = vmatprep.subr.bf16.mxu0 %v17731_v54 }
0x2d4e   : > { %14044 = vmatpush1.bf16.msra.mxu1 %v17726_v57  ;;  %14085 = vmatpush1.bf16.msra.mxu0 %v17729_v58 }
0x2d4f   : > { %14045 = vmatprep.subr.bf16.mxu1 %v17734_v59  ;;  %14086 = vmatprep.subr.bf16.mxu0 %v17737_v29 }
0x2d52   : > { %14046 = vmatpush1.bf16.msra.mxu1 %v17732_v4  ;;  %14087 = vmatpush1.bf16.msra.mxu0 %v17735_v44  ;;  %v17792_v44 = vld [vmem:[#allocation8 + $0xef0] ss:$8 sps:$4 sm:$0xff]  }
0x2d53   : > { %14047 = vmatprep.subr.bf16.mxu1 %v17740_v12  ;;  %14088 = vmatprep.subr.bf16.mxu0 %v17743_v11 }
0x2d56   : > { %14048 = vmatpush1.bf16.msra.mxu1 %v17738_v47  ;;  %14089 = vmatpush1.bf16.msra.mxu0 %v17741_v53 }
0x2d57   : > { %14049 = vmatprep.subr.bf16.mxu1 %v17746_v50  ;;  %14090 = vmatprep.subr.bf16.mxu0 %v17749_v7 }
0x2d5a   : > { %14050 = vmatpush1.bf16.msra.mxu1 %v17744_v61  ;;  %14091 = vmatpush1.bf16.msra.mxu0 %v17747_v55 }
0x2d5b   : > { %14051 = vmatprep.subr.bf16.mxu1 %v17752_v8  ;;  %14092 = vmatprep.subr.bf16.mxu0 %v17755_v2 }
0x2d5e   : > { %14052 = vmatpush1.bf16.msra.mxu1 %v17750_v63  ;;  %14093 = vmatpush1.bf16.msra.mxu0 %v17753_v49  ;;  %v13308_v63 = vrot.slane %v19277_v43, %v18541_v9  ;;  %v13312_v49 = vrot.slane %v19288_v10, %v18541_v9 }
0x2d5f   : > { %14053 = vmatprep.subr.bf16.mxu1 %v17758_v46  ;;  %14094 = vmatprep.subr.bf16.mxu0 %v17761_v18 }
0x2d62   : > { %14054 = vmatpush1.bf16.msra.mxu1 %v17756_v22  ;;  %14095 = vmatpush1.bf16.msra.mxu0 %v17759_v52 }
0x2d63   : > { %14055 = vmatprep.subr.bf16.mxu1 %v17764_v1  ;;  %14096 = vmatprep.subr.bf16.mxu0 %v17767_v42 }
0x2d66   : > { %14056 = vmatpush1.bf16.msra.mxu1 %v17762_v14  ;;  %14097 = vmatpush1.bf16.msra.mxu0 %v17765_v34 }
0x2d67   : > { %14057 = vmatprep.subr.bf16.mxu1 %v17770_v60  ;;  %14098 = vmatprep.subr.bf16.mxu0 %v17773_v37 }
0x2d6a   : > { %14058 = vmatpush1.bf16.msra.mxu1 %v17768_v19  ;;  %14099 = vmatpush1.bf16.msra.mxu0 %v17771_v16 }
0x2d6b   : > { %14059 = vmatprep.subr.bf16.mxu1 %v17776_v25  ;;  %14100 = vmatprep.subr.bf16.mxu0 %v17779_v21 }
0x2d6e   : > { %14060 = vmatpush1.bf16.msra.mxu1 %v17774_v26  ;;  %14101 = vmatpush1.bf16.msra.mxu0 %v17777_v27 }
0x2d6f   : > { %14061 = vmatprep.subr.bf16.mxu1 %v17782_v28  ;;  %14102 = vmatprep.subr.bf16.mxu0 %v17785_v36 }
0x2d72   : > { %14062 = vmatpush1.bf16.msra.mxu1 %v17780_v3  ;;  %14103 = vmatpush1.bf16.msra.mxu0 %v17783_v31 }
0x2d73   : > { %14063 = vmatprep.subr.bf16.mxu1 %v17788_v13  ;;  %14104 = vmatprep.subr.bf16.mxu0 %v17791_v30 }
0x2d74   : > { %v13112_v48 = vpop.f32.mrb[176].mxu1  ;;  %v13153_v40 = vpop.f32.mrb[120].mxu0 }
0x2d75   : > { %v13113_v0 = vadd.f32 %v13112_v48, %v12343_v32  ;;  %v13154_v20 = vadd.f32 %v13153_v40, %v12351_v24  ;;  %v13114_v54 = vpop.f32.mrb[177].mxu1  ;;  %v13155_v57 = vpop.f32.mrb[121].mxu0 }
0x2d76   : > { %v13115_v58 = vadd.f32 %v13114_v54, %v12347_v41  ;;  %v13156_v59 = vadd.f32 %v13155_v57, %v12355_v33  ;;  %v13116_v29 = vpop.f32.mrb[178].mxu1  ;;  %v13157_v4 = vpop.f32.mrb[122].mxu0  ;;  %14064 = vmatpush1.bf16.msra.mxu1 %v17786_v51  ;;  %14105 = vmatpush1.bf16.msra.mxu0 %v17789_v23 }
0x2d77   : > { %v13164_v12 = vmax.f32 %v13113_v0, 0.0  ;;  %v13166_v11 = vmax.f32 %v13154_v20, 0.0  ;;  %v13117_v47 = vpop.f32.mrb[179].mxu1  ;;  %v13158_v53 = vpop.f32.mrb[123].mxu0  ;;  %14065 = vmatprep.subr.bf16.mxu1 %v17794_v15  ;;  %14106 = vmatprep.subr.bf16.mxu0 %v17797_v5 }
0x2d78   : > { %v13165_v50 = vmax.f32 %v13115_v58, 0.0  ;;  %v13167_v7 = vmax.f32 %v13156_v59, 0.0  ;;  %v14148_v58 = vrot.slane %v19277_v43, %v18626_v35  ;;  %v14152_v59 = vrot.slane %v19288_v10, %v18626_v35 }
0x2d79   : > { %v13172_v8 = vpack.c.bf16 %v13164_v12, %v13164_v12  ;;  %v13174_v2 = vpack.c.bf16 %v13166_v11, %v13166_v11 }
0x2d7a   : > { %v13173_v61 = vpack.c.bf16 %v13165_v50, %v13165_v50  ;;  %v13175_v55 = vpack.c.bf16 %v13167_v7, %v13167_v7  ;;  %14066 = vmatpush1.bf16.msra.mxu1 %v17792_v44  ;;  %14107 = vmatpush1.bf16.msra.mxu0 %v17795_v17 }
0x2d7c   : > { %14067 = vmatprep.mubr.bf16.mxu1 %v13173_v61  ;;  %14108 = vmatprep.mubr.bf16.mxu0 %v13175_v55 }
0x2d7d   : > { %14068 = vmatmul.mubr.bf16.vlgmr.msra.gmra.mrb[184].mxu1 %v13172_v8  ;;  %14109 = vmatmul.mubr.bf16.vlgmr.msra.gmra.mrb[128].mxu0 %v13174_v2 }
0x2e10   : > { %v13987_v46 = vpop.f32.mrb[180].mxu1  ;;  %v14028_v18 = vpop.f32.mrb[124].mxu0 }
0x2e11   : > { %v13988_v22 = vadd.f32 %v13987_v46, %v13308_v63  ;;  %v13989_v52 = vpop.f32.mrb[181].mxu1  ;;  %v14030_v1 = vpop.f32.mrb[125].mxu0 }
0x2e12   : > { %v13990_v42 = vadd.f32 %v13989_v52, %v13312_v49  ;;  %v13991_v14 = vpop.f32.mrb[182].mxu1  ;;  %v14032_v34 = vpop.f32.mrb[126].mxu0 }
0x2e13   : > { %v14029_v60 = vadd.f32 %v14028_v18, %v13988_v22  ;;  %v13992_v37 = vpop.f32.mrb[183].mxu1  ;;  %v14033_v19 = vpop.f32.mrb[127].mxu0 }
0x2e14   : > { %v14031_v16 = vadd.f32 %v14030_v1, %v13990_v42 }
0x2e50   : > { %v14069_v25 = vpop.f32.mrb[184].mxu1  ;;  %v14110_v21 = vpop.f32.mrb[128].mxu0 }
0x2e51   : > { %v14070_v26 = vadd.f32 %v14069_v25, %v14029_v60  ;;  %v14071_v27 = vpop.f32.mrb[185].mxu1  ;;  %v14112_v28 = vpop.f32.mrb[129].mxu0 }
0x2e52   : > { %v14072_v36 = vadd.f32 %v14071_v27, %v14031_v16  ;;  %v14073_v3 = vpop.f32.mrb[186].mxu1  ;;  %v14114_v31 = vpop.f32.mrb[130].mxu0 }
0x2e53   : > { %v14111_v13 = vadd.f32 %v14110_v21, %v14070_v26  ;;  %v14074_v30 = vpop.f32.mrb[187].mxu1  ;;  %v14115_v38 = vpop.f32.mrb[131].mxu0 }
0x2e54   : > { %v14113_v32 = vadd.f32 %v14112_v28, %v14072_v36 }
0x2e55   : > { %v14117_v24 = vadd.f32 %v14111_v13, %v19262_v56  ;;  %v14142_v56 = vrot.slane %v19314_v45, %v18541_v9 }
0x2e56   : > { %v14118_v39 = vadd.f32 %v14113_v32, %v19260_v62  ;;  %v14138_v62 = vrot.slane %v19303_v6, %v18541_v9 }
0x2e58   : > { %v14119_v41 = vadd.f32 %v14118_v39, %v14117_v24 }
0x2e5a   : > { %14120 = vadd.xlane.f32.xlu0 %v14119_v41 }
0x2ee7   : > { %v14121_v33 = vpop.xlane.xlu0 %14120 }
0x2ee8   : > { %v14122_v51 = vmul.f32 0.00390625, %v14121_v33 }
0x2eea   : > { %v14123_v23 = vsub.f32 %v14117_v24, %v14122_v51  ;;  %v14124_v15 = vsub.f32 %v14118_v39, %v14122_v51 }
0x2eec   : > { %v14125_v5 = vmul.f32 %v14123_v23, %v14123_v23  ;;  %v14126_v48 = vmul.f32 %v14124_v15, %v14124_v15 }
0x2eee   : > { %v14127_v40 = vadd.f32 %v14126_v48, %v14125_v5 }
0x2ef0   : > { %14128 = vadd.xlane.f32.xlu0 %v14127_v40 }
0x2f7d   : > { %v14129_v0 = vpop.xlane.xlu0 %14128 }
0x2f7e   : > { %v14130_v20 = vmul.f32 0.00390625, %v14129_v0 }
0x2f80   : > { %v14131_v54 = vadd.f32 1e-05, %v14130_v20 }
0x2f82   : > { %17878 = vrsqrt.f32 %v14131_v54 }
0x2f8c   : > { %v17879_v57 = vpop.eup %17878 }
0x2f8d   : > { %v14133_v29 = vmul.f32 %v17879_v57, %v14123_v23  ;;  %v14134_v4 = vmul.f32 %v17879_v57, %v14124_v15 }
0x2f8f   : > { %v14143_v44 = vmul.f32 %v14138_v62, %v14133_v29  ;;  %v14144_v17 = vmul.f32 %v14142_v56, %v14134_v4 }
0x2f91   : > { %v14153_v12 = vadd.f32 %v14148_v58, %v14143_v44  ;;  %v14154_v6 = vadd.f32 %v14152_v59, %v14144_v17 }
0x2f93   : > { %14155 = vst [vmem:[%s368_s29] sm:$0xff] %v14153_v12  ;;  %14156 = vst [vmem:[%s368_s29 + $0x8] sm:$0xff] %v14154_v6 }
0x2f94   : > { %18040 = shalt.err (!%p18037_p0)
}
0x2f95   : > { %s18041_s10 = scalar_lea.hbm %s19337_s13, 256  ;;  %s18045_s12 = scalar_lea.hbm %s19387_s8, 512 }
0x2f96   : > { %p18042_p6 = scmp.ne.s32.totalorder %s19337_s13, %s18041_s10  ;;  %p18046_p13 = scmp.lt.u32.totalorder %s19337_s13, %s19387_s8 }
0x2f97   : > { %p18047_p12 = scmp.lt.u32.totalorder %s18045_s12, %s18041_s10  ;;  %p18049_p2 = scmp.lt.u32.totalorder %s18041_s10, %s19337_s13 }
0x2f98   : > { %p18043_p9 = pnand %p18042_p6, %p19415_p3 }
0x2f99   : > { %p18048_p1 = por %p18047_p12, %p18046_p13 }
0x2f9a   : > { %p18044_p10 = pneg %p18043_p9 }
0x2f9b   : > { %p18050_p4 = por %p18049_p2, %p18048_p1 }
0x2f9d   : > { %p18051_p7 = pnand %p18050_p4, %p18044_p10 }
0x2f9f   : > { %18054 = shalt.err (!%p18051_p7)
}
0x2fa0   : > { %16169 = dma.vmem_to_hbm [thread:$0]  (%p19415_p3), %s19339_s11, 256, %s19337_s13, %s14158_s18  }
0x2fa1 PF: > { %p16196_p8 = scmp.ge.s32.totalorder %s18101_s30, 2  ;;  %s14184_s20 = sand.u32 1, %s18089_s27  }
0x2fa2   : > { %p19416_p11 = scmp.ne.s32.totalorder %s19401_s16, 0  ;;  %s14185_s17 = scalar_lea.sflag [#allocation4], %s14184_s20 }
0x2fa4   : > { %p16185_p5 = pnand %p16196_p8, %p19416_p11 }
0x2fa6   : > { %18084 = dma.done.wait (!%p16185_p5), %s14185_s17, 256  }
0x2fa7   : > { %18086 = vsyncadd (!%p16185_p5), %s14185_s17, 4294967040  ;;  %s19417_s30 = sld [smem:[#allocation16_spill]]  ;;  %s19418_s29 = sld [smem:[#allocation15_spill]] }
0x2fa8   : > { %s19419_s25 = sld [smem:[#allocation17_spill]]  ;;  %s19420_s27 = smov %s18093_s28 }
0x2fad   : > { %p21_p0 = scmp.ge.s32.totalorder %s19417_s30, 4   ;;  %s19421_s28 = smov %s19418_s29 }
0x2fae   : > { %s19422_s29 = smov %s19419_s25 }
0x2faf   :  { %23 = sbr.rel (!%p21_p0) target bundleno = 8 (0x8), region = 123 }
0x2fb6   :  { %14190 = vsyncpa [#allocation3], 1 }
0x2fb7   :  { %14192 = vsyncpa [#allocation3 + $0x1], 1 }
0x2fb8   :  { %14193 = vsyncpa [#allocation6], 1 }
0x2fb9   :  { %14194 = vsyncpa [#allocation9], 1 }
0x2fba   :  { %14195 = vsyncpa [#allocation4], 1 }
0x2fbb   :  { %14197 = vsyncpa [#allocation4 + $0x1], 1 }

</bundles_post_ra>
